<compile_context>
chip_gen: v7x
topology: tpu7x:2x2x1
jax: 0.10.0
libtpu: 0.0.40
codegen_flags: <defaults>
</compile_context>

<pallas_src>
import functools
import math

import jax
import jax.numpy as jnp
from jax.experimental import pallas as pl
from jax.experimental.pallas import tpu as pltpu

BN_EPS = 1e-5
LANE = 128                 # Cout padding multiple (lane-dense output / MXU N)
SUBLANE = 8
MAX_TM = 128               # flattened-spatial tile (keeps f32 acc <= 128 KiB)
_NEG = float(jnp.finfo(jnp.bfloat16).min)   # "-inf" surrogate for maxpool padding


def _round_up(x, m):
    return (x + m - 1) // m * m


@functools.lru_cache(maxsize=None)
def _vmem_limit_bytes():
    """Generation-dependent scoped-VMEM budget (raise above 32 MiB on 128-MiB chips)."""
    limit = 32 << 20                     # proven-safe fallback (all generations)
    try:
        cap = int(pltpu.get_tpu_info().vmem_capacity_bytes)
        if cap >= (128 << 20):           # v4/v5e/v6e: 128 MiB physical
            limit = 64 << 20
        else:                            # v7x (64 MiB) or smaller
            limit = min(32 << 20, max(cap // 2, 16 << 20))
    except Exception:
        pass
    return limit


def _compiler_params(n_axes):
    return pltpu.CompilerParams(
        dimension_semantics=("parallel",) * n_axes,
        vmem_limit_bytes=_vmem_limit_bytes())


# ----------------------------- Pallas kernels ------------------------------

def _m_base(axis, tm, multi):
    if multi:
        return pl.multiple_of(pl.program_id(axis) * tm, tm)
    return 0  # single M tile -> fully static slicing


def _conv_bn_kernel(x_ref, w_ref, scale_ref, bias_ref, o_ref,
                    *, taps, tm, relu, multi_m):
    """Direct conv = per-tap MXU matmuls with f32 accumulation, fused BN (+ReLU).

    x_ref:     (1, ss, Lin, Cin_p) bf16  phase-split, flattened, zero-padded image
    w_ref:     (kh*kw, Cin_p, tCo) bf16  one weight slab per tap
    scale_ref: (1, tCo) f32              folded BN scale
    bias_ref:  (1, tCo) f32              folded BN bias
    o_ref:     (1, tm, tCo) bf16
    """
    m0 = _m_base(2, tm, multi_m)
    phase0, shift0 = taps[0]
    acc = jnp.dot(x_ref[0, phase0, pl.ds(m0 + shift0, tm), :], w_ref[0],
                  preferred_element_type=jnp.float32)
    for t in range(1, len(taps)):
        phase, shift = taps[t]
        acc = acc + jnp.dot(x_ref[0, phase, pl.ds(m0 + shift, tm), :], w_ref[t],
                            preferred_element_type=jnp.float32)
    y = acc * scale_ref[...] + bias_ref[...]
    if relu:
        y = jnp.maximum(y, 0.0)
    o_ref[0] = y.astype(o_ref.dtype)


def _conv_bn_res_kernel(x_ref, w_ref, scale_ref, bias_ref, r_ref, o_ref,
                        *, taps, tm, relu, multi_m):
    """BasicBlock tail: conv2 + BN2 + residual add (+ReLU), fully fused."""
    m0 = _m_base(2, tm, multi_m)
    phase0, shift0 = taps[0]
    acc = jnp.dot(x_ref[0, phase0, pl.ds(m0 + shift0, tm), :], w_ref[0],
                  preferred_element_type=jnp.float32)
    for t in range(1, len(taps)):
        phase, shift = taps[t]
        acc = acc + jnp.dot(x_ref[0, phase, pl.ds(m0 + shift, tm), :], w_ref[t],
                            preferred_element_type=jnp.float32)
    y = acc * scale_ref[...] + bias_ref[...] + r_ref[0].astype(jnp.float32)
    if relu:
        y = jnp.maximum(y, 0.0)
    o_ref[0] = y.astype(o_ref.dtype)


def _stem_kernel(x_ref, w_ref, scale_ref, bias_ref, o_ref, *, relu):
    """7x7 stem as ONE K-folded matmul (K = kh*kw*cin padded to 256) + BN (+ReLU).

    x_ref: (1, tm, Kp) bf16 im2col patches;  w_ref: (Kp, tCo) bf16.
    """
    y = jnp.dot(x_ref[0], w_ref[...], preferred_element_type=jnp.float32)
    y = y * scale_ref[...] + bias_ref[...]
    if relu:
        y = jnp.maximum(y, 0.0)
    o_ref[0] = y.astype(o_ref.dtype)


def _maxpool_kernel(x_ref, o_ref, *, taps, tm, multi_m):
    """3x3/s2 max pool as an in-kernel window-max over shifted flattened views."""
    m0 = _m_base(1, tm, multi_m)
    phase0, shift0 = taps[0]
    r = x_ref[0, phase0, pl.ds(m0 + shift0, tm), :]
    for phase, shift in taps[1:]:
        r = jnp.maximum(r, x_ref[0, phase, pl.ds(m0 + shift, tm), :])
    o_ref[0] = r


# --------------------------- layout preparation -----------------------------
# "Flat activations" are dicts {flat: (N, mp, C_p) bf16, ho, wo, wq} kept between
# ops so no NHWC round trip is materialized per conv.

def _flat_to_image(act):
    """Flat act -> (N, ho, wo, C_p) valid NHWC view (lazy XLA slice/reshape)."""
    n, _, cp = act["flat"].shape
    ho, wo, wq = act["ho"], act["wo"], act["wq"]
    return act["flat"][:, :ho * wq, :].reshape(n, ho, wq, cp)[:, :, :wo, :]


def _lower_spatial(img, k, s, p, pad_value, extra_cols=0):
    """(N,H,W,C) -> stride-free flattened tap layout.

    Returns x_flat (N, phases, hq*wq, C), taps [(phase, flat_shift)], ho, wo, wq.
    For output flat position m = oh*wq + ow (ow < wo valid), tap (i,j) reads
    x_flat[phase(i,j), m + shift(i,j)] == padded_img[oh*s + i, ow*s + j].
    Columns ow in [wo, wq) are garbage and are sliced off by the consumer.
    extra_cols forces wq >= wo + extra_cols (to match a residual consumer's layout).
    """
    n, h, w, c = img.shape
    ho = (h + 2 * p - k) // s + 1
    wo = (w + 2 * p - k) // s + 1
    amax = (k - 1) // s
    hq = ho + amax
    wq = wo + max(amax, extra_cols)
    pad_b = max(s * hq - (h + p), 0)
    pad_r = max(s * wq - (w + p), 0)
    xp = jnp.pad(img, ((0, 0), (p, pad_b), (p, pad_r), (0, 0)),
                 constant_values=pad_value)
    xp = xp[:, :s * hq, :s * wq, :]
    xr = xp.reshape(n, hq, s, wq, s, c).transpose(0, 2, 4, 1, 3, 5)
    x_flat = xr.reshape(n, s * s, hq * wq, c)
    taps = tuple(((i % s) * s + (j % s), (i // s) * wq + (j // s))
                 for i in range(k) for j in range(k))
    if k == 1:
        x_flat = x_flat[:, :1]          # 1x1 conv only reads phase 0: 4x less DMA
    return x_flat, taps, ho, wo, wq


def _flat_geometry(m_out, taps, x_len):
    tm = min(MAX_TM, _round_up(m_out, SUBLANE))
    mp = _round_up(m_out, tm)
    max_shift = max(sh for _, sh in taps)
    lin = _round_up(max(mp + max_shift, x_len), SUBLANE)
    return tm, mp, lin


def _pick_tco(cout_p):
    # Full 256-wide N on v6e/v7x MXUs for wide layers; 128 otherwise.
    return 256 if cout_p >= 256 else min(LANE, cout_p)


# ------------------------------- conv / pool --------------------------------

def conv_bn(act, p, *, k, stride, pad, relu, residual=None, extra_cols=0):
    """Conv2d(k,stride,pad,bias=False) + folded BN (+residual) (+ReLU) on a flat act."""
    img = _flat_to_image(act)
    n = img.shape[0]
    kk, cin_p, cout_p = p["w"].shape
    assert kk == k * k and cin_p == img.shape[-1]
    x_flat, taps, ho, wo, wq = _lower_spatial(img, k, stride, pad, 0.0, extra_cols)
    m_out = ho * wq
    tm, mp, lin = _flat_geometry(m_out, taps, x_flat.shape[2])
    x_flat = jnp.pad(x_flat, ((0, 0), (0, 0), (0, lin - x_flat.shape[2]), (0, 0)))
    ss = x_flat.shape[1]
    tco = _pick_tco(cout_p)
    n_m, n_co = mp // tm, cout_p // tco
    # M innermost: weight/scale/bias block indices are constant over the inner loop.
    grid = (n, n_co, n_m)

    in_specs = [
        # Whole per-image flattened activation; its block index depends only on n, so
        # the pipeliner fetches it once per image and reuses it across Cout/M tiles.
        pl.BlockSpec((1, ss, lin, cin_p), lambda nn, cc, mm: (nn, 0, 0, 0)),
        pl.BlockSpec((kk, cin_p, tco), lambda nn, cc, mm: (0, 0, cc)),
        pl.BlockSpec((1, tco), lambda nn, cc, mm: (0, cc)),
        pl.BlockSpec((1, tco), lambda nn, cc, mm: (0, cc)),
    ]
    args = [x_flat, p["w"], p["scale"], p["bias"]]

    if residual is not None:
        assert (residual["ho"], residual["wo"], residual["wq"]) == (ho, wo, wq)
        r = residual["flat"]
        assert r.shape == (n, mp, cout_p)
        in_specs.append(pl.BlockSpec((1, tm, tco), lambda nn, cc, mm: (nn, mm, cc)))
        args.append(r)
        kernel = functools.partial(_conv_bn_res_kernel, taps=taps, tm=tm,
                                   relu=relu, multi_m=n_m > 1)
    else:
        kernel = functools.partial(_conv_bn_kernel, taps=taps, tm=tm,
                                   relu=relu, multi_m=n_m > 1)

    out = pl.pallas_call(
        kernel,
        out_shape=jax.ShapeDtypeStruct((n, mp, cout_p), jnp.bfloat16),
        grid=grid,
        in_specs=in_specs,
        out_specs=pl.BlockSpec((1, tm, tco), lambda nn, cc, mm: (nn, mm, cc)),
        compiler_params=_compiler_params(3),
    )(*args)
    return {"flat": out, "ho": ho, "wo": wo, "wq": wq}


def stem_conv_bn_relu(x_nhwc, p):
    """7x7/s2/p3 conv + BN + ReLU via a K-folded im2col (one big-K matmul per tile)."""
    n, h, w, cin = x_nhwc.shape
    k, s, pad = 7, 2, 3
    ho = (h + 2 * pad - k) // s + 1
    wo = (w + 2 * pad - k) // s + 1
    xp = jnp.pad(x_nhwc, ((0, 0), (pad, pad), (pad, pad), (0, 0)))
    cols = [xp[:, i:i + s * ho:s, j:j + s * wo:s, :]
            for i in range(k) for j in range(k)]
    patches = jnp.concatenate(cols, axis=-1).reshape(n, ho * wo, k * k * cin)

    kdim_p, cout_p = p["w"].shape
    m_out = ho * wo
    tm = min(MAX_TM, _round_up(m_out, SUBLANE))
    mp = _round_up(m_out, tm)
    patches = jnp.pad(patches, ((0, 0), (0, mp - m_out),
                                (0, kdim_p - k * k * cin))).astype(jnp.bfloat16)
    tco = _pick_tco(cout_p)
    n_m, n_co = mp // tm, cout_p // tco

    out = pl.pallas_call(
        functools.partial(_stem_kernel, relu=True),
        out_shape=jax.ShapeDtypeStruct((n, mp, cout_p), jnp.bfloat16),
        grid=(n, n_co, n_m),
        in_specs=[
            pl.BlockSpec((1, tm, kdim_p), lambda nn, cc, mm: (nn, mm, 0)),
            pl.BlockSpec((kdim_p, tco), lambda nn, cc, mm: (0, cc)),
            pl.BlockSpec((1, tco), lambda nn, cc, mm: (0, cc)),
            pl.BlockSpec((1, tco), lambda nn, cc, mm: (0, cc)),
        ],
        out_specs=pl.BlockSpec((1, tm, tco), lambda nn, cc, mm: (nn, mm, cc)),
        compiler_params=_compiler_params(3),
    )(patches, p["w"], p["scale"], p["bias"])
    # Exact im2col -> zero garbage columns in the stem output (wq == wo).
    return {"flat": out, "ho": ho, "wo": wo, "wq": wo}


def maxpool_3x3_s2_p1(act, extra_cols=0):
    """MaxPool2d(kernel=3, stride=2, padding=1) on a flat activation."""
    img = _flat_to_image(act)
    n, _, _, c = img.shape
    x_flat, taps, ho, wo, wq = _lower_spatial(img, 3, 2, 1, _NEG, extra_cols)
    m_out = ho * wq
    tm, mp, lin = _flat_geometry(m_out, taps, x_flat.shape[2])
    x_flat = jnp.pad(x_flat, ((0, 0), (0, 0), (0, lin - x_flat.shape[2]), (0, 0)),
                     constant_values=_NEG)
    ss = x_flat.shape[1]
    n_m = mp // tm
    out = pl.pallas_call(
        functools.partial(_maxpool_kernel, taps=taps, tm=tm, multi_m=n_m > 1),
        out_shape=jax.ShapeDtypeStruct((n, mp, c), img.dtype),
        grid=(n, n_m),
        in_specs=[pl.BlockSpec((1, ss, lin, c), lambda nn, mm: (nn, 0, 0, 0))],
        out_specs=pl.BlockSpec((1, tm, c), lambda nn, mm: (nn, mm, 0)),
        compiler_params=_compiler_params(2),
    )(x_flat)
    return {"flat": out, "ho": ho, "wo": wo, "wq": wq}


# ------------------------- parameter construction ---------------------------

def _fold_bn(kg, kb, km, kv, cout):
    gamma = 1.0 + 0.1 * jax.random.normal(kg, (cout,), jnp.float32)
    beta = 0.1 * jax.random.normal(kb, (cout,), jnp.float32)
    mean = 0.1 * jax.random.normal(km, (cout,), jnp.float32)
    var = 0.9 + 0.2 * jax.random.uniform(kv, (cout,), jnp.float32)
    scale = gamma / jnp.sqrt(var + BN_EPS)
    bias = beta - mean * scale
    return scale, bias


def _init_conv_bn(key, k, cin, cout, cin_p, cout_p):
    kw_, kg, kb, km, kv = jax.random.split(key, 5)
    fan_in = k * k * cin
    w = jax.random.normal(kw_, (k, k, cin, cout), jnp.float32) / math.sqrt(fan_in)
    scale, bias = _fold_bn(kg, kb, km, kv, cout)
    # Pad Cin/Cout with zeros so channel-padded activations stay exactly 0.
    w_p = jnp.zeros((k, k, cin_p, cout_p), jnp.float32).at[:, :, :cin, :cout].set(w)
    scale_p = jnp.zeros((1, cout_p), jnp.float32).at[0, :cout].set(scale)
    bias_p = jnp.zeros((1, cout_p), jnp.float32).at[0, :cout].set(bias)
    return {"w": w_p.reshape(k * k, cin_p, cout_p).astype(jnp.bfloat16),
            "scale": scale_p, "bias": bias_p}


def _init_stem(key, k, cin, cout, cout_p):
    kw_, kg, kb, km, kv = jax.random.split(key, 5)
    fan_in = k * k * cin
    w = jax.random.normal(kw_, (k, k, cin, cout), jnp.float32) / math.sqrt(fan_in)
    scale, bias = _fold_bn(kg, kb, km, kv, cout)
    kdim = k * k * cin
    kdim_p = _round_up(kdim, LANE)
    # K-folded layout (Kp, Cout_p): row order (i, j, cin) matches the im2col concat.
    w_p = (jnp.zeros((kdim_p, cout_p), jnp.float32)
           .at[:kdim, :cout].set(w.reshape(kdim, cout)))
    scale_p = jnp.zeros((1, cout_p), jnp.float32).at[0, :cout].set(scale)
    bias_p = jnp.zeros((1, cout_p), jnp.float32).at[0, :cout].set(bias)
    return {"w": w_p.astype(jnp.bfloat16), "scale": scale_p, "bias": bias_p}


def init_resnet_encoder_params(key, num_input_channels=4, base=16):
    """Reduced ResNet18 (BasicBlock, 2 blocks/stage, widths base*[1,2,4,8])."""
    widths = [base, base * 2, base * 4, base * 8]
    params = {}
    key, k0 = jax.random.split(key)
    params["conv1"] = _init_stem(k0, 7, num_input_channels, widths[0],
                                 _round_up(widths[0], LANE))
    in_c = widths[0]
    act_cp = _round_up(widths[0], LANE)
    for li, out_c in enumerate(widths):
        out_cp = _round_up(out_c, LANE)
        blocks = []
        for bi in range(2):
            stride = 2 if (li > 0 and bi == 0) else 1
            key, k1, k2, k3 = jax.random.split(key, 4)
            block = {
                "conv1": _init_conv_bn(k1, 3, in_c, out_c, act_cp, out_cp),
                "conv2": _init_conv_bn(k2, 3, out_c, out_c, out_cp, out_cp),
            }
            if stride != 1 or in_c != out_c:
                block["down"] = _init_conv_bn(k3, 1, in_c, out_c, act_cp, out_cp)
            blocks.append(block)
            in_c = out_c
            act_cp = out_cp
        params[f"layer{li + 1}"] = blocks
    return params


# ------------------------------ forward pass --------------------------------

def resnet_encoder_forward(params, x_nchw, *, widths):
    """Matches ResNetEncoder.forward: returns [act1, act2, act3, act4] (NCHW, f32)."""
    x_nhwc = jnp.transpose(x_nchw, (0, 2, 3, 1)).astype(jnp.bfloat16)
    # encoder0 = conv1(7x7/s2) + bn1 + relu + maxpool(3x3/s2)
    act = stem_conv_bn_relu(x_nhwc, params["conv1"])
    # extra_cols=2 puts the pooled act in layer1-conv2's flat geometry so it can be
    # consumed as a residual with no wrapper-side re-layout.
    act = maxpool_3x3_s2_p1(act, extra_cols=2)
    acts = []
    for li in range(4):
        for bi, blk in enumerate(params[f"layer{li + 1}"]):
            stride = 2 if (li > 0 and bi == 0) else 1
            identity = act
            out = conv_bn(act, blk["conv1"], k=3, stride=stride, pad=1, relu=True)
            if "down" in blk:
                # Downsample emits conv2's output flat geometry (extra_cols=2) so the
                # fused residual add reads it directly.
                identity = conv_bn(act, blk["down"], k=1, stride=stride, pad=0,
                                   relu=False, extra_cols=2)
            act = conv_bn(out, blk["conv2"], k=3, stride=1, pad=1, relu=True,
                          residual=identity)
        # Strip flat/garbage/channel padding only for the returned activations.
        img = _flat_to_image(act)[..., :widths[li]]
        acts.append(jnp.transpose(img, (0, 3, 1, 2)).astype(jnp.float32))
    return acts


if __name__ == "__main__":
    key = jax.random.PRNGKey(0)
    kx, kp = jax.random.split(key)
    # small shapes: batch=2, 4 input channels, 16x16 spatial, base width 16
    x = jax.random.normal(kx, (2, 4, 16, 16), jnp.float32)  # NCHW
    params = init_resnet_encoder_params(kp, num_input_channels=4, base=16)
    widths = (16, 32, 64, 128)

    fwd = jax.jit(functools.partial(resnet_encoder_forward, widths=widths))
    acts = jax.block_until_ready(fwd(params, x))

    expected = [(2, 16, 4, 4), (2, 32, 2, 2), (2, 64, 1, 1), (2, 128, 1, 1)]
    got = [tuple(a.shape) for a in acts]
    assert got == expected, f"shape mismatch: {got} vs {expected}"
    assert all(bool(jnp.all(jnp.isfinite(a))) for a in acts)
    print("KERNEL_OK")
</pallas_src>

<mosaic_0001>
module attributes {stable_mosaic.version = 11 : i64} {
  func.func @_stem_kernel(%arg0: i32, %arg1: i32, %arg2: i32, %arg3: memref<1x64x256xbf16, #tpu.memory_space<vmem>>, %arg4: memref<256x128xbf16, #tpu.memory_space<vmem>>, %arg5: memref<1x128xf32, #tpu.memory_space<vmem>>, %arg6: memref<1x128xf32, #tpu.memory_space<vmem>>, %arg7: memref<1x64x128xbf16, #tpu.memory_space<vmem>>) attributes {dimension_semantics = [#tpu.dimension_semantics<parallel>, #tpu.dimension_semantics<parallel>, #tpu.dimension_semantics<parallel>], iteration_bounds = array<i64: 2, 1, 1>, scalar_prefetch = 0 : i64, scratch_operands = 0 : i64, tpu.core_type = #tpu.core_type<tc>, window_params = [{transform_indices = @transform_0, window_bounds = array<i64: 1, 64, 256>}, {transform_indices = @transform_1, window_bounds = array<i64: 256, 128>}, {transform_indices = @transform_2, window_bounds = array<i64: 1, 128>}, {transform_indices = @transform_3, window_bounds = array<i64: 1, 128>}, {transform_indices = @transform_4, window_bounds = array<i64: 1, 64, 128>}]} {
    %c0 = arith.constant 0 : index
    %c0_0 = arith.constant 0 : index
    %c0_1 = arith.constant 0 : index
    %0 = vector.load %arg3[%c0, %c0_0, %c0_1] : memref<1x64x256xbf16, #tpu.memory_space<vmem>>, vector<1x64x256xbf16>
    %1 = vector.shape_cast %0 : vector<1x64x256xbf16> to vector<64x256xbf16>
    %c0_2 = arith.constant 0 : index
    %c0_3 = arith.constant 0 : index
    %2 = vector.load %arg4[%c0_2, %c0_3] : memref<256x128xbf16, #tpu.memory_space<vmem>>, vector<256x128xbf16>
    %cst = arith.constant dense<0.000000e+00> : vector<64x128xf32>
    %3 = tpu.matmul %1, %2, %cst {dimension_numbers = #tpu.dot_dimension_numbers<[1], [0], [0], [1], [0, 0, 1, 1], [], []>} : vector<64x256xbf16>, vector<256x128xbf16>, vector<64x128xf32> -> vector<64x128xf32>
    %c0_4 = arith.constant 0 : index
    %c0_5 = arith.constant 0 : index
    %4 = vector.load %arg5[%c0_4, %c0_5] : memref<1x128xf32, #tpu.memory_space<vmem>>, vector<1x128xf32>
    %5 = vector.broadcast %4 : vector<1x128xf32> to vector<64x128xf32>
    %6 = arith.mulf %3, %5 : vector<64x128xf32>
    %c0_6 = arith.constant 0 : index
    %c0_7 = arith.constant 0 : index
    %7 = vector.load %arg6[%c0_6, %c0_7] : memref<1x128xf32, #tpu.memory_space<vmem>>, vector<1x128xf32>
    %8 = vector.broadcast %7 : vector<1x128xf32> to vector<64x128xf32>
    %9 = arith.addf %6, %8 : vector<64x128xf32>
    %cst_8 = arith.constant 0.000000e+00 : f32
    %10 = vector.broadcast %cst_8 : f32 to vector<64x128xf32>
    %11 = arith.maximumf %9, %10 : vector<64x128xf32>
    %12 = arith.truncf %11 : vector<64x128xf32> to vector<64x128xbf16>
    %c0_9 = arith.constant 0 : index
    %c0_10 = arith.constant 0 : index
    %c0_11 = arith.constant 0 : index
    %13 = vector.load %arg7[%c0_9, %c0_10, %c0_11] : memref<1x64x128xbf16, #tpu.memory_space<vmem>>, vector<1x64x128xbf16>
    %14 = vector.shape_cast %13 : vector<1x64x128xbf16> to vector<64x128xbf16>
    %15 = vector.shape_cast %12 : vector<64x128xbf16> to vector<1x64x128xbf16>
    tpu.vector_store %arg7[%c0_9, %c0_10, %c0_11], %15 {strides = array<i32>} : memref<1x64x128xbf16, #tpu.memory_space<vmem>>, vector<1x64x128xbf16>,
    return
  }
  func.func @transform_0(%arg0: i32, %arg1: i32, %arg2: i32) -> (i32, i32, i32) {
    %c0_i32 = arith.constant 0 : i32
    %c0_i32_0 = arith.constant 0 : i32
    return %arg0, %arg2, %c0_i32 : i32, i32, i32
  }
  func.func @transform_1(%arg0: i32, %arg1: i32, %arg2: i32) -> (i32, i32) {
    %c0_i32 = arith.constant 0 : i32
    %c0_i32_0 = arith.constant 0 : i32
    return %c0_i32, %arg1 : i32, i32
  }
  func.func @transform_2(%arg0: i32, %arg1: i32, %arg2: i32) -> (i32, i32) {
    %c0_i32 = arith.constant 0 : i32
    %c0_i32_0 = arith.constant 0 : i32
    return %c0_i32, %arg1 : i32, i32
  }
  func.func @transform_3(%arg0: i32, %arg1: i32, %arg2: i32) -> (i32, i32) {
    %c0_i32 = arith.constant 0 : i32
    %c0_i32_0 = arith.constant 0 : i32
    return %c0_i32, %arg1 : i32, i32
  }
  func.func @transform_4(%arg0: i32, %arg1: i32, %arg2: i32) -> (i32, i32, i32) {
    %c0_i32 = arith.constant 0 : i32
    return %arg0, %arg2, %arg1 : i32, i32, i32
  }
}

module attributes {stable_mosaic.version = 11 : i64} {
  func.func @_maxpool_kernel(%arg0: i32, %arg1: i32, %arg2: memref<1x4x32x128xbf16, #tpu.memory_space<vmem>>, %arg3: memref<1x24x128xbf16, #tpu.memory_space<vmem>>) attributes {dimension_semantics = [#tpu.dimension_semantics<parallel>, #tpu.dimension_semantics<parallel>], iteration_bounds = array<i64: 2, 1>, scalar_prefetch = 0 : i64, scratch_operands = 0 : i64, tpu.core_type = #tpu.core_type<tc>, window_params = [{transform_indices = @transform_0, window_bounds = array<i64: 1, 4, 32, 128>}, {transform_indices = @transform_1, window_bounds = array<i64: 1, 24, 128>}]} {
    %c0 = arith.constant 0 : index
    %c0_0 = arith.constant 0 : index
    %c0_1 = arith.constant 0 : index
    %c0_2 = arith.constant 0 : index
    %0 = vector.load %arg2[%c0, %c0_0, %c0_1, %c0_2] : memref<1x4x32x128xbf16, #tpu.memory_space<vmem>>, vector<1x1x24x128xbf16>
    %1 = vector.shape_cast %0 : vector<1x1x24x128xbf16> to vector<24x128xbf16>
    %c0_3 = arith.constant 0 : index
    %c1 = arith.constant 1 : index
    %c0_4 = arith.constant 0 : index
    %c0_5 = arith.constant 0 : index
    %2 = vector.load %arg2[%c0_3, %c1, %c0_4, %c0_5] : memref<1x4x32x128xbf16, #tpu.memory_space<vmem>>, vector<1x1x24x128xbf16>
    %3 = vector.shape_cast %2 : vector<1x1x24x128xbf16> to vector<24x128xbf16>
    %4 = arith.maximumf %1, %3 : vector<24x128xbf16>
    %c0_6 = arith.constant 0 : index
    %c0_7 = arith.constant 0 : index
    %c1_8 = arith.constant 1 : index
    %c0_9 = arith.constant 0 : index
    %5 = vector.load %arg2[%c0_6, %c0_7, %c1_8, %c0_9] : memref<1x4x32x128xbf16, #tpu.memory_space<vmem>>, vector<1x1x24x128xbf16>
    %6 = vector.shape_cast %5 : vector<1x1x24x128xbf16> to vector<24x128xbf16>
    %7 = arith.maximumf %4, %6 : vector<24x128xbf16>
    %c0_10 = arith.constant 0 : index
    %c2 = arith.constant 2 : index
    %c0_11 = arith.constant 0 : index
    %c0_12 = arith.constant 0 : index
    %8 = vector.load %arg2[%c0_10, %c2, %c0_11, %c0_12] : memref<1x4x32x128xbf16, #tpu.memory_space<vmem>>, vector<1x1x24x128xbf16>
    %9 = vector.shape_cast %8 : vector<1x1x24x128xbf16> to vector<24x128xbf16>
    %10 = arith.maximumf %7, %9 : vector<24x128xbf16>
    %c0_13 = arith.constant 0 : index
    %c3 = arith.constant 3 : index
    %c0_14 = arith.constant 0 : index
    %c0_15 = arith.constant 0 : index
    %11 = vector.load %arg2[%c0_13, %c3, %c0_14, %c0_15] : memref<1x4x32x128xbf16, #tpu.memory_space<vmem>>, vector<1x1x24x128xbf16>
    %12 = vector.shape_cast %11 : vector<1x1x24x128xbf16> to vector<24x128xbf16>
    %13 = arith.maximumf %10, %12 : vector<24x128xbf16>
    %c0_16 = arith.constant 0 : index
    %c2_17 = arith.constant 2 : index
    %c1_18 = arith.constant 1 : index
    %c0_19 = arith.constant 0 : index
    %14 = vector.load %arg2[%c0_16, %c2_17, %c1_18, %c0_19] : memref<1x4x32x128xbf16, #tpu.memory_space<vmem>>, vector<1x1x24x128xbf16>
    %15 = vector.shape_cast %14 : vector<1x1x24x128xbf16> to vector<24x128xbf16>
    %16 = arith.maximumf %13, %15 : vector<24x128xbf16>
    %c0_20 = arith.constant 0 : index
    %c0_21 = arith.constant 0 : index
    %c6 = arith.constant 6 : index
    %c0_22 = arith.constant 0 : index
    %17 = vector.load %arg2[%c0_20, %c0_21, %c6, %c0_22] : memref<1x4x32x128xbf16, #tpu.memory_space<vmem>>, vector<1x1x24x128xbf16>
    %18 = vector.shape_cast %17 : vector<1x1x24x128xbf16> to vector<24x128xbf16>
    %19 = arith.maximumf %16, %18 : vector<24x128xbf16>
    %c0_23 = arith.constant 0 : index
    %c1_24 = arith.constant 1 : index
    %c6_25 = arith.constant 6 : index
    %c0_26 = arith.constant 0 : index
    %20 = vector.load %arg2[%c0_23, %c1_24, %c6_25, %c0_26] : memref<1x4x32x128xbf16, #tpu.memory_space<vmem>>, vector<1x1x24x128xbf16>
    %21 = vector.shape_cast %20 : vector<1x1x24x128xbf16> to vector<24x128xbf16>
    %22 = arith.maximumf %19, %21 : vector<24x128xbf16>
    %c0_27 = arith.constant 0 : index
    %c0_28 = arith.constant 0 : index
    %c7 = arith.constant 7 : index
    %c0_29 = arith.constant 0 : index
    %23 = vector.load %arg2[%c0_27, %c0_28, %c7, %c0_29] : memref<1x4x32x128xbf16, #tpu.memory_space<vmem>>, vector<1x1x24x128xbf16>
    %24 = vector.shape_cast %23 : vector<1x1x24x128xbf16> to vector<24x128xbf16>
    %25 = arith.maximumf %22, %24 : vector<24x128xbf16>
    %c0_30 = arith.constant 0 : index
    %c0_31 = arith.constant 0 : index
    %c0_32 = arith.constant 0 : index
    %26 = vector.load %arg3[%c0_30, %c0_31, %c0_32] : memref<1x24x128xbf16, #tpu.memory_space<vmem>>, vector<1x24x128xbf16>
    %27 = vector.shape_cast %26 : vector<1x24x128xbf16> to vector<24x128xbf16>
    %28 = vector.shape_cast %25 : vector<24x128xbf16> to vector<1x24x128xbf16>
    tpu.vector_store %arg3[%c0_30, %c0_31, %c0_32], %28 {strides = array<i32>} : memref<1x24x128xbf16, #tpu.memory_space<vmem>>, vector<1x24x128xbf16>,
    return
  }
  func.func @transform_0(%arg0: i32, %arg1: i32) -> (i32, i32, i32, i32) {
    %c0_i32 = arith.constant 0 : i32
    %c0_i32_0 = arith.constant 0 : i32
    %c0_i32_1 = arith.constant 0 : i32
    %c0_i32_2 = arith.constant 0 : i32
    return %arg0, %c0_i32, %c0_i32_0, %c0_i32_1 : i32, i32, i32, i32
  }
  func.func @transform_1(%arg0: i32, %arg1: i32) -> (i32, i32, i32) {
    %c0_i32 = arith.constant 0 : i32
    %c0_i32_0 = arith.constant 0 : i32
    return %arg0, %arg1, %c0_i32 : i32, i32, i32
  }
}

module attributes {stable_mosaic.version = 11 : i64} {
  func.func @_conv_bn_res_kernel(%arg0: i32, %arg1: i32, %arg2: i32, %arg3: memref<1x1x40x128xbf16, #tpu.memory_space<vmem>>, %arg4: memref<9x128x128xbf16, #tpu.memory_space<vmem>>, %arg5: memref<1x128xf32, #tpu.memory_space<vmem>>, %arg6: memref<1x128xf32, #tpu.memory_space<vmem>>, %arg7: memref<1x24x128xbf16, #tpu.memory_space<vmem>>, %arg8: memref<1x24x128xbf16, #tpu.memory_space<vmem>>) attributes {dimension_semantics = [#tpu.dimension_semantics<parallel>, #tpu.dimension_semantics<parallel>, #tpu.dimension_semantics<parallel>], iteration_bounds = array<i64: 2, 1, 1>, scalar_prefetch = 0 : i64, scratch_operands = 0 : i64, tpu.core_type = #tpu.core_type<tc>, window_params = [{transform_indices = @transform_0, window_bounds = array<i64: 1, 1, 40, 128>}, {transform_indices = @transform_1, window_bounds = array<i64: 9, 128, 128>}, {transform_indices = @transform_2, window_bounds = array<i64: 1, 128>}, {transform_indices = @transform_3, window_bounds = array<i64: 1, 128>}, {transform_indices = @transform_4, window_bounds = array<i64: 1, 24, 128>}, {transform_indices = @transform_5, window_bounds = array<i64: 1, 24, 128>}]} {
    %c0 = arith.constant 0 : index
    %c0_0 = arith.constant 0 : index
    %c0_1 = arith.constant 0 : index
    %c0_2 = arith.constant 0 : index
    %0 = vector.load %arg3[%c0, %c0_0, %c0_1, %c0_2] : memref<1x1x40x128xbf16, #tpu.memory_space<vmem>>, vector<1x1x24x128xbf16>
    %1 = vector.shape_cast %0 : vector<1x1x24x128xbf16> to vector<24x128xbf16>
    %c0_3 = arith.constant 0 : index
    %c0_4 = arith.constant 0 : index
    %c0_5 = arith.constant 0 : index
    %2 = vector.load %arg4[%c0_3, %c0_4, %c0_5] : memref<9x128x128xbf16, #tpu.memory_space<vmem>>, vector<1x128x128xbf16>
    %3 = vector.shape_cast %2 : vector<1x128x128xbf16> to vector<128x128xbf16>
    %cst = arith.constant dense<0.000000e+00> : vector<24x128xf32>
    %4 = tpu.matmul %1, %3, %cst {dimension_numbers = #tpu.dot_dimension_numbers<[1], [0], [0], [1], [0, 0, 1, 1], [], []>} : vector<24x128xbf16>, vector<128x128xbf16>, vector<24x128xf32> -> vector<24x128xf32>
    %c0_6 = arith.constant 0 : index
    %c0_7 = arith.constant 0 : index
    %c1 = arith.constant 1 : index
    %c0_8 = arith.constant 0 : index
    %5 = vector.load %arg3[%c0_6, %c0_7, %c1, %c0_8] : memref<1x1x40x128xbf16, #tpu.memory_space<vmem>>, vector<1x1x24x128xbf16>
    %6 = vector.shape_cast %5 : vector<1x1x24x128xbf16> to vector<24x128xbf16>
    %c1_9 = arith.constant 1 : index
    %c0_10 = arith.constant 0 : index
    %c0_11 = arith.constant 0 : index
    %7 = vector.load %arg4[%c1_9, %c0_10, %c0_11] : memref<9x128x128xbf16, #tpu.memory_space<vmem>>, vector<1x128x128xbf16>
    %8 = vector.shape_cast %7 : vector<1x128x128xbf16> to vector<128x128xbf16>
    %cst_12 = arith.constant dense<0.000000e+00> : vector<24x128xf32>
    %9 = tpu.matmul %6, %8, %cst_12 {dimension_numbers = #tpu.dot_dimension_numbers<[1], [0], [0], [1], [0, 0, 1, 1], [], []>} : vector<24x128xbf16>, vector<128x128xbf16>, vector<24x128xf32> -> vector<24x128xf32>
    %10 = arith.addf %4, %9 : vector<24x128xf32>
    %c0_13 = arith.constant 0 : index
    %c0_14 = arith.constant 0 : index
    %c2 = arith.constant 2 : index
    %c0_15 = arith.constant 0 : index
    %11 = vector.load %arg3[%c0_13, %c0_14, %c2, %c0_15] : memref<1x1x40x128xbf16, #tpu.memory_space<vmem>>, vector<1x1x24x128xbf16>
    %12 = vector.shape_cast %11 : vector<1x1x24x128xbf16> to vector<24x128xbf16>
    %c2_16 = arith.constant 2 : index
    %c0_17 = arith.constant 0 : index
    %c0_18 = arith.constant 0 : index
    %13 = vector.load %arg4[%c2_16, %c0_17, %c0_18] : memref<9x128x128xbf16, #tpu.memory_space<vmem>>, vector<1x128x128xbf16>
    %14 = vector.shape_cast %13 : vector<1x128x128xbf16> to vector<128x128xbf16>
    %cst_19 = arith.constant dense<0.000000e+00> : vector<24x128xf32>
    %15 = tpu.matmul %12, %14, %cst_19 {dimension_numbers = #tpu.dot_dimension_numbers<[1], [0], [0], [1], [0, 0, 1, 1], [], []>} : vector<24x128xbf16>, vector<128x128xbf16>, vector<24x128xf32> -> vector<24x128xf32>
    %16 = arith.addf %10, %15 : vector<24x128xf32>
    %c0_20 = arith.constant 0 : index
    %c0_21 = arith.constant 0 : index
    %c6 = arith.constant 6 : index
    %c0_22 = arith.constant 0 : index
    %17 = vector.load %arg3[%c0_20, %c0_21, %c6, %c0_22] : memref<1x1x40x128xbf16, #tpu.memory_space<vmem>>, vector<1x1x24x128xbf16>
    %18 = vector.shape_cast %17 : vector<1x1x24x128xbf16> to vector<24x128xbf16>
    %c3 = arith.constant 3 : index
    %c0_23 = arith.constant 0 : index
    %c0_24 = arith.constant 0 : index
    %19 = vector.load %arg4[%c3, %c0_23, %c0_24] : memref<9x128x128xbf16, #tpu.memory_space<vmem>>, vector<1x128x128xbf16>
    %20 = vector.shape_cast %19 : vector<1x128x128xbf16> to vector<128x128xbf16>
    %cst_25 = arith.constant dense<0.000000e+00> : vector<24x128xf32>
    %21 = tpu.matmul %18, %20, %cst_25 {dimension_numbers = #tpu.dot_dimension_numbers<[1], [0], [0], [1], [0, 0, 1, 1], [], []>} : vector<24x128xbf16>, vector<128x128xbf16>, vector<24x128xf32> -> vector<24x128xf32>
    %22 = arith.addf %16, %21 : vector<24x128xf32>
    %c0_26 = arith.constant 0 : index
    %c0_27 = arith.constant 0 : index
    %c7 = arith.constant 7 : index
    %c0_28 = arith.constant 0 : index
    %23 = vector.load %arg3[%c0_26, %c0_27, %c7, %c0_28] : memref<1x1x40x128xbf16, #tpu.memory_space<vmem>>, vector<1x1x24x128xbf16>
    %24 = vector.shape_cast %23 : vector<1x1x24x128xbf16> to vector<24x128xbf16>
    %c4 = arith.constant 4 : index
    %c0_29 = arith.constant 0 : index
    %c0_30 = arith.constant 0 : index
    %25 = vector.load %arg4[%c4, %c0_29, %c0_30] : memref<9x128x128xbf16, #tpu.memory_space<vmem>>, vector<1x128x128xbf16>
    %26 = vector.shape_cast %25 : vector<1x128x128xbf16> to vector<128x128xbf16>
    %cst_31 = arith.constant dense<0.000000e+00> : vector<24x128xf32>
    %27 = tpu.matmul %24, %26, %cst_31 {dimension_numbers = #tpu.dot_dimension_numbers<[1], [0], [0], [1], [0, 0, 1, 1], [], []>} : vector<24x128xbf16>, vector<128x128xbf16>, vector<24x128xf32> -> vector<24x128xf32>
    %28 = arith.addf %22, %27 : vector<24x128xf32>
    %c0_32 = arith.constant 0 : index
    %c0_33 = arith.constant 0 : index
    %c8 = arith.constant 8 : index
    %c0_34 = arith.constant 0 : index
    %29 = vector.load %arg3[%c0_32, %c0_33, %c8, %c0_34] : memref<1x1x40x128xbf16, #tpu.memory_space<vmem>>, vector<1x1x24x128xbf16>
    %30 = vector.shape_cast %29 : vector<1x1x24x128xbf16> to vector<24x128xbf16>
    %c5 = arith.constant 5 : index
    %c0_35 = arith.constant 0 : index
    %c0_36 = arith.constant 0 : index
    %31 = vector.load %arg4[%c5, %c0_35, %c0_36] : memref<9x128x128xbf16, #tpu.memory_space<vmem>>, vector<1x128x128xbf16>
    %32 = vector.shape_cast %31 : vector<1x128x128xbf16> to vector<128x128xbf16>
    %cst_37 = arith.constant dense<0.000000e+00> : vector<24x128xf32>
    %33 = tpu.matmul %30, %32, %cst_37 {dimension_numbers = #tpu.dot_dimension_numbers<[1], [0], [0], [1], [0, 0, 1, 1], [], []>} : vector<24x128xbf16>, vector<128x128xbf16>, vector<24x128xf32> -> vector<24x128xf32>
    %34 = arith.addf %28, %33 : vector<24x128xf32>
    %c0_38 = arith.constant 0 : index
    %c0_39 = arith.constant 0 : index
    %c12 = arith.constant 12 : index
    %c0_40 = arith.constant 0 : index
    %35 = vector.load %arg3[%c0_38, %c0_39, %c12, %c0_40] : memref<1x1x40x128xbf16, #tpu.memory_space<vmem>>, vector<1x1x24x128xbf16>
    %36 = vector.shape_cast %35 : vector<1x1x24x128xbf16> to vector<24x128xbf16>
    %c6_41 = arith.constant 6 : index
    %c0_42 = arith.constant 0 : index
    %c0_43 = arith.constant 0 : index
    %37 = vector.load %arg4[%c6_41, %c0_42, %c0_43] : memref<9x128x128xbf16, #tpu.memory_space<vmem>>, vector<1x128x128xbf16>
    %38 = vector.shape_cast %37 : vector<1x128x128xbf16> to vector<128x128xbf16>
    %cst_44 = arith.constant dense<0.000000e+00> : vector<24x128xf32>
    %39 = tpu.matmul %36, %38, %cst_44 {dimension_numbers = #tpu.dot_dimension_numbers<[1], [0], [0], [1], [0, 0, 1, 1], [], []>} : vector<24x128xbf16>, vector<128x128xbf16>, vector<24x128xf32> -> vector<24x128xf32>
    %40 = arith.addf %34, %39 : vector<24x128xf32>
    %c0_45 = arith.constant 0 : index
    %c0_46 = arith.constant 0 : index
    %c13 = arith.constant 13 : index
    %c0_47 = arith.constant 0 : index
    %41 = vector.load %arg3[%c0_45, %c0_46, %c13, %c0_47] : memref<1x1x40x128xbf16, #tpu.memory_space<vmem>>, vector<1x1x24x128xbf16>
    %42 = vector.shape_cast %41 : vector<1x1x24x128xbf16> to vector<24x128xbf16>
    %c7_48 = arith.constant 7 : index
    %c0_49 = arith.constant 0 : index
    %c0_50 = arith.constant 0 : index
    %43 = vector.load %arg4[%c7_48, %c0_49, %c0_50] : memref<9x128x128xbf16, #tpu.memory_space<vmem>>, vector<1x128x128xbf16>
    %44 = vector.shape_cast %43 : vector<1x128x128xbf16> to vector<128x128xbf16>
    %cst_51 = arith.constant dense<0.000000e+00> : vector<24x128xf32>
    %45 = tpu.matmul %42, %44, %cst_51 {dimension_numbers = #tpu.dot_dimension_numbers<[1], [0], [0], [1], [0, 0, 1, 1], [], []>} : vector<24x128xbf16>, vector<128x128xbf16>, vector<24x128xf32> -> vector<24x128xf32>
    %46 = arith.addf %40, %45 : vector<24x128xf32>
    %c0_52 = arith.constant 0 : index
    %c0_53 = arith.constant 0 : index
    %c14 = arith.constant 14 : index
    %c0_54 = arith.constant 0 : index
    %47 = vector.load %arg3[%c0_52, %c0_53, %c14, %c0_54] : memref<1x1x40x128xbf16, #tpu.memory_space<vmem>>, vector<1x1x24x128xbf16>
    %48 = vector.shape_cast %47 : vector<1x1x24x128xbf16> to vector<24x128xbf16>
    %c8_55 = arith.constant 8 : index
    %c0_56 = arith.constant 0 : index
    %c0_57 = arith.constant 0 : index
    %49 = vector.load %arg4[%c8_55, %c0_56, %c0_57] : memref<9x128x128xbf16, #tpu.memory_space<vmem>>, vector<1x128x128xbf16>
    %50 = vector.shape_cast %49 : vector<1x128x128xbf16> to vector<128x128xbf16>
    %cst_58 = arith.constant dense<0.000000e+00> : vector<24x128xf32>
    %51 = tpu.matmul %48, %50, %cst_58 {dimension_numbers = #tpu.dot_dimension_numbers<[1], [0], [0], [1], [0, 0, 1, 1], [], []>} : vector<24x128xbf16>, vector<128x128xbf16>, vector<24x128xf32> -> vector<24x128xf32>
    %52 = arith.addf %46, %51 : vector<24x128xf32>
    %c0_59 = arith.constant 0 : index
    %c0_60 = arith.constant 0 : index
    %53 = vector.load %arg5[%c0_59, %c0_60] : memref<1x128xf32, #tpu.memory_space<vmem>>, vector<1x128xf32>
    %54 = vector.broadcast %53 : vector<1x128xf32> to vector<24x128xf32>
    %55 = arith.mulf %52, %54 : vector<24x128xf32>
    %c0_61 = arith.constant 0 : index
    %c0_62 = arith.constant 0 : index
    %56 = vector.load %arg6[%c0_61, %c0_62] : memref<1x128xf32, #tpu.memory_space<vmem>>, vector<1x128xf32>
    %57 = vector.broadcast %56 : vector<1x128xf32> to vector<24x128xf32>
    %58 = arith.addf %55, %57 : vector<24x128xf32>
    %c0_63 = arith.constant 0 : index
    %c0_64 = arith.constant 0 : index
    %c0_65 = arith.constant 0 : index
    %59 = vector.load %arg7[%c0_63, %c0_64, %c0_65] : memref<1x24x128xbf16, #tpu.memory_space<vmem>>, vector<1x24x128xbf16>
    %60 = vector.shape_cast %59 : vector<1x24x128xbf16> to vector<24x128xbf16>
    %61 = arith.extf %60 : vector<24x128xbf16> to vector<24x128xf32>
    %62 = arith.addf %58, %61 : vector<24x128xf32>
    %cst_66 = arith.constant 0.000000e+00 : f32
    %63 = vector.broadcast %cst_66 : f32 to vector<24x128xf32>
    %64 = arith.maximumf %62, %63 : vector<24x128xf32>
    %65 = arith.truncf %64 : vector<24x128xf32> to vector<24x128xbf16>
    %c0_67 = arith.constant 0 : index
    %c0_68 = arith.constant 0 : index
    %c0_69 = arith.constant 0 : index
    %66 = vector.load %arg8[%c0_67, %c0_68, %c0_69] : memref<1x24x128xbf16, #tpu.memory_space<vmem>>, vector<1x24x128xbf16>
    %67 = vector.shape_cast %66 : vector<1x24x128xbf16> to vector<24x128xbf16>
    %68 = vector.shape_cast %65 : vector<24x128xbf16> to vector<1x24x128xbf16>
    tpu.vector_store %arg8[%c0_67, %c0_68, %c0_69], %68 {strides = array<i32>} : memref<1x24x128xbf16, #tpu.memory_space<vmem>>, vector<1x24x128xbf16>,
    return
  }
  func.func @transform_0(%arg0: i32, %arg1: i32, %arg2: i32) -> (i32, i32, i32, i32) {
    %c0_i32 = arith.constant 0 : i32
    %c0_i32_0 = arith.constant 0 : i32
    %c0_i32_1 = arith.constant 0 : i32
    %c0_i32_2 = arith.constant 0 : i32
    return %arg0, %c0_i32, %c0_i32_0, %c0_i32_1 : i32, i32, i32, i32
  }
  func.func @transform_1(%arg0: i32, %arg1: i32, %arg2: i32) -> (i32, i32, i32) {
    %c0_i32 = arith.constant 0 : i32
    %c0_i32_0 = arith.constant 0 : i32
    %c0_i32_1 = arith.constant 0 : i32
    return %c0_i32, %c0_i32_0, %arg1 : i32, i32, i32
  }
  func.func @transform_2(%arg0: i32, %arg1: i32, %arg2: i32) -> (i32, i32) {
    %c0_i32 = arith.constant 0 : i32
    %c0_i32_0 = arith.constant 0 : i32
    return %c0_i32, %arg1 : i32, i32
  }
  func.func @transform_3(%arg0: i32, %arg1: i32, %arg2: i32) -> (i32, i32) {
    %c0_i32 = arith.constant 0 : i32
    %c0_i32_0 = arith.constant 0 : i32
    return %c0_i32, %arg1 : i32, i32
  }
  func.func @transform_4(%arg0: i32, %arg1: i32, %arg2: i32) -> (i32, i32, i32) {
    %c0_i32 = arith.constant 0 : i32
    return %arg0, %arg2, %arg1 : i32, i32, i32
  }
  func.func @transform_5(%arg0: i32, %arg1: i32, %arg2: i32) -> (i32, i32, i32) {
    %c0_i32 = arith.constant 0 : i32
    return %arg0, %arg2, %arg1 : i32, i32, i32
  }
}

module attributes {stable_mosaic.version = 11 : i64} {
  func.func @_conv_bn_kernel(%arg0: i32, %arg1: i32, %arg2: i32, %arg3: memref<1x1x40x128xbf16, #tpu.memory_space<vmem>>, %arg4: memref<9x128x128xbf16, #tpu.memory_space<vmem>>, %arg5: memref<1x128xf32, #tpu.memory_space<vmem>>, %arg6: memref<1x128xf32, #tpu.memory_space<vmem>>, %arg7: memref<1x24x128xbf16, #tpu.memory_space<vmem>>) attributes {dimension_semantics = [#tpu.dimension_semantics<parallel>, #tpu.dimension_semantics<parallel>, #tpu.dimension_semantics<parallel>], iteration_bounds = array<i64: 2, 1, 1>, scalar_prefetch = 0 : i64, scratch_operands = 0 : i64, tpu.core_type = #tpu.core_type<tc>, window_params = [{transform_indices = @transform_0, window_bounds = array<i64: 1, 1, 40, 128>}, {transform_indices = @transform_1, window_bounds = array<i64: 9, 128, 128>}, {transform_indices = @transform_2, window_bounds = array<i64: 1, 128>}, {transform_indices = @transform_3, window_bounds = array<i64: 1, 128>}, {transform_indices = @transform_4, window_bounds = array<i64: 1, 24, 128>}]} {
    %c0 = arith.constant 0 : index
    %c0_0 = arith.constant 0 : index
    %c0_1 = arith.constant 0 : index
    %c0_2 = arith.constant 0 : index
    %0 = vector.load %arg3[%c0, %c0_0, %c0_1, %c0_2] : memref<1x1x40x128xbf16, #tpu.memory_space<vmem>>, vector<1x1x24x128xbf16>
    %1 = vector.shape_cast %0 : vector<1x1x24x128xbf16> to vector<24x128xbf16>
    %c0_3 = arith.constant 0 : index
    %c0_4 = arith.constant 0 : index
    %c0_5 = arith.constant 0 : index
    %2 = vector.load %arg4[%c0_3, %c0_4, %c0_5] : memref<9x128x128xbf16, #tpu.memory_space<vmem>>, vector<1x128x128xbf16>
    %3 = vector.shape_cast %2 : vector<1x128x128xbf16> to vector<128x128xbf16>
    %cst = arith.constant dense<0.000000e+00> : vector<24x128xf32>
    %4 = tpu.matmul %1, %3, %cst {dimension_numbers = #tpu.dot_dimension_numbers<[1], [0], [0], [1], [0, 0, 1, 1], [], []>} : vector<24x128xbf16>, vector<128x128xbf16>, vector<24x128xf32> -> vector<24x128xf32>
    %c0_6 = arith.constant 0 : index
    %c0_7 = arith.constant 0 : index
    %c1 = arith.constant 1 : index
    %c0_8 = arith.constant 0 : index
    %5 = vector.load %arg3[%c0_6, %c0_7, %c1, %c0_8] : memref<1x1x40x128xbf16, #tpu.memory_space<vmem>>, vector<1x1x24x128xbf16>
    %6 = vector.shape_cast %5 : vector<1x1x24x128xbf16> to vector<24x128xbf16>
    %c1_9 = arith.constant 1 : index
    %c0_10 = arith.constant 0 : index
    %c0_11 = arith.constant 0 : index
    %7 = vector.load %arg4[%c1_9, %c0_10, %c0_11] : memref<9x128x128xbf16, #tpu.memory_space<vmem>>, vector<1x128x128xbf16>
    %8 = vector.shape_cast %7 : vector<1x128x128xbf16> to vector<128x128xbf16>
    %cst_12 = arith.constant dense<0.000000e+00> : vector<24x128xf32>
    %9 = tpu.matmul %6, %8, %cst_12 {dimension_numbers = #tpu.dot_dimension_numbers<[1], [0], [0], [1], [0, 0, 1, 1], [], []>} : vector<24x128xbf16>, vector<128x128xbf16>, vector<24x128xf32> -> vector<24x128xf32>
    %10 = arith.addf %4, %9 : vector<24x128xf32>
    %c0_13 = arith.constant 0 : index
    %c0_14 = arith.constant 0 : index
    %c2 = arith.constant 2 : index
    %c0_15 = arith.constant 0 : index
    %11 = vector.load %arg3[%c0_13, %c0_14, %c2, %c0_15] : memref<1x1x40x128xbf16, #tpu.memory_space<vmem>>, vector<1x1x24x128xbf16>
    %12 = vector.shape_cast %11 : vector<1x1x24x128xbf16> to vector<24x128xbf16>
    %c2_16 = arith.constant 2 : index
    %c0_17 = arith.constant 0 : index
    %c0_18 = arith.constant 0 : index
    %13 = vector.load %arg4[%c2_16, %c0_17, %c0_18] : memref<9x128x128xbf16, #tpu.memory_space<vmem>>, vector<1x128x128xbf16>
    %14 = vector.shape_cast %13 : vector<1x128x128xbf16> to vector<128x128xbf16>
    %cst_19 = arith.constant dense<0.000000e+00> : vector<24x128xf32>
    %15 = tpu.matmul %12, %14, %cst_19 {dimension_numbers = #tpu.dot_dimension_numbers<[1], [0], [0], [1], [0, 0, 1, 1], [], []>} : vector<24x128xbf16>, vector<128x128xbf16>, vector<24x128xf32> -> vector<24x128xf32>
    %16 = arith.addf %10, %15 : vector<24x128xf32>
    %c0_20 = arith.constant 0 : index
    %c0_21 = arith.constant 0 : index
    %c6 = arith.constant 6 : index
    %c0_22 = arith.constant 0 : index
    %17 = vector.load %arg3[%c0_20, %c0_21, %c6, %c0_22] : memref<1x1x40x128xbf16, #tpu.memory_space<vmem>>, vector<1x1x24x128xbf16>
    %18 = vector.shape_cast %17 : vector<1x1x24x128xbf16> to vector<24x128xbf16>
    %c3 = arith.constant 3 : index
    %c0_23 = arith.constant 0 : index
    %c0_24 = arith.constant 0 : index
    %19 = vector.load %arg4[%c3, %c0_23, %c0_24] : memref<9x128x128xbf16, #tpu.memory_space<vmem>>, vector<1x128x128xbf16>
    %20 = vector.shape_cast %19 : vector<1x128x128xbf16> to vector<128x128xbf16>
    %cst_25 = arith.constant dense<0.000000e+00> : vector<24x128xf32>
    %21 = tpu.matmul %18, %20, %cst_25 {dimension_numbers = #tpu.dot_dimension_numbers<[1], [0], [0], [1], [0, 0, 1, 1], [], []>} : vector<24x128xbf16>, vector<128x128xbf16>, vector<24x128xf32> -> vector<24x128xf32>
    %22 = arith.addf %16, %21 : vector<24x128xf32>
    %c0_26 = arith.constant 0 : index
    %c0_27 = arith.constant 0 : index
    %c7 = arith.constant 7 : index
    %c0_28 = arith.constant 0 : index
    %23 = vector.load %arg3[%c0_26, %c0_27, %c7, %c0_28] : memref<1x1x40x128xbf16, #tpu.memory_space<vmem>>, vector<1x1x24x128xbf16>
    %24 = vector.shape_cast %23 : vector<1x1x24x128xbf16> to vector<24x128xbf16>
    %c4 = arith.constant 4 : index
    %c0_29 = arith.constant 0 : index
    %c0_30 = arith.constant 0 : index
    %25 = vector.load %arg4[%c4, %c0_29, %c0_30] : memref<9x128x128xbf16, #tpu.memory_space<vmem>>, vector<1x128x128xbf16>
    %26 = vector.shape_cast %25 : vector<1x128x128xbf16> to vector<128x128xbf16>
    %cst_31 = arith.constant dense<0.000000e+00> : vector<24x128xf32>
    %27 = tpu.matmul %24, %26, %cst_31 {dimension_numbers = #tpu.dot_dimension_numbers<[1], [0], [0], [1], [0, 0, 1, 1], [], []>} : vector<24x128xbf16>, vector<128x128xbf16>, vector<24x128xf32> -> vector<24x128xf32>
    %28 = arith.addf %22, %27 : vector<24x128xf32>
    %c0_32 = arith.constant 0 : index
    %c0_33 = arith.constant 0 : index
    %c8 = arith.constant 8 : index
    %c0_34 = arith.constant 0 : index
    %29 = vector.load %arg3[%c0_32, %c0_33, %c8, %c0_34] : memref<1x1x40x128xbf16, #tpu.memory_space<vmem>>, vector<1x1x24x128xbf16>
    %30 = vector.shape_cast %29 : vector<1x1x24x128xbf16> to vector<24x128xbf16>
    %c5 = arith.constant 5 : index
    %c0_35 = arith.constant 0 : index
    %c0_36 = arith.constant 0 : index
    %31 = vector.load %arg4[%c5, %c0_35, %c0_36] : memref<9x128x128xbf16, #tpu.memory_space<vmem>>, vector<1x128x128xbf16>
    %32 = vector.shape_cast %31 : vector<1x128x128xbf16> to vector<128x128xbf16>
    %cst_37 = arith.constant dense<0.000000e+00> : vector<24x128xf32>
    %33 = tpu.matmul %30, %32, %cst_37 {dimension_numbers = #tpu.dot_dimension_numbers<[1], [0], [0], [1], [0, 0, 1, 1], [], []>} : vector<24x128xbf16>, vector<128x128xbf16>, vector<24x128xf32> -> vector<24x128xf32>
    %34 = arith.addf %28, %33 : vector<24x128xf32>
    %c0_38 = arith.constant 0 : index
    %c0_39 = arith.constant 0 : index
    %c12 = arith.constant 12 : index
    %c0_40 = arith.constant 0 : index
    %35 = vector.load %arg3[%c0_38, %c0_39, %c12, %c0_40] : memref<1x1x40x128xbf16, #tpu.memory_space<vmem>>, vector<1x1x24x128xbf16>
    %36 = vector.shape_cast %35 : vector<1x1x24x128xbf16> to vector<24x128xbf16>
    %c6_41 = arith.constant 6 : index
    %c0_42 = arith.constant 0 : index
    %c0_43 = arith.constant 0 : index
    %37 = vector.load %arg4[%c6_41, %c0_42, %c0_43] : memref<9x128x128xbf16, #tpu.memory_space<vmem>>, vector<1x128x128xbf16>
    %38 = vector.shape_cast %37 : vector<1x128x128xbf16> to vector<128x128xbf16>
    %cst_44 = arith.constant dense<0.000000e+00> : vector<24x128xf32>
    %39 = tpu.matmul %36, %38, %cst_44 {dimension_numbers = #tpu.dot_dimension_numbers<[1], [0], [0], [1], [0, 0, 1, 1], [], []>} : vector<24x128xbf16>, vector<128x128xbf16>, vector<24x128xf32> -> vector<24x128xf32>
    %40 = arith.addf %34, %39 : vector<24x128xf32>
    %c0_45 = arith.constant 0 : index
    %c0_46 = arith.constant 0 : index
    %c13 = arith.constant 13 : index
    %c0_47 = arith.constant 0 : index
    %41 = vector.load %arg3[%c0_45, %c0_46, %c13, %c0_47] : memref<1x1x40x128xbf16, #tpu.memory_space<vmem>>, vector<1x1x24x128xbf16>
    %42 = vector.shape_cast %41 : vector<1x1x24x128xbf16> to vector<24x128xbf16>
    %c7_48 = arith.constant 7 : index
    %c0_49 = arith.constant 0 : index
    %c0_50 = arith.constant 0 : index
    %43 = vector.load %arg4[%c7_48, %c0_49, %c0_50] : memref<9x128x128xbf16, #tpu.memory_space<vmem>>, vector<1x128x128xbf16>
    %44 = vector.shape_cast %43 : vector<1x128x128xbf16> to vector<128x128xbf16>
    %cst_51 = arith.constant dense<0.000000e+00> : vector<24x128xf32>
    %45 = tpu.matmul %42, %44, %cst_51 {dimension_numbers = #tpu.dot_dimension_numbers<[1], [0], [0], [1], [0, 0, 1, 1], [], []>} : vector<24x128xbf16>, vector<128x128xbf16>, vector<24x128xf32> -> vector<24x128xf32>
    %46 = arith.addf %40, %45 : vector<24x128xf32>
    %c0_52 = arith.constant 0 : index
    %c0_53 = arith.constant 0 : index
    %c14 = arith.constant 14 : index
    %c0_54 = arith.constant 0 : index
    %47 = vector.load %arg3[%c0_52, %c0_53, %c14, %c0_54] : memref<1x1x40x128xbf16, #tpu.memory_space<vmem>>, vector<1x1x24x128xbf16>
    %48 = vector.shape_cast %47 : vector<1x1x24x128xbf16> to vector<24x128xbf16>
    %c8_55 = arith.constant 8 : index
    %c0_56 = arith.constant 0 : index
    %c0_57 = arith.constant 0 : index
    %49 = vector.load %arg4[%c8_55, %c0_56, %c0_57] : memref<9x128x128xbf16, #tpu.memory_space<vmem>>, vector<1x128x128xbf16>
    %50 = vector.shape_cast %49 : vector<1x128x128xbf16> to vector<128x128xbf16>
    %cst_58 = arith.constant dense<0.000000e+00> : vector<24x128xf32>
    %51 = tpu.matmul %48, %50, %cst_58 {dimension_numbers = #tpu.dot_dimension_numbers<[1], [0], [0], [1], [0, 0, 1, 1], [], []>} : vector<24x128xbf16>, vector<128x128xbf16>, vector<24x128xf32> -> vector<24x128xf32>
    %52 = arith.addf %46, %51 : vector<24x128xf32>
    %c0_59 = arith.constant 0 : index
    %c0_60 = arith.constant 0 : index
    %53 = vector.load %arg5[%c0_59, %c0_60] : memref<1x128xf32, #tpu.memory_space<vmem>>, vector<1x128xf32>
    %54 = vector.broadcast %53 : vector<1x128xf32> to vector<24x128xf32>
    %55 = arith.mulf %52, %54 : vector<24x128xf32>
    %c0_61 = arith.constant 0 : index
    %c0_62 = arith.constant 0 : index
    %56 = vector.load %arg6[%c0_61, %c0_62] : memref<1x128xf32, #tpu.memory_space<vmem>>, vector<1x128xf32>
    %57 = vector.broadcast %56 : vector<1x128xf32> to vector<24x128xf32>
    %58 = arith.addf %55, %57 : vector<24x128xf32>
    %cst_63 = arith.constant 0.000000e+00 : f32
    %59 = vector.broadcast %cst_63 : f32 to vector<24x128xf32>
    %60 = arith.maximumf %58, %59 : vector<24x128xf32>
    %61 = arith.truncf %60 : vector<24x128xf32> to vector<24x128xbf16>
    %c0_64 = arith.constant 0 : index
    %c0_65 = arith.constant 0 : index
    %c0_66 = arith.constant 0 : index
    %62 = vector.load %arg7[%c0_64, %c0_65, %c0_66] : memref<1x24x128xbf16, #tpu.memory_space<vmem>>, vector<1x24x128xbf16>
    %63 = vector.shape_cast %62 : vector<1x24x128xbf16> to vector<24x128xbf16>
    %64 = vector.shape_cast %61 : vector<24x128xbf16> to vector<1x24x128xbf16>
    tpu.vector_store %arg7[%c0_64, %c0_65, %c0_66], %64 {strides = array<i32>} : memref<1x24x128xbf16, #tpu.memory_space<vmem>>, vector<1x24x128xbf16>,
    return
  }
  func.func @transform_0(%arg0: i32, %arg1: i32, %arg2: i32) -> (i32, i32, i32, i32) {
    %c0_i32 = arith.constant 0 : i32
    %c0_i32_0 = arith.constant 0 : i32
    %c0_i32_1 = arith.constant 0 : i32
    %c0_i32_2 = arith.constant 0 : i32
    return %arg0, %c0_i32, %c0_i32_0, %c0_i32_1 : i32, i32, i32, i32
  }
  func.func @transform_1(%arg0: i32, %arg1: i32, %arg2: i32) -> (i32, i32, i32) {
    %c0_i32 = arith.constant 0 : i32
    %c0_i32_0 = arith.constant 0 : i32
    %c0_i32_1 = arith.constant 0 : i32
    return %c0_i32, %c0_i32_0, %arg1 : i32, i32, i32
  }
  func.func @transform_2(%arg0: i32, %arg1: i32, %arg2: i32) -> (i32, i32) {
    %c0_i32 = arith.constant 0 : i32
    %c0_i32_0 = arith.constant 0 : i32
    return %c0_i32, %arg1 : i32, i32
  }
  func.func @transform_3(%arg0: i32, %arg1: i32, %arg2: i32) -> (i32, i32) {
    %c0_i32 = arith.constant 0 : i32
    %c0_i32_0 = arith.constant 0 : i32
    return %c0_i32, %arg1 : i32, i32
  }
  func.func @transform_4(%arg0: i32, %arg1: i32, %arg2: i32) -> (i32, i32, i32) {
    %c0_i32 = arith.constant 0 : i32
    return %arg0, %arg2, %arg1 : i32, i32, i32
  }
}

module attributes {stable_mosaic.version = 11 : i64} {
  func.func @_conv_bn_kernel(%arg0: i32, %arg1: i32, %arg2: i32, %arg3: memref<1x1x8x128xbf16, #tpu.memory_space<vmem>>, %arg4: memref<1x128x128xbf16, #tpu.memory_space<vmem>>, %arg5: memref<1x128xf32, #tpu.memory_space<vmem>>, %arg6: memref<1x128xf32, #tpu.memory_space<vmem>>, %arg7: memref<1x8x128xbf16, #tpu.memory_space<vmem>>) attributes {dimension_semantics = [#tpu.dimension_semantics<parallel>, #tpu.dimension_semantics<parallel>, #tpu.dimension_semantics<parallel>], iteration_bounds = array<i64: 2, 1, 1>, scalar_prefetch = 0 : i64, scratch_operands = 0 : i64, tpu.core_type = #tpu.core_type<tc>, window_params = [{transform_indices = @transform_0, window_bounds = array<i64: 1, 1, 8, 128>}, {transform_indices = @transform_1, window_bounds = array<i64: 1, 128, 128>}, {transform_indices = @transform_2, window_bounds = array<i64: 1, 128>}, {transform_indices = @transform_3, window_bounds = array<i64: 1, 128>}, {transform_indices = @transform_4, window_bounds = array<i64: 1, 8, 128>}]} {
    %c0 = arith.constant 0 : index
    %c0_0 = arith.constant 0 : index
    %c0_1 = arith.constant 0 : index
    %c0_2 = arith.constant 0 : index
    %0 = vector.load %arg3[%c0, %c0_0, %c0_1, %c0_2] : memref<1x1x8x128xbf16, #tpu.memory_space<vmem>>, vector<1x1x8x128xbf16>
    %1 = vector.shape_cast %0 : vector<1x1x8x128xbf16> to vector<8x128xbf16>
    %c0_3 = arith.constant 0 : index
    %c0_4 = arith.constant 0 : index
    %c0_5 = arith.constant 0 : index
    %2 = vector.load %arg4[%c0_3, %c0_4, %c0_5] : memref<1x128x128xbf16, #tpu.memory_space<vmem>>, vector<1x128x128xbf16>
    %3 = vector.shape_cast %2 : vector<1x128x128xbf16> to vector<128x128xbf16>
    %cst = arith.constant dense<0.000000e+00> : vector<8x128xf32>
    %4 = tpu.matmul %1, %3, %cst {dimension_numbers = #tpu.dot_dimension_numbers<[1], [0], [0], [1], [0, 0, 1, 1], [], []>} : vector<8x128xbf16>, vector<128x128xbf16>, vector<8x128xf32> -> vector<8x128xf32>
    %c0_6 = arith.constant 0 : index
    %c0_7 = arith.constant 0 : index
    %5 = vector.load %arg5[%c0_6, %c0_7] : memref<1x128xf32, #tpu.memory_space<vmem>>, vector<1x128xf32>
    %6 = vector.broadcast %5 : vector<1x128xf32> to vector<8x128xf32>
    %7 = arith.mulf %4, %6 : vector<8x128xf32>
    %c0_8 = arith.constant 0 : index
    %c0_9 = arith.constant 0 : index
    %8 = vector.load %arg6[%c0_8, %c0_9] : memref<1x128xf32, #tpu.memory_space<vmem>>, vector<1x128xf32>
    %9 = vector.broadcast %8 : vector<1x128xf32> to vector<8x128xf32>
    %10 = arith.addf %7, %9 : vector<8x128xf32>
    %11 = arith.truncf %10 : vector<8x128xf32> to vector<8x128xbf16>
    %c0_10 = arith.constant 0 : index
    %c0_11 = arith.constant 0 : index
    %c0_12 = arith.constant 0 : index
    %12 = vector.load %arg7[%c0_10, %c0_11, %c0_12] : memref<1x8x128xbf16, #tpu.memory_space<vmem>>, vector<1x8x128xbf16>
    %13 = vector.shape_cast %12 : vector<1x8x128xbf16> to vector<8x128xbf16>
    %14 = vector.shape_cast %11 : vector<8x128xbf16> to vector<1x8x128xbf16>
    tpu.vector_store %arg7[%c0_10, %c0_11, %c0_12], %14 {strides = array<i32>} : memref<1x8x128xbf16, #tpu.memory_space<vmem>>, vector<1x8x128xbf16>,
    return
  }
  func.func @transform_0(%arg0: i32, %arg1: i32, %arg2: i32) -> (i32, i32, i32, i32) {
    %c0_i32 = arith.constant 0 : i32
    %c0_i32_0 = arith.constant 0 : i32
    %c0_i32_1 = arith.constant 0 : i32
    %c0_i32_2 = arith.constant 0 : i32
    return %arg0, %c0_i32, %c0_i32_0, %c0_i32_1 : i32, i32, i32, i32
  }
  func.func @transform_1(%arg0: i32, %arg1: i32, %arg2: i32) -> (i32, i32, i32) {
    %c0_i32 = arith.constant 0 : i32
    %c0_i32_0 = arith.constant 0 : i32
    %c0_i32_1 = arith.constant 0 : i32
    return %c0_i32, %c0_i32_0, %arg1 : i32, i32, i32
  }
  func.func @transform_2(%arg0: i32, %arg1: i32, %arg2: i32) -> (i32, i32) {
    %c0_i32 = arith.constant 0 : i32
    %c0_i32_0 = arith.constant 0 : i32
    return %c0_i32, %arg1 : i32, i32
  }
  func.func @transform_3(%arg0: i32, %arg1: i32, %arg2: i32) -> (i32, i32) {
    %c0_i32 = arith.constant 0 : i32
    %c0_i32_0 = arith.constant 0 : i32
    return %c0_i32, %arg1 : i32, i32
  }
  func.func @transform_4(%arg0: i32, %arg1: i32, %arg2: i32) -> (i32, i32, i32) {
    %c0_i32 = arith.constant 0 : i32
    return %arg0, %arg2, %arg1 : i32, i32, i32
  }
}

module attributes {stable_mosaic.version = 11 : i64} {
  func.func @_conv_bn_kernel(%arg0: i32, %arg1: i32, %arg2: i32, %arg3: memref<1x4x16x128xbf16, #tpu.memory_space<vmem>>, %arg4: memref<9x128x128xbf16, #tpu.memory_space<vmem>>, %arg5: memref<1x128xf32, #tpu.memory_space<vmem>>, %arg6: memref<1x128xf32, #tpu.memory_space<vmem>>, %arg7: memref<1x8x128xbf16, #tpu.memory_space<vmem>>) attributes {dimension_semantics = [#tpu.dimension_semantics<parallel>, #tpu.dimension_semantics<parallel>, #tpu.dimension_semantics<parallel>], iteration_bounds = array<i64: 2, 1, 1>, scalar_prefetch = 0 : i64, scratch_operands = 0 : i64, tpu.core_type = #tpu.core_type<tc>, window_params = [{transform_indices = @transform_0, window_bounds = array<i64: 1, 4, 16, 128>}, {transform_indices = @transform_1, window_bounds = array<i64: 9, 128, 128>}, {transform_indices = @transform_2, window_bounds = array<i64: 1, 128>}, {transform_indices = @transform_3, window_bounds = array<i64: 1, 128>}, {transform_indices = @transform_4, window_bounds = array<i64: 1, 8, 128>}]} {
    %c0 = arith.constant 0 : index
    %c0_0 = arith.constant 0 : index
    %c0_1 = arith.constant 0 : index
    %c0_2 = arith.constant 0 : index
    %0 = vector.load %arg3[%c0, %c0_0, %c0_1, %c0_2] : memref<1x4x16x128xbf16, #tpu.memory_space<vmem>>, vector<1x1x8x128xbf16>
    %1 = vector.shape_cast %0 : vector<1x1x8x128xbf16> to vector<8x128xbf16>
    %c0_3 = arith.constant 0 : index
    %c0_4 = arith.constant 0 : index
    %c0_5 = arith.constant 0 : index
    %2 = vector.load %arg4[%c0_3, %c0_4, %c0_5] : memref<9x128x128xbf16, #tpu.memory_space<vmem>>, vector<1x128x128xbf16>
    %3 = vector.shape_cast %2 : vector<1x128x128xbf16> to vector<128x128xbf16>
    %cst = arith.constant dense<0.000000e+00> : vector<8x128xf32>
    %4 = tpu.matmul %1, %3, %cst {dimension_numbers = #tpu.dot_dimension_numbers<[1], [0], [0], [1], [0, 0, 1, 1], [], []>} : vector<8x128xbf16>, vector<128x128xbf16>, vector<8x128xf32> -> vector<8x128xf32>
    %c0_6 = arith.constant 0 : index
    %c1 = arith.constant 1 : index
    %c0_7 = arith.constant 0 : index
    %c0_8 = arith.constant 0 : index
    %5 = vector.load %arg3[%c0_6, %c1, %c0_7, %c0_8] : memref<1x4x16x128xbf16, #tpu.memory_space<vmem>>, vector<1x1x8x128xbf16>
    %6 = vector.shape_cast %5 : vector<1x1x8x128xbf16> to vector<8x128xbf16>
    %c1_9 = arith.constant 1 : index
    %c0_10 = arith.constant 0 : index
    %c0_11 = arith.constant 0 : index
    %7 = vector.load %arg4[%c1_9, %c0_10, %c0_11] : memref<9x128x128xbf16, #tpu.memory_space<vmem>>, vector<1x128x128xbf16>
    %8 = vector.shape_cast %7 : vector<1x128x128xbf16> to vector<128x128xbf16>
    %cst_12 = arith.constant dense<0.000000e+00> : vector<8x128xf32>
    %9 = tpu.matmul %6, %8, %cst_12 {dimension_numbers = #tpu.dot_dimension_numbers<[1], [0], [0], [1], [0, 0, 1, 1], [], []>} : vector<8x128xbf16>, vector<128x128xbf16>, vector<8x128xf32> -> vector<8x128xf32>
    %10 = arith.addf %4, %9 : vector<8x128xf32>
    %c0_13 = arith.constant 0 : index
    %c0_14 = arith.constant 0 : index
    %c1_15 = arith.constant 1 : index
    %c0_16 = arith.constant 0 : index
    %11 = vector.load %arg3[%c0_13, %c0_14, %c1_15, %c0_16] : memref<1x4x16x128xbf16, #tpu.memory_space<vmem>>, vector<1x1x8x128xbf16>
    %12 = vector.shape_cast %11 : vector<1x1x8x128xbf16> to vector<8x128xbf16>
    %c2 = arith.constant 2 : index
    %c0_17 = arith.constant 0 : index
    %c0_18 = arith.constant 0 : index
    %13 = vector.load %arg4[%c2, %c0_17, %c0_18] : memref<9x128x128xbf16, #tpu.memory_space<vmem>>, vector<1x128x128xbf16>
    %14 = vector.shape_cast %13 : vector<1x128x128xbf16> to vector<128x128xbf16>
    %cst_19 = arith.constant dense<0.000000e+00> : vector<8x128xf32>
    %15 = tpu.matmul %12, %14, %cst_19 {dimension_numbers = #tpu.dot_dimension_numbers<[1], [0], [0], [1], [0, 0, 1, 1], [], []>} : vector<8x128xbf16>, vector<128x128xbf16>, vector<8x128xf32> -> vector<8x128xf32>
    %16 = arith.addf %10, %15 : vector<8x128xf32>
    %c0_20 = arith.constant 0 : index
    %c2_21 = arith.constant 2 : index
    %c0_22 = arith.constant 0 : index
    %c0_23 = arith.constant 0 : index
    %17 = vector.load %arg3[%c0_20, %c2_21, %c0_22, %c0_23] : memref<1x4x16x128xbf16, #tpu.memory_space<vmem>>, vector<1x1x8x128xbf16>
    %18 = vector.shape_cast %17 : vector<1x1x8x128xbf16> to vector<8x128xbf16>
    %c3 = arith.constant 3 : index
    %c0_24 = arith.constant 0 : index
    %c0_25 = arith.constant 0 : index
    %19 = vector.load %arg4[%c3, %c0_24, %c0_25] : memref<9x128x128xbf16, #tpu.memory_space<vmem>>, vector<1x128x128xbf16>
    %20 = vector.shape_cast %19 : vector<1x128x128xbf16> to vector<128x128xbf16>
    %cst_26 = arith.constant dense<0.000000e+00> : vector<8x128xf32>
    %21 = tpu.matmul %18, %20, %cst_26 {dimension_numbers = #tpu.dot_dimension_numbers<[1], [0], [0], [1], [0, 0, 1, 1], [], []>} : vector<8x128xbf16>, vector<128x128xbf16>, vector<8x128xf32> -> vector<8x128xf32>
    %22 = arith.addf %16, %21 : vector<8x128xf32>
    %c0_27 = arith.constant 0 : index
    %c3_28 = arith.constant 3 : index
    %c0_29 = arith.constant 0 : index
    %c0_30 = arith.constant 0 : index
    %23 = vector.load %arg3[%c0_27, %c3_28, %c0_29, %c0_30] : memref<1x4x16x128xbf16, #tpu.memory_space<vmem>>, vector<1x1x8x128xbf16>
    %24 = vector.shape_cast %23 : vector<1x1x8x128xbf16> to vector<8x128xbf16>
    %c4 = arith.constant 4 : index
    %c0_31 = arith.constant 0 : index
    %c0_32 = arith.constant 0 : index
    %25 = vector.load %arg4[%c4, %c0_31, %c0_32] : memref<9x128x128xbf16, #tpu.memory_space<vmem>>, vector<1x128x128xbf16>
    %26 = vector.shape_cast %25 : vector<1x128x128xbf16> to vector<128x128xbf16>
    %cst_33 = arith.constant dense<0.000000e+00> : vector<8x128xf32>
    %27 = tpu.matmul %24, %26, %cst_33 {dimension_numbers = #tpu.dot_dimension_numbers<[1], [0], [0], [1], [0, 0, 1, 1], [], []>} : vector<8x128xbf16>, vector<128x128xbf16>, vector<8x128xf32> -> vector<8x128xf32>
    %28 = arith.addf %22, %27 : vector<8x128xf32>
    %c0_34 = arith.constant 0 : index
    %c2_35 = arith.constant 2 : index
    %c1_36 = arith.constant 1 : index
    %c0_37 = arith.constant 0 : index
    %29 = vector.load %arg3[%c0_34, %c2_35, %c1_36, %c0_37] : memref<1x4x16x128xbf16, #tpu.memory_space<vmem>>, vector<1x1x8x128xbf16>
    %30 = vector.shape_cast %29 : vector<1x1x8x128xbf16> to vector<8x128xbf16>
    %c5 = arith.constant 5 : index
    %c0_38 = arith.constant 0 : index
    %c0_39 = arith.constant 0 : index
    %31 = vector.load %arg4[%c5, %c0_38, %c0_39] : memref<9x128x128xbf16, #tpu.memory_space<vmem>>, vector<1x128x128xbf16>
    %32 = vector.shape_cast %31 : vector<1x128x128xbf16> to vector<128x128xbf16>
    %cst_40 = arith.constant dense<0.000000e+00> : vector<8x128xf32>
    %33 = tpu.matmul %30, %32, %cst_40 {dimension_numbers = #tpu.dot_dimension_numbers<[1], [0], [0], [1], [0, 0, 1, 1], [], []>} : vector<8x128xbf16>, vector<128x128xbf16>, vector<8x128xf32> -> vector<8x128xf32>
    %34 = arith.addf %28, %33 : vector<8x128xf32>
    %c0_41 = arith.constant 0 : index
    %c0_42 = arith.constant 0 : index
    %c3_43 = arith.constant 3 : index
    %c0_44 = arith.constant 0 : index
    %35 = vector.load %arg3[%c0_41, %c0_42, %c3_43, %c0_44] : memref<1x4x16x128xbf16, #tpu.memory_space<vmem>>, vector<1x1x8x128xbf16>
    %36 = vector.shape_cast %35 : vector<1x1x8x128xbf16> to vector<8x128xbf16>
    %c6 = arith.constant 6 : index
    %c0_45 = arith.constant 0 : index
    %c0_46 = arith.constant 0 : index
    %37 = vector.load %arg4[%c6, %c0_45, %c0_46] : memref<9x128x128xbf16, #tpu.memory_space<vmem>>, vector<1x128x128xbf16>
    %38 = vector.shape_cast %37 : vector<1x128x128xbf16> to vector<128x128xbf16>
    %cst_47 = arith.constant dense<0.000000e+00> : vector<8x128xf32>
    %39 = tpu.matmul %36, %38, %cst_47 {dimension_numbers = #tpu.dot_dimension_numbers<[1], [0], [0], [1], [0, 0, 1, 1], [], []>} : vector<8x128xbf16>, vector<128x128xbf16>, vector<8x128xf32> -> vector<8x128xf32>
    %40 = arith.addf %34, %39 : vector<8x128xf32>
    %c0_48 = arith.constant 0 : index
    %c1_49 = arith.constant 1 : index
    %c3_50 = arith.constant 3 : index
    %c0_51 = arith.constant 0 : index
    %41 = vector.load %arg3[%c0_48, %c1_49, %c3_50, %c0_51] : memref<1x4x16x128xbf16, #tpu.memory_space<vmem>>, vector<1x1x8x128xbf16>
    %42 = vector.shape_cast %41 : vector<1x1x8x128xbf16> to vector<8x128xbf16>
    %c7 = arith.constant 7 : index
    %c0_52 = arith.constant 0 : index
    %c0_53 = arith.constant 0 : index
    %43 = vector.load %arg4[%c7, %c0_52, %c0_53] : memref<9x128x128xbf16, #tpu.memory_space<vmem>>, vector<1x128x128xbf16>
    %44 = vector.shape_cast %43 : vector<1x128x128xbf16> to vector<128x128xbf16>
    %cst_54 = arith.constant dense<0.000000e+00> : vector<8x128xf32>
    %45 = tpu.matmul %42, %44, %cst_54 {dimension_numbers = #tpu.dot_dimension_numbers<[1], [0], [0], [1], [0, 0, 1, 1], [], []>} : vector<8x128xbf16>, vector<128x128xbf16>, vector<8x128xf32> -> vector<8x128xf32>
    %46 = arith.addf %40, %45 : vector<8x128xf32>
    %c0_55 = arith.constant 0 : index
    %c0_56 = arith.constant 0 : index
    %c4_57 = arith.constant 4 : index
    %c0_58 = arith.constant 0 : index
    %47 = vector.load %arg3[%c0_55, %c0_56, %c4_57, %c0_58] : memref<1x4x16x128xbf16, #tpu.memory_space<vmem>>, vector<1x1x8x128xbf16>
    %48 = vector.shape_cast %47 : vector<1x1x8x128xbf16> to vector<8x128xbf16>
    %c8 = arith.constant 8 : index
    %c0_59 = arith.constant 0 : index
    %c0_60 = arith.constant 0 : index
    %49 = vector.load %arg4[%c8, %c0_59, %c0_60] : memref<9x128x128xbf16, #tpu.memory_space<vmem>>, vector<1x128x128xbf16>
    %50 = vector.shape_cast %49 : vector<1x128x128xbf16> to vector<128x128xbf16>
    %cst_61 = arith.constant dense<0.000000e+00> : vector<8x128xf32>
    %51 = tpu.matmul %48, %50, %cst_61 {dimension_numbers = #tpu.dot_dimension_numbers<[1], [0], [0], [1], [0, 0, 1, 1], [], []>} : vector<8x128xbf16>, vector<128x128xbf16>, vector<8x128xf32> -> vector<8x128xf32>
    %52 = arith.addf %46, %51 : vector<8x128xf32>
    %c0_62 = arith.constant 0 : index
    %c0_63 = arith.constant 0 : index
    %53 = vector.load %arg5[%c0_62, %c0_63] : memref<1x128xf32, #tpu.memory_space<vmem>>, vector<1x128xf32>
    %54 = vector.broadcast %53 : vector<1x128xf32> to vector<8x128xf32>
    %55 = arith.mulf %52, %54 : vector<8x128xf32>
    %c0_64 = arith.constant 0 : index
    %c0_65 = arith.constant 0 : index
    %56 = vector.load %arg6[%c0_64, %c0_65] : memref<1x128xf32, #tpu.memory_space<vmem>>, vector<1x128xf32>
    %57 = vector.broadcast %56 : vector<1x128xf32> to vector<8x128xf32>
    %58 = arith.addf %55, %57 : vector<8x128xf32>
    %cst_66 = arith.constant 0.000000e+00 : f32
    %59 = vector.broadcast %cst_66 : f32 to vector<8x128xf32>
    %60 = arith.maximumf %58, %59 : vector<8x128xf32>
    %61 = arith.truncf %60 : vector<8x128xf32> to vector<8x128xbf16>
    %c0_67 = arith.constant 0 : index
    %c0_68 = arith.constant 0 : index
    %c0_69 = arith.constant 0 : index
    %62 = vector.load %arg7[%c0_67, %c0_68, %c0_69] : memref<1x8x128xbf16, #tpu.memory_space<vmem>>, vector<1x8x128xbf16>
    %63 = vector.shape_cast %62 : vector<1x8x128xbf16> to vector<8x128xbf16>
    %64 = vector.shape_cast %61 : vector<8x128xbf16> to vector<1x8x128xbf16>
    tpu.vector_store %arg7[%c0_67, %c0_68, %c0_69], %64 {strides = array<i32>} : memref<1x8x128xbf16, #tpu.memory_space<vmem>>, vector<1x8x128xbf16>,
    return
  }
  func.func @transform_0(%arg0: i32, %arg1: i32, %arg2: i32) -> (i32, i32, i32, i32) {
    %c0_i32 = arith.constant 0 : i32
    %c0_i32_0 = arith.constant 0 : i32
    %c0_i32_1 = arith.constant 0 : i32
    %c0_i32_2 = arith.constant 0 : i32
    return %arg0, %c0_i32, %c0_i32_0, %c0_i32_1 : i32, i32, i32, i32
  }
  func.func @transform_1(%arg0: i32, %arg1: i32, %arg2: i32) -> (i32, i32, i32) {
    %c0_i32 = arith.constant 0 : i32
    %c0_i32_0 = arith.constant 0 : i32
    %c0_i32_1 = arith.constant 0 : i32
    return %c0_i32, %c0_i32_0, %arg1 : i32, i32, i32
  }
  func.func @transform_2(%arg0: i32, %arg1: i32, %arg2: i32) -> (i32, i32) {
    %c0_i32 = arith.constant 0 : i32
    %c0_i32_0 = arith.constant 0 : i32
    return %c0_i32, %arg1 : i32, i32
  }
  func.func @transform_3(%arg0: i32, %arg1: i32, %arg2: i32) -> (i32, i32) {
    %c0_i32 = arith.constant 0 : i32
    %c0_i32_0 = arith.constant 0 : i32
    return %c0_i32, %arg1 : i32, i32
  }
  func.func @transform_4(%arg0: i32, %arg1: i32, %arg2: i32) -> (i32, i32, i32) {
    %c0_i32 = arith.constant 0 : i32
    return %arg0, %arg2, %arg1 : i32, i32, i32
  }
}

module attributes {stable_mosaic.version = 11 : i64} {
  func.func @_conv_bn_res_kernel(%arg0: i32, %arg1: i32, %arg2: i32, %arg3: memref<1x1x24x128xbf16, #tpu.memory_space<vmem>>, %arg4: memref<9x128x128xbf16, #tpu.memory_space<vmem>>, %arg5: memref<1x128xf32, #tpu.memory_space<vmem>>, %arg6: memref<1x128xf32, #tpu.memory_space<vmem>>, %arg7: memref<1x8x128xbf16, #tpu.memory_space<vmem>>, %arg8: memref<1x8x128xbf16, #tpu.memory_space<vmem>>) attributes {dimension_semantics = [#tpu.dimension_semantics<parallel>, #tpu.dimension_semantics<parallel>, #tpu.dimension_semantics<parallel>], iteration_bounds = array<i64: 2, 1, 1>, scalar_prefetch = 0 : i64, scratch_operands = 0 : i64, tpu.core_type = #tpu.core_type<tc>, window_params = [{transform_indices = @transform_0, window_bounds = array<i64: 1, 1, 24, 128>}, {transform_indices = @transform_1, window_bounds = array<i64: 9, 128, 128>}, {transform_indices = @transform_2, window_bounds = array<i64: 1, 128>}, {transform_indices = @transform_3, window_bounds = array<i64: 1, 128>}, {transform_indices = @transform_4, window_bounds = array<i64: 1, 8, 128>}, {transform_indices = @transform_5, window_bounds = array<i64: 1, 8, 128>}]} {
    %c0 = arith.constant 0 : index
    %c0_0 = arith.constant 0 : index
    %c0_1 = arith.constant 0 : index
    %c0_2 = arith.constant 0 : index
    %0 = vector.load %arg3[%c0, %c0_0, %c0_1, %c0_2] : memref<1x1x24x128xbf16, #tpu.memory_space<vmem>>, vector<1x1x8x128xbf16>
    %1 = vector.shape_cast %0 : vector<1x1x8x128xbf16> to vector<8x128xbf16>
    %c0_3 = arith.constant 0 : index
    %c0_4 = arith.constant 0 : index
    %c0_5 = arith.constant 0 : index
    %2 = vector.load %arg4[%c0_3, %c0_4, %c0_5] : memref<9x128x128xbf16, #tpu.memory_space<vmem>>, vector<1x128x128xbf16>
    %3 = vector.shape_cast %2 : vector<1x128x128xbf16> to vector<128x128xbf16>
    %cst = arith.constant dense<0.000000e+00> : vector<8x128xf32>
    %4 = tpu.matmul %1, %3, %cst {dimension_numbers = #tpu.dot_dimension_numbers<[1], [0], [0], [1], [0, 0, 1, 1], [], []>} : vector<8x128xbf16>, vector<128x128xbf16>, vector<8x128xf32> -> vector<8x128xf32>
    %c0_6 = arith.constant 0 : index
    %c0_7 = arith.constant 0 : index
    %c1 = arith.constant 1 : index
    %c0_8 = arith.constant 0 : index
    %5 = vector.load %arg3[%c0_6, %c0_7, %c1, %c0_8] : memref<1x1x24x128xbf16, #tpu.memory_space<vmem>>, vector<1x1x8x128xbf16>
    %6 = vector.shape_cast %5 : vector<1x1x8x128xbf16> to vector<8x128xbf16>
    %c1_9 = arith.constant 1 : index
    %c0_10 = arith.constant 0 : index
    %c0_11 = arith.constant 0 : index
    %7 = vector.load %arg4[%c1_9, %c0_10, %c0_11] : memref<9x128x128xbf16, #tpu.memory_space<vmem>>, vector<1x128x128xbf16>
    %8 = vector.shape_cast %7 : vector<1x128x128xbf16> to vector<128x128xbf16>
    %cst_12 = arith.constant dense<0.000000e+00> : vector<8x128xf32>
    %9 = tpu.matmul %6, %8, %cst_12 {dimension_numbers = #tpu.dot_dimension_numbers<[1], [0], [0], [1], [0, 0, 1, 1], [], []>} : vector<8x128xbf16>, vector<128x128xbf16>, vector<8x128xf32> -> vector<8x128xf32>
    %10 = arith.addf %4, %9 : vector<8x128xf32>
    %c0_13 = arith.constant 0 : index
    %c0_14 = arith.constant 0 : index
    %c2 = arith.constant 2 : index
    %c0_15 = arith.constant 0 : index
    %11 = vector.load %arg3[%c0_13, %c0_14, %c2, %c0_15] : memref<1x1x24x128xbf16, #tpu.memory_space<vmem>>, vector<1x1x8x128xbf16>
    %12 = vector.shape_cast %11 : vector<1x1x8x128xbf16> to vector<8x128xbf16>
    %c2_16 = arith.constant 2 : index
    %c0_17 = arith.constant 0 : index
    %c0_18 = arith.constant 0 : index
    %13 = vector.load %arg4[%c2_16, %c0_17, %c0_18] : memref<9x128x128xbf16, #tpu.memory_space<vmem>>, vector<1x128x128xbf16>
    %14 = vector.shape_cast %13 : vector<1x128x128xbf16> to vector<128x128xbf16>
    %cst_19 = arith.constant dense<0.000000e+00> : vector<8x128xf32>
    %15 = tpu.matmul %12, %14, %cst_19 {dimension_numbers = #tpu.dot_dimension_numbers<[1], [0], [0], [1], [0, 0, 1, 1], [], []>} : vector<8x128xbf16>, vector<128x128xbf16>, vector<8x128xf32> -> vector<8x128xf32>
    %16 = arith.addf %10, %15 : vector<8x128xf32>
    %c0_20 = arith.constant 0 : index
    %c0_21 = arith.constant 0 : index
    %c4 = arith.constant 4 : index
    %c0_22 = arith.constant 0 : index
    %17 = vector.load %arg3[%c0_20, %c0_21, %c4, %c0_22] : memref<1x1x24x128xbf16, #tpu.memory_space<vmem>>, vector<1x1x8x128xbf16>
    %18 = vector.shape_cast %17 : vector<1x1x8x128xbf16> to vector<8x128xbf16>
    %c3 = arith.constant 3 : index
    %c0_23 = arith.constant 0 : index
    %c0_24 = arith.constant 0 : index
    %19 = vector.load %arg4[%c3, %c0_23, %c0_24] : memref<9x128x128xbf16, #tpu.memory_space<vmem>>, vector<1x128x128xbf16>
    %20 = vector.shape_cast %19 : vector<1x128x128xbf16> to vector<128x128xbf16>
    %cst_25 = arith.constant dense<0.000000e+00> : vector<8x128xf32>
    %21 = tpu.matmul %18, %20, %cst_25 {dimension_numbers = #tpu.dot_dimension_numbers<[1], [0], [0], [1], [0, 0, 1, 1], [], []>} : vector<8x128xbf16>, vector<128x128xbf16>, vector<8x128xf32> -> vector<8x128xf32>
    %22 = arith.addf %16, %21 : vector<8x128xf32>
    %c0_26 = arith.constant 0 : index
    %c0_27 = arith.constant 0 : index
    %c5 = arith.constant 5 : index
    %c0_28 = arith.constant 0 : index
    %23 = vector.load %arg3[%c0_26, %c0_27, %c5, %c0_28] : memref<1x1x24x128xbf16, #tpu.memory_space<vmem>>, vector<1x1x8x128xbf16>
    %24 = vector.shape_cast %23 : vector<1x1x8x128xbf16> to vector<8x128xbf16>
    %c4_29 = arith.constant 4 : index
    %c0_30 = arith.constant 0 : index
    %c0_31 = arith.constant 0 : index
    %25 = vector.load %arg4[%c4_29, %c0_30, %c0_31] : memref<9x128x128xbf16, #tpu.memory_space<vmem>>, vector<1x128x128xbf16>
    %26 = vector.shape_cast %25 : vector<1x128x128xbf16> to vector<128x128xbf16>
    %cst_32 = arith.constant dense<0.000000e+00> : vector<8x128xf32>
    %27 = tpu.matmul %24, %26, %cst_32 {dimension_numbers = #tpu.dot_dimension_numbers<[1], [0], [0], [1], [0, 0, 1, 1], [], []>} : vector<8x128xbf16>, vector<128x128xbf16>, vector<8x128xf32> -> vector<8x128xf32>
    %28 = arith.addf %22, %27 : vector<8x128xf32>
    %c0_33 = arith.constant 0 : index
    %c0_34 = arith.constant 0 : index
    %c6 = arith.constant 6 : index
    %c0_35 = arith.constant 0 : index
    %29 = vector.load %arg3[%c0_33, %c0_34, %c6, %c0_35] : memref<1x1x24x128xbf16, #tpu.memory_space<vmem>>, vector<1x1x8x128xbf16>
    %30 = vector.shape_cast %29 : vector<1x1x8x128xbf16> to vector<8x128xbf16>
    %c5_36 = arith.constant 5 : index
    %c0_37 = arith.constant 0 : index
    %c0_38 = arith.constant 0 : index
    %31 = vector.load %arg4[%c5_36, %c0_37, %c0_38] : memref<9x128x128xbf16, #tpu.memory_space<vmem>>, vector<1x128x128xbf16>
    %32 = vector.shape_cast %31 : vector<1x128x128xbf16> to vector<128x128xbf16>
    %cst_39 = arith.constant dense<0.000000e+00> : vector<8x128xf32>
    %33 = tpu.matmul %30, %32, %cst_39 {dimension_numbers = #tpu.dot_dimension_numbers<[1], [0], [0], [1], [0, 0, 1, 1], [], []>} : vector<8x128xbf16>, vector<128x128xbf16>, vector<8x128xf32> -> vector<8x128xf32>
    %34 = arith.addf %28, %33 : vector<8x128xf32>
    %c0_40 = arith.constant 0 : index
    %c0_41 = arith.constant 0 : index
    %c8 = arith.constant 8 : index
    %c0_42 = arith.constant 0 : index
    %35 = vector.load %arg3[%c0_40, %c0_41, %c8, %c0_42] : memref<1x1x24x128xbf16, #tpu.memory_space<vmem>>, vector<1x1x8x128xbf16>
    %36 = vector.shape_cast %35 : vector<1x1x8x128xbf16> to vector<8x128xbf16>
    %c6_43 = arith.constant 6 : index
    %c0_44 = arith.constant 0 : index
    %c0_45 = arith.constant 0 : index
    %37 = vector.load %arg4[%c6_43, %c0_44, %c0_45] : memref<9x128x128xbf16, #tpu.memory_space<vmem>>, vector<1x128x128xbf16>
    %38 = vector.shape_cast %37 : vector<1x128x128xbf16> to vector<128x128xbf16>
    %cst_46 = arith.constant dense<0.000000e+00> : vector<8x128xf32>
    %39 = tpu.matmul %36, %38, %cst_46 {dimension_numbers = #tpu.dot_dimension_numbers<[1], [0], [0], [1], [0, 0, 1, 1], [], []>} : vector<8x128xbf16>, vector<128x128xbf16>, vector<8x128xf32> -> vector<8x128xf32>
    %40 = arith.addf %34, %39 : vector<8x128xf32>
    %c0_47 = arith.constant 0 : index
    %c0_48 = arith.constant 0 : index
    %c9 = arith.constant 9 : index
    %c0_49 = arith.constant 0 : index
    %41 = vector.load %arg3[%c0_47, %c0_48, %c9, %c0_49] : memref<1x1x24x128xbf16, #tpu.memory_space<vmem>>, vector<1x1x8x128xbf16>
    %42 = vector.shape_cast %41 : vector<1x1x8x128xbf16> to vector<8x128xbf16>
    %c7 = arith.constant 7 : index
    %c0_50 = arith.constant 0 : index
    %c0_51 = arith.constant 0 : index
    %43 = vector.load %arg4[%c7, %c0_50, %c0_51] : memref<9x128x128xbf16, #tpu.memory_space<vmem>>, vector<1x128x128xbf16>
    %44 = vector.shape_cast %43 : vector<1x128x128xbf16> to vector<128x128xbf16>
    %cst_52 = arith.constant dense<0.000000e+00> : vector<8x128xf32>
    %45 = tpu.matmul %42, %44, %cst_52 {dimension_numbers = #tpu.dot_dimension_numbers<[1], [0], [0], [1], [0, 0, 1, 1], [], []>} : vector<8x128xbf16>, vector<128x128xbf16>, vector<8x128xf32> -> vector<8x128xf32>
    %46 = arith.addf %40, %45 : vector<8x128xf32>
    %c0_53 = arith.constant 0 : index
    %c0_54 = arith.constant 0 : index
    %c10 = arith.constant 10 : index
    %c0_55 = arith.constant 0 : index
    %47 = vector.load %arg3[%c0_53, %c0_54, %c10, %c0_55] : memref<1x1x24x128xbf16, #tpu.memory_space<vmem>>, vector<1x1x8x128xbf16>
    %48 = vector.shape_cast %47 : vector<1x1x8x128xbf16> to vector<8x128xbf16>
    %c8_56 = arith.constant 8 : index
    %c0_57 = arith.constant 0 : index
    %c0_58 = arith.constant 0 : index
    %49 = vector.load %arg4[%c8_56, %c0_57, %c0_58] : memref<9x128x128xbf16, #tpu.memory_space<vmem>>, vector<1x128x128xbf16>
    %50 = vector.shape_cast %49 : vector<1x128x128xbf16> to vector<128x128xbf16>
    %cst_59 = arith.constant dense<0.000000e+00> : vector<8x128xf32>
    %51 = tpu.matmul %48, %50, %cst_59 {dimension_numbers = #tpu.dot_dimension_numbers<[1], [0], [0], [1], [0, 0, 1, 1], [], []>} : vector<8x128xbf16>, vector<128x128xbf16>, vector<8x128xf32> -> vector<8x128xf32>
    %52 = arith.addf %46, %51 : vector<8x128xf32>
    %c0_60 = arith.constant 0 : index
    %c0_61 = arith.constant 0 : index
    %53 = vector.load %arg5[%c0_60, %c0_61] : memref<1x128xf32, #tpu.memory_space<vmem>>, vector<1x128xf32>
    %54 = vector.broadcast %53 : vector<1x128xf32> to vector<8x128xf32>
    %55 = arith.mulf %52, %54 : vector<8x128xf32>
    %c0_62 = arith.constant 0 : index
    %c0_63 = arith.constant 0 : index
    %56 = vector.load %arg6[%c0_62, %c0_63] : memref<1x128xf32, #tpu.memory_space<vmem>>, vector<1x128xf32>
    %57 = vector.broadcast %56 : vector<1x128xf32> to vector<8x128xf32>
    %58 = arith.addf %55, %57 : vector<8x128xf32>
    %c0_64 = arith.constant 0 : index
    %c0_65 = arith.constant 0 : index
    %c0_66 = arith.constant 0 : index
    %59 = vector.load %arg7[%c0_64, %c0_65, %c0_66] : memref<1x8x128xbf16, #tpu.memory_space<vmem>>, vector<1x8x128xbf16>
    %60 = vector.shape_cast %59 : vector<1x8x128xbf16> to vector<8x128xbf16>
    %61 = arith.extf %60 : vector<8x128xbf16> to vector<8x128xf32>
    %62 = arith.addf %58, %61 : vector<8x128xf32>
    %cst_67 = arith.constant 0.000000e+00 : f32
    %63 = vector.broadcast %cst_67 : f32 to vector<8x128xf32>
    %64 = arith.maximumf %62, %63 : vector<8x128xf32>
    %65 = arith.truncf %64 : vector<8x128xf32> to vector<8x128xbf16>
    %c0_68 = arith.constant 0 : index
    %c0_69 = arith.constant 0 : index
    %c0_70 = arith.constant 0 : index
    %66 = vector.load %arg8[%c0_68, %c0_69, %c0_70] : memref<1x8x128xbf16, #tpu.memory_space<vmem>>, vector<1x8x128xbf16>
    %67 = vector.shape_cast %66 : vector<1x8x128xbf16> to vector<8x128xbf16>
    %68 = vector.shape_cast %65 : vector<8x128xbf16> to vector<1x8x128xbf16>
    tpu.vector_store %arg8[%c0_68, %c0_69, %c0_70], %68 {strides = array<i32>} : memref<1x8x128xbf16, #tpu.memory_space<vmem>>, vector<1x8x128xbf16>,
    return
  }
  func.func @transform_0(%arg0: i32, %arg1: i32, %arg2: i32) -> (i32, i32, i32, i32) {
    %c0_i32 = arith.constant 0 : i32
    %c0_i32_0 = arith.constant 0 : i32
    %c0_i32_1 = arith.constant 0 : i32
    %c0_i32_2 = arith.constant 0 : i32
    return %arg0, %c0_i32, %c0_i32_0, %c0_i32_1 : i32, i32, i32, i32
  }
  func.func @transform_1(%arg0: i32, %arg1: i32, %arg2: i32) -> (i32, i32, i32) {
    %c0_i32 = arith.constant 0 : i32
    %c0_i32_0 = arith.constant 0 : i32
    %c0_i32_1 = arith.constant 0 : i32
    return %c0_i32, %c0_i32_0, %arg1 : i32, i32, i32
  }
  func.func @transform_2(%arg0: i32, %arg1: i32, %arg2: i32) -> (i32, i32) {
    %c0_i32 = arith.constant 0 : i32
    %c0_i32_0 = arith.constant 0 : i32
    return %c0_i32, %arg1 : i32, i32
  }
  func.func @transform_3(%arg0: i32, %arg1: i32, %arg2: i32) -> (i32, i32) {
    %c0_i32 = arith.constant 0 : i32
    %c0_i32_0 = arith.constant 0 : i32
    return %c0_i32, %arg1 : i32, i32
  }
  func.func @transform_4(%arg0: i32, %arg1: i32, %arg2: i32) -> (i32, i32, i32) {
    %c0_i32 = arith.constant 0 : i32
    return %arg0, %arg2, %arg1 : i32, i32, i32
  }
  func.func @transform_5(%arg0: i32, %arg1: i32, %arg2: i32) -> (i32, i32, i32) {
    %c0_i32 = arith.constant 0 : i32
    return %arg0, %arg2, %arg1 : i32, i32, i32
  }
}

module attributes {stable_mosaic.version = 11 : i64} {
  func.func @_conv_bn_kernel(%arg0: i32, %arg1: i32, %arg2: i32, %arg3: memref<1x1x24x128xbf16, #tpu.memory_space<vmem>>, %arg4: memref<9x128x128xbf16, #tpu.memory_space<vmem>>, %arg5: memref<1x128xf32, #tpu.memory_space<vmem>>, %arg6: memref<1x128xf32, #tpu.memory_space<vmem>>, %arg7: memref<1x8x128xbf16, #tpu.memory_space<vmem>>) attributes {dimension_semantics = [#tpu.dimension_semantics<parallel>, #tpu.dimension_semantics<parallel>, #tpu.dimension_semantics<parallel>], iteration_bounds = array<i64: 2, 1, 1>, scalar_prefetch = 0 : i64, scratch_operands = 0 : i64, tpu.core_type = #tpu.core_type<tc>, window_params = [{transform_indices = @transform_0, window_bounds = array<i64: 1, 1, 24, 128>}, {transform_indices = @transform_1, window_bounds = array<i64: 9, 128, 128>}, {transform_indices = @transform_2, window_bounds = array<i64: 1, 128>}, {transform_indices = @transform_3, window_bounds = array<i64: 1, 128>}, {transform_indices = @transform_4, window_bounds = array<i64: 1, 8, 128>}]} {
    %c0 = arith.constant 0 : index
    %c0_0 = arith.constant 0 : index
    %c0_1 = arith.constant 0 : index
    %c0_2 = arith.constant 0 : index
    %0 = vector.load %arg3[%c0, %c0_0, %c0_1, %c0_2] : memref<1x1x24x128xbf16, #tpu.memory_space<vmem>>, vector<1x1x8x128xbf16>
    %1 = vector.shape_cast %0 : vector<1x1x8x128xbf16> to vector<8x128xbf16>
    %c0_3 = arith.constant 0 : index
    %c0_4 = arith.constant 0 : index
    %c0_5 = arith.constant 0 : index
    %2 = vector.load %arg4[%c0_3, %c0_4, %c0_5] : memref<9x128x128xbf16, #tpu.memory_space<vmem>>, vector<1x128x128xbf16>
    %3 = vector.shape_cast %2 : vector<1x128x128xbf16> to vector<128x128xbf16>
    %cst = arith.constant dense<0.000000e+00> : vector<8x128xf32>
    %4 = tpu.matmul %1, %3, %cst {dimension_numbers = #tpu.dot_dimension_numbers<[1], [0], [0], [1], [0, 0, 1, 1], [], []>} : vector<8x128xbf16>, vector<128x128xbf16>, vector<8x128xf32> -> vector<8x128xf32>
    %c0_6 = arith.constant 0 : index
    %c0_7 = arith.constant 0 : index
    %c1 = arith.constant 1 : index
    %c0_8 = arith.constant 0 : index
    %5 = vector.load %arg3[%c0_6, %c0_7, %c1, %c0_8] : memref<1x1x24x128xbf16, #tpu.memory_space<vmem>>, vector<1x1x8x128xbf16>
    %6 = vector.shape_cast %5 : vector<1x1x8x128xbf16> to vector<8x128xbf16>
    %c1_9 = arith.constant 1 : index
    %c0_10 = arith.constant 0 : index
    %c0_11 = arith.constant 0 : index
    %7 = vector.load %arg4[%c1_9, %c0_10, %c0_11] : memref<9x128x128xbf16, #tpu.memory_space<vmem>>, vector<1x128x128xbf16>
    %8 = vector.shape_cast %7 : vector<1x128x128xbf16> to vector<128x128xbf16>
    %cst_12 = arith.constant dense<0.000000e+00> : vector<8x128xf32>
    %9 = tpu.matmul %6, %8, %cst_12 {dimension_numbers = #tpu.dot_dimension_numbers<[1], [0], [0], [1], [0, 0, 1, 1], [], []>} : vector<8x128xbf16>, vector<128x128xbf16>, vector<8x128xf32> -> vector<8x128xf32>
    %10 = arith.addf %4, %9 : vector<8x128xf32>
    %c0_13 = arith.constant 0 : index
    %c0_14 = arith.constant 0 : index
    %c2 = arith.constant 2 : index
    %c0_15 = arith.constant 0 : index
    %11 = vector.load %arg3[%c0_13, %c0_14, %c2, %c0_15] : memref<1x1x24x128xbf16, #tpu.memory_space<vmem>>, vector<1x1x8x128xbf16>
    %12 = vector.shape_cast %11 : vector<1x1x8x128xbf16> to vector<8x128xbf16>
    %c2_16 = arith.constant 2 : index
    %c0_17 = arith.constant 0 : index
    %c0_18 = arith.constant 0 : index
    %13 = vector.load %arg4[%c2_16, %c0_17, %c0_18] : memref<9x128x128xbf16, #tpu.memory_space<vmem>>, vector<1x128x128xbf16>
    %14 = vector.shape_cast %13 : vector<1x128x128xbf16> to vector<128x128xbf16>
    %cst_19 = arith.constant dense<0.000000e+00> : vector<8x128xf32>
    %15 = tpu.matmul %12, %14, %cst_19 {dimension_numbers = #tpu.dot_dimension_numbers<[1], [0], [0], [1], [0, 0, 1, 1], [], []>} : vector<8x128xbf16>, vector<128x128xbf16>, vector<8x128xf32> -> vector<8x128xf32>
    %16 = arith.addf %10, %15 : vector<8x128xf32>
    %c0_20 = arith.constant 0 : index
    %c0_21 = arith.constant 0 : index
    %c4 = arith.constant 4 : index
    %c0_22 = arith.constant 0 : index
    %17 = vector.load %arg3[%c0_20, %c0_21, %c4, %c0_22] : memref<1x1x24x128xbf16, #tpu.memory_space<vmem>>, vector<1x1x8x128xbf16>
    %18 = vector.shape_cast %17 : vector<1x1x8x128xbf16> to vector<8x128xbf16>
    %c3 = arith.constant 3 : index
    %c0_23 = arith.constant 0 : index
    %c0_24 = arith.constant 0 : index
    %19 = vector.load %arg4[%c3, %c0_23, %c0_24] : memref<9x128x128xbf16, #tpu.memory_space<vmem>>, vector<1x128x128xbf16>
    %20 = vector.shape_cast %19 : vector<1x128x128xbf16> to vector<128x128xbf16>
    %cst_25 = arith.constant dense<0.000000e+00> : vector<8x128xf32>
    %21 = tpu.matmul %18, %20, %cst_25 {dimension_numbers = #tpu.dot_dimension_numbers<[1], [0], [0], [1], [0, 0, 1, 1], [], []>} : vector<8x128xbf16>, vector<128x128xbf16>, vector<8x128xf32> -> vector<8x128xf32>
    %22 = arith.addf %16, %21 : vector<8x128xf32>
    %c0_26 = arith.constant 0 : index
    %c0_27 = arith.constant 0 : index
    %c5 = arith.constant 5 : index
    %c0_28 = arith.constant 0 : index
    %23 = vector.load %arg3[%c0_26, %c0_27, %c5, %c0_28] : memref<1x1x24x128xbf16, #tpu.memory_space<vmem>>, vector<1x1x8x128xbf16>
    %24 = vector.shape_cast %23 : vector<1x1x8x128xbf16> to vector<8x128xbf16>
    %c4_29 = arith.constant 4 : index
    %c0_30 = arith.constant 0 : index
    %c0_31 = arith.constant 0 : index
    %25 = vector.load %arg4[%c4_29, %c0_30, %c0_31] : memref<9x128x128xbf16, #tpu.memory_space<vmem>>, vector<1x128x128xbf16>
    %26 = vector.shape_cast %25 : vector<1x128x128xbf16> to vector<128x128xbf16>
    %cst_32 = arith.constant dense<0.000000e+00> : vector<8x128xf32>
    %27 = tpu.matmul %24, %26, %cst_32 {dimension_numbers = #tpu.dot_dimension_numbers<[1], [0], [0], [1], [0, 0, 1, 1], [], []>} : vector<8x128xbf16>, vector<128x128xbf16>, vector<8x128xf32> -> vector<8x128xf32>
    %28 = arith.addf %22, %27 : vector<8x128xf32>
    %c0_33 = arith.constant 0 : index
    %c0_34 = arith.constant 0 : index
    %c6 = arith.constant 6 : index
    %c0_35 = arith.constant 0 : index
    %29 = vector.load %arg3[%c0_33, %c0_34, %c6, %c0_35] : memref<1x1x24x128xbf16, #tpu.memory_space<vmem>>, vector<1x1x8x128xbf16>
    %30 = vector.shape_cast %29 : vector<1x1x8x128xbf16> to vector<8x128xbf16>
    %c5_36 = arith.constant 5 : index
    %c0_37 = arith.constant 0 : index
    %c0_38 = arith.constant 0 : index
    %31 = vector.load %arg4[%c5_36, %c0_37, %c0_38] : memref<9x128x128xbf16, #tpu.memory_space<vmem>>, vector<1x128x128xbf16>
    %32 = vector.shape_cast %31 : vector<1x128x128xbf16> to vector<128x128xbf16>
    %cst_39 = arith.constant dense<0.000000e+00> : vector<8x128xf32>
    %33 = tpu.matmul %30, %32, %cst_39 {dimension_numbers = #tpu.dot_dimension_numbers<[1], [0], [0], [1], [0, 0, 1, 1], [], []>} : vector<8x128xbf16>, vector<128x128xbf16>, vector<8x128xf32> -> vector<8x128xf32>
    %34 = arith.addf %28, %33 : vector<8x128xf32>
    %c0_40 = arith.constant 0 : index
    %c0_41 = arith.constant 0 : index
    %c8 = arith.constant 8 : index
    %c0_42 = arith.constant 0 : index
    %35 = vector.load %arg3[%c0_40, %c0_41, %c8, %c0_42] : memref<1x1x24x128xbf16, #tpu.memory_space<vmem>>, vector<1x1x8x128xbf16>
    %36 = vector.shape_cast %35 : vector<1x1x8x128xbf16> to vector<8x128xbf16>
    %c6_43 = arith.constant 6 : index
    %c0_44 = arith.constant 0 : index
    %c0_45 = arith.constant 0 : index
    %37 = vector.load %arg4[%c6_43, %c0_44, %c0_45] : memref<9x128x128xbf16, #tpu.memory_space<vmem>>, vector<1x128x128xbf16>
    %38 = vector.shape_cast %37 : vector<1x128x128xbf16> to vector<128x128xbf16>
    %cst_46 = arith.constant dense<0.000000e+00> : vector<8x128xf32>
    %39 = tpu.matmul %36, %38, %cst_46 {dimension_numbers = #tpu.dot_dimension_numbers<[1], [0], [0], [1], [0, 0, 1, 1], [], []>} : vector<8x128xbf16>, vector<128x128xbf16>, vector<8x128xf32> -> vector<8x128xf32>
    %40 = arith.addf %34, %39 : vector<8x128xf32>
    %c0_47 = arith.constant 0 : index
    %c0_48 = arith.constant 0 : index
    %c9 = arith.constant 9 : index
    %c0_49 = arith.constant 0 : index
    %41 = vector.load %arg3[%c0_47, %c0_48, %c9, %c0_49] : memref<1x1x24x128xbf16, #tpu.memory_space<vmem>>, vector<1x1x8x128xbf16>
    %42 = vector.shape_cast %41 : vector<1x1x8x128xbf16> to vector<8x128xbf16>
    %c7 = arith.constant 7 : index
    %c0_50 = arith.constant 0 : index
    %c0_51 = arith.constant 0 : index
    %43 = vector.load %arg4[%c7, %c0_50, %c0_51] : memref<9x128x128xbf16, #tpu.memory_space<vmem>>, vector<1x128x128xbf16>
    %44 = vector.shape_cast %43 : vector<1x128x128xbf16> to vector<128x128xbf16>
    %cst_52 = arith.constant dense<0.000000e+00> : vector<8x128xf32>
    %45 = tpu.matmul %42, %44, %cst_52 {dimension_numbers = #tpu.dot_dimension_numbers<[1], [0], [0], [1], [0, 0, 1, 1], [], []>} : vector<8x128xbf16>, vector<128x128xbf16>, vector<8x128xf32> -> vector<8x128xf32>
    %46 = arith.addf %40, %45 : vector<8x128xf32>
    %c0_53 = arith.constant 0 : index
    %c0_54 = arith.constant 0 : index
    %c10 = arith.constant 10 : index
    %c0_55 = arith.constant 0 : index
    %47 = vector.load %arg3[%c0_53, %c0_54, %c10, %c0_55] : memref<1x1x24x128xbf16, #tpu.memory_space<vmem>>, vector<1x1x8x128xbf16>
    %48 = vector.shape_cast %47 : vector<1x1x8x128xbf16> to vector<8x128xbf16>
    %c8_56 = arith.constant 8 : index
    %c0_57 = arith.constant 0 : index
    %c0_58 = arith.constant 0 : index
    %49 = vector.load %arg4[%c8_56, %c0_57, %c0_58] : memref<9x128x128xbf16, #tpu.memory_space<vmem>>, vector<1x128x128xbf16>
    %50 = vector.shape_cast %49 : vector<1x128x128xbf16> to vector<128x128xbf16>
    %cst_59 = arith.constant dense<0.000000e+00> : vector<8x128xf32>
    %51 = tpu.matmul %48, %50, %cst_59 {dimension_numbers = #tpu.dot_dimension_numbers<[1], [0], [0], [1], [0, 0, 1, 1], [], []>} : vector<8x128xbf16>, vector<128x128xbf16>, vector<8x128xf32> -> vector<8x128xf32>
    %52 = arith.addf %46, %51 : vector<8x128xf32>
    %c0_60 = arith.constant 0 : index
    %c0_61 = arith.constant 0 : index
    %53 = vector.load %arg5[%c0_60, %c0_61] : memref<1x128xf32, #tpu.memory_space<vmem>>, vector<1x128xf32>
    %54 = vector.broadcast %53 : vector<1x128xf32> to vector<8x128xf32>
    %55 = arith.mulf %52, %54 : vector<8x128xf32>
    %c0_62 = arith.constant 0 : index
    %c0_63 = arith.constant 0 : index
    %56 = vector.load %arg6[%c0_62, %c0_63] : memref<1x128xf32, #tpu.memory_space<vmem>>, vector<1x128xf32>
    %57 = vector.broadcast %56 : vector<1x128xf32> to vector<8x128xf32>
    %58 = arith.addf %55, %57 : vector<8x128xf32>
    %cst_64 = arith.constant 0.000000e+00 : f32
    %59 = vector.broadcast %cst_64 : f32 to vector<8x128xf32>
    %60 = arith.maximumf %58, %59 : vector<8x128xf32>
    %61 = arith.truncf %60 : vector<8x128xf32> to vector<8x128xbf16>
    %c0_65 = arith.constant 0 : index
    %c0_66 = arith.constant 0 : index
    %c0_67 = arith.constant 0 : index
    %62 = vector.load %arg7[%c0_65, %c0_66, %c0_67] : memref<1x8x128xbf16, #tpu.memory_space<vmem>>, vector<1x8x128xbf16>
    %63 = vector.shape_cast %62 : vector<1x8x128xbf16> to vector<8x128xbf16>
    %64 = vector.shape_cast %61 : vector<8x128xbf16> to vector<1x8x128xbf16>
    tpu.vector_store %arg7[%c0_65, %c0_66, %c0_67], %64 {strides = array<i32>} : memref<1x8x128xbf16, #tpu.memory_space<vmem>>, vector<1x8x128xbf16>,
    return
  }
  func.func @transform_0(%arg0: i32, %arg1: i32, %arg2: i32) -> (i32, i32, i32, i32) {
    %c0_i32 = arith.constant 0 : i32
    %c0_i32_0 = arith.constant 0 : i32
    %c0_i32_1 = arith.constant 0 : i32
    %c0_i32_2 = arith.constant 0 : i32
    return %arg0, %c0_i32, %c0_i32_0, %c0_i32_1 : i32, i32, i32, i32
  }
  func.func @transform_1(%arg0: i32, %arg1: i32, %arg2: i32) -> (i32, i32, i32) {
    %c0_i32 = arith.constant 0 : i32
    %c0_i32_0 = arith.constant 0 : i32
    %c0_i32_1 = arith.constant 0 : i32
    return %c0_i32, %c0_i32_0, %arg1 : i32, i32, i32
  }
  func.func @transform_2(%arg0: i32, %arg1: i32, %arg2: i32) -> (i32, i32) {
    %c0_i32 = arith.constant 0 : i32
    %c0_i32_0 = arith.constant 0 : i32
    return %c0_i32, %arg1 : i32, i32
  }
  func.func @transform_3(%arg0: i32, %arg1: i32, %arg2: i32) -> (i32, i32) {
    %c0_i32 = arith.constant 0 : i32
    %c0_i32_0 = arith.constant 0 : i32
    return %c0_i32, %arg1 : i32, i32
  }
  func.func @transform_4(%arg0: i32, %arg1: i32, %arg2: i32) -> (i32, i32, i32) {
    %c0_i32 = arith.constant 0 : i32
    return %arg0, %arg2, %arg1 : i32, i32, i32
  }
}

module attributes {stable_mosaic.version = 11 : i64} {
  func.func @_conv_bn_kernel(%arg0: i32, %arg1: i32, %arg2: i32, %arg3: memref<1x4x16x128xbf16, #tpu.memory_space<vmem>>, %arg4: memref<9x128x128xbf16, #tpu.memory_space<vmem>>, %arg5: memref<1x128xf32, #tpu.memory_space<vmem>>, %arg6: memref<1x128xf32, #tpu.memory_space<vmem>>, %arg7: memref<1x8x128xbf16, #tpu.memory_space<vmem>>) attributes {dimension_semantics = [#tpu.dimension_semantics<parallel>, #tpu.dimension_semantics<parallel>, #tpu.dimension_semantics<parallel>], iteration_bounds = array<i64: 2, 1, 1>, scalar_prefetch = 0 : i64, scratch_operands = 0 : i64, tpu.core_type = #tpu.core_type<tc>, window_params = [{transform_indices = @transform_0, window_bounds = array<i64: 1, 4, 16, 128>}, {transform_indices = @transform_1, window_bounds = array<i64: 9, 128, 128>}, {transform_indices = @transform_2, window_bounds = array<i64: 1, 128>}, {transform_indices = @transform_3, window_bounds = array<i64: 1, 128>}, {transform_indices = @transform_4, window_bounds = array<i64: 1, 8, 128>}]} {
    %c0 = arith.constant 0 : index
    %c0_0 = arith.constant 0 : index
    %c0_1 = arith.constant 0 : index
    %c0_2 = arith.constant 0 : index
    %0 = vector.load %arg3[%c0, %c0_0, %c0_1, %c0_2] : memref<1x4x16x128xbf16, #tpu.memory_space<vmem>>, vector<1x1x8x128xbf16>
    %1 = vector.shape_cast %0 : vector<1x1x8x128xbf16> to vector<8x128xbf16>
    %c0_3 = arith.constant 0 : index
    %c0_4 = arith.constant 0 : index
    %c0_5 = arith.constant 0 : index
    %2 = vector.load %arg4[%c0_3, %c0_4, %c0_5] : memref<9x128x128xbf16, #tpu.memory_space<vmem>>, vector<1x128x128xbf16>
    %3 = vector.shape_cast %2 : vector<1x128x128xbf16> to vector<128x128xbf16>
    %cst = arith.constant dense<0.000000e+00> : vector<8x128xf32>
    %4 = tpu.matmul %1, %3, %cst {dimension_numbers = #tpu.dot_dimension_numbers<[1], [0], [0], [1], [0, 0, 1, 1], [], []>} : vector<8x128xbf16>, vector<128x128xbf16>, vector<8x128xf32> -> vector<8x128xf32>
    %c0_6 = arith.constant 0 : index
    %c1 = arith.constant 1 : index
    %c0_7 = arith.constant 0 : index
    %c0_8 = arith.constant 0 : index
    %5 = vector.load %arg3[%c0_6, %c1, %c0_7, %c0_8] : memref<1x4x16x128xbf16, #tpu.memory_space<vmem>>, vector<1x1x8x128xbf16>
    %6 = vector.shape_cast %5 : vector<1x1x8x128xbf16> to vector<8x128xbf16>
    %c1_9 = arith.constant 1 : index
    %c0_10 = arith.constant 0 : index
    %c0_11 = arith.constant 0 : index
    %7 = vector.load %arg4[%c1_9, %c0_10, %c0_11] : memref<9x128x128xbf16, #tpu.memory_space<vmem>>, vector<1x128x128xbf16>
    %8 = vector.shape_cast %7 : vector<1x128x128xbf16> to vector<128x128xbf16>
    %cst_12 = arith.constant dense<0.000000e+00> : vector<8x128xf32>
    %9 = tpu.matmul %6, %8, %cst_12 {dimension_numbers = #tpu.dot_dimension_numbers<[1], [0], [0], [1], [0, 0, 1, 1], [], []>} : vector<8x128xbf16>, vector<128x128xbf16>, vector<8x128xf32> -> vector<8x128xf32>
    %10 = arith.addf %4, %9 : vector<8x128xf32>
    %c0_13 = arith.constant 0 : index
    %c0_14 = arith.constant 0 : index
    %c1_15 = arith.constant 1 : index
    %c0_16 = arith.constant 0 : index
    %11 = vector.load %arg3[%c0_13, %c0_14, %c1_15, %c0_16] : memref<1x4x16x128xbf16, #tpu.memory_space<vmem>>, vector<1x1x8x128xbf16>
    %12 = vector.shape_cast %11 : vector<1x1x8x128xbf16> to vector<8x128xbf16>
    %c2 = arith.constant 2 : index
    %c0_17 = arith.constant 0 : index
    %c0_18 = arith.constant 0 : index
    %13 = vector.load %arg4[%c2, %c0_17, %c0_18] : memref<9x128x128xbf16, #tpu.memory_space<vmem>>, vector<1x128x128xbf16>
    %14 = vector.shape_cast %13 : vector<1x128x128xbf16> to vector<128x128xbf16>
    %cst_19 = arith.constant dense<0.000000e+00> : vector<8x128xf32>
    %15 = tpu.matmul %12, %14, %cst_19 {dimension_numbers = #tpu.dot_dimension_numbers<[1], [0], [0], [1], [0, 0, 1, 1], [], []>} : vector<8x128xbf16>, vector<128x128xbf16>, vector<8x128xf32> -> vector<8x128xf32>
    %16 = arith.addf %10, %15 : vector<8x128xf32>
    %c0_20 = arith.constant 0 : index
    %c2_21 = arith.constant 2 : index
    %c0_22 = arith.constant 0 : index
    %c0_23 = arith.constant 0 : index
    %17 = vector.load %arg3[%c0_20, %c2_21, %c0_22, %c0_23] : memref<1x4x16x128xbf16, #tpu.memory_space<vmem>>, vector<1x1x8x128xbf16>
    %18 = vector.shape_cast %17 : vector<1x1x8x128xbf16> to vector<8x128xbf16>
    %c3 = arith.constant 3 : index
    %c0_24 = arith.constant 0 : index
    %c0_25 = arith.constant 0 : index
    %19 = vector.load %arg4[%c3, %c0_24, %c0_25] : memref<9x128x128xbf16, #tpu.memory_space<vmem>>, vector<1x128x128xbf16>
    %20 = vector.shape_cast %19 : vector<1x128x128xbf16> to vector<128x128xbf16>
    %cst_26 = arith.constant dense<0.000000e+00> : vector<8x128xf32>
    %21 = tpu.matmul %18, %20, %cst_26 {dimension_numbers = #tpu.dot_dimension_numbers<[1], [0], [0], [1], [0, 0, 1, 1], [], []>} : vector<8x128xbf16>, vector<128x128xbf16>, vector<8x128xf32> -> vector<8x128xf32>
    %22 = arith.addf %16, %21 : vector<8x128xf32>
    %c0_27 = arith.constant 0 : index
    %c3_28 = arith.constant 3 : index
    %c0_29 = arith.constant 0 : index
    %c0_30 = arith.constant 0 : index
    %23 = vector.load %arg3[%c0_27, %c3_28, %c0_29, %c0_30] : memref<1x4x16x128xbf16, #tpu.memory_space<vmem>>, vector<1x1x8x128xbf16>
    %24 = vector.shape_cast %23 : vector<1x1x8x128xbf16> to vector<8x128xbf16>
    %c4 = arith.constant 4 : index
    %c0_31 = arith.constant 0 : index
    %c0_32 = arith.constant 0 : index
    %25 = vector.load %arg4[%c4, %c0_31, %c0_32] : memref<9x128x128xbf16, #tpu.memory_space<vmem>>, vector<1x128x128xbf16>
    %26 = vector.shape_cast %25 : vector<1x128x128xbf16> to vector<128x128xbf16>
    %cst_33 = arith.constant dense<0.000000e+00> : vector<8x128xf32>
    %27 = tpu.matmul %24, %26, %cst_33 {dimension_numbers = #tpu.dot_dimension_numbers<[1], [0], [0], [1], [0, 0, 1, 1], [], []>} : vector<8x128xbf16>, vector<128x128xbf16>, vector<8x128xf32> -> vector<8x128xf32>
    %28 = arith.addf %22, %27 : vector<8x128xf32>
    %c0_34 = arith.constant 0 : index
    %c2_35 = arith.constant 2 : index
    %c1_36 = arith.constant 1 : index
    %c0_37 = arith.constant 0 : index
    %29 = vector.load %arg3[%c0_34, %c2_35, %c1_36, %c0_37] : memref<1x4x16x128xbf16, #tpu.memory_space<vmem>>, vector<1x1x8x128xbf16>
    %30 = vector.shape_cast %29 : vector<1x1x8x128xbf16> to vector<8x128xbf16>
    %c5 = arith.constant 5 : index
    %c0_38 = arith.constant 0 : index
    %c0_39 = arith.constant 0 : index
    %31 = vector.load %arg4[%c5, %c0_38, %c0_39] : memref<9x128x128xbf16, #tpu.memory_space<vmem>>, vector<1x128x128xbf16>
    %32 = vector.shape_cast %31 : vector<1x128x128xbf16> to vector<128x128xbf16>
    %cst_40 = arith.constant dense<0.000000e+00> : vector<8x128xf32>
    %33 = tpu.matmul %30, %32, %cst_40 {dimension_numbers = #tpu.dot_dimension_numbers<[1], [0], [0], [1], [0, 0, 1, 1], [], []>} : vector<8x128xbf16>, vector<128x128xbf16>, vector<8x128xf32> -> vector<8x128xf32>
    %34 = arith.addf %28, %33 : vector<8x128xf32>
    %c0_41 = arith.constant 0 : index
    %c0_42 = arith.constant 0 : index
    %c2_43 = arith.constant 2 : index
    %c0_44 = arith.constant 0 : index
    %35 = vector.load %arg3[%c0_41, %c0_42, %c2_43, %c0_44] : memref<1x4x16x128xbf16, #tpu.memory_space<vmem>>, vector<1x1x8x128xbf16>
    %36 = vector.shape_cast %35 : vector<1x1x8x128xbf16> to vector<8x128xbf16>
    %c6 = arith.constant 6 : index
    %c0_45 = arith.constant 0 : index
    %c0_46 = arith.constant 0 : index
    %37 = vector.load %arg4[%c6, %c0_45, %c0_46] : memref<9x128x128xbf16, #tpu.memory_space<vmem>>, vector<1x128x128xbf16>
    %38 = vector.shape_cast %37 : vector<1x128x128xbf16> to vector<128x128xbf16>
    %cst_47 = arith.constant dense<0.000000e+00> : vector<8x128xf32>
    %39 = tpu.matmul %36, %38, %cst_47 {dimension_numbers = #tpu.dot_dimension_numbers<[1], [0], [0], [1], [0, 0, 1, 1], [], []>} : vector<8x128xbf16>, vector<128x128xbf16>, vector<8x128xf32> -> vector<8x128xf32>
    %40 = arith.addf %34, %39 : vector<8x128xf32>
    %c0_48 = arith.constant 0 : index
    %c1_49 = arith.constant 1 : index
    %c2_50 = arith.constant 2 : index
    %c0_51 = arith.constant 0 : index
    %41 = vector.load %arg3[%c0_48, %c1_49, %c2_50, %c0_51] : memref<1x4x16x128xbf16, #tpu.memory_space<vmem>>, vector<1x1x8x128xbf16>
    %42 = vector.shape_cast %41 : vector<1x1x8x128xbf16> to vector<8x128xbf16>
    %c7 = arith.constant 7 : index
    %c0_52 = arith.constant 0 : index
    %c0_53 = arith.constant 0 : index
    %43 = vector.load %arg4[%c7, %c0_52, %c0_53] : memref<9x128x128xbf16, #tpu.memory_space<vmem>>, vector<1x128x128xbf16>
    %44 = vector.shape_cast %43 : vector<1x128x128xbf16> to vector<128x128xbf16>
    %cst_54 = arith.constant dense<0.000000e+00> : vector<8x128xf32>
    %45 = tpu.matmul %42, %44, %cst_54 {dimension_numbers = #tpu.dot_dimension_numbers<[1], [0], [0], [1], [0, 0, 1, 1], [], []>} : vector<8x128xbf16>, vector<128x128xbf16>, vector<8x128xf32> -> vector<8x128xf32>
    %46 = arith.addf %40, %45 : vector<8x128xf32>
    %c0_55 = arith.constant 0 : index
    %c0_56 = arith.constant 0 : index
    %c3_57 = arith.constant 3 : index
    %c0_58 = arith.constant 0 : index
    %47 = vector.load %arg3[%c0_55, %c0_56, %c3_57, %c0_58] : memref<1x4x16x128xbf16, #tpu.memory_space<vmem>>, vector<1x1x8x128xbf16>
    %48 = vector.shape_cast %47 : vector<1x1x8x128xbf16> to vector<8x128xbf16>
    %c8 = arith.constant 8 : index
    %c0_59 = arith.constant 0 : index
    %c0_60 = arith.constant 0 : index
    %49 = vector.load %arg4[%c8, %c0_59, %c0_60] : memref<9x128x128xbf16, #tpu.memory_space<vmem>>, vector<1x128x128xbf16>
    %50 = vector.shape_cast %49 : vector<1x128x128xbf16> to vector<128x128xbf16>
    %cst_61 = arith.constant dense<0.000000e+00> : vector<8x128xf32>
    %51 = tpu.matmul %48, %50, %cst_61 {dimension_numbers = #tpu.dot_dimension_numbers<[1], [0], [0], [1], [0, 0, 1, 1], [], []>} : vector<8x128xbf16>, vector<128x128xbf16>, vector<8x128xf32> -> vector<8x128xf32>
    %52 = arith.addf %46, %51 : vector<8x128xf32>
    %c0_62 = arith.constant 0 : index
    %c0_63 = arith.constant 0 : index
    %53 = vector.load %arg5[%c0_62, %c0_63] : memref<1x128xf32, #tpu.memory_space<vmem>>, vector<1x128xf32>
    %54 = vector.broadcast %53 : vector<1x128xf32> to vector<8x128xf32>
    %55 = arith.mulf %52, %54 : vector<8x128xf32>
    %c0_64 = arith.constant 0 : index
    %c0_65 = arith.constant 0 : index
    %56 = vector.load %arg6[%c0_64, %c0_65] : memref<1x128xf32, #tpu.memory_space<vmem>>, vector<1x128xf32>
    %57 = vector.broadcast %56 : vector<1x128xf32> to vector<8x128xf32>
    %58 = arith.addf %55, %57 : vector<8x128xf32>
    %cst_66 = arith.constant 0.000000e+00 : f32
    %59 = vector.broadcast %cst_66 : f32 to vector<8x128xf32>
    %60 = arith.maximumf %58, %59 : vector<8x128xf32>
    %61 = arith.truncf %60 : vector<8x128xf32> to vector<8x128xbf16>
    %c0_67 = arith.constant 0 : index
    %c0_68 = arith.constant 0 : index
    %c0_69 = arith.constant 0 : index
    %62 = vector.load %arg7[%c0_67, %c0_68, %c0_69] : memref<1x8x128xbf16, #tpu.memory_space<vmem>>, vector<1x8x128xbf16>
    %63 = vector.shape_cast %62 : vector<1x8x128xbf16> to vector<8x128xbf16>
    %64 = vector.shape_cast %61 : vector<8x128xbf16> to vector<1x8x128xbf16>
    tpu.vector_store %arg7[%c0_67, %c0_68, %c0_69], %64 {strides = array<i32>} : memref<1x8x128xbf16, #tpu.memory_space<vmem>>, vector<1x8x128xbf16>,
    return
  }
  func.func @transform_0(%arg0: i32, %arg1: i32, %arg2: i32) -> (i32, i32, i32, i32) {
    %c0_i32 = arith.constant 0 : i32
    %c0_i32_0 = arith.constant 0 : i32
    %c0_i32_1 = arith.constant 0 : i32
    %c0_i32_2 = arith.constant 0 : i32
    return %arg0, %c0_i32, %c0_i32_0, %c0_i32_1 : i32, i32, i32, i32
  }
  func.func @transform_1(%arg0: i32, %arg1: i32, %arg2: i32) -> (i32, i32, i32) {
    %c0_i32 = arith.constant 0 : i32
    %c0_i32_0 = arith.constant 0 : i32
    %c0_i32_1 = arith.constant 0 : i32
    return %c0_i32, %c0_i32_0, %arg1 : i32, i32, i32
  }
  func.func @transform_2(%arg0: i32, %arg1: i32, %arg2: i32) -> (i32, i32) {
    %c0_i32 = arith.constant 0 : i32
    %c0_i32_0 = arith.constant 0 : i32
    return %c0_i32, %arg1 : i32, i32
  }
  func.func @transform_3(%arg0: i32, %arg1: i32, %arg2: i32) -> (i32, i32) {
    %c0_i32 = arith.constant 0 : i32
    %c0_i32_0 = arith.constant 0 : i32
    return %c0_i32, %arg1 : i32, i32
  }
  func.func @transform_4(%arg0: i32, %arg1: i32, %arg2: i32) -> (i32, i32, i32) {
    %c0_i32 = arith.constant 0 : i32
    return %arg0, %arg2, %arg1 : i32, i32, i32
  }
}

module attributes {stable_mosaic.version = 11 : i64} {
  func.func @_conv_bn_res_kernel(%arg0: i32, %arg1: i32, %arg2: i32, %arg3: memref<1x1x16x128xbf16, #tpu.memory_space<vmem>>, %arg4: memref<9x128x128xbf16, #tpu.memory_space<vmem>>, %arg5: memref<1x128xf32, #tpu.memory_space<vmem>>, %arg6: memref<1x128xf32, #tpu.memory_space<vmem>>, %arg7: memref<1x8x128xbf16, #tpu.memory_space<vmem>>, %arg8: memref<1x8x128xbf16, #tpu.memory_space<vmem>>) attributes {dimension_semantics = [#tpu.dimension_semantics<parallel>, #tpu.dimension_semantics<parallel>, #tpu.dimension_semantics<parallel>], iteration_bounds = array<i64: 2, 1, 1>, scalar_prefetch = 0 : i64, scratch_operands = 0 : i64, tpu.core_type = #tpu.core_type<tc>, window_params = [{transform_indices = @transform_0, window_bounds = array<i64: 1, 1, 16, 128>}, {transform_indices = @transform_1, window_bounds = array<i64: 9, 128, 128>}, {transform_indices = @transform_2, window_bounds = array<i64: 1, 128>}, {transform_indices = @transform_3, window_bounds = array<i64: 1, 128>}, {transform_indices = @transform_4, window_bounds = array<i64: 1, 8, 128>}, {transform_indices = @transform_5, window_bounds = array<i64: 1, 8, 128>}]} {
    %c0 = arith.constant 0 : index
    %c0_0 = arith.constant 0 : index
    %c0_1 = arith.constant 0 : index
    %c0_2 = arith.constant 0 : index
    %0 = vector.load %arg3[%c0, %c0_0, %c0_1, %c0_2] : memref<1x1x16x128xbf16, #tpu.memory_space<vmem>>, vector<1x1x8x128xbf16>
    %1 = vector.shape_cast %0 : vector<1x1x8x128xbf16> to vector<8x128xbf16>
    %c0_3 = arith.constant 0 : index
    %c0_4 = arith.constant 0 : index
    %c0_5 = arith.constant 0 : index
    %2 = vector.load %arg4[%c0_3, %c0_4, %c0_5] : memref<9x128x128xbf16, #tpu.memory_space<vmem>>, vector<1x128x128xbf16>
    %3 = vector.shape_cast %2 : vector<1x128x128xbf16> to vector<128x128xbf16>
    %cst = arith.constant dense<0.000000e+00> : vector<8x128xf32>
    %4 = tpu.matmul %1, %3, %cst {dimension_numbers = #tpu.dot_dimension_numbers<[1], [0], [0], [1], [0, 0, 1, 1], [], []>} : vector<8x128xbf16>, vector<128x128xbf16>, vector<8x128xf32> -> vector<8x128xf32>
    %c0_6 = arith.constant 0 : index
    %c0_7 = arith.constant 0 : index
    %c1 = arith.constant 1 : index
    %c0_8 = arith.constant 0 : index
    %5 = vector.load %arg3[%c0_6, %c0_7, %c1, %c0_8] : memref<1x1x16x128xbf16, #tpu.memory_space<vmem>>, vector<1x1x8x128xbf16>
    %6 = vector.shape_cast %5 : vector<1x1x8x128xbf16> to vector<8x128xbf16>
    %c1_9 = arith.constant 1 : index
    %c0_10 = arith.constant 0 : index
    %c0_11 = arith.constant 0 : index
    %7 = vector.load %arg4[%c1_9, %c0_10, %c0_11] : memref<9x128x128xbf16, #tpu.memory_space<vmem>>, vector<1x128x128xbf16>
    %8 = vector.shape_cast %7 : vector<1x128x128xbf16> to vector<128x128xbf16>
    %cst_12 = arith.constant dense<0.000000e+00> : vector<8x128xf32>
    %9 = tpu.matmul %6, %8, %cst_12 {dimension_numbers = #tpu.dot_dimension_numbers<[1], [0], [0], [1], [0, 0, 1, 1], [], []>} : vector<8x128xbf16>, vector<128x128xbf16>, vector<8x128xf32> -> vector<8x128xf32>
    %10 = arith.addf %4, %9 : vector<8x128xf32>
    %c0_13 = arith.constant 0 : index
    %c0_14 = arith.constant 0 : index
    %c2 = arith.constant 2 : index
    %c0_15 = arith.constant 0 : index
    %11 = vector.load %arg3[%c0_13, %c0_14, %c2, %c0_15] : memref<1x1x16x128xbf16, #tpu.memory_space<vmem>>, vector<1x1x8x128xbf16>
    %12 = vector.shape_cast %11 : vector<1x1x8x128xbf16> to vector<8x128xbf16>
    %c2_16 = arith.constant 2 : index
    %c0_17 = arith.constant 0 : index
    %c0_18 = arith.constant 0 : index
    %13 = vector.load %arg4[%c2_16, %c0_17, %c0_18] : memref<9x128x128xbf16, #tpu.memory_space<vmem>>, vector<1x128x128xbf16>
    %14 = vector.shape_cast %13 : vector<1x128x128xbf16> to vector<128x128xbf16>
    %cst_19 = arith.constant dense<0.000000e+00> : vector<8x128xf32>
    %15 = tpu.matmul %12, %14, %cst_19 {dimension_numbers = #tpu.dot_dimension_numbers<[1], [0], [0], [1], [0, 0, 1, 1], [], []>} : vector<8x128xbf16>, vector<128x128xbf16>, vector<8x128xf32> -> vector<8x128xf32>
    %16 = arith.addf %10, %15 : vector<8x128xf32>
    %c0_20 = arith.constant 0 : index
    %c0_21 = arith.constant 0 : index
    %c3 = arith.constant 3 : index
    %c0_22 = arith.constant 0 : index
    %17 = vector.load %arg3[%c0_20, %c0_21, %c3, %c0_22] : memref<1x1x16x128xbf16, #tpu.memory_space<vmem>>, vector<1x1x8x128xbf16>
    %18 = vector.shape_cast %17 : vector<1x1x8x128xbf16> to vector<8x128xbf16>
    %c3_23 = arith.constant 3 : index
    %c0_24 = arith.constant 0 : index
    %c0_25 = arith.constant 0 : index
    %19 = vector.load %arg4[%c3_23, %c0_24, %c0_25] : memref<9x128x128xbf16, #tpu.memory_space<vmem>>, vector<1x128x128xbf16>
    %20 = vector.shape_cast %19 : vector<1x128x128xbf16> to vector<128x128xbf16>
    %cst_26 = arith.constant dense<0.000000e+00> : vector<8x128xf32>
    %21 = tpu.matmul %18, %20, %cst_26 {dimension_numbers = #tpu.dot_dimension_numbers<[1], [0], [0], [1], [0, 0, 1, 1], [], []>} : vector<8x128xbf16>, vector<128x128xbf16>, vector<8x128xf32> -> vector<8x128xf32>
    %22 = arith.addf %16, %21 : vector<8x128xf32>
    %c0_27 = arith.constant 0 : index
    %c0_28 = arith.constant 0 : index
    %c4 = arith.constant 4 : index
    %c0_29 = arith.constant 0 : index
    %23 = vector.load %arg3[%c0_27, %c0_28, %c4, %c0_29] : memref<1x1x16x128xbf16, #tpu.memory_space<vmem>>, vector<1x1x8x128xbf16>
    %24 = vector.shape_cast %23 : vector<1x1x8x128xbf16> to vector<8x128xbf16>
    %c4_30 = arith.constant 4 : index
    %c0_31 = arith.constant 0 : index
    %c0_32 = arith.constant 0 : index
    %25 = vector.load %arg4[%c4_30, %c0_31, %c0_32] : memref<9x128x128xbf16, #tpu.memory_space<vmem>>, vector<1x128x128xbf16>
    %26 = vector.shape_cast %25 : vector<1x128x128xbf16> to vector<128x128xbf16>
    %cst_33 = arith.constant dense<0.000000e+00> : vector<8x128xf32>
    %27 = tpu.matmul %24, %26, %cst_33 {dimension_numbers = #tpu.dot_dimension_numbers<[1], [0], [0], [1], [0, 0, 1, 1], [], []>} : vector<8x128xbf16>, vector<128x128xbf16>, vector<8x128xf32> -> vector<8x128xf32>
    %28 = arith.addf %22, %27 : vector<8x128xf32>
    %c0_34 = arith.constant 0 : index
    %c0_35 = arith.constant 0 : index
    %c5 = arith.constant 5 : index
    %c0_36 = arith.constant 0 : index
    %29 = vector.load %arg3[%c0_34, %c0_35, %c5, %c0_36] : memref<1x1x16x128xbf16, #tpu.memory_space<vmem>>, vector<1x1x8x128xbf16>
    %30 = vector.shape_cast %29 : vector<1x1x8x128xbf16> to vector<8x128xbf16>
    %c5_37 = arith.constant 5 : index
    %c0_38 = arith.constant 0 : index
    %c0_39 = arith.constant 0 : index
    %31 = vector.load %arg4[%c5_37, %c0_38, %c0_39] : memref<9x128x128xbf16, #tpu.memory_space<vmem>>, vector<1x128x128xbf16>
    %32 = vector.shape_cast %31 : vector<1x128x128xbf16> to vector<128x128xbf16>
    %cst_40 = arith.constant dense<0.000000e+00> : vector<8x128xf32>
    %33 = tpu.matmul %30, %32, %cst_40 {dimension_numbers = #tpu.dot_dimension_numbers<[1], [0], [0], [1], [0, 0, 1, 1], [], []>} : vector<8x128xbf16>, vector<128x128xbf16>, vector<8x128xf32> -> vector<8x128xf32>
    %34 = arith.addf %28, %33 : vector<8x128xf32>
    %c0_41 = arith.constant 0 : index
    %c0_42 = arith.constant 0 : index
    %c6 = arith.constant 6 : index
    %c0_43 = arith.constant 0 : index
    %35 = vector.load %arg3[%c0_41, %c0_42, %c6, %c0_43] : memref<1x1x16x128xbf16, #tpu.memory_space<vmem>>, vector<1x1x8x128xbf16>
    %36 = vector.shape_cast %35 : vector<1x1x8x128xbf16> to vector<8x128xbf16>
    %c6_44 = arith.constant 6 : index
    %c0_45 = arith.constant 0 : index
    %c0_46 = arith.constant 0 : index
    %37 = vector.load %arg4[%c6_44, %c0_45, %c0_46] : memref<9x128x128xbf16, #tpu.memory_space<vmem>>, vector<1x128x128xbf16>
    %38 = vector.shape_cast %37 : vector<1x128x128xbf16> to vector<128x128xbf16>
    %cst_47 = arith.constant dense<0.000000e+00> : vector<8x128xf32>
    %39 = tpu.matmul %36, %38, %cst_47 {dimension_numbers = #tpu.dot_dimension_numbers<[1], [0], [0], [1], [0, 0, 1, 1], [], []>} : vector<8x128xbf16>, vector<128x128xbf16>, vector<8x128xf32> -> vector<8x128xf32>
    %40 = arith.addf %34, %39 : vector<8x128xf32>
    %c0_48 = arith.constant 0 : index
    %c0_49 = arith.constant 0 : index
    %c7 = arith.constant 7 : index
    %c0_50 = arith.constant 0 : index
    %41 = vector.load %arg3[%c0_48, %c0_49, %c7, %c0_50] : memref<1x1x16x128xbf16, #tpu.memory_space<vmem>>, vector<1x1x8x128xbf16>
    %42 = vector.shape_cast %41 : vector<1x1x8x128xbf16> to vector<8x128xbf16>
    %c7_51 = arith.constant 7 : index
    %c0_52 = arith.constant 0 : index
    %c0_53 = arith.constant 0 : index
    %43 = vector.load %arg4[%c7_51, %c0_52, %c0_53] : memref<9x128x128xbf16, #tpu.memory_space<vmem>>, vector<1x128x128xbf16>
    %44 = vector.shape_cast %43 : vector<1x128x128xbf16> to vector<128x128xbf16>
    %cst_54 = arith.constant dense<0.000000e+00> : vector<8x128xf32>
    %45 = tpu.matmul %42, %44, %cst_54 {dimension_numbers = #tpu.dot_dimension_numbers<[1], [0], [0], [1], [0, 0, 1, 1], [], []>} : vector<8x128xbf16>, vector<128x128xbf16>, vector<8x128xf32> -> vector<8x128xf32>
    %46 = arith.addf %40, %45 : vector<8x128xf32>
    %c0_55 = arith.constant 0 : index
    %c0_56 = arith.constant 0 : index
    %c8 = arith.constant 8 : index
    %c0_57 = arith.constant 0 : index
    %47 = vector.load %arg3[%c0_55, %c0_56, %c8, %c0_57] : memref<1x1x16x128xbf16, #tpu.memory_space<vmem>>, vector<1x1x8x128xbf16>
    %48 = vector.shape_cast %47 : vector<1x1x8x128xbf16> to vector<8x128xbf16>
    %c8_58 = arith.constant 8 : index
    %c0_59 = arith.constant 0 : index
    %c0_60 = arith.constant 0 : index
    %49 = vector.load %arg4[%c8_58, %c0_59, %c0_60] : memref<9x128x128xbf16, #tpu.memory_space<vmem>>, vector<1x128x128xbf16>
    %50 = vector.shape_cast %49 : vector<1x128x128xbf16> to vector<128x128xbf16>
    %cst_61 = arith.constant dense<0.000000e+00> : vector<8x128xf32>
    %51 = tpu.matmul %48, %50, %cst_61 {dimension_numbers = #tpu.dot_dimension_numbers<[1], [0], [0], [1], [0, 0, 1, 1], [], []>} : vector<8x128xbf16>, vector<128x128xbf16>, vector<8x128xf32> -> vector<8x128xf32>
    %52 = arith.addf %46, %51 : vector<8x128xf32>
    %c0_62 = arith.constant 0 : index
    %c0_63 = arith.constant 0 : index
    %53 = vector.load %arg5[%c0_62, %c0_63] : memref<1x128xf32, #tpu.memory_space<vmem>>, vector<1x128xf32>
    %54 = vector.broadcast %53 : vector<1x128xf32> to vector<8x128xf32>
    %55 = arith.mulf %52, %54 : vector<8x128xf32>
    %c0_64 = arith.constant 0 : index
    %c0_65 = arith.constant 0 : index
    %56 = vector.load %arg6[%c0_64, %c0_65] : memref<1x128xf32, #tpu.memory_space<vmem>>, vector<1x128xf32>
    %57 = vector.broadcast %56 : vector<1x128xf32> to vector<8x128xf32>
    %58 = arith.addf %55, %57 : vector<8x128xf32>
    %c0_66 = arith.constant 0 : index
    %c0_67 = arith.constant 0 : index
    %c0_68 = arith.constant 0 : index
    %59 = vector.load %arg7[%c0_66, %c0_67, %c0_68] : memref<1x8x128xbf16, #tpu.memory_space<vmem>>, vector<1x8x128xbf16>
    %60 = vector.shape_cast %59 : vector<1x8x128xbf16> to vector<8x128xbf16>
    %61 = arith.extf %60 : vector<8x128xbf16> to vector<8x128xf32>
    %62 = arith.addf %58, %61 : vector<8x128xf32>
    %cst_69 = arith.constant 0.000000e+00 : f32
    %63 = vector.broadcast %cst_69 : f32 to vector<8x128xf32>
    %64 = arith.maximumf %62, %63 : vector<8x128xf32>
    %65 = arith.truncf %64 : vector<8x128xf32> to vector<8x128xbf16>
    %c0_70 = arith.constant 0 : index
    %c0_71 = arith.constant 0 : index
    %c0_72 = arith.constant 0 : index
    %66 = vector.load %arg8[%c0_70, %c0_71, %c0_72] : memref<1x8x128xbf16, #tpu.memory_space<vmem>>, vector<1x8x128xbf16>
    %67 = vector.shape_cast %66 : vector<1x8x128xbf16> to vector<8x128xbf16>
    %68 = vector.shape_cast %65 : vector<8x128xbf16> to vector<1x8x128xbf16>
    tpu.vector_store %arg8[%c0_70, %c0_71, %c0_72], %68 {strides = array<i32>} : memref<1x8x128xbf16, #tpu.memory_space<vmem>>, vector<1x8x128xbf16>,
    return
  }
  func.func @transform_0(%arg0: i32, %arg1: i32, %arg2: i32) -> (i32, i32, i32, i32) {
    %c0_i32 = arith.constant 0 : i32
    %c0_i32_0 = arith.constant 0 : i32
    %c0_i32_1 = arith.constant 0 : i32
    %c0_i32_2 = arith.constant 0 : i32
    return %arg0, %c0_i32, %c0_i32_0, %c0_i32_1 : i32, i32, i32, i32
  }
  func.func @transform_1(%arg0: i32, %arg1: i32, %arg2: i32) -> (i32, i32, i32) {
    %c0_i32 = arith.constant 0 : i32
    %c0_i32_0 = arith.constant 0 : i32
    %c0_i32_1 = arith.constant 0 : i32
    return %c0_i32, %c0_i32_0, %arg1 : i32, i32, i32
  }
  func.func @transform_2(%arg0: i32, %arg1: i32, %arg2: i32) -> (i32, i32) {
    %c0_i32 = arith.constant 0 : i32
    %c0_i32_0 = arith.constant 0 : i32
    return %c0_i32, %arg1 : i32, i32
  }
  func.func @transform_3(%arg0: i32, %arg1: i32, %arg2: i32) -> (i32, i32) {
    %c0_i32 = arith.constant 0 : i32
    %c0_i32_0 = arith.constant 0 : i32
    return %c0_i32, %arg1 : i32, i32
  }
  func.func @transform_4(%arg0: i32, %arg1: i32, %arg2: i32) -> (i32, i32, i32) {
    %c0_i32 = arith.constant 0 : i32
    return %arg0, %arg2, %arg1 : i32, i32, i32
  }
  func.func @transform_5(%arg0: i32, %arg1: i32, %arg2: i32) -> (i32, i32, i32) {
    %c0_i32 = arith.constant 0 : i32
    return %arg0, %arg2, %arg1 : i32, i32, i32
  }
}

module attributes {stable_mosaic.version = 11 : i64} {
  func.func @_conv_bn_kernel(%arg0: i32, %arg1: i32, %arg2: i32, %arg3: memref<1x1x16x128xbf16, #tpu.memory_space<vmem>>, %arg4: memref<9x128x128xbf16, #tpu.memory_space<vmem>>, %arg5: memref<1x128xf32, #tpu.memory_space<vmem>>, %arg6: memref<1x128xf32, #tpu.memory_space<vmem>>, %arg7: memref<1x8x128xbf16, #tpu.memory_space<vmem>>) attributes {dimension_semantics = [#tpu.dimension_semantics<parallel>, #tpu.dimension_semantics<parallel>, #tpu.dimension_semantics<parallel>], iteration_bounds = array<i64: 2, 1, 1>, scalar_prefetch = 0 : i64, scratch_operands = 0 : i64, tpu.core_type = #tpu.core_type<tc>, window_params = [{transform_indices = @transform_0, window_bounds = array<i64: 1, 1, 16, 128>}, {transform_indices = @transform_1, window_bounds = array<i64: 9, 128, 128>}, {transform_indices = @transform_2, window_bounds = array<i64: 1, 128>}, {transform_indices = @transform_3, window_bounds = array<i64: 1, 128>}, {transform_indices = @transform_4, window_bounds = array<i64: 1, 8, 128>}]} {
    %c0 = arith.constant 0 : index
    %c0_0 = arith.constant 0 : index
    %c0_1 = arith.constant 0 : index
    %c0_2 = arith.constant 0 : index
    %0 = vector.load %arg3[%c0, %c0_0, %c0_1, %c0_2] : memref<1x1x16x128xbf16, #tpu.memory_space<vmem>>, vector<1x1x8x128xbf16>
    %1 = vector.shape_cast %0 : vector<1x1x8x128xbf16> to vector<8x128xbf16>
    %c0_3 = arith.constant 0 : index
    %c0_4 = arith.constant 0 : index
    %c0_5 = arith.constant 0 : index
    %2 = vector.load %arg4[%c0_3, %c0_4, %c0_5] : memref<9x128x128xbf16, #tpu.memory_space<vmem>>, vector<1x128x128xbf16>
    %3 = vector.shape_cast %2 : vector<1x128x128xbf16> to vector<128x128xbf16>
    %cst = arith.constant dense<0.000000e+00> : vector<8x128xf32>
    %4 = tpu.matmul %1, %3, %cst {dimension_numbers = #tpu.dot_dimension_numbers<[1], [0], [0], [1], [0, 0, 1, 1], [], []>} : vector<8x128xbf16>, vector<128x128xbf16>, vector<8x128xf32> -> vector<8x128xf32>
    %c0_6 = arith.constant 0 : index
    %c0_7 = arith.constant 0 : index
    %c1 = arith.constant 1 : index
    %c0_8 = arith.constant 0 : index
    %5 = vector.load %arg3[%c0_6, %c0_7, %c1, %c0_8] : memref<1x1x16x128xbf16, #tpu.memory_space<vmem>>, vector<1x1x8x128xbf16>
    %6 = vector.shape_cast %5 : vector<1x1x8x128xbf16> to vector<8x128xbf16>
    %c1_9 = arith.constant 1 : index
    %c0_10 = arith.constant 0 : index
    %c0_11 = arith.constant 0 : index
    %7 = vector.load %arg4[%c1_9, %c0_10, %c0_11] : memref<9x128x128xbf16, #tpu.memory_space<vmem>>, vector<1x128x128xbf16>
    %8 = vector.shape_cast %7 : vector<1x128x128xbf16> to vector<128x128xbf16>
    %cst_12 = arith.constant dense<0.000000e+00> : vector<8x128xf32>
    %9 = tpu.matmul %6, %8, %cst_12 {dimension_numbers = #tpu.dot_dimension_numbers<[1], [0], [0], [1], [0, 0, 1, 1], [], []>} : vector<8x128xbf16>, vector<128x128xbf16>, vector<8x128xf32> -> vector<8x128xf32>
    %10 = arith.addf %4, %9 : vector<8x128xf32>
    %c0_13 = arith.constant 0 : index
    %c0_14 = arith.constant 0 : index
    %c2 = arith.constant 2 : index
    %c0_15 = arith.constant 0 : index
    %11 = vector.load %arg3[%c0_13, %c0_14, %c2, %c0_15] : memref<1x1x16x128xbf16, #tpu.memory_space<vmem>>, vector<1x1x8x128xbf16>
    %12 = vector.shape_cast %11 : vector<1x1x8x128xbf16> to vector<8x128xbf16>
    %c2_16 = arith.constant 2 : index
    %c0_17 = arith.constant 0 : index
    %c0_18 = arith.constant 0 : index
    %13 = vector.load %arg4[%c2_16, %c0_17, %c0_18] : memref<9x128x128xbf16, #tpu.memory_space<vmem>>, vector<1x128x128xbf16>
    %14 = vector.shape_cast %13 : vector<1x128x128xbf16> to vector<128x128xbf16>
    %cst_19 = arith.constant dense<0.000000e+00> : vector<8x128xf32>
    %15 = tpu.matmul %12, %14, %cst_19 {dimension_numbers = #tpu.dot_dimension_numbers<[1], [0], [0], [1], [0, 0, 1, 1], [], []>} : vector<8x128xbf16>, vector<128x128xbf16>, vector<8x128xf32> -> vector<8x128xf32>
    %16 = arith.addf %10, %15 : vector<8x128xf32>
    %c0_20 = arith.constant 0 : index
    %c0_21 = arith.constant 0 : index
    %c3 = arith.constant 3 : index
    %c0_22 = arith.constant 0 : index
    %17 = vector.load %arg3[%c0_20, %c0_21, %c3, %c0_22] : memref<1x1x16x128xbf16, #tpu.memory_space<vmem>>, vector<1x1x8x128xbf16>
    %18 = vector.shape_cast %17 : vector<1x1x8x128xbf16> to vector<8x128xbf16>
    %c3_23 = arith.constant 3 : index
    %c0_24 = arith.constant 0 : index
    %c0_25 = arith.constant 0 : index
    %19 = vector.load %arg4[%c3_23, %c0_24, %c0_25] : memref<9x128x128xbf16, #tpu.memory_space<vmem>>, vector<1x128x128xbf16>
    %20 = vector.shape_cast %19 : vector<1x128x128xbf16> to vector<128x128xbf16>
    %cst_26 = arith.constant dense<0.000000e+00> : vector<8x128xf32>
    %21 = tpu.matmul %18, %20, %cst_26 {dimension_numbers = #tpu.dot_dimension_numbers<[1], [0], [0], [1], [0, 0, 1, 1], [], []>} : vector<8x128xbf16>, vector<128x128xbf16>, vector<8x128xf32> -> vector<8x128xf32>
    %22 = arith.addf %16, %21 : vector<8x128xf32>
    %c0_27 = arith.constant 0 : index
    %c0_28 = arith.constant 0 : index
    %c4 = arith.constant 4 : index
    %c0_29 = arith.constant 0 : index
    %23 = vector.load %arg3[%c0_27, %c0_28, %c4, %c0_29] : memref<1x1x16x128xbf16, #tpu.memory_space<vmem>>, vector<1x1x8x128xbf16>
    %24 = vector.shape_cast %23 : vector<1x1x8x128xbf16> to vector<8x128xbf16>
    %c4_30 = arith.constant 4 : index
    %c0_31 = arith.constant 0 : index
    %c0_32 = arith.constant 0 : index
    %25 = vector.load %arg4[%c4_30, %c0_31, %c0_32] : memref<9x128x128xbf16, #tpu.memory_space<vmem>>, vector<1x128x128xbf16>
    %26 = vector.shape_cast %25 : vector<1x128x128xbf16> to vector<128x128xbf16>
    %cst_33 = arith.constant dense<0.000000e+00> : vector<8x128xf32>
    %27 = tpu.matmul %24, %26, %cst_33 {dimension_numbers = #tpu.dot_dimension_numbers<[1], [0], [0], [1], [0, 0, 1, 1], [], []>} : vector<8x128xbf16>, vector<128x128xbf16>, vector<8x128xf32> -> vector<8x128xf32>
    %28 = arith.addf %22, %27 : vector<8x128xf32>
    %c0_34 = arith.constant 0 : index
    %c0_35 = arith.constant 0 : index
    %c5 = arith.constant 5 : index
    %c0_36 = arith.constant 0 : index
    %29 = vector.load %arg3[%c0_34, %c0_35, %c5, %c0_36] : memref<1x1x16x128xbf16, #tpu.memory_space<vmem>>, vector<1x1x8x128xbf16>
    %30 = vector.shape_cast %29 : vector<1x1x8x128xbf16> to vector<8x128xbf16>
    %c5_37 = arith.constant 5 : index
    %c0_38 = arith.constant 0 : index
    %c0_39 = arith.constant 0 : index
    %31 = vector.load %arg4[%c5_37, %c0_38, %c0_39] : memref<9x128x128xbf16, #tpu.memory_space<vmem>>, vector<1x128x128xbf16>
    %32 = vector.shape_cast %31 : vector<1x128x128xbf16> to vector<128x128xbf16>
    %cst_40 = arith.constant dense<0.000000e+00> : vector<8x128xf32>
    %33 = tpu.matmul %30, %32, %cst_40 {dimension_numbers = #tpu.dot_dimension_numbers<[1], [0], [0], [1], [0, 0, 1, 1], [], []>} : vector<8x128xbf16>, vector<128x128xbf16>, vector<8x128xf32> -> vector<8x128xf32>
    %34 = arith.addf %28, %33 : vector<8x128xf32>
    %c0_41 = arith.constant 0 : index
    %c0_42 = arith.constant 0 : index
    %c6 = arith.constant 6 : index
    %c0_43 = arith.constant 0 : index
    %35 = vector.load %arg3[%c0_41, %c0_42, %c6, %c0_43] : memref<1x1x16x128xbf16, #tpu.memory_space<vmem>>, vector<1x1x8x128xbf16>
    %36 = vector.shape_cast %35 : vector<1x1x8x128xbf16> to vector<8x128xbf16>
    %c6_44 = arith.constant 6 : index
    %c0_45 = arith.constant 0 : index
    %c0_46 = arith.constant 0 : index
    %37 = vector.load %arg4[%c6_44, %c0_45, %c0_46] : memref<9x128x128xbf16, #tpu.memory_space<vmem>>, vector<1x128x128xbf16>
    %38 = vector.shape_cast %37 : vector<1x128x128xbf16> to vector<128x128xbf16>
    %cst_47 = arith.constant dense<0.000000e+00> : vector<8x128xf32>
    %39 = tpu.matmul %36, %38, %cst_47 {dimension_numbers = #tpu.dot_dimension_numbers<[1], [0], [0], [1], [0, 0, 1, 1], [], []>} : vector<8x128xbf16>, vector<128x128xbf16>, vector<8x128xf32> -> vector<8x128xf32>
    %40 = arith.addf %34, %39 : vector<8x128xf32>
    %c0_48 = arith.constant 0 : index
    %c0_49 = arith.constant 0 : index
    %c7 = arith.constant 7 : index
    %c0_50 = arith.constant 0 : index
    %41 = vector.load %arg3[%c0_48, %c0_49, %c7, %c0_50] : memref<1x1x16x128xbf16, #tpu.memory_space<vmem>>, vector<1x1x8x128xbf16>
    %42 = vector.shape_cast %41 : vector<1x1x8x128xbf16> to vector<8x128xbf16>
    %c7_51 = arith.constant 7 : index
    %c0_52 = arith.constant 0 : index
    %c0_53 = arith.constant 0 : index
    %43 = vector.load %arg4[%c7_51, %c0_52, %c0_53] : memref<9x128x128xbf16, #tpu.memory_space<vmem>>, vector<1x128x128xbf16>
    %44 = vector.shape_cast %43 : vector<1x128x128xbf16> to vector<128x128xbf16>
    %cst_54 = arith.constant dense<0.000000e+00> : vector<8x128xf32>
    %45 = tpu.matmul %42, %44, %cst_54 {dimension_numbers = #tpu.dot_dimension_numbers<[1], [0], [0], [1], [0, 0, 1, 1], [], []>} : vector<8x128xbf16>, vector<128x128xbf16>, vector<8x128xf32> -> vector<8x128xf32>
    %46 = arith.addf %40, %45 : vector<8x128xf32>
    %c0_55 = arith.constant 0 : index
    %c0_56 = arith.constant 0 : index
    %c8 = arith.constant 8 : index
    %c0_57 = arith.constant 0 : index
    %47 = vector.load %arg3[%c0_55, %c0_56, %c8, %c0_57] : memref<1x1x16x128xbf16, #tpu.memory_space<vmem>>, vector<1x1x8x128xbf16>
    %48 = vector.shape_cast %47 : vector<1x1x8x128xbf16> to vector<8x128xbf16>
    %c8_58 = arith.constant 8 : index
    %c0_59 = arith.constant 0 : index
    %c0_60 = arith.constant 0 : index
    %49 = vector.load %arg4[%c8_58, %c0_59, %c0_60] : memref<9x128x128xbf16, #tpu.memory_space<vmem>>, vector<1x128x128xbf16>
    %50 = vector.shape_cast %49 : vector<1x128x128xbf16> to vector<128x128xbf16>
    %cst_61 = arith.constant dense<0.000000e+00> : vector<8x128xf32>
    %51 = tpu.matmul %48, %50, %cst_61 {dimension_numbers = #tpu.dot_dimension_numbers<[1], [0], [0], [1], [0, 0, 1, 1], [], []>} : vector<8x128xbf16>, vector<128x128xbf16>, vector<8x128xf32> -> vector<8x128xf32>
    %52 = arith.addf %46, %51 : vector<8x128xf32>
    %c0_62 = arith.constant 0 : index
    %c0_63 = arith.constant 0 : index
    %53 = vector.load %arg5[%c0_62, %c0_63] : memref<1x128xf32, #tpu.memory_space<vmem>>, vector<1x128xf32>
    %54 = vector.broadcast %53 : vector<1x128xf32> to vector<8x128xf32>
    %55 = arith.mulf %52, %54 : vector<8x128xf32>
    %c0_64 = arith.constant 0 : index
    %c0_65 = arith.constant 0 : index
    %56 = vector.load %arg6[%c0_64, %c0_65] : memref<1x128xf32, #tpu.memory_space<vmem>>, vector<1x128xf32>
    %57 = vector.broadcast %56 : vector<1x128xf32> to vector<8x128xf32>
    %58 = arith.addf %55, %57 : vector<8x128xf32>
    %cst_66 = arith.constant 0.000000e+00 : f32
    %59 = vector.broadcast %cst_66 : f32 to vector<8x128xf32>
    %60 = arith.maximumf %58, %59 : vector<8x128xf32>
    %61 = arith.truncf %60 : vector<8x128xf32> to vector<8x128xbf16>
    %c0_67 = arith.constant 0 : index
    %c0_68 = arith.constant 0 : index
    %c0_69 = arith.constant 0 : index
    %62 = vector.load %arg7[%c0_67, %c0_68, %c0_69] : memref<1x8x128xbf16, #tpu.memory_space<vmem>>, vector<1x8x128xbf16>
    %63 = vector.shape_cast %62 : vector<1x8x128xbf16> to vector<8x128xbf16>
    %64 = vector.shape_cast %61 : vector<8x128xbf16> to vector<1x8x128xbf16>
    tpu.vector_store %arg7[%c0_67, %c0_68, %c0_69], %64 {strides = array<i32>} : memref<1x8x128xbf16, #tpu.memory_space<vmem>>, vector<1x8x128xbf16>,
    return
  }
  func.func @transform_0(%arg0: i32, %arg1: i32, %arg2: i32) -> (i32, i32, i32, i32) {
    %c0_i32 = arith.constant 0 : i32
    %c0_i32_0 = arith.constant 0 : i32
    %c0_i32_1 = arith.constant 0 : i32
    %c0_i32_2 = arith.constant 0 : i32
    return %arg0, %c0_i32, %c0_i32_0, %c0_i32_1 : i32, i32, i32, i32
  }
  func.func @transform_1(%arg0: i32, %arg1: i32, %arg2: i32) -> (i32, i32, i32) {
    %c0_i32 = arith.constant 0 : i32
    %c0_i32_0 = arith.constant 0 : i32
    %c0_i32_1 = arith.constant 0 : i32
    return %c0_i32, %c0_i32_0, %arg1 : i32, i32, i32
  }
  func.func @transform_2(%arg0: i32, %arg1: i32, %arg2: i32) -> (i32, i32) {
    %c0_i32 = arith.constant 0 : i32
    %c0_i32_0 = arith.constant 0 : i32
    return %c0_i32, %arg1 : i32, i32
  }
  func.func @transform_3(%arg0: i32, %arg1: i32, %arg2: i32) -> (i32, i32) {
    %c0_i32 = arith.constant 0 : i32
    %c0_i32_0 = arith.constant 0 : i32
    return %c0_i32, %arg1 : i32, i32
  }
  func.func @transform_4(%arg0: i32, %arg1: i32, %arg2: i32) -> (i32, i32, i32) {
    %c0_i32 = arith.constant 0 : i32
    return %arg0, %arg2, %arg1 : i32, i32, i32
  }
}

</mosaic_0001>

<bundles_post_ra>
// kernel: resnet_encoder_forward.22
= control target key start
LH: loop header
LB: loop body
LE: loop exit
PB: predicated region body
PF: predicated region fallthrough
CT: control target
= control target key end

     0   :  { %s502_s6 = smov 0   ;;  %s504_s7 = smov 0   ;;  %s649_s0 = inlined_call_operand.vmem [shape: bf16[2,4,32,128], index: 0, kind: input, shape index: {}]   ;;  %s650_s1 = inlined_call_operand.vmem [shape: bf16[2,24,128], index: 1, kind: output, shape index: {}]  }
   0x1   :  { %s506_s8 = smov 0  }
   0x2 LB: > { %s23_s9 = sadd.s32 1, %s486_s7  ;;  %p415_p0 = scmp.ge.s32.totalorder %s490_s8, 1  ;;  %s490_s8 = sphi %s506_s8, %s11_s8   ;;  %s486_s7 = sphi %s504_s7, %s658_s7   ;;  %s482_s6 = sphi %s502_s6, %s657_s6  }
   0x3   : > { %p25_p1 = scmp.ge.s32.totalorder %s23_s9, 2  ;;  %p101_p2 = scmp.lt.s32.totalorder %s490_s8, 3 }
   0x5   : > { %s660_s9 = smov (%p25_p1, %s23_s9), 0  ;;  %p102_p3 = pnand %p415_p0, %p101_p2 }
   0x6   : > { %p125_p4 = scmp.lt.s32.totalorder (!%p102_p3), %s482_s6, 1  ;;  %vm151_vm0 = vsmask.f32 (!%p102_p3), 3328  ;;  %vm152_vm1 = vsmask.f32 (!%p102_p3), 7440  ;;  %vm255_vm2 = vcmask (!%p102_p3), 1040384  }
   0x7   : > { %105 = sbr.rel (%p102_p3) target bundleno = 50 (0x32), region = 24  ;;  %vm256_vm3 = vcmask (!%p102_p3), 1044484   ;;  %vm568_vm4 = vmor (!%p102_p3), %vm151_vm0, %vm152_vm1  ;;  %vm297_vm5 = vsmask.f32 (!%p102_p3), 256  ;;  %vm298_vm6 = vsmask.f32 (!%p102_p3), 4368 }
   0x8   : > { %vm589_vm7 = vmor (!%p102_p3), %vm255_vm2, %vm256_vm3 }
   0x9   : > { %vm622_vm8 = vmor (!%p102_p3), %vm297_vm5, %vm298_vm6 }
   0xe   : > { %s662_s6 = smov (!%p125_p4, %s482_s6), 1 }
   0xf   : > { %s436_s10 = sshll.u32 %s662_s6, 6  ;;  %s443_s14 = smul.u32 12, %s662_s6 }
  0x10   : > { %s526_s13 = scalar_lea.vmem %s649_s0, %s436_s10 }
  0x11   : > { %v140_v0 = vld [vmem:[%s526_s13] sm:$0xf]  ;;  %v530_v1 = vld [vmem:[%s526_s13 + $0x4] sm:$0xf]  ;;  %v533_v2 = vld [vmem:[%s526_s13 + $0x8] sm:$0xf]  ;;  %s138_s17 = scalar_lea.vmem %s650_s1, %s443_s14 }
  0x12   : > { %v419_v3 = vld [vmem:[%s526_s13 + $0x10] sm:$0xf]  ;;  %v537_v4 = vld [vmem:[%s526_s13 + $0x14] sm:$0xf]  ;;  %v150_v6 = vld [vmem:[%s526_s13 + $0xc] sm:$0x1] }
  0x13   : > { %v147_v5 = vmax.bf16 %v419_v3, %v140_v0  ;;  %v155_v7 = vshrl.u32 %v140_v0, 16  ;;  %v541_v8 = vld [vmem:[%s526_s13 + $0x20] sm:$0xf]  ;;  %v544_v9 = vld [vmem:[%s526_s13 + $0x18] sm:$0xf]  ;;  %v158_v10 = vshll.u32 %v140_v0, 16  ;;  %v148_v24 = vmax.bf16 %v537_v4, %v530_v1 }
  0x14   : > { %v164_v11 = vshll.u32 %v530_v1, 16  ;;  %v168_v12 = vshrl.u32 %v530_v1, 16  ;;  %v174_v13 = vshll.u32 %v533_v2, 16  ;;  %v178_v15 = vshrl.u32 %v533_v2, 16  ;;  %v423_v17 = vld [vmem:[%s526_s13 + $0x24] sm:$0xf] }
  0x15   : > { %v157_v14 = vrot.slane %v155_v7, 4  ;;  %v184_v16 = vshll.u32 %v150_v6, 16  ;;  %v210_v18 = vshrl.u32 %v541_v8, 16  ;;  %v160_v19 = vrot.slane %v158_v10, 5  ;;  %v424_v23 = vld [vmem:[%s526_s13 + $0x28] sm:$0xf] }
  0x16   : > { %v166_v20 = vrot.slane %v164_v11, 5  ;;  %v170_v21 = vrot.slane %v168_v12, 4  ;;  %v176_v22 = vrot.slane %v174_v13, 5  ;;  %v149_v25 = vmax.bf16 %v544_v9, %v533_v2  ;;  %v428_v42 = vld [vmem:[%s526_s13 + $0x2c] sm:$0x1] }
  0x17   : > { %v180_v26 = vrot.slane %v178_v15, 4  ;;  %v186_v27 = vrot.slane %v184_v16, 5  ;;  %v161_v28 = vor.u32 %v160_v19, %v157_v14  ;;  %v212_v30 = vrot.slane %v210_v18, 4  ;;  %v249_v50 = vld [vmem:[%s526_s13] sm:$0x8] }
  0x18   : > { %v171_v29 = vor.u32 %v170_v21, %v166_v20  ;;  %v213_v31 = vshll.u32 %v541_v8, 16  ;;  %v219_v34 = vshll.u32 %v423_v17, 16  ;;  %v223_v35 = vshrl.u32 %v423_v17, 16  ;;  %v425_v56 = vld [vmem:[%s526_s13 + $0x30] sm:$0xf] }
  0x19   : > { %v181_v33 = vor.u32 %v180_v26, %v176_v22  ;;  %v229_v36 = vshll.u32 %v424_v23, 16  ;;  %v162_v37 = vrot.slane %v161_v28, 4  ;;  %v233_v40 = vshrl.u32 %v424_v23, 16  ;;  %v426_v57 = vld [vmem:[%s526_s13 + $0x34] sm:$0xf] }
  0x1a   : > { %v172_v38 = vrot.slane %v171_v29, 4  ;;  %v215_v39 = vrot.slane %v213_v31, 5  ;;  %v221_v43 = vrot.slane %v219_v34, 5  ;;  %v225_v44 = vrot.slane %v223_v35, 4  ;;  %v427_v63 = vld [vmem:[%s526_s13 + $0x38] sm:$0xf] }
  0x1b   : > { %v182_v41 = vrot.slane %v181_v33, 4  ;;  %v231_v45 = vrot.slane %v229_v36, 5  ;;  %v167_v46 = vsel %vm568_vm4, %v162_v37, %v166_v20  ;;  %v235_v49 = vrot.slane %v233_v40, 4  ;;  %v250_v3 = vld [vmem:[%s526_s13 + $0xc] sm:$0x7] }
  0x1c   : > { %v177_v47 = vsel %vm568_vm4, %v172_v38, %v176_v22  ;;  %v216_v48 = vor.u32 %v215_v39, %v212_v30  ;;  %v191_v52 = vmax.bf16 %v167_v46, %v147_v5  ;;  %v226_v54 = vor.u32 %v225_v44, %v221_v43  ;;  %v430_v20 = vld [vmem:[%s526_s13 + $0x10] sm:$0x8]  ;;  %v296_v38 = vld [vmem:[%s526_s13 + $0xc] sm:$0xf] }
  0x1d   : > { %v187_v51 = vsel %vm568_vm4, %v182_v41, %v186_v27  ;;  %v192_v53 = vmax.bf16 %v177_v47, %v148_v24  ;;  %v236_v59 = vor.u32 %v235_v49, %v231_v45  ;;  %v239_v60 = vshll.u32 %v428_v42, 16 }
  0x1e   : > { %v193_v55 = vmax.bf16 %v187_v51, %v149_v25  ;;  %v217_v58 = vrot.slane %v216_v48, 4  ;;  %v198_v61 = vmax.bf16 %v541_v8, %v191_v52  ;;  %v227_v0 = vrot.slane %v226_v54, 4  ;;  %v431_v25 = vld [vmem:[%s526_s13 + $0x1c] sm:$0x7] }
  0x1f   : > { %v199_v62 = vmax.bf16 %v423_v17, %v192_v53  ;;  %v429_v6 = vrot.slane %v249_v50, 11  ;;  %v237_v10 = vrot.slane %v236_v59, 4  ;;  %v241_v14 = vrot.slane %v239_v60, 5 }
  0x20   : > { %v200_v5 = vmax.bf16 %v424_v23, %v193_v55  ;;  %v222_v7 = vsel %vm568_vm4, %v217_v58, %v221_v43  ;;  %v205_v18 = vmax.bf16 %v425_v56, %v198_v61  ;;  %v232_v17 = vsel %vm568_vm4, %v227_v0, %v231_v45 }
  0x21   : > { %v206_v8 = vmax.bf16 %v426_v57, %v199_v62  ;;  %v260_v19 = vrot.slane %v530_v1, 7  ;;  %v242_v22 = vsel %vm568_vm4, %v237_v10, %v241_v14  ;;  %v263_v23 = vrot.slane %v533_v2, 7 }
  0x22   : > { %v207_v21 = vmax.bf16 %v427_v63, %v200_v5  ;;  %v266_v24 = vrot.slane %v250_v3, 7  ;;  %v246_v26 = vmax.bf16 %v222_v7, %v205_v18  ;;  %v432_v33 = vrot.slane %v430_v20, 11 }
  0x23   : > { %v247_v27 = vmax.bf16 %v232_v17, %v206_v8  ;;  %v261_v28 = vsel %vm589_vm7, %v429_v6, %v260_v19  ;;  %v262_v29 = vrot.slane %v260_v19, 4  ;;  %v265_v31 = vrot.slane %v263_v23, 4 }
  0x24   : > { %v248_v30 = vmax.bf16 %v242_v22, %v207_v21  ;;  %v282_v34 = vrot.slane %v537_v4, 7  ;;  %v271_v35 = vmax.bf16 %v261_v28, %v246_v26  ;;  %v285_v36 = vrot.slane %v544_v9, 7 }
  0x25   : > { %v264_v32 = vsel %vm589_vm7, %v262_v29, %v263_v23  ;;  %v288_v37 = vrot.slane %v431_v25, 7  ;;  %v267_v39 = vsel %vm589_vm7, %v265_v31, %v266_v24  ;;  %v301_v45 = vshrl.u32 %v249_v50, 16 }
  0x26   : > { %v272_v40 = vmax.bf16 %v264_v32, %v247_v27  ;;  %v283_v41 = vsel %vm589_vm7, %v432_v33, %v282_v34  ;;  %v284_v42 = vrot.slane %v282_v34, 4  ;;  %v273_v43 = vmax.bf16 %v267_v39, %v248_v30 }
  0x27   : > { %v287_v44 = vrot.slane %v285_v36, 4  ;;  %v293_v4 = vmax.bf16 %v283_v41, %v271_v35  ;;  %v305_v9 = vrot.slane %v168_v12, 7  ;;  %v309_v47 = vrot.slane %v178_v15, 7 }
  0x28   : > { %v286_v46 = vsel %vm589_vm7, %v284_v42, %v285_v36  ;;  %v314_v48 = vshrl.u32 %v296_v38, 16  ;;  %v433_v50 = vrot.slane %v301_v45, 11  ;;  %v317_v53 = vshll.u32 %v296_v38, 16 }
  0x29   : > { %v289_v49 = vsel %vm589_vm7, %v287_v44, %v288_v37  ;;  %v294_v51 = vmax.bf16 %v286_v46, %v272_v40  ;;  %v306_v12 = vor.u32 %v305_v9, %v164_v11  ;;  %v308_v54 = vrot.slane %v305_v9, 4 }
  0x2a   : > { %v310_v15 = vor.u32 %v309_v47, %v174_v13  ;;  %v312_v55 = vrot.slane %v309_v47, 4  ;;  %v316_v56 = vrot.slane %v314_v48, 7  ;;  %v295_v57 = vmax.bf16 %v289_v49, %v273_v43 }
  0x2b   : > { %v307_v58 = vsel %vm622_vm8, %v433_v50, %v306_v12 }
  0x2c   : > { %v311_v59 = vsel %vm622_vm8, %v308_v54, %v310_v15  ;;  %v319_v60 = vor.u32 %v317_v53, %v316_v56  ;;  %v324_v61 = vmax.bf16 %v307_v58, %v293_v4 }
  0x2d   : > { %v325_v62 = vmax.bf16 %v311_v59, %v294_v51 }
  0x2e   : > { %v320_v1 = vsel %vm622_vm8, %v312_v55, %v319_v60 }
  0x2f   : > { %v442_v2 = vcombine.low %v324_v61, %v325_v62  ;;  %v326_v11 = vmax.bf16 %v320_v1, %v295_v57 }
  0x31   : > { %441 = vst [vmem:[%s138_s17] sm:$0xff] %v442_v2   ;;  %329 = vst [vmem:[%s138_s17 + $0x8] sm:$0xf] %v326_v11 }
  0x32 PF: > { %s11_s8 = sadd.s32 1, %s490_s8   ;;  %s657_s6 = smov %s486_s7 }
  0x33   : > { %p8_p5 = scmp.ge.s32.totalorder %s11_s8, 4   ;;  %s658_s7 = smov %s660_s9 }
  0x35   :  { %10 = sbr.rel (!%p8_p5) target bundleno = 2 (0x2), region = 57 }

// kernel: resnet_encoder_forward.21
= control target key start
LH: loop header
LB: loop body
LE: loop exit
PB: predicated region body
PF: predicated region fallthrough
CT: control target
= control target key end

     0   :  { %s1000_s15 = smov 0   ;;  %s1002_s16 = smov 0   ;;  %s1101_s0 = inlined_call_operand.vmem [shape: bf16[2,64,256], index: 0, kind: input, shape index: {}]   ;;  %s1102_s1 = inlined_call_operand.vmem [shape: bf16[256,128], index: 1, kind: input, shape index: {}]   ;;  %s1103_s2 = inlined_call_operand.vmem [shape: f32[1,128], index: 2, kind: input, shape index: {}]   ;;  %s1104_s3 = inlined_call_operand.vmem [shape: f32[1,128], index: 3, kind: input, shape index: {}]   ;;  %s1105_s4 = inlined_call_operand.vmem [shape: bf16[2,64,128], index: 4, kind: output, shape index: {}]  }
   0x1   :  { %s1004_s17 = smov 0  }
   0x2 LB: > { %s33_s18 = sadd.s32 1, %s969_s16  ;;  %p769_p0 = scmp.ge.s32.totalorder %s973_s17, 1  ;;  %s973_s17 = sphi %s1004_s17, %s14_s17   ;;  %s969_s16 = sphi %s1002_s16, %s1107_s16   ;;  %s965_s15 = sphi %s1000_s15, %s1106_s15  }
   0x3   : > { %p35_p1 = scmp.ge.s32.totalorder %s33_s18, 2  ;;  %p218_p2 = scmp.lt.s32.totalorder %s973_s17, 3 }
   0x5   : > { %s1109_s18 = smov (%p35_p1, %s33_s18), 0  ;;  %p219_p3 = pnand %p769_p0, %p218_p2 }
   0x6   : > { %v923_v0 = vld [vmem:[%s1102_s1 + $0x40] sm:$0xff] (!%p219_p3)   ;;  %v925_v2 = vld [vmem:[%s1102_s1 + $0x48] sm:$0xff] (!%p219_p3)   ;;  %p267_p4 = scmp.lt.s32.totalorder (!%p219_p3), %s965_s15, 1  ;;  %v927_v4 = vld [vmem:[%s1102_s1 + $0x50] sm:$0xff] (!%p219_p3)  }
   0x7   : > { %222 = sbr.rel (%p219_p3) target bundleno = 274 (0x112), region = 36  ;;  %v924_v1 = vld [vmem:[%s1102_s1] sm:$0xff] (!%p219_p3)   ;;  %843 = vmatprep.subr.bf16.mxu0 (!%p219_p3), %v923_v0  ;;  %883 = vmatprep.subr.bf16.mxu1 (!%p219_p3), %v923_v0  ;;  %v926_v3 = vld [vmem:[%s1102_s1 + $0x8] sm:$0xff] (!%p219_p3)   ;;  %v928_v5 = vld [vmem:[%s1102_s1 + $0x10] sm:$0xff] (!%p219_p3)  }
   0x8   : > { %844 = vmatpush3.bf16.msra.mxu0 (!%p219_p3), %v924_v1  ;;  %891 = vmatpush3.bf16.msra.mxu1 (!%p219_p3), %v924_v1  ;;  %v929_v6 = vld [vmem:[%s1102_s1 + $0x58] sm:$0xff] (!%p219_p3)   ;;  %v931_v8 = vld [vmem:[%s1102_s1 + $0x60] sm:$0xff] (!%p219_p3)   ;;  %v933_v10 = vld [vmem:[%s1102_s1 + $0x68] sm:$0xff] (!%p219_p3)  }
   0x9   : > { %845 = vmatprep.subr.bf16.mxu0 (!%p219_p3), %v925_v2  ;;  %884 = vmatprep.subr.bf16.mxu1 (!%p219_p3), %v925_v2  ;;  %v930_v7 = vld [vmem:[%s1102_s1 + $0x18] sm:$0xff] (!%p219_p3)   ;;  %v932_v9 = vld [vmem:[%s1102_s1 + $0x20] sm:$0xff] (!%p219_p3)   ;;  %v934_v13 = vld [vmem:[%s1102_s1 + $0x28] sm:$0xff] (!%p219_p3)  }
   0xa   : > { %v935_v14 = vld [vmem:[%s1102_s1 + $0x70] sm:$0xff] (!%p219_p3)   ;;  %v937_v16 = vld [vmem:[%s1102_s1 + $0x78] sm:$0xff] (!%p219_p3)   ;;  %v798_v27 = vld [vmem:[%s1103_s2] ss:$0 sm:$0xff] (!%p219_p3) }
   0xb   : > { %v936_v15 = vld [vmem:[%s1102_s1 + $0x30] sm:$0xff] (!%p219_p3)   ;;  %v938_v17 = vld [vmem:[%s1102_s1 + $0x38] sm:$0xff] (!%p219_p3)   ;;  %v799_v33 = vld [vmem:[%s1104_s3] ss:$0 sm:$0xff] (!%p219_p3) }
   0xc   : > { %846 = vmatpush3.bf16.msra.mxu0 (!%p219_p3), %v926_v3  ;;  %892 = vmatpush3.bf16.msra.mxu1 (!%p219_p3), %v926_v3 }
   0xd   : > { %847 = vmatprep.subr.bf16.mxu0 (!%p219_p3), %v927_v4  ;;  %885 = vmatprep.subr.bf16.mxu1 (!%p219_p3), %v927_v4 }
   0xe   : > { %s1111_s15 = smov (!%p267_p4, %s965_s15), 1 }
   0xf   : > { %s810_s9 = sshll.u32 %s1111_s15, 6  ;;  %s811_s11 = sshll.u32 %s1111_s15, 5 }
  0x10   : > { %848 = vmatpush3.bf16.msra.mxu0 %v928_v5  ;;  %893 = vmatpush3.bf16.msra.mxu1 %v928_v5  ;;  %s1051_s14 = scalar_lea.vmem %s1101_s0, %s810_s9 }
  0x11   : > { %849 = vmatprep.subr.bf16.mxu0 %v929_v6  ;;  %886 = vmatprep.subr.bf16.mxu1 %v929_v6  ;;  %v941_v11 = vld [vmem:[%s1051_s14 + $0x4] ss:$8 sps:$4 sm:$0xff]   ;;  %v939_v18 = vld [vmem:[%s1051_s14] ss:$8 sps:$4 sm:$0xff]   ;;  %v945_v20 = vld [vmem:[%s1051_s14 + $0x14] ss:$8 sps:$4 sm:$0xff]  }
  0x12   : > { %v944_v12 = vld [vmem:[%s1051_s14 + $0x24] ss:$8 sps:$4 sm:$0xff]   ;;  %509 = vmatprep.mubr.bf16.mxu0 %v941_v11  ;;  %v942_v19 = vld [vmem:[%s1051_s14 + $0x20] ss:$8 sps:$4 sm:$0xff]   ;;  %v947_v21 = vld [vmem:[%s1051_s14 + $0x34] ss:$8 sps:$4 sm:$0xff]  }
  0x13   : > { %525 = vmatprep.mubr.bf16.mxu1 %v944_v12  ;;  %v949_v22 = vld [vmem:[%s1051_s14 + $0x10] ss:$8 sps:$4 sm:$0xff]  }
  0x14   : > { %850 = vmatpush3.bf16.msra.mxu0 %v930_v7  ;;  %894 = vmatpush3.bf16.msra.mxu1 %v930_v7  ;;  %v950_v23 = vld [vmem:[%s1051_s14 + $0x30] ss:$8 sps:$4 sm:$0xff]   ;;  %s298_s14 = scalar_lea.vmem %s1105_s4, %s811_s11 }
  0x15   : > { %851 = vmatprep.subr.bf16.mxu0 %v931_v8  ;;  %887 = vmatprep.subr.bf16.mxu1 %v931_v8 }
  0x18   : > { %852 = vmatpush3.bf16.msra.mxu0 %v932_v9  ;;  %895 = vmatpush3.bf16.msra.mxu1 %v932_v9 }
  0x19   : > { %853 = vmatprep.subr.bf16.mxu0 %v933_v10  ;;  %888 = vmatprep.subr.bf16.mxu1 %v933_v10 }
  0x1c   : > { %854 = vmatpush3.bf16.msra.mxu0 %v934_v13  ;;  %896 = vmatpush3.bf16.msra.mxu1 %v934_v13 }
  0x1d   : > { %855 = vmatprep.subr.bf16.mxu0 %v935_v14  ;;  %889 = vmatprep.subr.bf16.mxu1 %v935_v14 }
  0x20   : > { %856 = vmatpush3.bf16.msra.mxu0 %v936_v15  ;;  %897 = vmatpush3.bf16.msra.mxu1 %v936_v15 }
  0x21   : > { %857 = vmatprep.subr.bf16.mxu0 %v937_v16  ;;  %890 = vmatprep.subr.bf16.mxu1 %v937_v16 }
  0x24   : > { %858 = vmatpush3.bf16.msra.mxu0 %v938_v17  ;;  %898 = vmatpush3.bf16.msra.mxu1 %v938_v17 }
  0x27   : > { %510 = vmatmul.mubr.bf16.vlgmr.msra.gmra.mrb[0].mxu0 %v939_v18  ;;  %526 = vmatmul.mubr.bf16.vlgmr.msra.gmra.mrb[0].mxu1 %v942_v19 }
  0x28   : > { %517 = vmatprep.mubr.bf16.mxu0 %v945_v20  ;;  %533 = vmatprep.mubr.bf16.mxu1 %v947_v21 }
  0x2f   : > { %518 = vmatmul.mubr.bf16.gmra.mrb[4].mxu0 %v949_v22  ;;  %534 = vmatmul.mubr.bf16.gmra.mrb[4].mxu1 %v950_v23 }
  0xfa   : > { %v859_v24 = vpop.f32.mrb[0].mxu0  ;;  %v871_v25 = vpop.f32.mrb[0].mxu1 }
  0xfb   : > { %v860_v26 = vpop.f32.mrb[1].mxu0  ;;  %v872_v28 = vpop.f32.mrb[1].mxu1 }
  0xfc   : > { %v861_v29 = vadd.f32 %v860_v26, %v859_v24  ;;  %v873_v30 = vadd.f32 %v872_v28, %v871_v25  ;;  %v862_v31 = vpop.f32.mrb[2].mxu0  ;;  %v874_v32 = vpop.f32.mrb[2].mxu1 }
  0xfd   : > { %v863_v34 = vpop.f32.mrb[3].mxu0  ;;  %v875_v35 = vpop.f32.mrb[3].mxu1 }
  0xfe   : > { %v549_v36 = vmul.f32 %v861_v29, %v798_v27  ;;  %v553_v37 = vmul.f32 %v873_v30, %v798_v27  ;;  %v864_v38 = vadd.f32 %v863_v34, %v862_v31  ;;  %v876_v39 = vadd.f32 %v875_v35, %v874_v32 }
 0x100   : > { %v564_v40 = vadd.f32 %v799_v33, %v549_v36  ;;  %v568_v41 = vadd.f32 %v799_v33, %v553_v37  ;;  %v550_v42 = vmul.f32 %v864_v38, %v798_v27  ;;  %v554_v43 = vmul.f32 %v876_v39, %v798_v27 }
 0x102   : > { %v565_v44 = vadd.f32 %v799_v33, %v550_v42  ;;  %v569_v45 = vadd.f32 %v799_v33, %v554_v43  ;;  %v865_v46 = vpop.f32.mrb[4].mxu0  ;;  %v877_v47 = vpop.f32.mrb[4].mxu1  ;;  %v572_v48 = vmax.f32 %v564_v40, 0.0  ;;  %v576_v49 = vmax.f32 %v568_v41, 0.0 }
 0x103   : > { %v866_v50 = vpop.f32.mrb[5].mxu0  ;;  %v878_v51 = vpop.f32.mrb[5].mxu1 }
 0x104   : > { %v573_v52 = vmax.f32 %v565_v44, 0.0  ;;  %v577_v53 = vmax.f32 %v569_v45, 0.0  ;;  %v867_v54 = vadd.f32 %v866_v50, %v865_v46  ;;  %v879_v55 = vadd.f32 %v878_v51, %v877_v47  ;;  %v868_v56 = vpop.f32.mrb[6].mxu0  ;;  %v880_v57 = vpop.f32.mrb[6].mxu1 }
 0x105   : > { %v869_v58 = vpop.f32.mrb[7].mxu0  ;;  %v881_v59 = vpop.f32.mrb[7].mxu1 }
 0x106   : > { %v823_v60 = vpack.c.bf16 %v573_v52, %v572_v48  ;;  %v833_v61 = vpack.c.bf16 %v577_v53, %v576_v49  ;;  %v551_v62 = vmul.f32 %v867_v54, %v798_v27  ;;  %v555_v63 = vmul.f32 %v879_v55, %v798_v27 }
 0x107   : > { %v870_v0 = vadd.f32 %v869_v58, %v868_v56  ;;  %v882_v1 = vadd.f32 %v881_v59, %v880_v57 }
 0x108   : > { %824 = vst [vmem:[%s298_s14] sm:$0xff] %v823_v60   ;;  %841 = vst [vmem:[%s298_s14 + $0x10] sm:$0xff] %v833_v61   ;;  %v566_v2 = vadd.f32 %v799_v33, %v551_v62  ;;  %v570_v3 = vadd.f32 %v799_v33, %v555_v63 }
 0x109   : > { %v552_v4 = vmul.f32 %v870_v0, %v798_v27  ;;  %v556_v5 = vmul.f32 %v882_v1, %v798_v27 }
 0x10a   : > { %v574_v8 = vmax.f32 %v566_v2, 0.0  ;;  %v578_v9 = vmax.f32 %v570_v3, 0.0 }
 0x10b   : > { %v567_v6 = vadd.f32 %v799_v33, %v552_v4  ;;  %v571_v7 = vadd.f32 %v799_v33, %v556_v5 }
 0x10d   : > { %v575_v10 = vmax.f32 %v567_v6, 0.0  ;;  %v579_v11 = vmax.f32 %v571_v7, 0.0 }
 0x10f   : > { %v828_v12 = vpack.c.bf16 %v575_v10, %v574_v8  ;;  %v838_v13 = vpack.c.bf16 %v579_v11, %v578_v9 }
 0x111   : > { %840 = vst [vmem:[%s298_s14 + $0x8] sm:$0xff] %v828_v12   ;;  %842 = vst [vmem:[%s298_s14 + $0x18] sm:$0xff] %v838_v13  }
 0x112 PF: > { %s14_s17 = sadd.s32 1, %s973_s17   ;;  %s1106_s15 = smov %s969_s16 }
 0x113   : > { %p11_p5 = scmp.ge.s32.totalorder %s14_s17, 4   ;;  %s1107_s16 = smov %s1109_s18 }
 0x115   :  { %13 = sbr.rel (!%p11_p5) target bundleno = 2 (0x2), region = 75 }

// kernel: resnet_encoder_forward.24
= control target key start
LH: loop header
LB: loop body
LE: loop exit
PB: predicated region body
PF: predicated region fallthrough
CT: control target
= control target key end

     0   :  { %s2444_s18 = smov 0   ;;  %s2446_s19 = smov 0   ;;  %s2788_s0 = inlined_call_operand.vmem [shape: bf16[2,1,40,128], index: 0, kind: input, shape index: {}]   ;;  %s2789_s1 = inlined_call_operand.vmem [shape: bf16[9,128,128], index: 1, kind: input, shape index: {}]   ;;  %s2790_s2 = inlined_call_operand.vmem [shape: f32[1,128], index: 2, kind: input, shape index: {}]   ;;  %s2791_s3 = inlined_call_operand.vmem [shape: f32[1,128], index: 3, kind: input, shape index: {}]   ;;  %s2792_s4 = inlined_call_operand.vmem [shape: bf16[2,24,128], index: 4, kind: input, shape index: {}]   ;;  %s2793_s5 = inlined_call_operand.vmem [shape: bf16[2,24,128], index: 5, kind: output, shape index: {}]  }
   0x1   :  { %s2448_s20 = smov 0  }
   0x2 LB: > { %s34_s21 = sadd.s32 1, %s2408_s19  ;;  %p1742_p0 = scmp.ge.s32.totalorder %s2412_s20, 1  ;;  %s2412_s20 = sphi %s2448_s20, %s15_s20   ;;  %s2408_s19 = sphi %s2446_s19, %s2795_s19   ;;  %s2404_s18 = sphi %s2444_s18, %s2794_s18  }
   0x3   : > { %p36_p1 = scmp.ge.s32.totalorder %s34_s21, 2  ;;  %p257_p2 = scmp.lt.s32.totalorder %s2412_s20, 3 }
   0x5   : > { %s2797_s21 = smov (%p36_p1, %s34_s21), 0  ;;  %p258_p3 = pnand %p1742_p0, %p257_p2 }
   0x6   : > { %v2305_v0 = vld [vmem:[%s2789_s1 + $0x40] sm:$0xff] (!%p258_p3)   ;;  %p314_p4 = scmp.lt.s32.totalorder (!%p258_p3), %s2404_s18, 1  ;;  %v2307_v2 = vld [vmem:[%s2789_s1 + $0x48] sm:$0xff] (!%p258_p3)   ;;  %v2309_v4 = vld [vmem:[%s2789_s1 + $0x50] sm:$0xff] (!%p258_p3)   ;;  %vm403_vm0 = vsmask.f32 (!%p258_p3), 7424 }
   0x7   : > { %261 = sbr.rel (%p258_p3) target bundleno = 396 (0x18c), region = 40  ;;  %v2306_v1 = vld [vmem:[%s2789_s1 + $0x100] sm:$0xff] (!%p258_p3)   ;;  %2068 = vmatprep.subr.bf16.mxu1 (!%p258_p3), %v2305_v0  ;;  %v2308_v3 = vld [vmem:[%s2789_s1 + $0x108] sm:$0xff] (!%p258_p3)   ;;  %v2310_v5 = vld [vmem:[%s2789_s1 + $0x110] sm:$0xff] (!%p258_p3)   ;;  %vm893_vm1 = vsmask.f32 (!%p258_p3), 4352 }
   0x8   : > { %2148 = vmatprep.subr.bf16.mxu0 (!%p258_p3), %v2306_v1  ;;  %2069 = vmatpush3.bf16.msra.mxu1 (!%p258_p3), %v2305_v0  ;;  %v2311_v6 = vld [vmem:[%s2789_s1 + $0x58] sm:$0xff] (!%p258_p3)   ;;  %v2313_v8 = vld [vmem:[%s2789_s1 + $0x60] sm:$0xff] (!%p258_p3)   ;;  %v2315_v10 = vld [vmem:[%s2789_s1 + $0x68] sm:$0xff] (!%p258_p3)   ;;  %vm637_vm2 = vcmask (!%p258_p3), 1046528   ;;  %vm1163_vm3 = vcmask (!%p258_p3), 1045504   ;;  %vm767_vm4 = vcmask (!%p258_p3), 1044480  }
   0x9   : > { %2149 = vmatpush3.bf16.msra.mxu0 (!%p258_p3), %v2306_v1  ;;  %2070 = vmatprep.subr.bf16.mxu1 (!%p258_p3), %v2307_v2  ;;  %v2312_v7 = vld [vmem:[%s2789_s1 + $0x118] sm:$0xff] (!%p258_p3)   ;;  %v2314_v9 = vld [vmem:[%s2789_s1 + $0x120] sm:$0xff] (!%p258_p3)   ;;  %v2316_v11 = vld [vmem:[%s2789_s1 + $0x128] sm:$0xff] (!%p258_p3)   ;;  %vm1289_vm5 = vsmask.f32 (!%p258_p3), 5376 }
   0xa   : > { %2150 = vmatprep.subr.bf16.mxu0 (!%p258_p3), %v2308_v3  ;;  %v2317_v23 = vld [vmem:[%s2789_s1 + $0x70] sm:$0xff] (!%p258_p3)   ;;  %v2319_v30 = vld [vmem:[%s2789_s1 + $0x78] sm:$0xff] (!%p258_p3)   ;;  %v2323_v44 = vld [vmem:[%s2789_s1] sm:$0xff] (!%p258_p3)  }
   0xb   : > { %v2318_v26 = vld [vmem:[%s2789_s1 + $0x130] sm:$0xff] (!%p258_p3)   ;;  %v2320_v34 = vld [vmem:[%s2789_s1 + $0x138] sm:$0xff] (!%p258_p3)   ;;  %v2326_v46 = vld [vmem:[%s2789_s1 + $0x140] sm:$0xff] (!%p258_p3)  }
   0xc   : > { %2071 = vmatpush3.bf16.msra.mxu1 (!%p258_p3), %v2307_v2  ;;  %v2327_v48 = vld [vmem:[%s2789_s1 + $0x8] sm:$0xff] (!%p258_p3)   ;;  %v2329_v51 = vld [vmem:[%s2789_s1 + $0x10] sm:$0xff] (!%p258_p3)   ;;  %v2331_v53 = vld [vmem:[%s2789_s1 + $0x18] sm:$0xff] (!%p258_p3)  }
   0xd   : > { %2151 = vmatpush3.bf16.msra.mxu0 (!%p258_p3), %v2308_v3  ;;  %2072 = vmatprep.subr.bf16.mxu1 (!%p258_p3), %v2309_v4  ;;  %v2328_v49 = vld [vmem:[%s2789_s1 + $0x148] sm:$0xff] (!%p258_p3)   ;;  %v2330_v52 = vld [vmem:[%s2789_s1 + $0x150] sm:$0xff] (!%p258_p3)   ;;  %v2332_v54 = vld [vmem:[%s2789_s1 + $0x158] sm:$0xff] (!%p258_p3)  }
   0xe   : > { %s2799_s18 = smov (!%p314_p4, %s2404_s18), 1  ;;  %2152 = vmatprep.subr.bf16.mxu0 %v2310_v5  ;;  %v2333_v55 = vld [vmem:[%s2789_s1 + $0x20] sm:$0xff]   ;;  %v2335_v57 = vld [vmem:[%s2789_s1 + $0x28] sm:$0xff]   ;;  %v2337_v59 = vld [vmem:[%s2789_s1 + $0x30] sm:$0xff]  }
   0xf   : > { %s2279_s13 = smul.u32 20, %s2799_s18  ;;  %v2334_v56 = vld [vmem:[%s2789_s1 + $0x160] sm:$0xff]   ;;  %v2336_v58 = vld [vmem:[%s2789_s1 + $0x168] sm:$0xff]   ;;  %v2338_v60 = vld [vmem:[%s2789_s1 + $0x170] sm:$0xff]  }
  0x10   : > { %2073 = vmatpush3.bf16.msra.mxu1 %v2309_v4  ;;  %v2339_v61 = vld [vmem:[%s2789_s1 + $0x38] sm:$0xff]   ;;  %s2280_s28 = smul.u32 12, %s2799_s18 }
  0x11   : > { %2153 = vmatpush3.bf16.msra.mxu0 %v2310_v5  ;;  %2074 = vmatprep.subr.bf16.mxu1 %v2311_v6  ;;  %s2498_s24 = scalar_lea.vmem %s2788_s0, %s2279_s13  ;;  %v2340_v3 = vld [vmem:[%s2789_s1 + $0x178] sm:$0xff]  }
  0x12   : > { %2154 = vmatprep.subr.bf16.mxu0 %v2312_v7  ;;  %v356_v12 = vld [vmem:[%s2498_s24] sm:$0xf]  ;;  %v2508_v13 = vld [vmem:[%s2498_s24 + $0x4] sm:$0xf]  ;;  %v2511_v14 = vld [vmem:[%s2498_s24 + $0x8] sm:$0xf]  ;;  %s340_s6 = scalar_lea.vmem %s2792_s4, %s2280_s28  ;;  %s353_s11 = scalar_lea.vmem %s2793_s5, %s2280_s28 }
  0x13   : > { %v375_v15 = vld [vmem:[%s2498_s24 + $0xc] sm:$0x1]  ;;  %v1762_v16 = vcombine.low %v356_v12, %v2508_v13  ;;  %v742_v18 = vld [vmem:[%s2498_s24] sm:$0x8]  ;;  %v1873_v50 = vcombine.low %v2508_v13, %v2511_v14  ;;  %v1132_v63 = vld [vmem:[%s2498_s24 + $0x4] sm:$0xc] }
  0x14   : > { %2075 = vmatpush3.bf16.msra.mxu1 %v2311_v6  ;;  %v2516_v17 = vcombine.low %v2511_v14, %v375_v15  ;;  %v2520_v21 = vcombine.low %v742_v18, %v2508_v13  ;;  %v2523_v22 = vld [vmem:[%s2498_s24 + $0xc] sm:$0xf]  ;;  %v616_v62 = vld [vmem:[%s2498_s24] sm:$0xe]  ;;  %v2594_v0 = vld [vmem:[%s2498_s24 + $0x8] sm:$0xf] }
  0x15   : > { %2155 = vmatpush3.bf16.msra.mxu0 %v2312_v7  ;;  %2076 = vmatprep.subr.bf16.mxu1 %v2313_v8  ;;  %v405_v19 = vshrl.u32 %v1762_v16, 16  ;;  %v407_v20 = vshll.u32 %v1762_v16, 16  ;;  %v1848_v25 = vcombine.low %v2511_v14, %v2523_v22  ;;  %v2597_v1 = vld [vmem:[%s2498_s24 + $0xc] sm:$0xf]  ;;  %v1135_v2 = vld [vmem:[%s2498_s24 + $0x10] sm:$0x3]  ;;  %v1797_v4 = vcombine.low %v616_v62, %v2508_v13 }
  0x16   : > { %2156 = vmatprep.subr.bf16.mxu0 %v2314_v9  ;;  %v412_v24 = vshll.u32 %v2516_v17, 16  ;;  %v895_v28 = vshrl.u32 %v2520_v21, 16  ;;  %v898_v29 = vshll.u32 %v2520_v21, 16  ;;  %v416_v43 = vshrl.u32 %v2516_v17, 16  ;;  %v2341_v7 = vld [vmem:[%s2789_s1 + $0x80] sm:$0xff]   ;;  %v2347_v18 = vld [vmem:[%s2789_s1 + $0x188] sm:$0xff]  }
  0x17   : > { %v409_v27 = vrot.slane %v407_v20, 1  ;;  %v903_v32 = vshrl.u32 %v1848_v25, 16  ;;  %v906_v33 = vshll.u32 %v1848_v25, 16  ;;  %v2605_v5 = vcombine.low %v1132_v63, %v2594_v0  ;;  %v2377_v62 = vld [vmem:[%s2789_s1 + $0x1f0] sm:$0xff]   ;;  %v1408_v63 = vld [vmem:[%s2498_s24 + $0x4] sm:$0x8] }
  0x18   : > { %2077 = vmatpush3.bf16.msra.mxu1 %v2313_v8  ;;  %v414_v31 = vrot.slane %v412_v24, 1  ;;  %v897_v36 = vrot.slane %v895_v28, 3  ;;  %v900_v37 = vrot.slane %v898_v29, 4  ;;  %v1900_v6 = vcombine.low %v2597_v1, %v1135_v2  ;;  %v2343_v8 = vld [vmem:[%s2789_s1 + $0x180] sm:$0xff]   ;;  %v743_v24 = vld [vmem:[%s2498_s24 + $0xc] sm:$0x7] }
  0x19   : > { %2157 = vmatpush3.bf16.msra.mxu0 %v2314_v9  ;;  %2078 = vmatprep.subr.bf16.mxu1 %v2315_v10  ;;  %v410_v35 = vor.u32 %v409_v27, %v405_v19  ;;  %v905_v38 = vrot.slane %v903_v32, 3  ;;  %v908_v39 = vrot.slane %v906_v33, 4  ;;  %v1772_v9 = vcombine.low %v2511_v14, %v2511_v14  ;;  %v2350_v27 = vld [vmem:[%s2789_s1 + $0x98] sm:$0xff]   ;;  %v1268_v32 = vld [vmem:[%s2498_s24 + $0x10] sm:$0x7]  ;;  %v2355_v33 = vld [vmem:[%s2789_s1 + $0x1a8] sm:$0xff]  }
  0x1a   : > { %2158 = vmatprep.subr.bf16.mxu0 %v2316_v11  ;;  %v901_v41 = vor.u32 %v900_v37, %v897_v36  ;;  %v418_v47 = vor.u32 %v416_v43, %v414_v31  ;;  %v1874_v12 = vcombine.low %v2523_v22, %v2523_v22  ;;  %v1164_v13 = vrot.slane %v2605_v5, 2  ;;  %v2348_v22 = vld [vmem:[%s2789_s1 + $0x90] sm:$0xff]   ;;  %v2351_v28 = vld [vmem:[%s2789_s1 + $0x198] sm:$0xff]  }
  0x1b   : > { %v415_v40 = vsel %vm403_vm0, %v410_v35, %v414_v31  ;;  %v909_v42 = vor.u32 %v908_v39, %v905_v38  ;;  %v2620_v15 = vrot.slane %v1900_v6, 2  ;;  %v768_v25 = vrot.slane %v2520_v21, 3  ;;  %v2354_v31 = vld [vmem:[%s2789_s1 + $0xa8] sm:$0xff]   ;;  %v2356_v35 = vld [vmem:[%s2789_s1 + $0xb0] sm:$0xff]   ;;  %v2379_v2 = vld [vmem:[%s2789_s1 + $0x1f8] sm:$0xff]  }
  0x1c   : > { %2079 = vmatpush3.bf16.msra.mxu1 %v2315_v10  ;;  %2084 = vmatprep.mubr.bf16.mxu1 %v415_v40  ;;  %v638_v10 = vrot.slane %v1797_v4, 1  ;;  %v2357_v36 = vld [vmem:[%s2789_s1 + $0x1b0] sm:$0xff]   ;;  %v1291_v37 = vshrl.u32 %v2605_v5, 16  ;;  %v1294_v38 = vshll.u32 %v2605_v5, 16  ;;  %v2381_v4 = vld [vmem:[%s2789_s1 + $0x200] sm:$0xff]  }
  0x1d   : > { %2159 = vmatpush3.bf16.msra.mxu0 %v2316_v11  ;;  %2080 = vmatprep.subr.bf16.mxu1 %v2317_v23  ;;  %v910_v45 = vsel %vm893_vm1, %v901_v41, %v909_v42  ;;  %v639_v11 = vrot.slane %v2516_v17, 1  ;;  %v1166_v20 = vsel %vm1163_vm3, %v1164_v13, %v2620_v15  ;;  %v2358_v41 = vld [vmem:[%s2789_s1 + $0xb8] sm:$0xff]  }
  0x1e   : > { %2160 = vmatprep.subr.bf16.mxu0 %v2318_v26  ;;  %2164 = vmatprep.mubr.bf16.mxu0 %v910_v45  ;;  %v1293_v43 = vrot.slane %v1291_v37, 2  ;;  %v2370_v17 = vld [vmem:[%s2789_s1 + $0xd8] sm:$0xff]  }
  0x1f   : > { %v640_v19 = vsel %vm637_vm2, %v638_v10, %v639_v11  ;;  %v2385_v10 = vld [vmem:[%s2789_s1 + $0x220] sm:$0xff]   ;;  %v2388_v13 = vld [vmem:[%s2789_s1 + $0x238] sm:$0xff]  }
  0x20   : > { %2081 = vmatpush3.bf16.msra.mxu1 %v2317_v23  ;;  %v2349_v23 = vld [vmem:[%s2789_s1 + $0x190] sm:$0xff]  }
  0x21   : > { %2161 = vmatpush3.bf16.msra.mxu0 %v2318_v26  ;;  %2082 = vmatprep.subr.bf16.mxu1 %v2319_v30  ;;  %v1823_v26 = vcombine.low %v2511_v14, %v743_v24  ;;  %v2352_v14 = vld [vmem:[%s2789_s1 + $0xa0] sm:$0xff]  }
  0x22   : > { %2162 = vmatprep.subr.bf16.mxu0 %v2320_v34 }
  0x23   : > { %v2646_v29 = vrot.slane %v1823_v26, 3  ;;  %v1970_v26 = vld [vmem:[%s340_s6] sm:$0xff]  }
  0x24   : > { %2083 = vmatpush3.bf16.msra.mxu1 %v2319_v30  ;;  %v2353_v30 = vld [vmem:[%s2789_s1 + $0x1a0] sm:$0xff]   ;;  %v1972_v37 = vunpack.c.h.bf16 %v1970_v26 }
  0x25   : > { %2163 = vmatpush3.bf16.msra.mxu0 %v2320_v34  ;;  %2088 = vmatprep.subr.bf16.mxu1 %v2323_v44  ;;  %v770_v21 = vsel %vm767_vm4, %v768_v25, %v2646_v29  ;;  %v2664_v34 = vcombine.low %v2597_v1, %v1268_v32  ;;  %v2378_v1 = vld [vmem:[%s2789_s1 + $0xf8] sm:$0xff]   ;;  %v1971_v32 = vunpack.c.l.bf16 %v1970_v26 }
  0x26   : > { %2168 = vmatprep.subr.bf16.mxu0 %v2326_v46 }
  0x27   : > { %2085 = vmatmul.mubr.bf16.vlgmr.msra.gmra.mrb[0].mxu1 %v418_v47  ;;  %v1299_v39 = vshrl.u32 %v2664_v34, 16  ;;  %v1302_v40 = vshll.u32 %v2664_v34, 16  ;;  %v2361_v47 = vld [vmem:[%s2789_s1 + $0xc0] sm:$0xff]   ;;  %v1430_v6 = vrot.slane %v2664_v34, 3 }
  0x28   : > { %2089 = vmatpush3.bf16.msra.mxu1 %v2323_v44  ;;  %2165 = vmatmul.mubr.bf16.vlgmr.msra.gmra.mrb[0].mxu0 %v909_v42  ;;  %v2359_v42 = vld [vmem:[%s2789_s1 + $0x1b8] sm:$0xff]   ;;  %v1296_v44 = vrot.slane %v1294_v38, 3 }
  0x29   : > { %2169 = vmatpush3.bf16.msra.mxu0 %v2326_v46  ;;  %2090 = vmatprep.subr.bf16.mxu1 %v2327_v48  ;;  %v1301_v45 = vrot.slane %v1299_v39, 2  ;;  %v1304_v46 = vrot.slane %v1302_v40, 3 }
  0x2a   : > { %2170 = vmatprep.subr.bf16.mxu0 %v2328_v49  ;;  %2104 = vmatprep.mubr.bf16.mxu1 %v1762_v16  ;;  %v2346_v16 = vld [vmem:[%s2789_s1 + $0x88] sm:$0xff]  }
  0x2b   : > { %2184 = vmatprep.mubr.bf16.mxu0 %v1873_v50  ;;  %v2688_v50 = vor.u32 %v1304_v46, %v1301_v45 }
  0x2c   : > { %2091 = vmatpush3.bf16.msra.mxu1 %v2327_v48  ;;  %v2365_v48 = vld [vmem:[%s2789_s1 + $0x1c0] sm:$0xff]  }
  0x2d   : > { %2171 = vmatpush3.bf16.msra.mxu0 %v2328_v49  ;;  %2092 = vmatprep.subr.bf16.mxu1 %v2329_v51  ;;  %v1297_v49 = vor.u32 %v1296_v44, %v1293_v43 }
  0x2e   : > { %2172 = vmatprep.subr.bf16.mxu0 %v2330_v52 }
  0x30   : > { %2093 = vmatpush3.bf16.msra.mxu1 %v2329_v51  ;;  %v2366_v51 = vld [vmem:[%s2789_s1 + $0xc8] sm:$0xff]  }
  0x31   : > { %2173 = vmatpush3.bf16.msra.mxu0 %v2330_v52  ;;  %2094 = vmatprep.subr.bf16.mxu1 %v2331_v53  ;;  %v2367_v52 = vld [vmem:[%s2789_s1 + $0x1c8] sm:$0xff]  }
  0x32   : > { %2174 = vmatprep.subr.bf16.mxu0 %v2332_v54 }
  0x34   : > { %2095 = vmatpush3.bf16.msra.mxu1 %v2331_v53  ;;  %v1306_v53 = vsel %vm1289_vm5, %v1297_v49, %v2688_v50 }
  0x35   : > { %2175 = vmatpush3.bf16.msra.mxu0 %v2332_v54  ;;  %2096 = vmatprep.subr.bf16.mxu1 %v2333_v55  ;;  %v2368_v54 = vld [vmem:[%s2789_s1 + $0xd0] sm:$0xff]  }
  0x36   : > { %2176 = vmatprep.subr.bf16.mxu0 %v2334_v56 }
  0x38   : > { %2097 = vmatpush3.bf16.msra.mxu1 %v2333_v55  ;;  %v2369_v55 = vld [vmem:[%s2789_s1 + $0x1d0] sm:$0xff]  }
  0x39   : > { %2177 = vmatpush3.bf16.msra.mxu0 %v2334_v56  ;;  %2098 = vmatprep.subr.bf16.mxu1 %v2335_v57  ;;  %v2371_v56 = vld [vmem:[%s2789_s1 + $0x1d8] sm:$0xff]  }
  0x3a   : > { %2178 = vmatprep.subr.bf16.mxu0 %v2336_v58 }
  0x3c   : > { %2099 = vmatpush3.bf16.msra.mxu1 %v2335_v57  ;;  %v2372_v57 = vld [vmem:[%s2789_s1 + $0xe0] sm:$0xff]  }
  0x3d   : > { %2179 = vmatpush3.bf16.msra.mxu0 %v2336_v58  ;;  %2100 = vmatprep.subr.bf16.mxu1 %v2337_v59  ;;  %v2373_v58 = vld [vmem:[%s2789_s1 + $0x1e0] sm:$0xff]  }
  0x3e   : > { %2180 = vmatprep.subr.bf16.mxu0 %v2338_v60 }
  0x40   : > { %2101 = vmatpush3.bf16.msra.mxu1 %v2337_v59  ;;  %v2374_v59 = vld [vmem:[%s2789_s1 + $0xe8] sm:$0xff]  }
  0x41   : > { %2181 = vmatpush3.bf16.msra.mxu0 %v2338_v60  ;;  %2102 = vmatprep.subr.bf16.mxu1 %v2339_v61  ;;  %v2375_v60 = vld [vmem:[%s2789_s1 + $0x1e8] sm:$0xff]  }
  0x42   : > { %2182 = vmatprep.subr.bf16.mxu0 %v2340_v3 }
  0x44   : > { %2103 = vmatpush3.bf16.msra.mxu1 %v2339_v61  ;;  %v2376_v61 = vld [vmem:[%s2789_s1 + $0xf0] sm:$0xff]  }
  0x45   : > { %2183 = vmatpush3.bf16.msra.mxu0 %v2340_v3  ;;  %2108 = vmatprep.subr.bf16.mxu1 %v2341_v7  ;;  %v1950_v3 = vcombine.low %v1408_v63, %v2594_v0 }
  0x46   : > { %2188 = vmatprep.subr.bf16.mxu0 %v2343_v8 }
  0x47   : > { %2105 = vmatmul.mubr.bf16.vlgmr.msra.gmra.mrb[0].mxu1 %v1772_v9  ;;  %v1429_v5 = vrot.slane %v1950_v3, 3  ;;  %v2384_v9 = vld [vmem:[%s2789_s1 + $0x218] sm:$0xff]  }
  0x48   : > { %2109 = vmatpush3.bf16.msra.mxu1 %v2341_v7  ;;  %2185 = vmatmul.mubr.bf16.vlgmr.msra.gmra.mrb[0].mxu0 %v1874_v12  ;;  %v2382_v7 = vld [vmem:[%s2789_s1 + $0x208] sm:$0xff]   ;;  %v2387_v12 = vld [vmem:[%s2789_s1 + $0x230] sm:$0xff]  }
  0x49   : > { %2189 = vmatpush3.bf16.msra.mxu0 %v2343_v8  ;;  %2110 = vmatprep.subr.bf16.mxu1 %v2346_v16  ;;  %v1431_v0 = vsel %vm767_vm4, %v1429_v5, %v1430_v6  ;;  %v2383_v8 = vld [vmem:[%s2789_s1 + $0x210] sm:$0xff]  }
  0x4a   : > { %2190 = vmatprep.subr.bf16.mxu0 %v2347_v18  ;;  %2124 = vmatprep.mubr.bf16.mxu1 %v640_v19 }
  0x4b   : > { %2204 = vmatprep.mubr.bf16.mxu0 %v1166_v20 }
  0x4c   : > { %2111 = vmatpush3.bf16.msra.mxu1 %v2346_v16 }
  0x4d   : > { %2191 = vmatpush3.bf16.msra.mxu0 %v2347_v18  ;;  %2112 = vmatprep.subr.bf16.mxu1 %v2348_v22 }
  0x4e   : > { %2192 = vmatprep.subr.bf16.mxu0 %v2349_v23 }
  0x50   : > { %2113 = vmatpush3.bf16.msra.mxu1 %v2348_v22  ;;  %v1959_v22 = vld [vmem:[%s2790_s2] ss:$0 sm:$0xff] }
  0x51   : > { %2193 = vmatpush3.bf16.msra.mxu0 %v2349_v23  ;;  %2114 = vmatprep.subr.bf16.mxu1 %v2350_v27  ;;  %v1555_v23 = vld [vmem:[%s340_s6 + $0x8] sm:$0xf] }
  0x52   : > { %2194 = vmatprep.subr.bf16.mxu0 %v2351_v28 }
  0x54   : > { %2115 = vmatpush3.bf16.msra.mxu1 %v2350_v27  ;;  %v1960_v27 = vld [vmem:[%s2791_s3] ss:$0 sm:$0xff] }
  0x55   : > { %2195 = vmatpush3.bf16.msra.mxu0 %v2351_v28  ;;  %2116 = vmatprep.subr.bf16.mxu1 %v2352_v14 }
  0x56   : > { %2196 = vmatprep.subr.bf16.mxu0 %v2353_v30 }
  0x58   : > { %2117 = vmatpush3.bf16.msra.mxu1 %v2352_v14  ;;  %v1558_v14 = vunpack.c.l.bf16 %v1555_v23 }
  0x59   : > { %2197 = vmatpush3.bf16.msra.mxu0 %v2353_v30  ;;  %2118 = vmatprep.subr.bf16.mxu1 %v2354_v31 }
  0x5a   : > { %2198 = vmatprep.subr.bf16.mxu0 %v2355_v33 }
  0x5c   : > { %2119 = vmatpush3.bf16.msra.mxu1 %v2354_v31 }
  0x5d   : > { %2199 = vmatpush3.bf16.msra.mxu0 %v2355_v33  ;;  %2120 = vmatprep.subr.bf16.mxu1 %v2356_v35 }
  0x5e   : > { %2200 = vmatprep.subr.bf16.mxu0 %v2357_v36 }
  0x60   : > { %2121 = vmatpush3.bf16.msra.mxu1 %v2356_v35 }
  0x61   : > { %2201 = vmatpush3.bf16.msra.mxu0 %v2357_v36  ;;  %2122 = vmatprep.subr.bf16.mxu1 %v2358_v41 }
  0x62   : > { %2202 = vmatprep.subr.bf16.mxu0 %v2359_v42 }
  0x64   : > { %2123 = vmatpush3.bf16.msra.mxu1 %v2358_v41 }
  0x65   : > { %2203 = vmatpush3.bf16.msra.mxu0 %v2359_v42  ;;  %2128 = vmatprep.subr.bf16.mxu1 %v2361_v47 }
  0x66   : > { %2208 = vmatprep.subr.bf16.mxu0 %v2365_v48 }
  0x67   : > { %2125 = vmatmul.mubr.bf16.vlgmr.msra.gmra.mrb[0].mxu1 %v639_v11  ;;  %v2386_v11 = vld [vmem:[%s2789_s1 + $0x228] sm:$0xff]  }
  0x68   : > { %2129 = vmatpush3.bf16.msra.mxu1 %v2361_v47  ;;  %2205 = vmatmul.mubr.bf16.vlgmr.msra.gmra.mrb[0].mxu0 %v2620_v15 }
  0x69   : > { %2209 = vmatpush3.bf16.msra.mxu0 %v2365_v48  ;;  %2130 = vmatprep.subr.bf16.mxu1 %v2366_v51 }
  0x6a   : > { %2210 = vmatprep.subr.bf16.mxu0 %v2367_v52  ;;  %2144 = vmatprep.mubr.bf16.mxu1 %v770_v21 }
  0x6b   : > { %2224 = vmatprep.mubr.bf16.mxu0 %v1306_v53 }
  0x6c   : > { %2131 = vmatpush3.bf16.msra.mxu1 %v2366_v51 }
  0x6d   : > { %2211 = vmatpush3.bf16.msra.mxu0 %v2367_v52  ;;  %2132 = vmatprep.subr.bf16.mxu1 %v2368_v54 }
  0x6e   : > { %2212 = vmatprep.subr.bf16.mxu0 %v2369_v55 }
  0x70   : > { %2133 = vmatpush3.bf16.msra.mxu1 %v2368_v54 }
  0x71   : > { %2213 = vmatpush3.bf16.msra.mxu0 %v2369_v55  ;;  %2134 = vmatprep.subr.bf16.mxu1 %v2370_v17 }
  0x72   : > { %2214 = vmatprep.subr.bf16.mxu0 %v2371_v56 }
  0x74   : > { %2135 = vmatpush3.bf16.msra.mxu1 %v2370_v17 }
  0x75   : > { %2215 = vmatpush3.bf16.msra.mxu0 %v2371_v56  ;;  %2136 = vmatprep.subr.bf16.mxu1 %v2372_v57 }
  0x76   : > { %2216 = vmatprep.subr.bf16.mxu0 %v2373_v58 }
  0x78   : > { %2137 = vmatpush3.bf16.msra.mxu1 %v2372_v57 }
  0x79   : > { %2217 = vmatpush3.bf16.msra.mxu0 %v2373_v58  ;;  %2138 = vmatprep.subr.bf16.mxu1 %v2374_v59 }
  0x7a   : > { %2218 = vmatprep.subr.bf16.mxu0 %v2375_v60 }
  0x7c   : > { %2139 = vmatpush3.bf16.msra.mxu1 %v2374_v59 }
  0x7d   : > { %2219 = vmatpush3.bf16.msra.mxu0 %v2375_v60  ;;  %2140 = vmatprep.subr.bf16.mxu1 %v2376_v61 }
  0x7e   : > { %2220 = vmatprep.subr.bf16.mxu0 %v2377_v62 }
  0x80   : > { %2141 = vmatpush3.bf16.msra.mxu1 %v2376_v61 }
  0x81   : > { %2221 = vmatpush3.bf16.msra.mxu0 %v2377_v62  ;;  %2142 = vmatprep.subr.bf16.mxu1 %v2378_v1 }
  0x82   : > { %2222 = vmatprep.subr.bf16.mxu0 %v2379_v2 }
  0x84   : > { %2143 = vmatpush3.bf16.msra.mxu1 %v2378_v1 }
  0x85   : > { %2223 = vmatpush3.bf16.msra.mxu0 %v2379_v2 }
  0x86   : > { %2228 = vmatprep.subr.bf16.mxu0 %v2381_v4 }
  0x87   : > { %2145 = vmatmul.mubr.bf16.vlgmr.msra.gmra.mrb[0].mxu1 %v2646_v29 }
  0x88   : > { %2225 = vmatmul.mubr.bf16.vlgmr.msra.gmra.mrb[0].mxu0 %v2688_v50 }
  0x89   : > { %2229 = vmatpush3.bf16.msra.mxu0 %v2381_v4  ;;  %2244 = vmatprep.mubr.bf16.mxu0 %v1431_v0 }
  0x8a   : > { %2230 = vmatprep.subr.bf16.mxu0 %v2382_v7 }
  0x8d   : > { %2231 = vmatpush3.bf16.msra.mxu0 %v2382_v7 }
  0x8e   : > { %2232 = vmatprep.subr.bf16.mxu0 %v2383_v8 }
  0x91   : > { %2233 = vmatpush3.bf16.msra.mxu0 %v2383_v8 }
  0x92   : > { %2234 = vmatprep.subr.bf16.mxu0 %v2384_v9 }
  0x95   : > { %2235 = vmatpush3.bf16.msra.mxu0 %v2384_v9 }
  0x96   : > { %2236 = vmatprep.subr.bf16.mxu0 %v2385_v10 }
  0x99   : > { %2237 = vmatpush3.bf16.msra.mxu0 %v2385_v10 }
  0x9a   : > { %2238 = vmatprep.subr.bf16.mxu0 %v2386_v11 }
  0x9d   : > { %2239 = vmatpush3.bf16.msra.mxu0 %v2386_v11 }
  0x9e   : > { %2240 = vmatprep.subr.bf16.mxu0 %v2387_v12 }
  0xa1   : > { %2241 = vmatpush3.bf16.msra.mxu0 %v2387_v12 }
  0xa2   : > { %2242 = vmatprep.subr.bf16.mxu0 %v2388_v13 }
  0xa5   : > { %2243 = vmatpush3.bf16.msra.mxu0 %v2388_v13 }
  0xa8   : > { %2245 = vmatmul.mubr.bf16.vlgmr.msra.gmra.mrb[0].mxu0 %v1430_v6 }
 0x15a   : > { %v2146_v15 = vpop.f32.mrb[0].mxu1 }
 0x15b   : > { %v855_v16 = vpop.f32.mrb[1].mxu1 }
 0x15c   : > { %v2147_v18 = vpop.f32.mrb[2].mxu1 }
 0x15d   : > { %v858_v19 = vpop.f32.mrb[3].mxu1 }
 0x17b   : > { %v2246_v20 = vpop.f32.mrb[0].mxu0 }
 0x17c   : > { %v2248_v24 = vadd.f32 %v2246_v20, %v2146_v15  ;;  %v1516_v25 = vpop.f32.mrb[1].mxu0 }
 0x17d   : > { %v2249_v28 = vadd.f32 %v1516_v25, %v855_v16  ;;  %v2247_v29 = vpop.f32.mrb[2].mxu0 }
 0x17e   : > { %v1542_v21 = vmul.f32 %v2248_v24, %v1959_v22  ;;  %v1519_v30 = vpop.f32.mrb[3].mxu0 }
 0x17f   : > { %v1540_v31 = vmul.f32 %v2249_v28, %v1959_v22  ;;  %v2250_v33 = vadd.f32 %v1519_v30, %v858_v19 }
 0x180   : > { %v1552_v34 = vadd.f32 %v1960_v27, %v1542_v21 }
 0x181   : > { %v1550_v35 = vadd.f32 %v1960_v27, %v1540_v31  ;;  %v1541_v36 = vmul.f32 %v2250_v33, %v1959_v22 }
 0x182   : > { %v1561_v38 = vadd.f32 %v1558_v14, %v1552_v34 }
 0x183   : > { %v1559_v39 = vadd.f32 %v1971_v32, %v1550_v35  ;;  %v1551_v40 = vadd.f32 %v1960_v27, %v1541_v36 }
 0x184   : > { %v1564_v41 = vmax.f32 %v1561_v38, 0.0 }
 0x185   : > { %v1560_v42 = vadd.f32 %v1972_v37, %v1551_v40  ;;  %v1562_v44 = vmax.f32 %v1559_v39, 0.0 }
 0x186   : > { %v1968_v43 = vpack.c.bf16 %v1564_v41, %v1564_v41 }
 0x187   : > { %v1563_v45 = vmax.f32 %v1560_v42, 0.0 }
 0x188   : > { %1580 = vst [vmem:[%s353_s11 + $0x8] sm:$0xf] %v1968_v43 }
 0x189   : > { %v1976_v46 = vpack.c.bf16 %v1563_v45, %v1562_v44 }
 0x18b   : > { %1977 = vst [vmem:[%s353_s11] sm:$0xff] %v1976_v46  }
 0x18c PF: > { %s15_s20 = sadd.s32 1, %s2412_s20   ;;  %s2794_s18 = smov %s2408_s19 }
 0x18d   : > { %p12_p5 = scmp.ge.s32.totalorder %s15_s20, 4   ;;  %s2795_s19 = smov %s2797_s21 }
 0x18f   :  { %14 = sbr.rel (!%p12_p5) target bundleno = 2 (0x2), region = 90 }

// kernel: resnet_encoder_forward.23
= control target key start
LH: loop header
LB: loop body
LE: loop exit
PB: predicated region body
PF: predicated region fallthrough
CT: control target
= control target key end

     0   :  { %s2330_s15 = smov 0   ;;  %s2332_s16 = smov 0   ;;  %s2671_s0 = inlined_call_operand.vmem [shape: bf16[2,1,40,128], index: 0, kind: input, shape index: {}]   ;;  %s2672_s1 = inlined_call_operand.vmem [shape: bf16[9,128,128], index: 1, kind: input, shape index: {}]   ;;  %s2673_s2 = inlined_call_operand.vmem [shape: f32[1,128], index: 2, kind: input, shape index: {}]   ;;  %s2674_s3 = inlined_call_operand.vmem [shape: f32[1,128], index: 3, kind: input, shape index: {}]   ;;  %s2675_s4 = inlined_call_operand.vmem [shape: bf16[2,24,128], index: 4, kind: output, shape index: {}]  }
   0x1   :  { %s2334_s17 = smov 0  }
   0x2 LB: > { %s33_s18 = sadd.s32 1, %s2299_s16  ;;  %p1638_p0 = scmp.ge.s32.totalorder %s2303_s17, 1  ;;  %s2303_s17 = sphi %s2334_s17, %s14_s17   ;;  %s2299_s16 = sphi %s2332_s16, %s2677_s16   ;;  %s2295_s15 = sphi %s2330_s15, %s2676_s15  }
   0x3   : > { %p35_p1 = scmp.ge.s32.totalorder %s33_s18, 2  ;;  %p210_p2 = scmp.lt.s32.totalorder %s2303_s17, 3 }
   0x5   : > { %s2679_s18 = smov (%p35_p1, %s33_s18), 0  ;;  %p211_p3 = pnand %p1638_p0, %p210_p2 }
   0x6   : > { %v2196_v0 = vld [vmem:[%s2672_s1 + $0x40] sm:$0xff] (!%p211_p3)   ;;  %p253_p4 = scmp.lt.s32.totalorder (!%p211_p3), %s2295_s15, 1  ;;  %v2198_v2 = vld [vmem:[%s2672_s1 + $0x48] sm:$0xff] (!%p211_p3)   ;;  %v2200_v4 = vld [vmem:[%s2672_s1 + $0x50] sm:$0xff] (!%p211_p3)   ;;  %vm329_vm0 = vsmask.f32 (!%p211_p3), 7424 }
   0x7   : > { %214 = sbr.rel (%p211_p3) target bundleno = 394 (0x18a), region = 36  ;;  %v2197_v1 = vld [vmem:[%s2672_s1 + $0x100] sm:$0xff] (!%p211_p3)   ;;  %1959 = vmatprep.subr.bf16.mxu1 (!%p211_p3), %v2196_v0  ;;  %v2199_v3 = vld [vmem:[%s2672_s1 + $0x108] sm:$0xff] (!%p211_p3)   ;;  %v2201_v5 = vld [vmem:[%s2672_s1 + $0x110] sm:$0xff] (!%p211_p3)   ;;  %vm819_vm1 = vsmask.f32 (!%p211_p3), 4352 }
   0x8   : > { %2039 = vmatprep.subr.bf16.mxu0 (!%p211_p3), %v2197_v1  ;;  %1960 = vmatpush3.bf16.msra.mxu1 (!%p211_p3), %v2196_v0  ;;  %v2202_v6 = vld [vmem:[%s2672_s1 + $0x58] sm:$0xff] (!%p211_p3)   ;;  %v2204_v8 = vld [vmem:[%s2672_s1 + $0x60] sm:$0xff] (!%p211_p3)   ;;  %v2206_v10 = vld [vmem:[%s2672_s1 + $0x68] sm:$0xff] (!%p211_p3)   ;;  %vm563_vm2 = vcmask (!%p211_p3), 1046528   ;;  %vm1089_vm3 = vcmask (!%p211_p3), 1045504   ;;  %vm693_vm4 = vcmask (!%p211_p3), 1044480  }
   0x9   : > { %2040 = vmatpush3.bf16.msra.mxu0 (!%p211_p3), %v2197_v1  ;;  %1961 = vmatprep.subr.bf16.mxu1 (!%p211_p3), %v2198_v2  ;;  %v2203_v7 = vld [vmem:[%s2672_s1 + $0x118] sm:$0xff] (!%p211_p3)   ;;  %v2205_v9 = vld [vmem:[%s2672_s1 + $0x120] sm:$0xff] (!%p211_p3)   ;;  %v2207_v11 = vld [vmem:[%s2672_s1 + $0x128] sm:$0xff] (!%p211_p3)   ;;  %vm1215_vm5 = vsmask.f32 (!%p211_p3), 5376 }
   0xa   : > { %2041 = vmatprep.subr.bf16.mxu0 (!%p211_p3), %v2199_v3  ;;  %v2208_v23 = vld [vmem:[%s2672_s1 + $0x70] sm:$0xff] (!%p211_p3)   ;;  %v2210_v30 = vld [vmem:[%s2672_s1 + $0x78] sm:$0xff] (!%p211_p3)   ;;  %v2214_v44 = vld [vmem:[%s2672_s1] sm:$0xff] (!%p211_p3)  }
   0xb   : > { %v2209_v26 = vld [vmem:[%s2672_s1 + $0x130] sm:$0xff] (!%p211_p3)   ;;  %v2211_v34 = vld [vmem:[%s2672_s1 + $0x138] sm:$0xff] (!%p211_p3)   ;;  %v2217_v46 = vld [vmem:[%s2672_s1 + $0x140] sm:$0xff] (!%p211_p3)  }
   0xc   : > { %1962 = vmatpush3.bf16.msra.mxu1 (!%p211_p3), %v2198_v2  ;;  %v2218_v48 = vld [vmem:[%s2672_s1 + $0x8] sm:$0xff] (!%p211_p3)   ;;  %v2220_v51 = vld [vmem:[%s2672_s1 + $0x10] sm:$0xff] (!%p211_p3)   ;;  %v2222_v53 = vld [vmem:[%s2672_s1 + $0x18] sm:$0xff] (!%p211_p3)  }
   0xd   : > { %2042 = vmatpush3.bf16.msra.mxu0 (!%p211_p3), %v2199_v3  ;;  %1963 = vmatprep.subr.bf16.mxu1 (!%p211_p3), %v2200_v4  ;;  %v2219_v49 = vld [vmem:[%s2672_s1 + $0x148] sm:$0xff] (!%p211_p3)   ;;  %v2221_v52 = vld [vmem:[%s2672_s1 + $0x150] sm:$0xff] (!%p211_p3)   ;;  %v2223_v54 = vld [vmem:[%s2672_s1 + $0x158] sm:$0xff] (!%p211_p3)  }
   0xe   : > { %s2681_s15 = smov (!%p253_p4, %s2295_s15), 1  ;;  %2043 = vmatprep.subr.bf16.mxu0 %v2201_v5  ;;  %v2224_v55 = vld [vmem:[%s2672_s1 + $0x20] sm:$0xff]   ;;  %v2226_v57 = vld [vmem:[%s2672_s1 + $0x28] sm:$0xff]   ;;  %v2228_v59 = vld [vmem:[%s2672_s1 + $0x30] sm:$0xff]  }
   0xf   : > { %s2170_s9 = smul.u32 20, %s2681_s15  ;;  %v2225_v56 = vld [vmem:[%s2672_s1 + $0x160] sm:$0xff]   ;;  %v2227_v58 = vld [vmem:[%s2672_s1 + $0x168] sm:$0xff]   ;;  %v2229_v60 = vld [vmem:[%s2672_s1 + $0x170] sm:$0xff]  }
  0x10   : > { %1964 = vmatpush3.bf16.msra.mxu1 %v2200_v4  ;;  %v2230_v61 = vld [vmem:[%s2672_s1 + $0x38] sm:$0xff]   ;;  %s2171_s22 = smul.u32 12, %s2681_s15 }
  0x11   : > { %2044 = vmatpush3.bf16.msra.mxu0 %v2201_v5  ;;  %1965 = vmatprep.subr.bf16.mxu1 %v2202_v6  ;;  %s2384_s20 = scalar_lea.vmem %s2671_s0, %s2170_s9  ;;  %v2231_v3 = vld [vmem:[%s2672_s1 + $0x178] sm:$0xff]  }
  0x12   : > { %2045 = vmatprep.subr.bf16.mxu0 %v2203_v7  ;;  %v282_v12 = vld [vmem:[%s2384_s20] sm:$0xf]  ;;  %v2394_v13 = vld [vmem:[%s2384_s20 + $0x4] sm:$0xf]  ;;  %v2397_v14 = vld [vmem:[%s2384_s20 + $0x8] sm:$0xf] }
  0x13   : > { %v301_v15 = vld [vmem:[%s2384_s20 + $0xc] sm:$0x1]  ;;  %v1657_v16 = vcombine.low %v282_v12, %v2394_v13  ;;  %v668_v18 = vld [vmem:[%s2384_s20] sm:$0x8]  ;;  %v1768_v50 = vcombine.low %v2394_v13, %v2397_v14  ;;  %v1058_v63 = vld [vmem:[%s2384_s20 + $0x4] sm:$0xc] }
  0x14   : > { %1966 = vmatpush3.bf16.msra.mxu1 %v2202_v6  ;;  %v2402_v17 = vcombine.low %v2397_v14, %v301_v15  ;;  %v2406_v21 = vcombine.low %v668_v18, %v2394_v13  ;;  %v2409_v22 = vld [vmem:[%s2384_s20 + $0xc] sm:$0xf]  ;;  %v542_v62 = vld [vmem:[%s2384_s20] sm:$0xe]  ;;  %v2480_v0 = vld [vmem:[%s2384_s20 + $0x8] sm:$0xf] }
  0x15   : > { %2046 = vmatpush3.bf16.msra.mxu0 %v2203_v7  ;;  %1967 = vmatprep.subr.bf16.mxu1 %v2204_v8  ;;  %v331_v19 = vshrl.u32 %v1657_v16, 16  ;;  %v333_v20 = vshll.u32 %v1657_v16, 16  ;;  %v1743_v25 = vcombine.low %v2397_v14, %v2409_v22  ;;  %v2483_v1 = vld [vmem:[%s2384_s20 + $0xc] sm:$0xf]  ;;  %v1061_v2 = vld [vmem:[%s2384_s20 + $0x10] sm:$0x3]  ;;  %v1692_v4 = vcombine.low %v542_v62, %v2394_v13 }
  0x16   : > { %2047 = vmatprep.subr.bf16.mxu0 %v2205_v9  ;;  %v338_v24 = vshll.u32 %v2402_v17, 16  ;;  %v821_v28 = vshrl.u32 %v2406_v21, 16  ;;  %v824_v29 = vshll.u32 %v2406_v21, 16  ;;  %v342_v43 = vshrl.u32 %v2402_v17, 16  ;;  %v2232_v7 = vld [vmem:[%s2672_s1 + $0x80] sm:$0xff]   ;;  %v2238_v18 = vld [vmem:[%s2672_s1 + $0x188] sm:$0xff]  }
  0x17   : > { %v335_v27 = vrot.slane %v333_v20, 1  ;;  %v829_v32 = vshrl.u32 %v1743_v25, 16  ;;  %v832_v33 = vshll.u32 %v1743_v25, 16  ;;  %v2491_v5 = vcombine.low %v1058_v63, %v2480_v0  ;;  %v2268_v62 = vld [vmem:[%s2672_s1 + $0x1f0] sm:$0xff]   ;;  %v1334_v63 = vld [vmem:[%s2384_s20 + $0x4] sm:$0x8] }
  0x18   : > { %1968 = vmatpush3.bf16.msra.mxu1 %v2204_v8  ;;  %v340_v31 = vrot.slane %v338_v24, 1  ;;  %v823_v36 = vrot.slane %v821_v28, 3  ;;  %v826_v37 = vrot.slane %v824_v29, 4  ;;  %v1795_v6 = vcombine.low %v2483_v1, %v1061_v2  ;;  %v2234_v8 = vld [vmem:[%s2672_s1 + $0x180] sm:$0xff]   ;;  %v669_v24 = vld [vmem:[%s2384_s20 + $0xc] sm:$0x7] }
  0x19   : > { %2048 = vmatpush3.bf16.msra.mxu0 %v2205_v9  ;;  %1969 = vmatprep.subr.bf16.mxu1 %v2206_v10  ;;  %v336_v35 = vor.u32 %v335_v27, %v331_v19  ;;  %v831_v38 = vrot.slane %v829_v32, 3  ;;  %v834_v39 = vrot.slane %v832_v33, 4  ;;  %v1667_v9 = vcombine.low %v2397_v14, %v2397_v14  ;;  %v2241_v27 = vld [vmem:[%s2672_s1 + $0x98] sm:$0xff]   ;;  %v1194_v32 = vld [vmem:[%s2384_s20 + $0x10] sm:$0x7]  ;;  %v2246_v33 = vld [vmem:[%s2672_s1 + $0x1a8] sm:$0xff]   ;;  %s279_s20 = scalar_lea.vmem %s2675_s4, %s2171_s22 }
  0x1a   : > { %2049 = vmatprep.subr.bf16.mxu0 %v2207_v11  ;;  %v827_v41 = vor.u32 %v826_v37, %v823_v36  ;;  %v344_v47 = vor.u32 %v342_v43, %v340_v31  ;;  %v1769_v12 = vcombine.low %v2409_v22, %v2409_v22  ;;  %v1090_v13 = vrot.slane %v2491_v5, 2  ;;  %v2239_v22 = vld [vmem:[%s2672_s1 + $0x90] sm:$0xff]   ;;  %v2242_v28 = vld [vmem:[%s2672_s1 + $0x198] sm:$0xff]  }
  0x1b   : > { %v341_v40 = vsel %vm329_vm0, %v336_v35, %v340_v31  ;;  %v835_v42 = vor.u32 %v834_v39, %v831_v38  ;;  %v2506_v15 = vrot.slane %v1795_v6, 2  ;;  %v694_v25 = vrot.slane %v2406_v21, 3  ;;  %v2245_v31 = vld [vmem:[%s2672_s1 + $0xa8] sm:$0xff]   ;;  %v2247_v35 = vld [vmem:[%s2672_s1 + $0xb0] sm:$0xff]   ;;  %v2270_v2 = vld [vmem:[%s2672_s1 + $0x1f8] sm:$0xff]  }
  0x1c   : > { %1970 = vmatpush3.bf16.msra.mxu1 %v2206_v10  ;;  %1975 = vmatprep.mubr.bf16.mxu1 %v341_v40  ;;  %v564_v10 = vrot.slane %v1692_v4, 1  ;;  %v2248_v36 = vld [vmem:[%s2672_s1 + $0x1b0] sm:$0xff]   ;;  %v1217_v37 = vshrl.u32 %v2491_v5, 16  ;;  %v1220_v38 = vshll.u32 %v2491_v5, 16  ;;  %v2272_v4 = vld [vmem:[%s2672_s1 + $0x200] sm:$0xff]  }
  0x1d   : > { %2050 = vmatpush3.bf16.msra.mxu0 %v2207_v11  ;;  %1971 = vmatprep.subr.bf16.mxu1 %v2208_v23  ;;  %v836_v45 = vsel %vm819_vm1, %v827_v41, %v835_v42  ;;  %v565_v11 = vrot.slane %v2402_v17, 1  ;;  %v1092_v20 = vsel %vm1089_vm3, %v1090_v13, %v2506_v15  ;;  %v2249_v41 = vld [vmem:[%s2672_s1 + $0xb8] sm:$0xff]  }
  0x1e   : > { %2051 = vmatprep.subr.bf16.mxu0 %v2209_v26  ;;  %2055 = vmatprep.mubr.bf16.mxu0 %v836_v45  ;;  %v1219_v43 = vrot.slane %v1217_v37, 2  ;;  %v2261_v17 = vld [vmem:[%s2672_s1 + $0xd8] sm:$0xff]  }
  0x1f   : > { %v566_v19 = vsel %vm563_vm2, %v564_v10, %v565_v11  ;;  %v2276_v10 = vld [vmem:[%s2672_s1 + $0x220] sm:$0xff]   ;;  %v2279_v13 = vld [vmem:[%s2672_s1 + $0x238] sm:$0xff]  }
  0x20   : > { %1972 = vmatpush3.bf16.msra.mxu1 %v2208_v23  ;;  %v2240_v23 = vld [vmem:[%s2672_s1 + $0x190] sm:$0xff]  }
  0x21   : > { %2052 = vmatpush3.bf16.msra.mxu0 %v2209_v26  ;;  %1973 = vmatprep.subr.bf16.mxu1 %v2210_v30  ;;  %v1718_v26 = vcombine.low %v2397_v14, %v669_v24  ;;  %v2243_v14 = vld [vmem:[%s2672_s1 + $0xa0] sm:$0xff]  }
  0x22   : > { %2053 = vmatprep.subr.bf16.mxu0 %v2211_v34 }
  0x23   : > { %v2532_v29 = vrot.slane %v1718_v26, 3 }
  0x24   : > { %1974 = vmatpush3.bf16.msra.mxu1 %v2210_v30  ;;  %v2244_v30 = vld [vmem:[%s2672_s1 + $0x1a0] sm:$0xff]  }
  0x25   : > { %2054 = vmatpush3.bf16.msra.mxu0 %v2211_v34  ;;  %1979 = vmatprep.subr.bf16.mxu1 %v2214_v44  ;;  %v696_v21 = vsel %vm693_vm4, %v694_v25, %v2532_v29  ;;  %v2550_v34 = vcombine.low %v2483_v1, %v1194_v32  ;;  %v2269_v1 = vld [vmem:[%s2672_s1 + $0xf8] sm:$0xff]   ;;  %v1855_v25 = vld [vmem:[%s2674_s3] ss:$0 sm:$0xff] }
  0x26   : > { %2059 = vmatprep.subr.bf16.mxu0 %v2217_v46 }
  0x27   : > { %1976 = vmatmul.mubr.bf16.vlgmr.msra.gmra.mrb[0].mxu1 %v344_v47  ;;  %v1225_v39 = vshrl.u32 %v2550_v34, 16  ;;  %v1228_v40 = vshll.u32 %v2550_v34, 16  ;;  %v2252_v47 = vld [vmem:[%s2672_s1 + $0xc0] sm:$0xff]   ;;  %v1356_v6 = vrot.slane %v2550_v34, 3 }
  0x28   : > { %1980 = vmatpush3.bf16.msra.mxu1 %v2214_v44  ;;  %2056 = vmatmul.mubr.bf16.vlgmr.msra.gmra.mrb[0].mxu0 %v835_v42  ;;  %v2250_v42 = vld [vmem:[%s2672_s1 + $0x1b8] sm:$0xff]   ;;  %v1222_v44 = vrot.slane %v1220_v38, 3 }
  0x29   : > { %2060 = vmatpush3.bf16.msra.mxu0 %v2217_v46  ;;  %1981 = vmatprep.subr.bf16.mxu1 %v2218_v48  ;;  %v1227_v45 = vrot.slane %v1225_v39, 2  ;;  %v1230_v46 = vrot.slane %v1228_v40, 3 }
  0x2a   : > { %2061 = vmatprep.subr.bf16.mxu0 %v2219_v49  ;;  %1995 = vmatprep.mubr.bf16.mxu1 %v1657_v16  ;;  %v2237_v16 = vld [vmem:[%s2672_s1 + $0x88] sm:$0xff]  }
  0x2b   : > { %2075 = vmatprep.mubr.bf16.mxu0 %v1768_v50  ;;  %v2574_v50 = vor.u32 %v1230_v46, %v1227_v45 }
  0x2c   : > { %1982 = vmatpush3.bf16.msra.mxu1 %v2218_v48  ;;  %v2256_v48 = vld [vmem:[%s2672_s1 + $0x1c0] sm:$0xff]  }
  0x2d   : > { %2062 = vmatpush3.bf16.msra.mxu0 %v2219_v49  ;;  %1983 = vmatprep.subr.bf16.mxu1 %v2220_v51  ;;  %v1223_v49 = vor.u32 %v1222_v44, %v1219_v43 }
  0x2e   : > { %2063 = vmatprep.subr.bf16.mxu0 %v2221_v52 }
  0x30   : > { %1984 = vmatpush3.bf16.msra.mxu1 %v2220_v51  ;;  %v2257_v51 = vld [vmem:[%s2672_s1 + $0xc8] sm:$0xff]  }
  0x31   : > { %2064 = vmatpush3.bf16.msra.mxu0 %v2221_v52  ;;  %1985 = vmatprep.subr.bf16.mxu1 %v2222_v53  ;;  %v2258_v52 = vld [vmem:[%s2672_s1 + $0x1c8] sm:$0xff]  }
  0x32   : > { %2065 = vmatprep.subr.bf16.mxu0 %v2223_v54 }
  0x34   : > { %1986 = vmatpush3.bf16.msra.mxu1 %v2222_v53  ;;  %v1232_v53 = vsel %vm1215_vm5, %v1223_v49, %v2574_v50 }
  0x35   : > { %2066 = vmatpush3.bf16.msra.mxu0 %v2223_v54  ;;  %1987 = vmatprep.subr.bf16.mxu1 %v2224_v55  ;;  %v2259_v54 = vld [vmem:[%s2672_s1 + $0xd0] sm:$0xff]  }
  0x36   : > { %2067 = vmatprep.subr.bf16.mxu0 %v2225_v56 }
  0x38   : > { %1988 = vmatpush3.bf16.msra.mxu1 %v2224_v55  ;;  %v2260_v55 = vld [vmem:[%s2672_s1 + $0x1d0] sm:$0xff]  }
  0x39   : > { %2068 = vmatpush3.bf16.msra.mxu0 %v2225_v56  ;;  %1989 = vmatprep.subr.bf16.mxu1 %v2226_v57  ;;  %v2262_v56 = vld [vmem:[%s2672_s1 + $0x1d8] sm:$0xff]  }
  0x3a   : > { %2069 = vmatprep.subr.bf16.mxu0 %v2227_v58 }
  0x3c   : > { %1990 = vmatpush3.bf16.msra.mxu1 %v2226_v57  ;;  %v2263_v57 = vld [vmem:[%s2672_s1 + $0xe0] sm:$0xff]  }
  0x3d   : > { %2070 = vmatpush3.bf16.msra.mxu0 %v2227_v58  ;;  %1991 = vmatprep.subr.bf16.mxu1 %v2228_v59  ;;  %v2264_v58 = vld [vmem:[%s2672_s1 + $0x1e0] sm:$0xff]  }
  0x3e   : > { %2071 = vmatprep.subr.bf16.mxu0 %v2229_v60 }
  0x40   : > { %1992 = vmatpush3.bf16.msra.mxu1 %v2228_v59  ;;  %v2265_v59 = vld [vmem:[%s2672_s1 + $0xe8] sm:$0xff]  }
  0x41   : > { %2072 = vmatpush3.bf16.msra.mxu0 %v2229_v60  ;;  %1993 = vmatprep.subr.bf16.mxu1 %v2230_v61  ;;  %v2266_v60 = vld [vmem:[%s2672_s1 + $0x1e8] sm:$0xff]  }
  0x42   : > { %2073 = vmatprep.subr.bf16.mxu0 %v2231_v3 }
  0x44   : > { %1994 = vmatpush3.bf16.msra.mxu1 %v2230_v61  ;;  %v2267_v61 = vld [vmem:[%s2672_s1 + $0xf0] sm:$0xff]  }
  0x45   : > { %2074 = vmatpush3.bf16.msra.mxu0 %v2231_v3  ;;  %1999 = vmatprep.subr.bf16.mxu1 %v2232_v7  ;;  %v1845_v3 = vcombine.low %v1334_v63, %v2480_v0 }
  0x46   : > { %2079 = vmatprep.subr.bf16.mxu0 %v2234_v8 }
  0x47   : > { %1996 = vmatmul.mubr.bf16.vlgmr.msra.gmra.mrb[0].mxu1 %v1667_v9  ;;  %v1355_v5 = vrot.slane %v1845_v3, 3  ;;  %v2275_v9 = vld [vmem:[%s2672_s1 + $0x218] sm:$0xff]  }
  0x48   : > { %2000 = vmatpush3.bf16.msra.mxu1 %v2232_v7  ;;  %2076 = vmatmul.mubr.bf16.vlgmr.msra.gmra.mrb[0].mxu0 %v1769_v12  ;;  %v2273_v7 = vld [vmem:[%s2672_s1 + $0x208] sm:$0xff]   ;;  %v2278_v12 = vld [vmem:[%s2672_s1 + $0x230] sm:$0xff]  }
  0x49   : > { %2080 = vmatpush3.bf16.msra.mxu0 %v2234_v8  ;;  %2001 = vmatprep.subr.bf16.mxu1 %v2237_v16  ;;  %v1357_v0 = vsel %vm693_vm4, %v1355_v5, %v1356_v6  ;;  %v2274_v8 = vld [vmem:[%s2672_s1 + $0x210] sm:$0xff]  }
  0x4a   : > { %2081 = vmatprep.subr.bf16.mxu0 %v2238_v18  ;;  %2015 = vmatprep.mubr.bf16.mxu1 %v566_v19 }
  0x4b   : > { %2095 = vmatprep.mubr.bf16.mxu0 %v1092_v20 }
  0x4c   : > { %2002 = vmatpush3.bf16.msra.mxu1 %v2237_v16 }
  0x4d   : > { %2082 = vmatpush3.bf16.msra.mxu0 %v2238_v18  ;;  %2003 = vmatprep.subr.bf16.mxu1 %v2239_v22 }
  0x4e   : > { %2083 = vmatprep.subr.bf16.mxu0 %v2240_v23 }
  0x50   : > { %2004 = vmatpush3.bf16.msra.mxu1 %v2239_v22  ;;  %v1854_v22 = vld [vmem:[%s2673_s2] ss:$0 sm:$0xff] }
  0x51   : > { %2084 = vmatpush3.bf16.msra.mxu0 %v2240_v23  ;;  %2005 = vmatprep.subr.bf16.mxu1 %v2241_v27 }
  0x52   : > { %2085 = vmatprep.subr.bf16.mxu0 %v2242_v28 }
  0x54   : > { %2006 = vmatpush3.bf16.msra.mxu1 %v2241_v27 }
  0x55   : > { %2086 = vmatpush3.bf16.msra.mxu0 %v2242_v28  ;;  %2007 = vmatprep.subr.bf16.mxu1 %v2243_v14 }
  0x56   : > { %2087 = vmatprep.subr.bf16.mxu0 %v2244_v30 }
  0x58   : > { %2008 = vmatpush3.bf16.msra.mxu1 %v2243_v14 }
  0x59   : > { %2088 = vmatpush3.bf16.msra.mxu0 %v2244_v30  ;;  %2009 = vmatprep.subr.bf16.mxu1 %v2245_v31 }
  0x5a   : > { %2089 = vmatprep.subr.bf16.mxu0 %v2246_v33 }
  0x5c   : > { %2010 = vmatpush3.bf16.msra.mxu1 %v2245_v31 }
  0x5d   : > { %2090 = vmatpush3.bf16.msra.mxu0 %v2246_v33  ;;  %2011 = vmatprep.subr.bf16.mxu1 %v2247_v35 }
  0x5e   : > { %2091 = vmatprep.subr.bf16.mxu0 %v2248_v36 }
  0x60   : > { %2012 = vmatpush3.bf16.msra.mxu1 %v2247_v35 }
  0x61   : > { %2092 = vmatpush3.bf16.msra.mxu0 %v2248_v36  ;;  %2013 = vmatprep.subr.bf16.mxu1 %v2249_v41 }
  0x62   : > { %2093 = vmatprep.subr.bf16.mxu0 %v2250_v42 }
  0x64   : > { %2014 = vmatpush3.bf16.msra.mxu1 %v2249_v41 }
  0x65   : > { %2094 = vmatpush3.bf16.msra.mxu0 %v2250_v42  ;;  %2019 = vmatprep.subr.bf16.mxu1 %v2252_v47 }
  0x66   : > { %2099 = vmatprep.subr.bf16.mxu0 %v2256_v48 }
  0x67   : > { %2016 = vmatmul.mubr.bf16.vlgmr.msra.gmra.mrb[0].mxu1 %v565_v11  ;;  %v2277_v11 = vld [vmem:[%s2672_s1 + $0x228] sm:$0xff]  }
  0x68   : > { %2020 = vmatpush3.bf16.msra.mxu1 %v2252_v47  ;;  %2096 = vmatmul.mubr.bf16.vlgmr.msra.gmra.mrb[0].mxu0 %v2506_v15 }
  0x69   : > { %2100 = vmatpush3.bf16.msra.mxu0 %v2256_v48  ;;  %2021 = vmatprep.subr.bf16.mxu1 %v2257_v51 }
  0x6a   : > { %2101 = vmatprep.subr.bf16.mxu0 %v2258_v52  ;;  %2035 = vmatprep.mubr.bf16.mxu1 %v696_v21 }
  0x6b   : > { %2115 = vmatprep.mubr.bf16.mxu0 %v1232_v53 }
  0x6c   : > { %2022 = vmatpush3.bf16.msra.mxu1 %v2257_v51 }
  0x6d   : > { %2102 = vmatpush3.bf16.msra.mxu0 %v2258_v52  ;;  %2023 = vmatprep.subr.bf16.mxu1 %v2259_v54 }
  0x6e   : > { %2103 = vmatprep.subr.bf16.mxu0 %v2260_v55 }
  0x70   : > { %2024 = vmatpush3.bf16.msra.mxu1 %v2259_v54 }
  0x71   : > { %2104 = vmatpush3.bf16.msra.mxu0 %v2260_v55  ;;  %2025 = vmatprep.subr.bf16.mxu1 %v2261_v17 }
  0x72   : > { %2105 = vmatprep.subr.bf16.mxu0 %v2262_v56 }
  0x74   : > { %2026 = vmatpush3.bf16.msra.mxu1 %v2261_v17 }
  0x75   : > { %2106 = vmatpush3.bf16.msra.mxu0 %v2262_v56  ;;  %2027 = vmatprep.subr.bf16.mxu1 %v2263_v57 }
  0x76   : > { %2107 = vmatprep.subr.bf16.mxu0 %v2264_v58 }
  0x78   : > { %2028 = vmatpush3.bf16.msra.mxu1 %v2263_v57 }
  0x79   : > { %2108 = vmatpush3.bf16.msra.mxu0 %v2264_v58  ;;  %2029 = vmatprep.subr.bf16.mxu1 %v2265_v59 }
  0x7a   : > { %2109 = vmatprep.subr.bf16.mxu0 %v2266_v60 }
  0x7c   : > { %2030 = vmatpush3.bf16.msra.mxu1 %v2265_v59 }
  0x7d   : > { %2110 = vmatpush3.bf16.msra.mxu0 %v2266_v60  ;;  %2031 = vmatprep.subr.bf16.mxu1 %v2267_v61 }
  0x7e   : > { %2111 = vmatprep.subr.bf16.mxu0 %v2268_v62 }
  0x80   : > { %2032 = vmatpush3.bf16.msra.mxu1 %v2267_v61 }
  0x81   : > { %2112 = vmatpush3.bf16.msra.mxu0 %v2268_v62  ;;  %2033 = vmatprep.subr.bf16.mxu1 %v2269_v1 }
  0x82   : > { %2113 = vmatprep.subr.bf16.mxu0 %v2270_v2 }
  0x84   : > { %2034 = vmatpush3.bf16.msra.mxu1 %v2269_v1 }
  0x85   : > { %2114 = vmatpush3.bf16.msra.mxu0 %v2270_v2 }
  0x86   : > { %2119 = vmatprep.subr.bf16.mxu0 %v2272_v4 }
  0x87   : > { %2036 = vmatmul.mubr.bf16.vlgmr.msra.gmra.mrb[0].mxu1 %v2532_v29 }
  0x88   : > { %2116 = vmatmul.mubr.bf16.vlgmr.msra.gmra.mrb[0].mxu0 %v2574_v50 }
  0x89   : > { %2120 = vmatpush3.bf16.msra.mxu0 %v2272_v4  ;;  %2135 = vmatprep.mubr.bf16.mxu0 %v1357_v0 }
  0x8a   : > { %2121 = vmatprep.subr.bf16.mxu0 %v2273_v7 }
  0x8d   : > { %2122 = vmatpush3.bf16.msra.mxu0 %v2273_v7 }
  0x8e   : > { %2123 = vmatprep.subr.bf16.mxu0 %v2274_v8 }
  0x91   : > { %2124 = vmatpush3.bf16.msra.mxu0 %v2274_v8 }
  0x92   : > { %2125 = vmatprep.subr.bf16.mxu0 %v2275_v9 }
  0x95   : > { %2126 = vmatpush3.bf16.msra.mxu0 %v2275_v9 }
  0x96   : > { %2127 = vmatprep.subr.bf16.mxu0 %v2276_v10 }
  0x99   : > { %2128 = vmatpush3.bf16.msra.mxu0 %v2276_v10 }
  0x9a   : > { %2129 = vmatprep.subr.bf16.mxu0 %v2277_v11 }
  0x9d   : > { %2130 = vmatpush3.bf16.msra.mxu0 %v2277_v11 }
  0x9e   : > { %2131 = vmatprep.subr.bf16.mxu0 %v2278_v12 }
  0xa1   : > { %2132 = vmatpush3.bf16.msra.mxu0 %v2278_v12 }
  0xa2   : > { %2133 = vmatprep.subr.bf16.mxu0 %v2279_v13 }
  0xa5   : > { %2134 = vmatpush3.bf16.msra.mxu0 %v2279_v13 }
  0xa8   : > { %2136 = vmatmul.mubr.bf16.vlgmr.msra.gmra.mrb[0].mxu0 %v1356_v6 }
 0x15a   : > { %v2037_v15 = vpop.f32.mrb[0].mxu1 }
 0x15b   : > { %v781_v16 = vpop.f32.mrb[1].mxu1 }
 0x15c   : > { %v2038_v18 = vpop.f32.mrb[2].mxu1 }
 0x15d   : > { %v784_v19 = vpop.f32.mrb[3].mxu1 }
 0x17b   : > { %v2137_v20 = vpop.f32.mrb[0].mxu0 }
 0x17c   : > { %v2139_v23 = vadd.f32 %v2137_v20, %v2037_v15  ;;  %v1442_v24 = vpop.f32.mrb[1].mxu0 }
 0x17d   : > { %v2140_v26 = vadd.f32 %v1442_v24, %v781_v16  ;;  %v2138_v27 = vpop.f32.mrb[2].mxu0 }
 0x17e   : > { %v1468_v28 = vmul.f32 %v2139_v23, %v1854_v22  ;;  %v1445_v29 = vpop.f32.mrb[3].mxu0 }
 0x17f   : > { %v1466_v21 = vmul.f32 %v2140_v26, %v1854_v22  ;;  %v2141_v14 = vadd.f32 %v1445_v29, %v784_v19 }
 0x180   : > { %v1478_v30 = vadd.f32 %v1855_v25, %v1468_v28 }
 0x181   : > { %v1476_v31 = vadd.f32 %v1855_v25, %v1466_v21  ;;  %v1467_v32 = vmul.f32 %v2141_v14, %v1854_v22 }
 0x182   : > { %v1481_v33 = vmax.f32 %v1478_v30, 0.0 }
 0x183   : > { %v1477_v34 = vadd.f32 %v1855_v25, %v1467_v32  ;;  %v1479_v36 = vmax.f32 %v1476_v31, 0.0 }
 0x184   : > { %v1863_v35 = vpack.c.bf16 %v1481_v33, %v1481_v33 }
 0x185   : > { %v1480_v37 = vmax.f32 %v1477_v34, 0.0 }
 0x186   : > { %1497 = vst [vmem:[%s279_s20 + $0x8] sm:$0xf] %v1863_v35 }
 0x187   : > { %v1867_v38 = vpack.c.bf16 %v1480_v37, %v1479_v36 }
 0x189   : > { %1868 = vst [vmem:[%s279_s20] sm:$0xff] %v1867_v38  }
 0x18a PF: > { %s14_s17 = sadd.s32 1, %s2303_s17   ;;  %s2676_s15 = smov %s2299_s16 }
 0x18b   : > { %p11_p5 = scmp.ge.s32.totalorder %s14_s17, 4   ;;  %s2677_s16 = smov %s2679_s18 }
 0x18d   :  { %13 = sbr.rel (!%p11_p5) target bundleno = 2 (0x2), region = 83 }

// kernel: resnet_encoder_forward.28
= control target key start
LH: loop header
LB: loop body
LE: loop exit
PB: predicated region body
PF: predicated region fallthrough
CT: control target
= control target key end

     0   :  { %s657_s15 = smov 0   ;;  %s659_s16 = smov 0   ;;  %s724_s0 = inlined_call_operand.vmem [shape: bf16[2,1,8,128], index: 0, kind: input, shape index: {}]   ;;  %s725_s1 = inlined_call_operand.vmem [shape: bf16[1,128,128], index: 1, kind: input, shape index: {}]   ;;  %s726_s2 = inlined_call_operand.vmem [shape: f32[1,128], index: 2, kind: input, shape index: {}]   ;;  %s727_s3 = inlined_call_operand.vmem [shape: f32[1,128], index: 3, kind: input, shape index: {}]   ;;  %s728_s4 = inlined_call_operand.vmem [shape: bf16[2,8,128], index: 4, kind: output, shape index: {}]  }
   0x1   :  { %s661_s17 = smov 0  }
   0x2 LB: > { %s33_s18 = sadd.s32 1, %s624_s16  ;;  %p528_p0 = scmp.ge.s32.totalorder %s628_s17, 1  ;;  %s628_s17 = sphi %s661_s17, %s14_s17   ;;  %s624_s16 = sphi %s659_s16, %s730_s16   ;;  %s620_s15 = sphi %s657_s15, %s729_s15  }
   0x3   : > { %p35_p1 = scmp.ge.s32.totalorder %s33_s18, 2  ;;  %p209_p2 = scmp.lt.s32.totalorder %s628_s17, 3 }
   0x5   : > { %s732_s18 = smov (%p35_p1, %s33_s18), 0  ;;  %p210_p3 = pnand %p528_p0, %p209_p2 }
   0x6   : > { %v598_v0 = vld [vmem:[%s725_s1] sm:$0xff] (!%p210_p3)   ;;  %v630_v1 = vmov (!%p210_p3), 0.0   ;;  %v599_v2 = vld [vmem:[%s725_s1 + $0x8] sm:$0xff] (!%p210_p3)   ;;  %vm631_vm0 = vmmov (!%p210_p3), 0   ;;  %v600_v3 = vld [vmem:[%s725_s1 + $0x10] sm:$0xff] (!%p210_p3)   ;;  %p249_p4 = scmp.lt.s32.totalorder (!%p210_p3), %s620_s15, 1 }
   0x7   : > { %213 = sbr.rel (%p210_p3) target bundleno = 258 (0x102), region = 36  ;;  %552 = vmatprep.subr.bf16.mxu0 (!%p210_p3), %v630_v1  ;;  %568 = vmatprep.mubr.msk.bf16.mxu0 (!%p210_p3), %vm631_vm0, %v630_v1  ;;  %v601_v4 = vld [vmem:[%s725_s1 + $0x18] sm:$0xff] (!%p210_p3)   ;;  %v602_v5 = vld [vmem:[%s725_s1 + $0x20] sm:$0xff] (!%p210_p3)   ;;  %v603_v6 = vld [vmem:[%s725_s1 + $0x28] sm:$0xff] (!%p210_p3)  }
   0x8   : > { %553 = vmatpush3.bf16.msra.mxu0 (!%p210_p3), %v598_v0  ;;  %v604_v7 = vld [vmem:[%s725_s1 + $0x30] sm:$0xff] (!%p210_p3)   ;;  %v605_v8 = vld [vmem:[%s725_s1 + $0x38] sm:$0xff] (!%p210_p3)   ;;  %v539_v10 = vld [vmem:[%s726_s2] ss:$0 sm:$0xff] (!%p210_p3) }
   0x9   : > { %554 = vmatprep.subr.bf16.mxu0 (!%p210_p3), %v630_v1  ;;  %v540_v12 = vld [vmem:[%s727_s3] ss:$0 sm:$0xff] (!%p210_p3) }
   0xc   : > { %555 = vmatpush3.bf16.msra.mxu0 (!%p210_p3), %v599_v2 }
   0xd   : > { %556 = vmatprep.subr.bf16.mxu0 (!%p210_p3), %v630_v1 }
   0xe   : > { %s734_s15 = smov (!%p249_p4, %s620_s15), 1 }
   0xf   : > { %s529_s7 = sshll.u32 %s734_s15, 2 }
  0x10   : > { %557 = vmatpush3.bf16.msra.mxu0 %v600_v3  ;;  %s252_s12 = scalar_lea.vmem %s724_s0, %s529_s7  ;;  %s272_s22 = scalar_lea.vmem %s728_s4, %s529_s7 }
  0x11   : > { %558 = vmatprep.subr.bf16.mxu0 %v630_v1  ;;  %v274_v9 = vld [vmem:[%s252_s12] sm:$0xf] }
  0x14   : > { %559 = vmatpush3.bf16.msra.mxu0 %v601_v4 }
  0x15   : > { %560 = vmatprep.subr.bf16.mxu0 %v630_v1 }
  0x18   : > { %561 = vmatpush3.bf16.msra.mxu0 %v602_v5 }
  0x19   : > { %562 = vmatprep.subr.bf16.mxu0 %v630_v1 }
  0x1c   : > { %563 = vmatpush3.bf16.msra.mxu0 %v603_v6 }
  0x1d   : > { %564 = vmatprep.subr.bf16.mxu0 %v630_v1 }
  0x20   : > { %565 = vmatpush3.bf16.msra.mxu0 %v604_v7 }
  0x21   : > { %566 = vmatprep.subr.bf16.mxu0 %v630_v1 }
  0x24   : > { %567 = vmatpush3.bf16.msra.mxu0 %v605_v8 }
  0x27   : > { %569 = vmatmul.mubr.bf16.vlgmr.msra.gmra.mrb[0].mxu0 %v274_v9 }
  0xfa   : > { %v373_v11 = vpop.f32.mrb[0].mxu0 }
  0xfb   : > { %v386_v13 = vmul.f32 %v539_v10, %v373_v11  ;;  %v570_v14 = vpop.f32.mrb[1].mxu0 }
  0xfc   : > { %v376_v15 = vpop.f32.mrb[2].mxu0 }
  0xfd   : > { %v394_v16 = vadd.f32 %v540_v12, %v386_v13  ;;  %v571_v17 = vpop.f32.mrb[3].mxu0 }
  0xff   : > { %v395_v18 = vpack.c.bf16 %v394_v16, %v394_v16 }
 0x101   : > { %396 = vst [vmem:[%s272_s22] sm:$0xf] %v395_v18 }
 0x102 PF: > { %s14_s17 = sadd.s32 1, %s628_s17   ;;  %s729_s15 = smov %s624_s16 }
 0x103   : > { %p11_p5 = scmp.ge.s32.totalorder %s14_s17, 4   ;;  %s730_s16 = smov %s732_s18 }
 0x105   :  { %13 = sbr.rel (!%p11_p5) target bundleno = 2 (0x2), region = 75 }

// kernel: resnet_encoder_forward.27
= control target key start
LH: loop header
LB: loop body
LE: loop exit
PB: predicated region body
PF: predicated region fallthrough
CT: control target
= control target key end

     0   :  { %s2118_s15 = smov 0   ;;  %s2120_s16 = smov 0   ;;  %s2493_s0 = inlined_call_operand.vmem [shape: bf16[2,4,16,128], index: 0, kind: input, shape index: {}]   ;;  %s2494_s1 = inlined_call_operand.vmem [shape: bf16[9,128,128], index: 1, kind: input, shape index: {}]   ;;  %s2495_s2 = inlined_call_operand.vmem [shape: f32[1,128], index: 2, kind: input, shape index: {}]   ;;  %s2496_s3 = inlined_call_operand.vmem [shape: f32[1,128], index: 3, kind: input, shape index: {}]   ;;  %s2497_s4 = inlined_call_operand.vmem [shape: bf16[2,8,128], index: 4, kind: output, shape index: {}]  }
   0x1   :  { %s2122_s17 = smov 0  }
   0x2 LB: > { %s33_s18 = sadd.s32 1, %s2085_s16  ;;  %p1453_p0 = scmp.ge.s32.totalorder %s2089_s17, 1  ;;  %s2089_s17 = sphi %s2122_s17, %s14_s17   ;;  %s2085_s16 = sphi %s2120_s16, %s2499_s16   ;;  %s2081_s15 = sphi %s2118_s15, %s2498_s15  }
   0x3   : > { %p35_p1 = scmp.ge.s32.totalorder %s33_s18, 2  ;;  %p210_p2 = scmp.lt.s32.totalorder %s2089_s17, 3 }
   0x5   : > { %s2501_s18 = smov (%p35_p1, %s33_s18), 0  ;;  %p211_p3 = pnand %p1453_p0, %p210_p2 }
   0x6   : > { %v1990_v0 = vld [vmem:[%s2494_s1 + $0x40] sm:$0xff] (!%p211_p3)   ;;  %v2091_v1 = vmov (!%p211_p3), 0.0   ;;  %v1992_v3 = vld [vmem:[%s2494_s1 + $0x48] sm:$0xff] (!%p211_p3)   ;;  %vm2092_vm0 = vmmov (!%p211_p3), 0   ;;  %v1994_v5 = vld [vmem:[%s2494_s1 + $0x50] sm:$0xff] (!%p211_p3)   ;;  %p251_p4 = scmp.lt.s32.totalorder (!%p211_p3), %s2081_s15, 1 }
   0x7   : > { %214 = sbr.rel (%p211_p3) target bundleno = 391 (0x187), region = 36  ;;  %1755 = vmatprep.subr.bf16.mxu1 (!%p211_p3), %v2091_v1  ;;  %1835 = vmatprep.subr.bf16.mxu0 (!%p211_p3), %v2091_v1  ;;  %v1991_v2 = vld [vmem:[%s2494_s1 + $0x100] sm:$0xff] (!%p211_p3)   ;;  %v1993_v4 = vld [vmem:[%s2494_s1 + $0x108] sm:$0xff] (!%p211_p3)   ;;  %v1995_v6 = vld [vmem:[%s2494_s1 + $0x110] sm:$0xff] (!%p211_p3)  }
   0x8   : > { %1756 = vmatpush3.bf16.msra.mxu1 (!%p211_p3), %v1990_v0  ;;  %1771 = vmatprep.mubr.msk.bf16.mxu1 (!%p211_p3), %vm2092_vm0, %v2091_v1  ;;  %v1996_v7 = vld [vmem:[%s2494_s1 + $0x58] sm:$0xff] (!%p211_p3)   ;;  %v1998_v9 = vld [vmem:[%s2494_s1 + $0x60] sm:$0xff] (!%p211_p3)   ;;  %v2000_v11 = vld [vmem:[%s2494_s1 + $0x68] sm:$0xff] (!%p211_p3)  }
   0x9   : > { %1836 = vmatpush3.bf16.msra.mxu0 (!%p211_p3), %v1991_v2  ;;  %1757 = vmatprep.subr.bf16.mxu1 (!%p211_p3), %v2091_v1  ;;  %v1997_v8 = vld [vmem:[%s2494_s1 + $0x118] sm:$0xff] (!%p211_p3)   ;;  %v1999_v10 = vld [vmem:[%s2494_s1 + $0x120] sm:$0xff] (!%p211_p3)   ;;  %v2001_v12 = vld [vmem:[%s2494_s1 + $0x128] sm:$0xff] (!%p211_p3)  }
   0xa   : > { %1837 = vmatprep.subr.bf16.mxu0 (!%p211_p3), %v2091_v1  ;;  %1851 = vmatprep.mubr.msk.bf16.mxu0 (!%p211_p3), %vm2092_vm0, %v2091_v1  ;;  %v2002_v13 = vld [vmem:[%s2494_s1 + $0x70] sm:$0xff] (!%p211_p3)   ;;  %v2004_v15 = vld [vmem:[%s2494_s1 + $0x78] sm:$0xff] (!%p211_p3)   ;;  %v2006_v18 = vld [vmem:[%s2494_s1] sm:$0xff] (!%p211_p3)  }
   0xb   : > { %v2003_v14 = vld [vmem:[%s2494_s1 + $0x130] sm:$0xff] (!%p211_p3)   ;;  %v2005_v16 = vld [vmem:[%s2494_s1 + $0x138] sm:$0xff] (!%p211_p3)   ;;  %v2007_v20 = vld [vmem:[%s2494_s1 + $0x140] sm:$0xff] (!%p211_p3)  }
   0xc   : > { %1758 = vmatpush3.bf16.msra.mxu1 (!%p211_p3), %v1992_v3  ;;  %v2008_v21 = vld [vmem:[%s2494_s1 + $0x8] sm:$0xff] (!%p211_p3)   ;;  %v2010_v23 = vld [vmem:[%s2494_s1 + $0x10] sm:$0xff] (!%p211_p3)   ;;  %v2012_v25 = vld [vmem:[%s2494_s1 + $0x18] sm:$0xff] (!%p211_p3)  }
   0xd   : > { %1838 = vmatpush3.bf16.msra.mxu0 (!%p211_p3), %v1993_v4  ;;  %1759 = vmatprep.subr.bf16.mxu1 (!%p211_p3), %v2091_v1  ;;  %v2009_v22 = vld [vmem:[%s2494_s1 + $0x148] sm:$0xff] (!%p211_p3)   ;;  %v2011_v24 = vld [vmem:[%s2494_s1 + $0x150] sm:$0xff] (!%p211_p3)   ;;  %v2013_v26 = vld [vmem:[%s2494_s1 + $0x158] sm:$0xff] (!%p211_p3)  }
   0xe   : > { %1839 = vmatprep.subr.bf16.mxu0 %v2091_v1  ;;  %s2503_s15 = smov (!%p251_p4, %s2081_s15), 1  ;;  %v2014_v27 = vld [vmem:[%s2494_s1 + $0x20] sm:$0xff]   ;;  %v2016_v30 = vld [vmem:[%s2494_s1 + $0x28] sm:$0xff]   ;;  %v2018_v33 = vld [vmem:[%s2494_s1 + $0x30] sm:$0xff]  }
   0xf   : > { %s1673_s23 = sshll.u32 %s2503_s15, 5  ;;  %v2015_v28 = vld [vmem:[%s2494_s1 + $0x160] sm:$0xff]   ;;  %v2017_v31 = vld [vmem:[%s2494_s1 + $0x168] sm:$0xff]   ;;  %v2019_v34 = vld [vmem:[%s2494_s1 + $0x170] sm:$0xff]   ;;  %s1456_s21 = sshll.u32 %s2503_s15, 2 }
  0x10   : > { %1760 = vmatpush3.bf16.msra.mxu1 %v1994_v5  ;;  %s2206_s28 = scalar_lea.vmem %s2493_s0, %s1673_s23  ;;  %v2020_v35 = vld [vmem:[%s2494_s1 + $0x38] sm:$0xff]   ;;  %v2022_v40 = vld [vmem:[%s2494_s1 + $0x80] sm:$0xff]   ;;  %v2025_v43 = vld [vmem:[%s2494_s1 + $0x88] sm:$0xff]   ;;  %s275_s24 = scalar_lea.vmem %s2497_s4, %s1456_s21 }
  0x11   : > { %1840 = vmatpush3.bf16.msra.mxu0 %v1995_v6  ;;  %1761 = vmatprep.subr.bf16.mxu1 %v2091_v1  ;;  %v1457_v17 = vld [vmem:[%s2206_s28 + $0x8] sm:$0xf]  ;;  %v1540_v19 = vld [vmem:[%s2206_s28 + $0x18] sm:$0xf]  ;;  %v2023_v29 = vld [vmem:[%s2206_s28 + $0x10] sm:$0x1f]  }
  0x12   : > { %1841 = vmatprep.subr.bf16.mxu0 %v2091_v1  ;;  %v853_v32 = vshll.u32 %v2023_v29, 16  ;;  %v851_v36 = vshrl.u32 %v2023_v29, 16  ;;  %v2021_v38 = vld [vmem:[%s2494_s1 + $0x178] sm:$0xff]   ;;  %v277_v39 = vld [vmem:[%s2206_s28] sm:$0xf]  ;;  %v2026_v44 = vld [vmem:[%s2494_s1 + $0x188] sm:$0xff]  }
  0x13   : > { %v2024_v42 = vld [vmem:[%s2494_s1 + $0x180] sm:$0xff]   ;;  %v2027_v45 = vld [vmem:[%s2494_s1 + $0x90] sm:$0xff]   ;;  %v2029_v47 = vld [vmem:[%s2494_s1 + $0x98] sm:$0xff]  }
  0x14   : > { %1762 = vmatpush3.bf16.msra.mxu1 %v1996_v7  ;;  %v855_v37 = vrot.slane %v853_v32, 1  ;;  %v2028_v46 = vld [vmem:[%s2494_s1 + $0x190] sm:$0xff]   ;;  %v2030_v48 = vld [vmem:[%s2494_s1 + $0x198] sm:$0xff]   ;;  %v2031_v49 = vld [vmem:[%s2494_s1 + $0xa0] sm:$0xff]  }
  0x15   : > { %1842 = vmatpush3.bf16.msra.mxu0 %v1997_v8  ;;  %1763 = vmatprep.subr.bf16.mxu1 %v2091_v1  ;;  %v2328_v50 = vld [vmem:[%s2206_s28 + $0x4] sm:$0x3]  ;;  %v2331_v51 = vld [vmem:[%s2206_s28] sm:$0xc]  ;;  %v2033_v56 = vld [vmem:[%s2494_s1 + $0xa8] sm:$0xff]  }
  0x16   : > { %1843 = vmatprep.subr.bf16.mxu0 %v2091_v1  ;;  %v856_v41 = vor.u32 %v855_v37, %v851_v36  ;;  %v2032_v52 = vld [vmem:[%s2494_s1 + $0x1a0] sm:$0xff]   ;;  %v1660_v54 = vcombine.low %v2331_v51, %v2328_v50  ;;  %v2034_v58 = vld [vmem:[%s2494_s1 + $0x1a8] sm:$0xff]   ;;  %v2035_v60 = vld [vmem:[%s2494_s1 + $0xb0] sm:$0xff]  }
  0x17   : > { %v947_v53 = vld [vmem:[%s2206_s28] sm:$0xe]  ;;  %v2036_v63 = vld [vmem:[%s2494_s1 + $0x1b0] sm:$0xff]   ;;  %v2037_v3 = vld [vmem:[%s2494_s1 + $0xb8] sm:$0xff]  }
  0x18   : > { %1764 = vmatpush3.bf16.msra.mxu1 %v1998_v9  ;;  %v2039_v55 = vld [vmem:[%s2206_s28] sm:$0x1f]   ;;  %v1608_v57 = vcombine.low %v947_v53, %v2328_v50  ;;  %v2038_v6 = vld [vmem:[%s2494_s1 + $0x1b8] sm:$0xff]   ;;  %v2063_v37 = vld [vmem:[%s2494_s1 + $0x228] sm:$0xff]  }
  0x19   : > { %1844 = vmatpush3.bf16.msra.mxu0 %v1999_v10  ;;  %1765 = vmatprep.subr.bf16.mxu1 %v2091_v1  ;;  %v516_v59 = vshll.u32 %v2039_v55, 16  ;;  %v514_v0 = vshrl.u32 %v2039_v55, 16  ;;  %v2040_v8 = vld [vmem:[%s2494_s1 + $0xc0] sm:$0xff]   ;;  %v2056_v29 = vld [vmem:[%s2494_s1 + $0x1f8] sm:$0xff]  }
  0x1a   : > { %1845 = vmatprep.subr.bf16.mxu0 %v2091_v1  ;;  %v972_v61 = vshrl.u32 %v1608_v57, 16  ;;  %v975_v62 = vshll.u32 %v1608_v57, 16  ;;  %v2042_v10 = vld [vmem:[%s2494_s1 + $0x1c0] sm:$0xff]  }
  0x1b   : > { %v518_v2 = vrot.slane %v516_v59, 1  ;;  %v2058_v32 = vld [vmem:[%s2494_s1 + $0x200] sm:$0xff]  }
  0x1c   : > { %1766 = vmatpush3.bf16.msra.mxu1 %v2000_v11  ;;  %v974_v4 = vrot.slane %v972_v61, 1  ;;  %v977_v5 = vrot.slane %v975_v62, 2  ;;  %v2043_v11 = vld [vmem:[%s2494_s1 + $0xc8] sm:$0xff]   ;;  %v2062_v36 = vld [vmem:[%s2494_s1 + $0x220] sm:$0xff]  }
  0x1d   : > { %1846 = vmatpush3.bf16.msra.mxu0 %v2001_v12  ;;  %1767 = vmatprep.subr.bf16.mxu1 %v2091_v1  ;;  %v519_v7 = vor.u32 %v518_v2, %v514_v0  ;;  %v2044_v12 = vld [vmem:[%s2494_s1 + $0x1c8] sm:$0xff]  }
  0x1e   : > { %1847 = vmatprep.subr.bf16.mxu0 %v2091_v1  ;;  %v978_v9 = vor.u32 %v977_v5, %v974_v4 }
  0x20   : > { %1768 = vmatpush3.bf16.msra.mxu1 %v2002_v13  ;;  %v2045_v13 = vld [vmem:[%s2494_s1 + $0xd0] sm:$0xff]  }
  0x21   : > { %1848 = vmatpush3.bf16.msra.mxu0 %v2003_v14  ;;  %1769 = vmatprep.subr.bf16.mxu1 %v2091_v1  ;;  %v2046_v14 = vld [vmem:[%s2494_s1 + $0x1d0] sm:$0xff]  }
  0x22   : > { %1849 = vmatprep.subr.bf16.mxu0 %v2091_v1 }
  0x24   : > { %1770 = vmatpush3.bf16.msra.mxu1 %v2004_v15  ;;  %v2047_v15 = vld [vmem:[%s2494_s1 + $0xd8] sm:$0xff]  }
  0x25   : > { %1850 = vmatpush3.bf16.msra.mxu0 %v2005_v16  ;;  %1775 = vmatprep.subr.bf16.mxu1 %v2091_v1  ;;  %v2048_v16 = vld [vmem:[%s2494_s1 + $0x1d8] sm:$0xff]  }
  0x26   : > { %1855 = vmatprep.subr.bf16.mxu0 %v2091_v1 }
  0x27   : > { %1772 = vmatmul.mubr.bf16.vlgmr.msra.gmra.mrb[0].mxu1 %v1457_v17  ;;  %v2049_v17 = vld [vmem:[%s2494_s1 + $0xe0] sm:$0xff]  }
  0x28   : > { %1776 = vmatpush3.bf16.msra.mxu1 %v2006_v18  ;;  %1852 = vmatmul.mubr.bf16.vlgmr.msra.gmra.mrb[0].mxu0 %v1540_v19  ;;  %v2050_v18 = vld [vmem:[%s2494_s1 + $0x1e0] sm:$0xff]   ;;  %v2051_v19 = vld [vmem:[%s2494_s1 + $0xe8] sm:$0xff]  }
  0x29   : > { %1856 = vmatpush3.bf16.msra.mxu0 %v2007_v20  ;;  %1777 = vmatprep.subr.bf16.mxu1 %v2091_v1  ;;  %v2057_v20 = vld [vmem:[%s2206_s28 + $0x8] sm:$0x3e]  }
  0x2a   : > { %1857 = vmatprep.subr.bf16.mxu0 %v2091_v1  ;;  %1791 = vmatprep.mubr.msk.bf16.mxu1 %vm2092_vm0, %v2091_v1 }
  0x2b   : > { %1871 = vmatprep.mubr.msk.bf16.mxu0 %vm2092_vm0, %v2091_v1 }
  0x2c   : > { %1778 = vmatpush3.bf16.msra.mxu1 %v2008_v21  ;;  %v2052_v21 = vld [vmem:[%s2494_s1 + $0x1e8] sm:$0xff]  }
  0x2d   : > { %1858 = vmatpush3.bf16.msra.mxu0 %v2009_v22  ;;  %1779 = vmatprep.subr.bf16.mxu1 %v2091_v1  ;;  %v2053_v22 = vld [vmem:[%s2494_s1 + $0xf0] sm:$0xff]  }
  0x2e   : > { %1859 = vmatprep.subr.bf16.mxu0 %v2091_v1 }
  0x30   : > { %1780 = vmatpush3.bf16.msra.mxu1 %v2010_v23  ;;  %v1094_v23 = vshrl.u32 %v2057_v20, 16 }
  0x31   : > { %1860 = vmatpush3.bf16.msra.mxu0 %v2011_v24  ;;  %1781 = vmatprep.subr.bf16.mxu1 %v2091_v1  ;;  %v1097_v24 = vshll.u32 %v2057_v20, 16 }
  0x32   : > { %1861 = vmatprep.subr.bf16.mxu0 %v2091_v1 }
  0x34   : > { %1782 = vmatpush3.bf16.msra.mxu1 %v2012_v25  ;;  %v2054_v25 = vld [vmem:[%s2494_s1 + $0x1f0] sm:$0xff]  }
  0x35   : > { %1862 = vmatpush3.bf16.msra.mxu0 %v2013_v26  ;;  %1783 = vmatprep.subr.bf16.mxu1 %v2091_v1  ;;  %v2055_v26 = vld [vmem:[%s2494_s1 + $0xf8] sm:$0xff]  }
  0x36   : > { %1863 = vmatprep.subr.bf16.mxu0 %v2091_v1 }
  0x38   : > { %1784 = vmatpush3.bf16.msra.mxu1 %v2014_v27  ;;  %v1096_v27 = vrot.slane %v1094_v23, 1 }
  0x39   : > { %1864 = vmatpush3.bf16.msra.mxu0 %v2015_v28  ;;  %1785 = vmatprep.subr.bf16.mxu1 %v2091_v1  ;;  %v1099_v28 = vrot.slane %v1097_v24, 2 }
  0x3a   : > { %1865 = vmatprep.subr.bf16.mxu0 %v2091_v1 }
  0x3c   : > { %1786 = vmatpush3.bf16.msra.mxu1 %v2016_v30  ;;  %v1515_v30 = vld [vmem:[%s2206_s28 + $0x10] sm:$0xf] }
  0x3d   : > { %1866 = vmatpush3.bf16.msra.mxu0 %v2017_v31  ;;  %1787 = vmatprep.subr.bf16.mxu1 %v2091_v1  ;;  %v1100_v31 = vor.u32 %v1099_v28, %v1096_v27 }
  0x3e   : > { %1867 = vmatprep.subr.bf16.mxu0 %v2091_v1 }
  0x40   : > { %1788 = vmatpush3.bf16.msra.mxu1 %v2018_v33  ;;  %v2059_v33 = vld [vmem:[%s2494_s1 + $0x208] sm:$0xff]  }
  0x41   : > { %1868 = vmatpush3.bf16.msra.mxu0 %v2019_v34  ;;  %1789 = vmatprep.subr.bf16.mxu1 %v2091_v1  ;;  %v2060_v34 = vld [vmem:[%s2494_s1 + $0x210] sm:$0xff]  }
  0x42   : > { %1869 = vmatprep.subr.bf16.mxu0 %v2091_v1 }
  0x44   : > { %1790 = vmatpush3.bf16.msra.mxu1 %v2020_v35  ;;  %v2061_v35 = vld [vmem:[%s2494_s1 + $0x218] sm:$0xff]  }
  0x45   : > { %1870 = vmatpush3.bf16.msra.mxu0 %v2021_v38  ;;  %1795 = vmatprep.subr.bf16.mxu1 %v2091_v1  ;;  %v2064_v38 = vld [vmem:[%s2494_s1 + $0x230] sm:$0xff]  }
  0x46   : > { %1875 = vmatprep.subr.bf16.mxu0 %v2091_v1 }
  0x47   : > { %1792 = vmatmul.mubr.bf16.vlgmr.msra.gmra.mrb[0].mxu1 %v277_v39  ;;  %v2065_v39 = vld [vmem:[%s2494_s1 + $0x238] sm:$0xff]  }
  0x48   : > { %1796 = vmatpush3.bf16.msra.mxu1 %v2022_v40  ;;  %1872 = vmatmul.mubr.bf16.vlgmr.msra.gmra.mrb[0].mxu0 %v856_v41  ;;  %v1212_v40 = vrot.slane %v1660_v54, 2 }
  0x49   : > { %1876 = vmatpush3.bf16.msra.mxu0 %v2024_v42  ;;  %1797 = vmatprep.subr.bf16.mxu1 %v2091_v1 }
  0x4a   : > { %1877 = vmatprep.subr.bf16.mxu0 %v2091_v1  ;;  %1811 = vmatprep.mubr.msk.bf16.mxu1 %vm2092_vm0, %v2091_v1 }
  0x4b   : > { %1891 = vmatprep.mubr.msk.bf16.mxu0 %vm2092_vm0, %v2091_v1 }
  0x4c   : > { %1798 = vmatpush3.bf16.msra.mxu1 %v2025_v43 }
  0x4d   : > { %1878 = vmatpush3.bf16.msra.mxu0 %v2026_v44  ;;  %1799 = vmatprep.subr.bf16.mxu1 %v2091_v1 }
  0x4e   : > { %1879 = vmatprep.subr.bf16.mxu0 %v2091_v1 }
  0x50   : > { %1800 = vmatpush3.bf16.msra.mxu1 %v2027_v45 }
  0x51   : > { %1880 = vmatpush3.bf16.msra.mxu0 %v2028_v46  ;;  %1801 = vmatprep.subr.bf16.mxu1 %v2091_v1  ;;  %v1669_v46 = vld [vmem:[%s2495_s2] ss:$0 sm:$0xff] }
  0x52   : > { %1881 = vmatprep.subr.bf16.mxu0 %v2091_v1 }
  0x54   : > { %1802 = vmatpush3.bf16.msra.mxu1 %v2029_v47 }
  0x55   : > { %1882 = vmatpush3.bf16.msra.mxu0 %v2030_v48  ;;  %1803 = vmatprep.subr.bf16.mxu1 %v2091_v1 }
  0x56   : > { %1883 = vmatprep.subr.bf16.mxu0 %v2091_v1 }
  0x58   : > { %1804 = vmatpush3.bf16.msra.mxu1 %v2031_v49 }
  0x59   : > { %1884 = vmatpush3.bf16.msra.mxu0 %v2032_v52  ;;  %1805 = vmatprep.subr.bf16.mxu1 %v2091_v1 }
  0x5a   : > { %1885 = vmatprep.subr.bf16.mxu0 %v2091_v1 }
  0x5c   : > { %1806 = vmatpush3.bf16.msra.mxu1 %v2033_v56 }
  0x5d   : > { %1886 = vmatpush3.bf16.msra.mxu0 %v2034_v58  ;;  %1807 = vmatprep.subr.bf16.mxu1 %v2091_v1 }
  0x5e   : > { %1887 = vmatprep.subr.bf16.mxu0 %v2091_v1 }
  0x60   : > { %1808 = vmatpush3.bf16.msra.mxu1 %v2035_v60 }
  0x61   : > { %1888 = vmatpush3.bf16.msra.mxu0 %v2036_v63  ;;  %1809 = vmatprep.subr.bf16.mxu1 %v2091_v1 }
  0x62   : > { %1889 = vmatprep.subr.bf16.mxu0 %v2091_v1 }
  0x64   : > { %1810 = vmatpush3.bf16.msra.mxu1 %v2037_v3 }
  0x65   : > { %1890 = vmatpush3.bf16.msra.mxu0 %v2038_v6  ;;  %1815 = vmatprep.subr.bf16.mxu1 %v2091_v1 }
  0x66   : > { %1895 = vmatprep.subr.bf16.mxu0 %v2091_v1 }
  0x67   : > { %1812 = vmatmul.mubr.bf16.vlgmr.msra.gmra.mrb[0].mxu1 %v519_v7 }
  0x68   : > { %1816 = vmatpush3.bf16.msra.mxu1 %v2040_v8  ;;  %1892 = vmatmul.mubr.bf16.vlgmr.msra.gmra.mrb[0].mxu0 %v978_v9 }
  0x69   : > { %1896 = vmatpush3.bf16.msra.mxu0 %v2042_v10  ;;  %1817 = vmatprep.subr.bf16.mxu1 %v2091_v1 }
  0x6a   : > { %1897 = vmatprep.subr.bf16.mxu0 %v2091_v1  ;;  %1831 = vmatprep.mubr.msk.bf16.mxu1 %vm2092_vm0, %v2091_v1 }
  0x6b   : > { %1911 = vmatprep.mubr.msk.bf16.mxu0 %vm2092_vm0, %v2091_v1 }
  0x6c   : > { %1818 = vmatpush3.bf16.msra.mxu1 %v2043_v11 }
  0x6d   : > { %1898 = vmatpush3.bf16.msra.mxu0 %v2044_v12  ;;  %1819 = vmatprep.subr.bf16.mxu1 %v2091_v1 }
  0x6e   : > { %1899 = vmatprep.subr.bf16.mxu0 %v2091_v1 }
  0x70   : > { %1820 = vmatpush3.bf16.msra.mxu1 %v2045_v13 }
  0x71   : > { %1900 = vmatpush3.bf16.msra.mxu0 %v2046_v14  ;;  %1821 = vmatprep.subr.bf16.mxu1 %v2091_v1 }
  0x72   : > { %1901 = vmatprep.subr.bf16.mxu0 %v2091_v1 }
  0x74   : > { %1822 = vmatpush3.bf16.msra.mxu1 %v2047_v15 }
  0x75   : > { %1902 = vmatpush3.bf16.msra.mxu0 %v2048_v16  ;;  %1823 = vmatprep.subr.bf16.mxu1 %v2091_v1 }
  0x76   : > { %1903 = vmatprep.subr.bf16.mxu0 %v2091_v1 }
  0x78   : > { %1824 = vmatpush3.bf16.msra.mxu1 %v2049_v17 }
  0x79   : > { %1904 = vmatpush3.bf16.msra.mxu0 %v2050_v18  ;;  %1825 = vmatprep.subr.bf16.mxu1 %v2091_v1 }
  0x7a   : > { %1905 = vmatprep.subr.bf16.mxu0 %v2091_v1 }
  0x7c   : > { %1826 = vmatpush3.bf16.msra.mxu1 %v2051_v19 }
  0x7d   : > { %1906 = vmatpush3.bf16.msra.mxu0 %v2052_v21  ;;  %1827 = vmatprep.subr.bf16.mxu1 %v2091_v1 }
  0x7e   : > { %1907 = vmatprep.subr.bf16.mxu0 %v2091_v1 }
  0x80   : > { %1828 = vmatpush3.bf16.msra.mxu1 %v2053_v22 }
  0x81   : > { %1908 = vmatpush3.bf16.msra.mxu0 %v2054_v25  ;;  %1829 = vmatprep.subr.bf16.mxu1 %v2091_v1 }
  0x82   : > { %1909 = vmatprep.subr.bf16.mxu0 %v2091_v1 }
  0x84   : > { %1830 = vmatpush3.bf16.msra.mxu1 %v2055_v26 }
  0x85   : > { %1910 = vmatpush3.bf16.msra.mxu0 %v2056_v29 }
  0x86   : > { %1915 = vmatprep.subr.bf16.mxu0 %v2091_v1 }
  0x87   : > { %1832 = vmatmul.mubr.bf16.vlgmr.msra.gmra.mrb[0].mxu1 %v1515_v30 }
  0x88   : > { %1912 = vmatmul.mubr.bf16.vlgmr.msra.gmra.mrb[0].mxu0 %v1100_v31 }
  0x89   : > { %1916 = vmatpush3.bf16.msra.mxu0 %v2058_v32  ;;  %1931 = vmatprep.mubr.msk.bf16.mxu0 %vm2092_vm0, %v2091_v1 }
  0x8a   : > { %1917 = vmatprep.subr.bf16.mxu0 %v2091_v1 }
  0x8d   : > { %1918 = vmatpush3.bf16.msra.mxu0 %v2059_v33 }
  0x8e   : > { %1919 = vmatprep.subr.bf16.mxu0 %v2091_v1 }
  0x91   : > { %1920 = vmatpush3.bf16.msra.mxu0 %v2060_v34 }
  0x92   : > { %1921 = vmatprep.subr.bf16.mxu0 %v2091_v1 }
  0x95   : > { %1922 = vmatpush3.bf16.msra.mxu0 %v2061_v35 }
  0x96   : > { %1923 = vmatprep.subr.bf16.mxu0 %v2091_v1 }
  0x99   : > { %1924 = vmatpush3.bf16.msra.mxu0 %v2062_v36 }
  0x9a   : > { %1925 = vmatprep.subr.bf16.mxu0 %v2091_v1 }
  0x9d   : > { %1926 = vmatpush3.bf16.msra.mxu0 %v2063_v37 }
  0x9e   : > { %1927 = vmatprep.subr.bf16.mxu0 %v2091_v1 }
  0xa1   : > { %1928 = vmatpush3.bf16.msra.mxu0 %v2064_v38 }
  0xa2   : > { %1929 = vmatprep.subr.bf16.mxu0 %v2091_v1  ;;  %v1670_v1 = vld [vmem:[%s2496_s3] ss:$0 sm:$0xff] }
  0xa5   : > { %1930 = vmatpush3.bf16.msra.mxu0 %v2065_v39 }
  0xa8   : > { %1932 = vmatmul.mubr.bf16.vlgmr.msra.gmra.mrb[0].mxu0 %v1212_v40 }
 0x15a   : > { %v711_v41 = vpop.f32.mrb[0].mxu1 }
 0x15b   : > { %v1833_v42 = vpop.f32.mrb[1].mxu1 }
 0x15c   : > { %v714_v43 = vpop.f32.mrb[2].mxu1 }
 0x15d   : > { %v1834_v44 = vpop.f32.mrb[3].mxu1 }
 0x17b   : > { %v1296_v45 = vpop.f32.mrb[0].mxu0 }
 0x17c   : > { %v1935_v47 = vadd.f32 %v1296_v45, %v711_v41  ;;  %v1933_v48 = vpop.f32.mrb[1].mxu0 }
 0x17d   : > { %v1299_v49 = vpop.f32.mrb[2].mxu0 }
 0x17e   : > { %v1310_v50 = vmul.f32 %v1935_v47, %v1669_v46  ;;  %v1934_v51 = vpop.f32.mrb[3].mxu0 }
 0x180   : > { %v1318_v52 = vadd.f32 %v1670_v1, %v1310_v50 }
 0x182   : > { %v1319_v53 = vmax.f32 %v1318_v52, 0.0 }
 0x184   : > { %v1320_v54 = vpack.c.bf16 %v1319_v53, %v1319_v53 }
 0x186   : > { %1321 = vst [vmem:[%s275_s24] sm:$0xf] %v1320_v54 }
 0x187 PF: > { %s14_s17 = sadd.s32 1, %s2089_s17   ;;  %s2498_s15 = smov %s2085_s16 }
 0x188   : > { %p11_p5 = scmp.ge.s32.totalorder %s14_s17, 4   ;;  %s2499_s16 = smov %s2501_s18 }
 0x18a   :  { %13 = sbr.rel (!%p11_p5) target bundleno = 2 (0x2), region = 86 }

// kernel: resnet_encoder_forward.29
= control target key start
LH: loop header
LB: loop body
LE: loop exit
PB: predicated region body
PF: predicated region fallthrough
CT: control target
= control target key end

     0   :  { %s2203_s18 = smov 0   ;;  %s2205_s19 = smov 0   ;;  %s2596_s0 = inlined_call_operand.vmem [shape: bf16[2,1,24,128], index: 0, kind: input, shape index: {}]   ;;  %s2597_s1 = inlined_call_operand.vmem [shape: bf16[9,128,128], index: 1, kind: input, shape index: {}]   ;;  %s2598_s2 = inlined_call_operand.vmem [shape: f32[1,128], index: 2, kind: input, shape index: {}]   ;;  %s2599_s3 = inlined_call_operand.vmem [shape: f32[1,128], index: 3, kind: input, shape index: {}]   ;;  %s2600_s4 = inlined_call_operand.vmem [shape: bf16[2,8,128], index: 4, kind: input, shape index: {}]   ;;  %s2601_s5 = inlined_call_operand.vmem [shape: bf16[2,8,128], index: 5, kind: output, shape index: {}]  }
   0x1   :  { %s2207_s20 = smov 0  }
   0x2 LB: > { %s34_s21 = sadd.s32 1, %s2165_s19  ;;  %p1536_p0 = scmp.ge.s32.totalorder %s2169_s20, 1  ;;  %s2169_s20 = sphi %s2207_s20, %s15_s20   ;;  %s2165_s19 = sphi %s2205_s19, %s2603_s19   ;;  %s2161_s18 = sphi %s2203_s18, %s2602_s18  }
   0x3   : > { %p36_p1 = scmp.ge.s32.totalorder %s34_s21, 2  ;;  %p254_p2 = scmp.lt.s32.totalorder %s2169_s20, 3 }
   0x5   : > { %s2605_s21 = smov (%p36_p1, %s34_s21), 0  ;;  %p255_p3 = pnand %p1536_p0, %p254_p2 }
   0x6   : > { %v2068_v0 = vld [vmem:[%s2597_s1 + $0x40] sm:$0xff] (!%p255_p3)   ;;  %v2171_v1 = vmov (!%p255_p3), 0.0   ;;  %v2070_v3 = vld [vmem:[%s2597_s1 + $0x48] sm:$0xff] (!%p255_p3)   ;;  %vm2172_vm0 = vmmov (!%p255_p3), 0   ;;  %p307_p4 = scmp.lt.s32.totalorder (!%p255_p3), %s2161_s18, 1  ;;  %v2072_v5 = vld [vmem:[%s2597_s1 + $0x50] sm:$0xff] (!%p255_p3)  }
   0x7   : > { %258 = sbr.rel (%p255_p3) target bundleno = 393 (0x189), region = 40  ;;  %1832 = vmatprep.subr.bf16.mxu1 (!%p255_p3), %v2171_v1  ;;  %1912 = vmatprep.subr.bf16.mxu0 (!%p255_p3), %v2171_v1  ;;  %v2069_v2 = vld [vmem:[%s2597_s1 + $0x100] sm:$0xff] (!%p255_p3)   ;;  %v2071_v4 = vld [vmem:[%s2597_s1 + $0x108] sm:$0xff] (!%p255_p3)   ;;  %v2073_v6 = vld [vmem:[%s2597_s1 + $0x110] sm:$0xff] (!%p255_p3)  }
   0x8   : > { %1833 = vmatpush3.bf16.msra.mxu1 (!%p255_p3), %v2068_v0  ;;  %1848 = vmatprep.mubr.msk.bf16.mxu1 (!%p255_p3), %vm2172_vm0, %v2171_v1  ;;  %v2074_v7 = vld [vmem:[%s2597_s1 + $0x58] sm:$0xff] (!%p255_p3)   ;;  %v2076_v9 = vld [vmem:[%s2597_s1 + $0x60] sm:$0xff] (!%p255_p3)   ;;  %v2078_v13 = vld [vmem:[%s2597_s1 + $0x68] sm:$0xff] (!%p255_p3)  }
   0x9   : > { %1913 = vmatpush3.bf16.msra.mxu0 (!%p255_p3), %v2069_v2  ;;  %1834 = vmatprep.subr.bf16.mxu1 (!%p255_p3), %v2171_v1  ;;  %v2075_v8 = vld [vmem:[%s2597_s1 + $0x118] sm:$0xff] (!%p255_p3)   ;;  %v2077_v10 = vld [vmem:[%s2597_s1 + $0x120] sm:$0xff] (!%p255_p3)   ;;  %v2079_v17 = vld [vmem:[%s2597_s1 + $0x128] sm:$0xff] (!%p255_p3)  }
   0xa   : > { %1914 = vmatprep.subr.bf16.mxu0 (!%p255_p3), %v2171_v1  ;;  %1928 = vmatprep.mubr.msk.bf16.mxu0 (!%p255_p3), %vm2172_vm0, %v2171_v1  ;;  %v2080_v19 = vld [vmem:[%s2597_s1 + $0x70] sm:$0xff] (!%p255_p3)   ;;  %v2082_v24 = vld [vmem:[%s2597_s1 + $0x78] sm:$0xff] (!%p255_p3)   ;;  %v2085_v31 = vld [vmem:[%s2597_s1] sm:$0xff] (!%p255_p3)  }
   0xb   : > { %v2081_v23 = vld [vmem:[%s2597_s1 + $0x130] sm:$0xff] (!%p255_p3)   ;;  %v2083_v29 = vld [vmem:[%s2597_s1 + $0x138] sm:$0xff] (!%p255_p3)   ;;  %v2087_v33 = vld [vmem:[%s2597_s1 + $0x140] sm:$0xff] (!%p255_p3)  }
   0xc   : > { %1835 = vmatpush3.bf16.msra.mxu1 (!%p255_p3), %v2070_v3  ;;  %v2088_v34 = vld [vmem:[%s2597_s1 + $0x8] sm:$0xff] (!%p255_p3)   ;;  %v2090_v36 = vld [vmem:[%s2597_s1 + $0x10] sm:$0xff] (!%p255_p3)   ;;  %v2092_v38 = vld [vmem:[%s2597_s1 + $0x18] sm:$0xff] (!%p255_p3)  }
   0xd   : > { %1915 = vmatpush3.bf16.msra.mxu0 (!%p255_p3), %v2071_v4  ;;  %1836 = vmatprep.subr.bf16.mxu1 (!%p255_p3), %v2171_v1  ;;  %v2089_v35 = vld [vmem:[%s2597_s1 + $0x148] sm:$0xff] (!%p255_p3)   ;;  %v2091_v37 = vld [vmem:[%s2597_s1 + $0x150] sm:$0xff] (!%p255_p3)   ;;  %v2093_v39 = vld [vmem:[%s2597_s1 + $0x158] sm:$0xff] (!%p255_p3)  }
   0xe   : > { %s2607_s18 = smov (!%p307_p4, %s2161_s18), 1  ;;  %1916 = vmatprep.subr.bf16.mxu0 %v2171_v1  ;;  %v2094_v40 = vld [vmem:[%s2597_s1 + $0x20] sm:$0xff]   ;;  %v2096_v42 = vld [vmem:[%s2597_s1 + $0x28] sm:$0xff]   ;;  %v2098_v46 = vld [vmem:[%s2597_s1 + $0x30] sm:$0xff]  }
   0xf   : > { %s2041_s9 = smul.u32 12, %s2607_s18  ;;  %v2095_v41 = vld [vmem:[%s2597_s1 + $0x160] sm:$0xff]   ;;  %v2097_v44 = vld [vmem:[%s2597_s1 + $0x168] sm:$0xff]   ;;  %v2099_v47 = vld [vmem:[%s2597_s1 + $0x170] sm:$0xff]   ;;  %s1538_s29 = sshll.u32 %s2607_s18, 2 }
  0x10   : > { %1837 = vmatpush3.bf16.msra.mxu1 %v2072_v5  ;;  %v2100_v49 = vld [vmem:[%s2597_s1 + $0x38] sm:$0xff]   ;;  %v2102_v52 = vld [vmem:[%s2597_s1 + $0x80] sm:$0xff]   ;;  %v2105_v55 = vld [vmem:[%s2597_s1 + $0x88] sm:$0xff]   ;;  %s331_s6 = scalar_lea.vmem %s2600_s4, %s1538_s29  ;;  %s341_s12 = scalar_lea.vmem %s2601_s5, %s1538_s29 }
  0x11   : > { %1917 = vmatpush3.bf16.msra.mxu0 %v2073_v6  ;;  %1838 = vmatprep.subr.bf16.mxu1 %v2171_v1  ;;  %s2263_s16 = scalar_lea.vmem %s2596_s0, %s2041_s9  ;;  %v2101_v51 = vld [vmem:[%s2597_s1 + $0x178] sm:$0xff]   ;;  %v2104_v54 = vld [vmem:[%s2597_s1 + $0x180] sm:$0xff]   ;;  %v2106_v57 = vld [vmem:[%s2597_s1 + $0x188] sm:$0xff]  }
  0x12   : > { %1918 = vmatprep.subr.bf16.mxu0 %v2171_v1  ;;  %v2274_v11 = vld [vmem:[%s2263_s16] sm:$0xf]  ;;  %v2277_v12 = vld [vmem:[%s2263_s16 + $0x4] sm:$0x1]  ;;  %v2107_v59 = vld [vmem:[%s2597_s1 + $0x90] sm:$0xff]  }
  0x13   : > { %v1556_v14 = vcombine.low %v2274_v11, %v2277_v12  ;;  %v2285_v15 = vld [vmem:[%s2263_s16] sm:$0xc]  ;;  %v2288_v16 = vld [vmem:[%s2263_s16 + $0x4] sm:$0x7]  ;;  %v2108_v60 = vld [vmem:[%s2597_s1 + $0x190] sm:$0xff]  }
  0x14   : > { %1839 = vmatpush3.bf16.msra.mxu1 %v2074_v7  ;;  %v1639_v18 = vcombine.low %v2285_v15, %v2288_v16  ;;  %v2361_v43 = vld [vmem:[%s2263_s16] sm:$0xe]  ;;  %v2401_v56 = vld [vmem:[%s2263_s16 + $0x4] sm:$0x3]  ;;  %v2109_v61 = vld [vmem:[%s2597_s1 + $0x98] sm:$0xff]  }
  0x15   : > { %1919 = vmatpush3.bf16.msra.mxu0 %v2075_v8  ;;  %1840 = vmatprep.subr.bf16.mxu1 %v2171_v1  ;;  %v386_v20 = vshll.u32 %v1556_v14, 16  ;;  %v384_v25 = vshrl.u32 %v1556_v14, 16  ;;  %v1589_v45 = vcombine.low %v2361_v43, %v2277_v12  ;;  %v913_v48 = vld [vmem:[%s2263_s16] sm:$0x8]  ;;  %v1614_v58 = vcombine.low %v2285_v15, %v2401_v56  ;;  %v2110_v62 = vld [vmem:[%s2597_s1 + $0x198] sm:$0xff]   ;;  %v2113_v2 = vld [vmem:[%s2597_s1 + $0xa8] sm:$0xff]  }
  0x16   : > { %1920 = vmatprep.subr.bf16.mxu0 %v2171_v1  ;;  %v816_v21 = vshrl.u32 %v1639_v18, 16  ;;  %v819_v22 = vshll.u32 %v1639_v18, 16  ;;  %v1664_v50 = vcombine.low %v913_v48, %v2288_v16  ;;  %v2111_v63 = vld [vmem:[%s2597_s1 + $0xa0] sm:$0xff]   ;;  %v2114_v3 = vld [vmem:[%s2597_s1 + $0x1a8] sm:$0xff]   ;;  %v2115_v4 = vld [vmem:[%s2597_s1 + $0xb0] sm:$0xff]  }
  0x17   : > { %v388_v26 = vrot.slane %v386_v20, 1  ;;  %v2112_v0 = vld [vmem:[%s2597_s1 + $0x1a0] sm:$0xff]   ;;  %v2116_v5 = vld [vmem:[%s2597_s1 + $0x1b0] sm:$0xff]   ;;  %v2117_v6 = vld [vmem:[%s2597_s1 + $0xb8] sm:$0xff]   ;;  %v588_v8 = vrot.slane %v1589_v45, 1 }
  0x18   : > { %1841 = vmatpush3.bf16.msra.mxu1 %v2076_v9  ;;  %v818_v27 = vrot.slane %v816_v21, 2  ;;  %v821_v28 = vrot.slane %v819_v22, 3  ;;  %v934_v53 = vrot.slane %v1664_v50, 3  ;;  %v2118_v7 = vld [vmem:[%s2597_s1 + $0x1b8] sm:$0xff]   ;;  %v2120_v9 = vld [vmem:[%s2597_s1 + $0xc0] sm:$0xff]   ;;  %v2122_v12 = vld [vmem:[%s2597_s1 + $0xc8] sm:$0xff]  }
  0x19   : > { %1921 = vmatpush3.bf16.msra.mxu0 %v2077_v10  ;;  %1842 = vmatprep.subr.bf16.mxu1 %v2171_v1  ;;  %v389_v30 = vor.u32 %v388_v26, %v384_v25  ;;  %v1025_v10 = vld [vmem:[%s2263_s16 + $0x4] sm:$0xf]  ;;  %v2124_v14 = vld [vmem:[%s2597_s1 + $0xd0] sm:$0xff]   ;;  %v2127_v18 = vld [vmem:[%s2597_s1 + $0x1d8] sm:$0xff]  }
  0x1a   : > { %1922 = vmatprep.subr.bf16.mxu0 %v2171_v1  ;;  %v822_v32 = vor.u32 %v821_v28, %v818_v27  ;;  %v2125_v16 = vld [vmem:[%s2597_s1 + $0x1d0] sm:$0xff]   ;;  %v2129_v20 = vld [vmem:[%s2597_s1 + $0x1e0] sm:$0xff]   ;;  %v1133_v22 = vld [vmem:[%s2263_s16 + $0x8] sm:$0x1] }
  0x1b   : > { %v1132_v21 = vld [vmem:[%s2263_s16 + $0x4] sm:$0xf]  ;;  %v2131_v25 = vld [vmem:[%s2597_s1 + $0x1e8] sm:$0xff]   ;;  %v2132_v26 = vld [vmem:[%s2597_s1 + $0xf0] sm:$0xff]  }
  0x1c   : > { %1843 = vmatpush3.bf16.msra.mxu1 %v2078_v13  ;;  %v2123_v13 = vld [vmem:[%s2597_s1 + $0x1c8] sm:$0xff]   ;;  %v2133_v28 = vld [vmem:[%s2597_s1 + $0x1f0] sm:$0xff]   ;;  %v2145_v43 = vld [vmem:[%s2597_s1 + $0x238] sm:$0xff]  }
  0x1d   : > { %1923 = vmatpush3.bf16.msra.mxu0 %v2079_v17  ;;  %1844 = vmatprep.subr.bf16.mxu1 %v2171_v1  ;;  %v2126_v17 = vld [vmem:[%s2597_s1 + $0xd8] sm:$0xff]   ;;  %v2140_v15 = vld [vmem:[%s2597_s1 + $0x210] sm:$0xff]   ;;  %v1747_v50 = vld [vmem:[%s2598_s2] ss:$0 sm:$0xff] }
  0x1e   : > { %1924 = vmatprep.subr.bf16.mxu0 %v2171_v1 }
  0x20   : > { %1845 = vmatpush3.bf16.msra.mxu1 %v2080_v19  ;;  %v2128_v19 = vld [vmem:[%s2597_s1 + $0xe0] sm:$0xff]  }
  0x21   : > { %1925 = vmatpush3.bf16.msra.mxu0 %v2081_v23  ;;  %1846 = vmatprep.subr.bf16.mxu1 %v2171_v1  ;;  %v2130_v23 = vld [vmem:[%s2597_s1 + $0xe8] sm:$0xff]  }
  0x22   : > { %1926 = vmatprep.subr.bf16.mxu0 %v2171_v1 }
  0x24   : > { %1847 = vmatpush3.bf16.msra.mxu1 %v2082_v24  ;;  %v1713_v24 = vcombine.low %v1132_v21, %v1133_v22 }
  0x25   : > { %1927 = vmatpush3.bf16.msra.mxu0 %v2083_v29  ;;  %1852 = vmatprep.subr.bf16.mxu1 %v2171_v1  ;;  %v2134_v29 = vld [vmem:[%s2597_s1 + $0xf8] sm:$0xff]  }
  0x26   : > { %1932 = vmatprep.subr.bf16.mxu0 %v2171_v1  ;;  %v1159_v27 = vshll.u32 %v1713_v24, 16 }
  0x27   : > { %1849 = vmatmul.mubr.bf16.vlgmr.msra.gmra.mrb[0].mxu1 %v389_v30  ;;  %v1157_v30 = vshrl.u32 %v1713_v24, 16 }
  0x28   : > { %1853 = vmatpush3.bf16.msra.mxu1 %v2085_v31  ;;  %1929 = vmatmul.mubr.bf16.vlgmr.msra.gmra.mrb[0].mxu0 %v822_v32  ;;  %v1161_v31 = vrot.slane %v1159_v27, 1  ;;  %v2135_v32 = vld [vmem:[%s2597_s1 + $0x1f8] sm:$0xff]  }
  0x29   : > { %1933 = vmatpush3.bf16.msra.mxu0 %v2087_v33  ;;  %1854 = vmatprep.subr.bf16.mxu1 %v2171_v1  ;;  %v703_v33 = vrot.slane %v1614_v58, 2 }
  0x2a   : > { %1934 = vmatprep.subr.bf16.mxu0 %v2171_v1  ;;  %1868 = vmatprep.mubr.msk.bf16.mxu1 %vm2172_vm0, %v2171_v1 }
  0x2b   : > { %1948 = vmatprep.mubr.msk.bf16.mxu0 %vm2172_vm0, %v2171_v1 }
  0x2c   : > { %1855 = vmatpush3.bf16.msra.mxu1 %v2088_v34  ;;  %v1162_v34 = vor.u32 %v1161_v31, %v1157_v30 }
  0x2d   : > { %1935 = vmatpush3.bf16.msra.mxu0 %v2089_v35  ;;  %1856 = vmatprep.subr.bf16.mxu1 %v2171_v1  ;;  %v2138_v35 = vld [vmem:[%s2597_s1 + $0x200] sm:$0xff]  }
  0x2e   : > { %1936 = vmatprep.subr.bf16.mxu0 %v2171_v1 }
  0x30   : > { %1857 = vmatpush3.bf16.msra.mxu1 %v2090_v36  ;;  %v2139_v36 = vld [vmem:[%s2597_s1 + $0x208] sm:$0xff]  }
  0x31   : > { %1937 = vmatpush3.bf16.msra.mxu0 %v2091_v37  ;;  %1858 = vmatprep.subr.bf16.mxu1 %v2171_v1  ;;  %v2141_v37 = vld [vmem:[%s2597_s1 + $0x218] sm:$0xff]  }
  0x32   : > { %1938 = vmatprep.subr.bf16.mxu0 %v2171_v1 }
  0x34   : > { %1859 = vmatpush3.bf16.msra.mxu1 %v2092_v38  ;;  %v2142_v38 = vld [vmem:[%s2597_s1 + $0x220] sm:$0xff]  }
  0x35   : > { %1939 = vmatpush3.bf16.msra.mxu0 %v2093_v39  ;;  %1860 = vmatprep.subr.bf16.mxu1 %v2171_v1  ;;  %v2143_v39 = vld [vmem:[%s2597_s1 + $0x228] sm:$0xff]  }
  0x36   : > { %1940 = vmatprep.subr.bf16.mxu0 %v2171_v1 }
  0x38   : > { %1861 = vmatpush3.bf16.msra.mxu1 %v2094_v40  ;;  %v2144_v40 = vld [vmem:[%s2597_s1 + $0x230] sm:$0xff]  }
  0x39   : > { %1941 = vmatpush3.bf16.msra.mxu0 %v2095_v41  ;;  %1862 = vmatprep.subr.bf16.mxu1 %v2171_v1  ;;  %v1253_v41 = vld [vmem:[%s2263_s16 + $0x4] sm:$0xe] }
  0x3a   : > { %1942 = vmatprep.subr.bf16.mxu0 %v2171_v1 }
  0x3c   : > { %1863 = vmatpush3.bf16.msra.mxu1 %v2096_v42  ;;  %v1738_v42 = vcombine.low %v1253_v41, %v1133_v22 }
  0x3d   : > { %1943 = vmatpush3.bf16.msra.mxu0 %v2097_v44  ;;  %1864 = vmatprep.subr.bf16.mxu1 %v2171_v1 }
  0x3e   : > { %1944 = vmatprep.subr.bf16.mxu0 %v2171_v1  ;;  %v1274_v44 = vrot.slane %v1738_v42, 1 }
  0x40   : > { %1865 = vmatpush3.bf16.msra.mxu1 %v2098_v46 }
  0x41   : > { %1945 = vmatpush3.bf16.msra.mxu0 %v2099_v47  ;;  %1866 = vmatprep.subr.bf16.mxu1 %v2171_v1 }
  0x42   : > { %1946 = vmatprep.subr.bf16.mxu0 %v2171_v1 }
  0x44   : > { %1867 = vmatpush3.bf16.msra.mxu1 %v2100_v49 }
  0x45   : > { %1947 = vmatpush3.bf16.msra.mxu0 %v2101_v51  ;;  %1872 = vmatprep.subr.bf16.mxu1 %v2171_v1  ;;  %v1381_v51 = vld [vmem:[%s331_s6] sm:$0xf] }
  0x46   : > { %1952 = vmatprep.subr.bf16.mxu0 %v2171_v1  ;;  %v1382_v56 = vunpack.c.l.bf16 %v1381_v51 }
  0x47   : > { %1869 = vmatmul.mubr.bf16.vlgmr.msra.gmra.mrb[0].mxu1 %v2274_v11  ;;  %v2121_v11 = vld [vmem:[%s2597_s1 + $0x1c0] sm:$0xff]  }
  0x48   : > { %1873 = vmatpush3.bf16.msra.mxu1 %v2102_v52  ;;  %1949 = vmatmul.mubr.bf16.vlgmr.msra.gmra.mrb[0].mxu0 %v934_v53  ;;  %v1748_v53 = vld [vmem:[%s2599_s3] ss:$0 sm:$0xff] }
  0x49   : > { %1953 = vmatpush3.bf16.msra.mxu0 %v2104_v54  ;;  %1874 = vmatprep.subr.bf16.mxu1 %v2171_v1 }
  0x4a   : > { %1954 = vmatprep.subr.bf16.mxu0 %v2171_v1  ;;  %1888 = vmatprep.mubr.msk.bf16.mxu1 %vm2172_vm0, %v2171_v1 }
  0x4b   : > { %1968 = vmatprep.mubr.msk.bf16.mxu0 %vm2172_vm0, %v2171_v1 }
  0x4c   : > { %1875 = vmatpush3.bf16.msra.mxu1 %v2105_v55 }
  0x4d   : > { %1955 = vmatpush3.bf16.msra.mxu0 %v2106_v57  ;;  %1876 = vmatprep.subr.bf16.mxu1 %v2171_v1 }
  0x4e   : > { %1956 = vmatprep.subr.bf16.mxu0 %v2171_v1 }
  0x50   : > { %1877 = vmatpush3.bf16.msra.mxu1 %v2107_v59 }
  0x51   : > { %1957 = vmatpush3.bf16.msra.mxu0 %v2108_v60  ;;  %1878 = vmatprep.subr.bf16.mxu1 %v2171_v1 }
  0x52   : > { %1958 = vmatprep.subr.bf16.mxu0 %v2171_v1 }
  0x54   : > { %1879 = vmatpush3.bf16.msra.mxu1 %v2109_v61 }
  0x55   : > { %1959 = vmatpush3.bf16.msra.mxu0 %v2110_v62  ;;  %1880 = vmatprep.subr.bf16.mxu1 %v2171_v1 }
  0x56   : > { %1960 = vmatprep.subr.bf16.mxu0 %v2171_v1 }
  0x58   : > { %1881 = vmatpush3.bf16.msra.mxu1 %v2111_v63 }
  0x59   : > { %1961 = vmatpush3.bf16.msra.mxu0 %v2112_v0  ;;  %1882 = vmatprep.subr.bf16.mxu1 %v2171_v1 }
  0x5a   : > { %1962 = vmatprep.subr.bf16.mxu0 %v2171_v1 }
  0x5c   : > { %1883 = vmatpush3.bf16.msra.mxu1 %v2113_v2 }
  0x5d   : > { %1963 = vmatpush3.bf16.msra.mxu0 %v2114_v3  ;;  %1884 = vmatprep.subr.bf16.mxu1 %v2171_v1 }
  0x5e   : > { %1964 = vmatprep.subr.bf16.mxu0 %v2171_v1 }
  0x60   : > { %1885 = vmatpush3.bf16.msra.mxu1 %v2115_v4 }
  0x61   : > { %1965 = vmatpush3.bf16.msra.mxu0 %v2116_v5  ;;  %1886 = vmatprep.subr.bf16.mxu1 %v2171_v1 }
  0x62   : > { %1966 = vmatprep.subr.bf16.mxu0 %v2171_v1 }
  0x64   : > { %1887 = vmatpush3.bf16.msra.mxu1 %v2117_v6 }
  0x65   : > { %1967 = vmatpush3.bf16.msra.mxu0 %v2118_v7  ;;  %1892 = vmatprep.subr.bf16.mxu1 %v2171_v1 }
  0x66   : > { %1972 = vmatprep.subr.bf16.mxu0 %v2171_v1 }
  0x67   : > { %1889 = vmatmul.mubr.bf16.vlgmr.msra.gmra.mrb[0].mxu1 %v588_v8 }
  0x68   : > { %1893 = vmatpush3.bf16.msra.mxu1 %v2120_v9  ;;  %1969 = vmatmul.mubr.bf16.vlgmr.msra.gmra.mrb[0].mxu0 %v1025_v10 }
  0x69   : > { %1973 = vmatpush3.bf16.msra.mxu0 %v2121_v11  ;;  %1894 = vmatprep.subr.bf16.mxu1 %v2171_v1 }
  0x6a   : > { %1974 = vmatprep.subr.bf16.mxu0 %v2171_v1  ;;  %1908 = vmatprep.mubr.msk.bf16.mxu1 %vm2172_vm0, %v2171_v1 }
  0x6b   : > { %1988 = vmatprep.mubr.msk.bf16.mxu0 %vm2172_vm0, %v2171_v1 }
  0x6c   : > { %1895 = vmatpush3.bf16.msra.mxu1 %v2122_v12 }
  0x6d   : > { %1975 = vmatpush3.bf16.msra.mxu0 %v2123_v13  ;;  %1896 = vmatprep.subr.bf16.mxu1 %v2171_v1 }
  0x6e   : > { %1976 = vmatprep.subr.bf16.mxu0 %v2171_v1 }
  0x70   : > { %1897 = vmatpush3.bf16.msra.mxu1 %v2124_v14 }
  0x71   : > { %1977 = vmatpush3.bf16.msra.mxu0 %v2125_v16  ;;  %1898 = vmatprep.subr.bf16.mxu1 %v2171_v1 }
  0x72   : > { %1978 = vmatprep.subr.bf16.mxu0 %v2171_v1 }
  0x74   : > { %1899 = vmatpush3.bf16.msra.mxu1 %v2126_v17 }
  0x75   : > { %1979 = vmatpush3.bf16.msra.mxu0 %v2127_v18  ;;  %1900 = vmatprep.subr.bf16.mxu1 %v2171_v1 }
  0x76   : > { %1980 = vmatprep.subr.bf16.mxu0 %v2171_v1 }
  0x78   : > { %1901 = vmatpush3.bf16.msra.mxu1 %v2128_v19 }
  0x79   : > { %1981 = vmatpush3.bf16.msra.mxu0 %v2129_v20  ;;  %1902 = vmatprep.subr.bf16.mxu1 %v2171_v1 }
  0x7a   : > { %1982 = vmatprep.subr.bf16.mxu0 %v2171_v1 }
  0x7c   : > { %1903 = vmatpush3.bf16.msra.mxu1 %v2130_v23 }
  0x7d   : > { %1983 = vmatpush3.bf16.msra.mxu0 %v2131_v25  ;;  %1904 = vmatprep.subr.bf16.mxu1 %v2171_v1 }
  0x7e   : > { %1984 = vmatprep.subr.bf16.mxu0 %v2171_v1 }
  0x80   : > { %1905 = vmatpush3.bf16.msra.mxu1 %v2132_v26 }
  0x81   : > { %1985 = vmatpush3.bf16.msra.mxu0 %v2133_v28  ;;  %1906 = vmatprep.subr.bf16.mxu1 %v2171_v1 }
  0x82   : > { %1986 = vmatprep.subr.bf16.mxu0 %v2171_v1 }
  0x84   : > { %1907 = vmatpush3.bf16.msra.mxu1 %v2134_v29 }
  0x85   : > { %1987 = vmatpush3.bf16.msra.mxu0 %v2135_v32 }
  0x86   : > { %1992 = vmatprep.subr.bf16.mxu0 %v2171_v1 }
  0x87   : > { %1909 = vmatmul.mubr.bf16.vlgmr.msra.gmra.mrb[0].mxu1 %v703_v33 }
  0x88   : > { %1989 = vmatmul.mubr.bf16.vlgmr.msra.gmra.mrb[0].mxu0 %v1162_v34 }
  0x89   : > { %1993 = vmatpush3.bf16.msra.mxu0 %v2138_v35  ;;  %2008 = vmatprep.mubr.msk.bf16.mxu0 %vm2172_vm0, %v2171_v1 }
  0x8a   : > { %1994 = vmatprep.subr.bf16.mxu0 %v2171_v1 }
  0x8d   : > { %1995 = vmatpush3.bf16.msra.mxu0 %v2139_v36 }
  0x8e   : > { %1996 = vmatprep.subr.bf16.mxu0 %v2171_v1 }
  0x91   : > { %1997 = vmatpush3.bf16.msra.mxu0 %v2140_v15 }
  0x92   : > { %1998 = vmatprep.subr.bf16.mxu0 %v2171_v1 }
  0x95   : > { %1999 = vmatpush3.bf16.msra.mxu0 %v2141_v37 }
  0x96   : > { %2000 = vmatprep.subr.bf16.mxu0 %v2171_v1 }
  0x99   : > { %2001 = vmatpush3.bf16.msra.mxu0 %v2142_v38 }
  0x9a   : > { %2002 = vmatprep.subr.bf16.mxu0 %v2171_v1 }
  0x9d   : > { %2003 = vmatpush3.bf16.msra.mxu0 %v2143_v39 }
  0x9e   : > { %2004 = vmatprep.subr.bf16.mxu0 %v2171_v1 }
  0xa1   : > { %2005 = vmatpush3.bf16.msra.mxu0 %v2144_v40 }
  0xa2   : > { %2006 = vmatprep.subr.bf16.mxu0 %v2171_v1 }
  0xa5   : > { %2007 = vmatpush3.bf16.msra.mxu0 %v2145_v43 }
  0xa8   : > { %2009 = vmatmul.mubr.bf16.vlgmr.msra.gmra.mrb[0].mxu0 %v1274_v44 }
 0x15a   : > { %v787_v45 = vpop.f32.mrb[0].mxu1 }
 0x15b   : > { %v1910_v46 = vpop.f32.mrb[1].mxu1 }
 0x15c   : > { %v790_v47 = vpop.f32.mrb[2].mxu1 }
 0x15d   : > { %v1911_v48 = vpop.f32.mrb[3].mxu1 }
 0x17b   : > { %v1358_v49 = vpop.f32.mrb[0].mxu0 }
 0x17c   : > { %v2012_v52 = vadd.f32 %v1358_v49, %v787_v45  ;;  %v2010_v1 = vpop.f32.mrb[1].mxu0 }
 0x17d   : > { %v1361_v54 = vpop.f32.mrb[2].mxu0 }
 0x17e   : > { %v1372_v55 = vmul.f32 %v2012_v52, %v1747_v50  ;;  %v2011_v57 = vpop.f32.mrb[3].mxu0 }
 0x180   : > { %v1380_v58 = vadd.f32 %v1748_v53, %v1372_v55 }
 0x182   : > { %v1383_v59 = vadd.f32 %v1382_v56, %v1380_v58 }
 0x184   : > { %v1384_v60 = vmax.f32 %v1383_v59, 0.0 }
 0x186   : > { %v1385_v61 = vpack.c.bf16 %v1384_v60, %v1384_v60 }
 0x188   : > { %1386 = vst [vmem:[%s341_s12] sm:$0xf] %v1385_v61 }
 0x189 PF: > { %s15_s20 = sadd.s32 1, %s2169_s20   ;;  %s2602_s18 = smov %s2165_s19 }
 0x18a   : > { %p12_p5 = scmp.ge.s32.totalorder %s15_s20, 4   ;;  %s2603_s19 = smov %s2605_s21 }
 0x18c   :  { %14 = sbr.rel (!%p12_p5) target bundleno = 2 (0x2), region = 90 }

// kernel: resnet_encoder_forward.30
= control target key start
LH: loop header
LB: loop body
LE: loop exit
PB: predicated region body
PF: predicated region fallthrough
CT: control target
= control target key end

     0   :  { %s2110_s15 = smov 0   ;;  %s2112_s16 = smov 0   ;;  %s2500_s0 = inlined_call_operand.vmem [shape: bf16[2,1,24,128], index: 0, kind: input, shape index: {}]   ;;  %s2501_s1 = inlined_call_operand.vmem [shape: bf16[9,128,128], index: 1, kind: input, shape index: {}]   ;;  %s2502_s2 = inlined_call_operand.vmem [shape: f32[1,128], index: 2, kind: input, shape index: {}]   ;;  %s2503_s3 = inlined_call_operand.vmem [shape: f32[1,128], index: 3, kind: input, shape index: {}]   ;;  %s2504_s4 = inlined_call_operand.vmem [shape: bf16[2,8,128], index: 4, kind: output, shape index: {}]  }
   0x1   :  { %s2114_s17 = smov 0  }
   0x2 LB: > { %s33_s18 = sadd.s32 1, %s2077_s16  ;;  %p1449_p0 = scmp.ge.s32.totalorder %s2081_s17, 1  ;;  %s2081_s17 = sphi %s2114_s17, %s14_s17   ;;  %s2077_s16 = sphi %s2112_s16, %s2506_s16   ;;  %s2073_s15 = sphi %s2110_s15, %s2505_s15  }
   0x3   : > { %p35_p1 = scmp.ge.s32.totalorder %s33_s18, 2  ;;  %p210_p2 = scmp.lt.s32.totalorder %s2081_s17, 3 }
   0x5   : > { %s2508_s18 = smov (%p35_p1, %s33_s18), 0  ;;  %p211_p3 = pnand %p1449_p0, %p210_p2 }
   0x6   : > { %v1980_v0 = vld [vmem:[%s2501_s1 + $0x40] sm:$0xff] (!%p211_p3)   ;;  %v2083_v1 = vmov (!%p211_p3), 0.0   ;;  %v1982_v3 = vld [vmem:[%s2501_s1 + $0x48] sm:$0xff] (!%p211_p3)   ;;  %vm2084_vm0 = vmmov (!%p211_p3), 0   ;;  %p251_p4 = scmp.lt.s32.totalorder (!%p211_p3), %s2073_s15, 1  ;;  %v1984_v5 = vld [vmem:[%s2501_s1 + $0x50] sm:$0xff] (!%p211_p3)  }
   0x7   : > { %214 = sbr.rel (%p211_p3) target bundleno = 391 (0x187), region = 36  ;;  %1744 = vmatprep.subr.bf16.mxu1 (!%p211_p3), %v2083_v1  ;;  %1824 = vmatprep.subr.bf16.mxu0 (!%p211_p3), %v2083_v1  ;;  %v1981_v2 = vld [vmem:[%s2501_s1 + $0x100] sm:$0xff] (!%p211_p3)   ;;  %v1983_v4 = vld [vmem:[%s2501_s1 + $0x108] sm:$0xff] (!%p211_p3)   ;;  %v1985_v6 = vld [vmem:[%s2501_s1 + $0x110] sm:$0xff] (!%p211_p3)  }
   0x8   : > { %1745 = vmatpush3.bf16.msra.mxu1 (!%p211_p3), %v1980_v0  ;;  %1760 = vmatprep.mubr.msk.bf16.mxu1 (!%p211_p3), %vm2084_vm0, %v2083_v1  ;;  %v1986_v7 = vld [vmem:[%s2501_s1 + $0x58] sm:$0xff] (!%p211_p3)   ;;  %v1988_v9 = vld [vmem:[%s2501_s1 + $0x60] sm:$0xff] (!%p211_p3)   ;;  %v1990_v13 = vld [vmem:[%s2501_s1 + $0x68] sm:$0xff] (!%p211_p3)  }
   0x9   : > { %1825 = vmatpush3.bf16.msra.mxu0 (!%p211_p3), %v1981_v2  ;;  %1746 = vmatprep.subr.bf16.mxu1 (!%p211_p3), %v2083_v1  ;;  %v1987_v8 = vld [vmem:[%s2501_s1 + $0x118] sm:$0xff] (!%p211_p3)   ;;  %v1989_v10 = vld [vmem:[%s2501_s1 + $0x120] sm:$0xff] (!%p211_p3)   ;;  %v1991_v17 = vld [vmem:[%s2501_s1 + $0x128] sm:$0xff] (!%p211_p3)  }
   0xa   : > { %1826 = vmatprep.subr.bf16.mxu0 (!%p211_p3), %v2083_v1  ;;  %1840 = vmatprep.mubr.msk.bf16.mxu0 (!%p211_p3), %vm2084_vm0, %v2083_v1  ;;  %v1992_v19 = vld [vmem:[%s2501_s1 + $0x70] sm:$0xff] (!%p211_p3)   ;;  %v1994_v24 = vld [vmem:[%s2501_s1 + $0x78] sm:$0xff] (!%p211_p3)   ;;  %v1997_v31 = vld [vmem:[%s2501_s1] sm:$0xff] (!%p211_p3)  }
   0xb   : > { %v1993_v23 = vld [vmem:[%s2501_s1 + $0x130] sm:$0xff] (!%p211_p3)   ;;  %v1995_v29 = vld [vmem:[%s2501_s1 + $0x138] sm:$0xff] (!%p211_p3)   ;;  %v1999_v33 = vld [vmem:[%s2501_s1 + $0x140] sm:$0xff] (!%p211_p3)  }
   0xc   : > { %1747 = vmatpush3.bf16.msra.mxu1 (!%p211_p3), %v1982_v3  ;;  %v2000_v34 = vld [vmem:[%s2501_s1 + $0x8] sm:$0xff] (!%p211_p3)   ;;  %v2002_v36 = vld [vmem:[%s2501_s1 + $0x10] sm:$0xff] (!%p211_p3)   ;;  %v2004_v38 = vld [vmem:[%s2501_s1 + $0x18] sm:$0xff] (!%p211_p3)  }
   0xd   : > { %1827 = vmatpush3.bf16.msra.mxu0 (!%p211_p3), %v1983_v4  ;;  %1748 = vmatprep.subr.bf16.mxu1 (!%p211_p3), %v2083_v1  ;;  %v2001_v35 = vld [vmem:[%s2501_s1 + $0x148] sm:$0xff] (!%p211_p3)   ;;  %v2003_v37 = vld [vmem:[%s2501_s1 + $0x150] sm:$0xff] (!%p211_p3)   ;;  %v2005_v39 = vld [vmem:[%s2501_s1 + $0x158] sm:$0xff] (!%p211_p3)  }
   0xe   : > { %s2510_s15 = smov (!%p251_p4, %s2073_s15), 1  ;;  %1828 = vmatprep.subr.bf16.mxu0 %v2083_v1  ;;  %v2006_v40 = vld [vmem:[%s2501_s1 + $0x20] sm:$0xff]   ;;  %v2008_v42 = vld [vmem:[%s2501_s1 + $0x28] sm:$0xff]   ;;  %v2010_v46 = vld [vmem:[%s2501_s1 + $0x30] sm:$0xff]  }
   0xf   : > { %s1953_s5 = smul.u32 12, %s2510_s15  ;;  %v2007_v41 = vld [vmem:[%s2501_s1 + $0x160] sm:$0xff]   ;;  %v2009_v44 = vld [vmem:[%s2501_s1 + $0x168] sm:$0xff]   ;;  %v2011_v47 = vld [vmem:[%s2501_s1 + $0x170] sm:$0xff]   ;;  %s1451_s22 = sshll.u32 %s2510_s15, 2 }
  0x10   : > { %1749 = vmatpush3.bf16.msra.mxu1 %v1984_v5  ;;  %v2012_v49 = vld [vmem:[%s2501_s1 + $0x38] sm:$0xff]   ;;  %v2014_v52 = vld [vmem:[%s2501_s1 + $0x80] sm:$0xff]   ;;  %v2017_v55 = vld [vmem:[%s2501_s1 + $0x88] sm:$0xff]   ;;  %s275_s25 = scalar_lea.vmem %s2504_s4, %s1451_s22 }
  0x11   : > { %1829 = vmatpush3.bf16.msra.mxu0 %v1985_v6  ;;  %1750 = vmatprep.subr.bf16.mxu1 %v2083_v1  ;;  %s2170_s12 = scalar_lea.vmem %s2500_s0, %s1953_s5  ;;  %v2013_v51 = vld [vmem:[%s2501_s1 + $0x178] sm:$0xff]   ;;  %v2016_v54 = vld [vmem:[%s2501_s1 + $0x180] sm:$0xff]   ;;  %v2018_v57 = vld [vmem:[%s2501_s1 + $0x188] sm:$0xff]  }
  0x12   : > { %1830 = vmatprep.subr.bf16.mxu0 %v2083_v1  ;;  %v2181_v11 = vld [vmem:[%s2170_s12] sm:$0xf]  ;;  %v2184_v12 = vld [vmem:[%s2170_s12 + $0x4] sm:$0x1]  ;;  %v2019_v59 = vld [vmem:[%s2501_s1 + $0x90] sm:$0xff]  }
  0x13   : > { %v1468_v14 = vcombine.low %v2181_v11, %v2184_v12  ;;  %v2192_v15 = vld [vmem:[%s2170_s12] sm:$0xc]  ;;  %v2195_v16 = vld [vmem:[%s2170_s12 + $0x4] sm:$0x7]  ;;  %v2020_v60 = vld [vmem:[%s2501_s1 + $0x190] sm:$0xff]  }
  0x14   : > { %1751 = vmatpush3.bf16.msra.mxu1 %v1986_v7  ;;  %v1551_v18 = vcombine.low %v2192_v15, %v2195_v16  ;;  %v2268_v43 = vld [vmem:[%s2170_s12] sm:$0xe]  ;;  %v2308_v56 = vld [vmem:[%s2170_s12 + $0x4] sm:$0x3]  ;;  %v2021_v61 = vld [vmem:[%s2501_s1 + $0x98] sm:$0xff]  }
  0x15   : > { %1831 = vmatpush3.bf16.msra.mxu0 %v1987_v8  ;;  %1752 = vmatprep.subr.bf16.mxu1 %v2083_v1  ;;  %v320_v20 = vshll.u32 %v1468_v14, 16  ;;  %v318_v25 = vshrl.u32 %v1468_v14, 16  ;;  %v1501_v45 = vcombine.low %v2268_v43, %v2184_v12  ;;  %v847_v48 = vld [vmem:[%s2170_s12] sm:$0x8]  ;;  %v1526_v58 = vcombine.low %v2192_v15, %v2308_v56  ;;  %v2022_v62 = vld [vmem:[%s2501_s1 + $0x198] sm:$0xff]   ;;  %v2025_v2 = vld [vmem:[%s2501_s1 + $0xa8] sm:$0xff]  }
  0x16   : > { %1832 = vmatprep.subr.bf16.mxu0 %v2083_v1  ;;  %v750_v21 = vshrl.u32 %v1551_v18, 16  ;;  %v753_v22 = vshll.u32 %v1551_v18, 16  ;;  %v1576_v50 = vcombine.low %v847_v48, %v2195_v16  ;;  %v2023_v63 = vld [vmem:[%s2501_s1 + $0xa0] sm:$0xff]   ;;  %v2026_v3 = vld [vmem:[%s2501_s1 + $0x1a8] sm:$0xff]   ;;  %v2027_v4 = vld [vmem:[%s2501_s1 + $0xb0] sm:$0xff]  }
  0x17   : > { %v322_v26 = vrot.slane %v320_v20, 1  ;;  %v2024_v0 = vld [vmem:[%s2501_s1 + $0x1a0] sm:$0xff]   ;;  %v2028_v5 = vld [vmem:[%s2501_s1 + $0x1b0] sm:$0xff]   ;;  %v2029_v6 = vld [vmem:[%s2501_s1 + $0xb8] sm:$0xff]   ;;  %v522_v8 = vrot.slane %v1501_v45, 1 }
  0x18   : > { %1753 = vmatpush3.bf16.msra.mxu1 %v1988_v9  ;;  %v752_v27 = vrot.slane %v750_v21, 2  ;;  %v755_v28 = vrot.slane %v753_v22, 3  ;;  %v868_v53 = vrot.slane %v1576_v50, 3  ;;  %v2030_v7 = vld [vmem:[%s2501_s1 + $0x1b8] sm:$0xff]   ;;  %v2032_v9 = vld [vmem:[%s2501_s1 + $0xc0] sm:$0xff]   ;;  %v2034_v12 = vld [vmem:[%s2501_s1 + $0xc8] sm:$0xff]  }
  0x19   : > { %1833 = vmatpush3.bf16.msra.mxu0 %v1989_v10  ;;  %1754 = vmatprep.subr.bf16.mxu1 %v2083_v1  ;;  %v323_v30 = vor.u32 %v322_v26, %v318_v25  ;;  %v959_v10 = vld [vmem:[%s2170_s12 + $0x4] sm:$0xf]  ;;  %v2036_v14 = vld [vmem:[%s2501_s1 + $0xd0] sm:$0xff]   ;;  %v2039_v18 = vld [vmem:[%s2501_s1 + $0x1d8] sm:$0xff]  }
  0x1a   : > { %1834 = vmatprep.subr.bf16.mxu0 %v2083_v1  ;;  %v756_v32 = vor.u32 %v755_v28, %v752_v27  ;;  %v2037_v16 = vld [vmem:[%s2501_s1 + $0x1d0] sm:$0xff]   ;;  %v2041_v20 = vld [vmem:[%s2501_s1 + $0x1e0] sm:$0xff]   ;;  %v1067_v22 = vld [vmem:[%s2170_s12 + $0x8] sm:$0x1] }
  0x1b   : > { %v1066_v21 = vld [vmem:[%s2170_s12 + $0x4] sm:$0xf]  ;;  %v2043_v25 = vld [vmem:[%s2501_s1 + $0x1e8] sm:$0xff]   ;;  %v2044_v26 = vld [vmem:[%s2501_s1 + $0xf0] sm:$0xff]  }
  0x1c   : > { %1755 = vmatpush3.bf16.msra.mxu1 %v1990_v13  ;;  %v2035_v13 = vld [vmem:[%s2501_s1 + $0x1c8] sm:$0xff]   ;;  %v2045_v28 = vld [vmem:[%s2501_s1 + $0x1f0] sm:$0xff]   ;;  %v2057_v43 = vld [vmem:[%s2501_s1 + $0x238] sm:$0xff]  }
  0x1d   : > { %1835 = vmatpush3.bf16.msra.mxu0 %v1991_v17  ;;  %1756 = vmatprep.subr.bf16.mxu1 %v2083_v1  ;;  %v2038_v17 = vld [vmem:[%s2501_s1 + $0xd8] sm:$0xff]   ;;  %v2052_v15 = vld [vmem:[%s2501_s1 + $0x210] sm:$0xff]   ;;  %v1659_v50 = vld [vmem:[%s2502_s2] ss:$0 sm:$0xff] }
  0x1e   : > { %1836 = vmatprep.subr.bf16.mxu0 %v2083_v1 }
  0x20   : > { %1757 = vmatpush3.bf16.msra.mxu1 %v1992_v19  ;;  %v2040_v19 = vld [vmem:[%s2501_s1 + $0xe0] sm:$0xff]  }
  0x21   : > { %1837 = vmatpush3.bf16.msra.mxu0 %v1993_v23  ;;  %1758 = vmatprep.subr.bf16.mxu1 %v2083_v1  ;;  %v2042_v23 = vld [vmem:[%s2501_s1 + $0xe8] sm:$0xff]  }
  0x22   : > { %1838 = vmatprep.subr.bf16.mxu0 %v2083_v1 }
  0x24   : > { %1759 = vmatpush3.bf16.msra.mxu1 %v1994_v24  ;;  %v1625_v24 = vcombine.low %v1066_v21, %v1067_v22 }
  0x25   : > { %1839 = vmatpush3.bf16.msra.mxu0 %v1995_v29  ;;  %1764 = vmatprep.subr.bf16.mxu1 %v2083_v1  ;;  %v2046_v29 = vld [vmem:[%s2501_s1 + $0xf8] sm:$0xff]  }
  0x26   : > { %1844 = vmatprep.subr.bf16.mxu0 %v2083_v1  ;;  %v1093_v27 = vshll.u32 %v1625_v24, 16 }
  0x27   : > { %1761 = vmatmul.mubr.bf16.vlgmr.msra.gmra.mrb[0].mxu1 %v323_v30  ;;  %v1091_v30 = vshrl.u32 %v1625_v24, 16 }
  0x28   : > { %1765 = vmatpush3.bf16.msra.mxu1 %v1997_v31  ;;  %1841 = vmatmul.mubr.bf16.vlgmr.msra.gmra.mrb[0].mxu0 %v756_v32  ;;  %v1095_v31 = vrot.slane %v1093_v27, 1  ;;  %v2047_v32 = vld [vmem:[%s2501_s1 + $0x1f8] sm:$0xff]  }
  0x29   : > { %1845 = vmatpush3.bf16.msra.mxu0 %v1999_v33  ;;  %1766 = vmatprep.subr.bf16.mxu1 %v2083_v1  ;;  %v637_v33 = vrot.slane %v1526_v58, 2 }
  0x2a   : > { %1846 = vmatprep.subr.bf16.mxu0 %v2083_v1  ;;  %1780 = vmatprep.mubr.msk.bf16.mxu1 %vm2084_vm0, %v2083_v1 }
  0x2b   : > { %1860 = vmatprep.mubr.msk.bf16.mxu0 %vm2084_vm0, %v2083_v1 }
  0x2c   : > { %1767 = vmatpush3.bf16.msra.mxu1 %v2000_v34  ;;  %v1096_v34 = vor.u32 %v1095_v31, %v1091_v30 }
  0x2d   : > { %1847 = vmatpush3.bf16.msra.mxu0 %v2001_v35  ;;  %1768 = vmatprep.subr.bf16.mxu1 %v2083_v1  ;;  %v2050_v35 = vld [vmem:[%s2501_s1 + $0x200] sm:$0xff]  }
  0x2e   : > { %1848 = vmatprep.subr.bf16.mxu0 %v2083_v1 }
  0x30   : > { %1769 = vmatpush3.bf16.msra.mxu1 %v2002_v36  ;;  %v2051_v36 = vld [vmem:[%s2501_s1 + $0x208] sm:$0xff]  }
  0x31   : > { %1849 = vmatpush3.bf16.msra.mxu0 %v2003_v37  ;;  %1770 = vmatprep.subr.bf16.mxu1 %v2083_v1  ;;  %v2053_v37 = vld [vmem:[%s2501_s1 + $0x218] sm:$0xff]  }
  0x32   : > { %1850 = vmatprep.subr.bf16.mxu0 %v2083_v1 }
  0x34   : > { %1771 = vmatpush3.bf16.msra.mxu1 %v2004_v38  ;;  %v2054_v38 = vld [vmem:[%s2501_s1 + $0x220] sm:$0xff]  }
  0x35   : > { %1851 = vmatpush3.bf16.msra.mxu0 %v2005_v39  ;;  %1772 = vmatprep.subr.bf16.mxu1 %v2083_v1  ;;  %v2055_v39 = vld [vmem:[%s2501_s1 + $0x228] sm:$0xff]  }
  0x36   : > { %1852 = vmatprep.subr.bf16.mxu0 %v2083_v1 }
  0x38   : > { %1773 = vmatpush3.bf16.msra.mxu1 %v2006_v40  ;;  %v2056_v40 = vld [vmem:[%s2501_s1 + $0x230] sm:$0xff]  }
  0x39   : > { %1853 = vmatpush3.bf16.msra.mxu0 %v2007_v41  ;;  %1774 = vmatprep.subr.bf16.mxu1 %v2083_v1  ;;  %v1187_v41 = vld [vmem:[%s2170_s12 + $0x4] sm:$0xe] }
  0x3a   : > { %1854 = vmatprep.subr.bf16.mxu0 %v2083_v1 }
  0x3c   : > { %1775 = vmatpush3.bf16.msra.mxu1 %v2008_v42  ;;  %v1650_v42 = vcombine.low %v1187_v41, %v1067_v22 }
  0x3d   : > { %1855 = vmatpush3.bf16.msra.mxu0 %v2009_v44  ;;  %1776 = vmatprep.subr.bf16.mxu1 %v2083_v1 }
  0x3e   : > { %1856 = vmatprep.subr.bf16.mxu0 %v2083_v1  ;;  %v1208_v44 = vrot.slane %v1650_v42, 1 }
  0x40   : > { %1777 = vmatpush3.bf16.msra.mxu1 %v2010_v46 }
  0x41   : > { %1857 = vmatpush3.bf16.msra.mxu0 %v2011_v47  ;;  %1778 = vmatprep.subr.bf16.mxu1 %v2083_v1 }
  0x42   : > { %1858 = vmatprep.subr.bf16.mxu0 %v2083_v1 }
  0x44   : > { %1779 = vmatpush3.bf16.msra.mxu1 %v2012_v49 }
  0x45   : > { %1859 = vmatpush3.bf16.msra.mxu0 %v2013_v51  ;;  %1784 = vmatprep.subr.bf16.mxu1 %v2083_v1 }
  0x46   : > { %1864 = vmatprep.subr.bf16.mxu0 %v2083_v1 }
  0x47   : > { %1781 = vmatmul.mubr.bf16.vlgmr.msra.gmra.mrb[0].mxu1 %v2181_v11  ;;  %v2033_v11 = vld [vmem:[%s2501_s1 + $0x1c0] sm:$0xff]  }
  0x48   : > { %1785 = vmatpush3.bf16.msra.mxu1 %v2014_v52  ;;  %1861 = vmatmul.mubr.bf16.vlgmr.msra.gmra.mrb[0].mxu0 %v868_v53  ;;  %v1660_v53 = vld [vmem:[%s2503_s3] ss:$0 sm:$0xff] }
  0x49   : > { %1865 = vmatpush3.bf16.msra.mxu0 %v2016_v54  ;;  %1786 = vmatprep.subr.bf16.mxu1 %v2083_v1 }
  0x4a   : > { %1866 = vmatprep.subr.bf16.mxu0 %v2083_v1  ;;  %1800 = vmatprep.mubr.msk.bf16.mxu1 %vm2084_vm0, %v2083_v1 }
  0x4b   : > { %1880 = vmatprep.mubr.msk.bf16.mxu0 %vm2084_vm0, %v2083_v1 }
  0x4c   : > { %1787 = vmatpush3.bf16.msra.mxu1 %v2017_v55 }
  0x4d   : > { %1867 = vmatpush3.bf16.msra.mxu0 %v2018_v57  ;;  %1788 = vmatprep.subr.bf16.mxu1 %v2083_v1 }
  0x4e   : > { %1868 = vmatprep.subr.bf16.mxu0 %v2083_v1 }
  0x50   : > { %1789 = vmatpush3.bf16.msra.mxu1 %v2019_v59 }
  0x51   : > { %1869 = vmatpush3.bf16.msra.mxu0 %v2020_v60  ;;  %1790 = vmatprep.subr.bf16.mxu1 %v2083_v1 }
  0x52   : > { %1870 = vmatprep.subr.bf16.mxu0 %v2083_v1 }
  0x54   : > { %1791 = vmatpush3.bf16.msra.mxu1 %v2021_v61 }
  0x55   : > { %1871 = vmatpush3.bf16.msra.mxu0 %v2022_v62  ;;  %1792 = vmatprep.subr.bf16.mxu1 %v2083_v1 }
  0x56   : > { %1872 = vmatprep.subr.bf16.mxu0 %v2083_v1 }
  0x58   : > { %1793 = vmatpush3.bf16.msra.mxu1 %v2023_v63 }
  0x59   : > { %1873 = vmatpush3.bf16.msra.mxu0 %v2024_v0  ;;  %1794 = vmatprep.subr.bf16.mxu1 %v2083_v1 }
  0x5a   : > { %1874 = vmatprep.subr.bf16.mxu0 %v2083_v1 }
  0x5c   : > { %1795 = vmatpush3.bf16.msra.mxu1 %v2025_v2 }
  0x5d   : > { %1875 = vmatpush3.bf16.msra.mxu0 %v2026_v3  ;;  %1796 = vmatprep.subr.bf16.mxu1 %v2083_v1 }
  0x5e   : > { %1876 = vmatprep.subr.bf16.mxu0 %v2083_v1 }
  0x60   : > { %1797 = vmatpush3.bf16.msra.mxu1 %v2027_v4 }
  0x61   : > { %1877 = vmatpush3.bf16.msra.mxu0 %v2028_v5  ;;  %1798 = vmatprep.subr.bf16.mxu1 %v2083_v1 }
  0x62   : > { %1878 = vmatprep.subr.bf16.mxu0 %v2083_v1 }
  0x64   : > { %1799 = vmatpush3.bf16.msra.mxu1 %v2029_v6 }
  0x65   : > { %1879 = vmatpush3.bf16.msra.mxu0 %v2030_v7  ;;  %1804 = vmatprep.subr.bf16.mxu1 %v2083_v1 }
  0x66   : > { %1884 = vmatprep.subr.bf16.mxu0 %v2083_v1 }
  0x67   : > { %1801 = vmatmul.mubr.bf16.vlgmr.msra.gmra.mrb[0].mxu1 %v522_v8 }
  0x68   : > { %1805 = vmatpush3.bf16.msra.mxu1 %v2032_v9  ;;  %1881 = vmatmul.mubr.bf16.vlgmr.msra.gmra.mrb[0].mxu0 %v959_v10 }
  0x69   : > { %1885 = vmatpush3.bf16.msra.mxu0 %v2033_v11  ;;  %1806 = vmatprep.subr.bf16.mxu1 %v2083_v1 }
  0x6a   : > { %1886 = vmatprep.subr.bf16.mxu0 %v2083_v1  ;;  %1820 = vmatprep.mubr.msk.bf16.mxu1 %vm2084_vm0, %v2083_v1 }
  0x6b   : > { %1900 = vmatprep.mubr.msk.bf16.mxu0 %vm2084_vm0, %v2083_v1 }
  0x6c   : > { %1807 = vmatpush3.bf16.msra.mxu1 %v2034_v12 }
  0x6d   : > { %1887 = vmatpush3.bf16.msra.mxu0 %v2035_v13  ;;  %1808 = vmatprep.subr.bf16.mxu1 %v2083_v1 }
  0x6e   : > { %1888 = vmatprep.subr.bf16.mxu0 %v2083_v1 }
  0x70   : > { %1809 = vmatpush3.bf16.msra.mxu1 %v2036_v14 }
  0x71   : > { %1889 = vmatpush3.bf16.msra.mxu0 %v2037_v16  ;;  %1810 = vmatprep.subr.bf16.mxu1 %v2083_v1 }
  0x72   : > { %1890 = vmatprep.subr.bf16.mxu0 %v2083_v1 }
  0x74   : > { %1811 = vmatpush3.bf16.msra.mxu1 %v2038_v17 }
  0x75   : > { %1891 = vmatpush3.bf16.msra.mxu0 %v2039_v18  ;;  %1812 = vmatprep.subr.bf16.mxu1 %v2083_v1 }
  0x76   : > { %1892 = vmatprep.subr.bf16.mxu0 %v2083_v1 }
  0x78   : > { %1813 = vmatpush3.bf16.msra.mxu1 %v2040_v19 }
  0x79   : > { %1893 = vmatpush3.bf16.msra.mxu0 %v2041_v20  ;;  %1814 = vmatprep.subr.bf16.mxu1 %v2083_v1 }
  0x7a   : > { %1894 = vmatprep.subr.bf16.mxu0 %v2083_v1 }
  0x7c   : > { %1815 = vmatpush3.bf16.msra.mxu1 %v2042_v23 }
  0x7d   : > { %1895 = vmatpush3.bf16.msra.mxu0 %v2043_v25  ;;  %1816 = vmatprep.subr.bf16.mxu1 %v2083_v1 }
  0x7e   : > { %1896 = vmatprep.subr.bf16.mxu0 %v2083_v1 }
  0x80   : > { %1817 = vmatpush3.bf16.msra.mxu1 %v2044_v26 }
  0x81   : > { %1897 = vmatpush3.bf16.msra.mxu0 %v2045_v28  ;;  %1818 = vmatprep.subr.bf16.mxu1 %v2083_v1 }
  0x82   : > { %1898 = vmatprep.subr.bf16.mxu0 %v2083_v1 }
  0x84   : > { %1819 = vmatpush3.bf16.msra.mxu1 %v2046_v29 }
  0x85   : > { %1899 = vmatpush3.bf16.msra.mxu0 %v2047_v32 }
  0x86   : > { %1904 = vmatprep.subr.bf16.mxu0 %v2083_v1 }
  0x87   : > { %1821 = vmatmul.mubr.bf16.vlgmr.msra.gmra.mrb[0].mxu1 %v637_v33 }
  0x88   : > { %1901 = vmatmul.mubr.bf16.vlgmr.msra.gmra.mrb[0].mxu0 %v1096_v34 }
  0x89   : > { %1905 = vmatpush3.bf16.msra.mxu0 %v2050_v35  ;;  %1920 = vmatprep.mubr.msk.bf16.mxu0 %vm2084_vm0, %v2083_v1 }
  0x8a   : > { %1906 = vmatprep.subr.bf16.mxu0 %v2083_v1 }
  0x8d   : > { %1907 = vmatpush3.bf16.msra.mxu0 %v2051_v36 }
  0x8e   : > { %1908 = vmatprep.subr.bf16.mxu0 %v2083_v1 }
  0x91   : > { %1909 = vmatpush3.bf16.msra.mxu0 %v2052_v15 }
  0x92   : > { %1910 = vmatprep.subr.bf16.mxu0 %v2083_v1 }
  0x95   : > { %1911 = vmatpush3.bf16.msra.mxu0 %v2053_v37 }
  0x96   : > { %1912 = vmatprep.subr.bf16.mxu0 %v2083_v1 }
  0x99   : > { %1913 = vmatpush3.bf16.msra.mxu0 %v2054_v38 }
  0x9a   : > { %1914 = vmatprep.subr.bf16.mxu0 %v2083_v1 }
  0x9d   : > { %1915 = vmatpush3.bf16.msra.mxu0 %v2055_v39 }
  0x9e   : > { %1916 = vmatprep.subr.bf16.mxu0 %v2083_v1 }
  0xa1   : > { %1917 = vmatpush3.bf16.msra.mxu0 %v2056_v40 }
  0xa2   : > { %1918 = vmatprep.subr.bf16.mxu0 %v2083_v1 }
  0xa5   : > { %1919 = vmatpush3.bf16.msra.mxu0 %v2057_v43 }
  0xa8   : > { %1921 = vmatmul.mubr.bf16.vlgmr.msra.gmra.mrb[0].mxu0 %v1208_v44 }
 0x15a   : > { %v721_v45 = vpop.f32.mrb[0].mxu1 }
 0x15b   : > { %v1822_v46 = vpop.f32.mrb[1].mxu1 }
 0x15c   : > { %v724_v47 = vpop.f32.mrb[2].mxu1 }
 0x15d   : > { %v1823_v48 = vpop.f32.mrb[3].mxu1 }
 0x17b   : > { %v1292_v49 = vpop.f32.mrb[0].mxu0 }
 0x17c   : > { %v1924_v51 = vadd.f32 %v1292_v49, %v721_v45  ;;  %v1922_v52 = vpop.f32.mrb[1].mxu0 }
 0x17d   : > { %v1295_v1 = vpop.f32.mrb[2].mxu0 }
 0x17e   : > { %v1306_v54 = vmul.f32 %v1924_v51, %v1659_v50  ;;  %v1923_v55 = vpop.f32.mrb[3].mxu0 }
 0x180   : > { %v1314_v56 = vadd.f32 %v1660_v53, %v1306_v54 }
 0x182   : > { %v1315_v57 = vmax.f32 %v1314_v56, 0.0 }
 0x184   : > { %v1316_v58 = vpack.c.bf16 %v1315_v57, %v1315_v57 }
 0x186   : > { %1317 = vst [vmem:[%s275_s25] sm:$0xf] %v1316_v58 }
 0x187 PF: > { %s14_s17 = sadd.s32 1, %s2081_s17   ;;  %s2505_s15 = smov %s2077_s16 }
 0x188   : > { %p11_p5 = scmp.ge.s32.totalorder %s14_s17, 4   ;;  %s2506_s16 = smov %s2508_s18 }
 0x18a   :  { %13 = sbr.rel (!%p11_p5) target bundleno = 2 (0x2), region = 83 }

// kernel: resnet_encoder_forward.32
= control target key start
LH: loop header
LB: loop body
LE: loop exit
PB: predicated region body
PF: predicated region fallthrough
CT: control target
= control target key end

     0   :  { %s2108_s15 = smov 0   ;;  %s2110_s16 = smov 0   ;;  %s2477_s0 = inlined_call_operand.vmem [shape: bf16[2,4,16,128], index: 0, kind: input, shape index: {}]   ;;  %s2478_s1 = inlined_call_operand.vmem [shape: bf16[9,128,128], index: 1, kind: input, shape index: {}]   ;;  %s2479_s2 = inlined_call_operand.vmem [shape: f32[1,128], index: 2, kind: input, shape index: {}]   ;;  %s2480_s3 = inlined_call_operand.vmem [shape: f32[1,128], index: 3, kind: input, shape index: {}]   ;;  %s2481_s4 = inlined_call_operand.vmem [shape: bf16[2,8,128], index: 4, kind: output, shape index: {}]  }
   0x1   :  { %s2112_s17 = smov 0  }
   0x2 LB: > { %s33_s18 = sadd.s32 1, %s2075_s16  ;;  %p1443_p0 = scmp.ge.s32.totalorder %s2079_s17, 1  ;;  %s2079_s17 = sphi %s2112_s17, %s14_s17   ;;  %s2075_s16 = sphi %s2110_s16, %s2483_s16   ;;  %s2071_s15 = sphi %s2108_s15, %s2482_s15  }
   0x3   : > { %p35_p1 = scmp.ge.s32.totalorder %s33_s18, 2  ;;  %p210_p2 = scmp.lt.s32.totalorder %s2079_s17, 3 }
   0x5   : > { %s2485_s18 = smov (%p35_p1, %s33_s18), 0  ;;  %p211_p3 = pnand %p1443_p0, %p210_p2 }
   0x6   : > { %v1980_v0 = vld [vmem:[%s2478_s1 + $0x40] sm:$0xff] (!%p211_p3)   ;;  %v2081_v1 = vmov (!%p211_p3), 0.0   ;;  %v1982_v3 = vld [vmem:[%s2478_s1 + $0x48] sm:$0xff] (!%p211_p3)   ;;  %vm2082_vm0 = vmmov (!%p211_p3), 0   ;;  %v1984_v5 = vld [vmem:[%s2478_s1 + $0x50] sm:$0xff] (!%p211_p3)   ;;  %p251_p4 = scmp.lt.s32.totalorder (!%p211_p3), %s2071_s15, 1 }
   0x7   : > { %214 = sbr.rel (%p211_p3) target bundleno = 391 (0x187), region = 36  ;;  %1745 = vmatprep.subr.bf16.mxu1 (!%p211_p3), %v2081_v1  ;;  %1825 = vmatprep.subr.bf16.mxu0 (!%p211_p3), %v2081_v1  ;;  %v1981_v2 = vld [vmem:[%s2478_s1 + $0x100] sm:$0xff] (!%p211_p3)   ;;  %v1983_v4 = vld [vmem:[%s2478_s1 + $0x108] sm:$0xff] (!%p211_p3)   ;;  %v1985_v6 = vld [vmem:[%s2478_s1 + $0x110] sm:$0xff] (!%p211_p3)  }
   0x8   : > { %1746 = vmatpush3.bf16.msra.mxu1 (!%p211_p3), %v1980_v0  ;;  %1761 = vmatprep.mubr.msk.bf16.mxu1 (!%p211_p3), %vm2082_vm0, %v2081_v1  ;;  %v1986_v7 = vld [vmem:[%s2478_s1 + $0x58] sm:$0xff] (!%p211_p3)   ;;  %v1988_v9 = vld [vmem:[%s2478_s1 + $0x60] sm:$0xff] (!%p211_p3)   ;;  %v1990_v11 = vld [vmem:[%s2478_s1 + $0x68] sm:$0xff] (!%p211_p3)  }
   0x9   : > { %1826 = vmatpush3.bf16.msra.mxu0 (!%p211_p3), %v1981_v2  ;;  %1747 = vmatprep.subr.bf16.mxu1 (!%p211_p3), %v2081_v1  ;;  %v1987_v8 = vld [vmem:[%s2478_s1 + $0x118] sm:$0xff] (!%p211_p3)   ;;  %v1989_v10 = vld [vmem:[%s2478_s1 + $0x120] sm:$0xff] (!%p211_p3)   ;;  %v1991_v12 = vld [vmem:[%s2478_s1 + $0x128] sm:$0xff] (!%p211_p3)  }
   0xa   : > { %1827 = vmatprep.subr.bf16.mxu0 (!%p211_p3), %v2081_v1  ;;  %1841 = vmatprep.mubr.msk.bf16.mxu0 (!%p211_p3), %vm2082_vm0, %v2081_v1  ;;  %v1992_v13 = vld [vmem:[%s2478_s1 + $0x70] sm:$0xff] (!%p211_p3)   ;;  %v1994_v15 = vld [vmem:[%s2478_s1 + $0x78] sm:$0xff] (!%p211_p3)   ;;  %v1996_v18 = vld [vmem:[%s2478_s1] sm:$0xff] (!%p211_p3)  }
   0xb   : > { %v1993_v14 = vld [vmem:[%s2478_s1 + $0x130] sm:$0xff] (!%p211_p3)   ;;  %v1995_v16 = vld [vmem:[%s2478_s1 + $0x138] sm:$0xff] (!%p211_p3)   ;;  %v1997_v20 = vld [vmem:[%s2478_s1 + $0x140] sm:$0xff] (!%p211_p3)  }
   0xc   : > { %1748 = vmatpush3.bf16.msra.mxu1 (!%p211_p3), %v1982_v3  ;;  %v1998_v21 = vld [vmem:[%s2478_s1 + $0x8] sm:$0xff] (!%p211_p3)   ;;  %v2000_v23 = vld [vmem:[%s2478_s1 + $0x10] sm:$0xff] (!%p211_p3)   ;;  %v2002_v25 = vld [vmem:[%s2478_s1 + $0x18] sm:$0xff] (!%p211_p3)  }
   0xd   : > { %1828 = vmatpush3.bf16.msra.mxu0 (!%p211_p3), %v1983_v4  ;;  %1749 = vmatprep.subr.bf16.mxu1 (!%p211_p3), %v2081_v1  ;;  %v1999_v22 = vld [vmem:[%s2478_s1 + $0x148] sm:$0xff] (!%p211_p3)   ;;  %v2001_v24 = vld [vmem:[%s2478_s1 + $0x150] sm:$0xff] (!%p211_p3)   ;;  %v2003_v26 = vld [vmem:[%s2478_s1 + $0x158] sm:$0xff] (!%p211_p3)  }
   0xe   : > { %1829 = vmatprep.subr.bf16.mxu0 %v2081_v1  ;;  %s2487_s15 = smov (!%p251_p4, %s2071_s15), 1  ;;  %v2004_v27 = vld [vmem:[%s2478_s1 + $0x20] sm:$0xff]   ;;  %v2006_v30 = vld [vmem:[%s2478_s1 + $0x28] sm:$0xff]   ;;  %v2008_v32 = vld [vmem:[%s2478_s1 + $0x30] sm:$0xff]  }
   0xf   : > { %s1663_s23 = sshll.u32 %s2487_s15, 5  ;;  %v2005_v28 = vld [vmem:[%s2478_s1 + $0x160] sm:$0xff]   ;;  %v2007_v31 = vld [vmem:[%s2478_s1 + $0x168] sm:$0xff]   ;;  %v2009_v34 = vld [vmem:[%s2478_s1 + $0x170] sm:$0xff]   ;;  %s1446_s21 = sshll.u32 %s2487_s15, 2 }
  0x10   : > { %1750 = vmatpush3.bf16.msra.mxu1 %v1984_v5  ;;  %s2196_s28 = scalar_lea.vmem %s2477_s0, %s1663_s23  ;;  %v2010_v35 = vld [vmem:[%s2478_s1 + $0x38] sm:$0xff]   ;;  %v2012_v40 = vld [vmem:[%s2478_s1 + $0x80] sm:$0xff]   ;;  %v2015_v43 = vld [vmem:[%s2478_s1 + $0x88] sm:$0xff]   ;;  %s275_s24 = scalar_lea.vmem %s2481_s4, %s1446_s21 }
  0x11   : > { %1830 = vmatpush3.bf16.msra.mxu0 %v1985_v6  ;;  %1751 = vmatprep.subr.bf16.mxu1 %v2081_v1  ;;  %v1447_v17 = vld [vmem:[%s2196_s28 + $0x8] sm:$0xf]  ;;  %v1530_v19 = vld [vmem:[%s2196_s28 + $0x18] sm:$0xf]  ;;  %v2013_v29 = vld [vmem:[%s2196_s28 + $0x10] sm:$0x1f]  }
  0x12   : > { %1831 = vmatprep.subr.bf16.mxu0 %v2081_v1  ;;  %v853_v33 = vshll.u32 %v2013_v29, 16  ;;  %v851_v36 = vshrl.u32 %v2013_v29, 16  ;;  %v2011_v38 = vld [vmem:[%s2478_s1 + $0x178] sm:$0xff]   ;;  %v277_v39 = vld [vmem:[%s2196_s28] sm:$0xf]  ;;  %v2016_v44 = vld [vmem:[%s2478_s1 + $0x188] sm:$0xff]  }
  0x13   : > { %v2014_v42 = vld [vmem:[%s2478_s1 + $0x180] sm:$0xff]   ;;  %v2017_v45 = vld [vmem:[%s2478_s1 + $0x90] sm:$0xff]   ;;  %v2019_v47 = vld [vmem:[%s2478_s1 + $0x98] sm:$0xff]  }
  0x14   : > { %1752 = vmatpush3.bf16.msra.mxu1 %v1986_v7  ;;  %v855_v37 = vrot.slane %v853_v33, 1  ;;  %v2018_v46 = vld [vmem:[%s2478_s1 + $0x190] sm:$0xff]   ;;  %v2020_v48 = vld [vmem:[%s2478_s1 + $0x198] sm:$0xff]   ;;  %v2021_v49 = vld [vmem:[%s2478_s1 + $0xa0] sm:$0xff]  }
  0x15   : > { %1832 = vmatpush3.bf16.msra.mxu0 %v1987_v8  ;;  %1753 = vmatprep.subr.bf16.mxu1 %v2081_v1  ;;  %v489_v50 = vld [vmem:[%s2196_s28] sm:$0xf]  ;;  %v490_v51 = vld [vmem:[%s2196_s28 + $0x4] sm:$0x1]  ;;  %v2023_v54 = vld [vmem:[%s2478_s1 + $0xa8] sm:$0xff]  }
  0x16   : > { %1833 = vmatprep.subr.bf16.mxu0 %v2081_v1  ;;  %v856_v41 = vor.u32 %v855_v37, %v851_v36  ;;  %v2022_v52 = vld [vmem:[%s2478_s1 + $0x1a0] sm:$0xff]   ;;  %v1496_v53 = vcombine.low %v489_v50, %v490_v51  ;;  %v2024_v55 = vld [vmem:[%s2478_s1 + $0x1a8] sm:$0xff]   ;;  %v2025_v57 = vld [vmem:[%s2478_s1 + $0xb0] sm:$0xff]  }
  0x17   : > { %v2026_v58 = vld [vmem:[%s2478_s1 + $0x1b0] sm:$0xff]   ;;  %v2340_v59 = vld [vmem:[%s2196_s28] sm:$0xe]  ;;  %v2027_v62 = vld [vmem:[%s2478_s1 + $0xb8] sm:$0xff]  }
  0x18   : > { %1754 = vmatpush3.bf16.msra.mxu1 %v1988_v9  ;;  %v516_v56 = vshll.u32 %v1496_v53, 16  ;;  %v514_v60 = vshrl.u32 %v1496_v53, 16  ;;  %v1598_v63 = vcombine.low %v2340_v59, %v490_v51  ;;  %v2028_v0 = vld [vmem:[%s2478_s1 + $0x1b8] sm:$0xff]   ;;  %v2030_v3 = vld [vmem:[%s2478_s1 + $0xc0] sm:$0xff]   ;;  %v2034_v6 = vld [vmem:[%s2478_s1 + $0xc8] sm:$0xff]  }
  0x19   : > { %1834 = vmatpush3.bf16.msra.mxu0 %v1989_v10  ;;  %1755 = vmatprep.subr.bf16.mxu1 %v2081_v1  ;;  %v2033_v5 = vld [vmem:[%s2478_s1 + $0x1c0] sm:$0xff]   ;;  %v2035_v7 = vld [vmem:[%s2478_s1 + $0x1c8] sm:$0xff]   ;;  %v2036_v8 = vld [vmem:[%s2478_s1 + $0xd0] sm:$0xff]  }
  0x1a   : > { %1835 = vmatprep.subr.bf16.mxu0 %v2081_v1  ;;  %v518_v61 = vrot.slane %v516_v56, 1  ;;  %v968_v4 = vrot.slane %v1598_v63, 1  ;;  %v2037_v9 = vld [vmem:[%s2478_s1 + $0x1d0] sm:$0xff]   ;;  %v2038_v10 = vld [vmem:[%s2478_s1 + $0xd8] sm:$0xff]  }
  0x1b   : > { %v2055_v33 = vld [vmem:[%s2478_s1 + $0x230] sm:$0xff]   ;;  %v2056_v36 = vld [vmem:[%s2478_s1 + $0x238] sm:$0xff]  }
  0x1c   : > { %1756 = vmatpush3.bf16.msra.mxu1 %v1990_v11  ;;  %v519_v2 = vor.u32 %v518_v61, %v514_v60  ;;  %v2039_v11 = vld [vmem:[%s2478_s1 + $0x1d8] sm:$0xff]  }
  0x1d   : > { %1836 = vmatpush3.bf16.msra.mxu0 %v1991_v12  ;;  %1757 = vmatprep.subr.bf16.mxu1 %v2081_v1  ;;  %v2040_v12 = vld [vmem:[%s2478_s1 + $0xe0] sm:$0xff]  }
  0x1e   : > { %1837 = vmatprep.subr.bf16.mxu0 %v2081_v1 }
  0x20   : > { %1758 = vmatpush3.bf16.msra.mxu1 %v1992_v13  ;;  %v2041_v13 = vld [vmem:[%s2478_s1 + $0x1e0] sm:$0xff]  }
  0x21   : > { %1838 = vmatpush3.bf16.msra.mxu0 %v1993_v14  ;;  %1759 = vmatprep.subr.bf16.mxu1 %v2081_v1  ;;  %v2042_v14 = vld [vmem:[%s2478_s1 + $0xe8] sm:$0xff]  }
  0x22   : > { %1839 = vmatprep.subr.bf16.mxu0 %v2081_v1 }
  0x24   : > { %1760 = vmatpush3.bf16.msra.mxu1 %v1994_v15  ;;  %v2043_v15 = vld [vmem:[%s2478_s1 + $0x1e8] sm:$0xff]  }
  0x25   : > { %1840 = vmatpush3.bf16.msra.mxu0 %v1995_v16  ;;  %1765 = vmatprep.subr.bf16.mxu1 %v2081_v1  ;;  %v2044_v16 = vld [vmem:[%s2478_s1 + $0xf0] sm:$0xff]  }
  0x26   : > { %1845 = vmatprep.subr.bf16.mxu0 %v2081_v1 }
  0x27   : > { %1762 = vmatmul.mubr.bf16.vlgmr.msra.gmra.mrb[0].mxu1 %v1447_v17  ;;  %v2045_v17 = vld [vmem:[%s2478_s1 + $0x1f0] sm:$0xff]  }
  0x28   : > { %1766 = vmatpush3.bf16.msra.mxu1 %v1996_v18  ;;  %1842 = vmatmul.mubr.bf16.vlgmr.msra.gmra.mrb[0].mxu0 %v1530_v19  ;;  %v2046_v18 = vld [vmem:[%s2478_s1 + $0xf8] sm:$0xff]   ;;  %v2048_v19 = vld [vmem:[%s2196_s28 + $0x8] sm:$0x1e]  }
  0x29   : > { %1846 = vmatpush3.bf16.msra.mxu0 %v1997_v20  ;;  %1767 = vmatprep.subr.bf16.mxu1 %v2081_v1  ;;  %v2047_v20 = vld [vmem:[%s2478_s1 + $0x1f8] sm:$0xff]  }
  0x2a   : > { %1847 = vmatprep.subr.bf16.mxu0 %v2081_v1  ;;  %1781 = vmatprep.mubr.msk.bf16.mxu1 %vm2082_vm0, %v2081_v1 }
  0x2b   : > { %1861 = vmatprep.mubr.msk.bf16.mxu0 %vm2082_vm0, %v2081_v1 }
  0x2c   : > { %1768 = vmatpush3.bf16.msra.mxu1 %v1998_v21  ;;  %v1505_v21 = vld [vmem:[%s2196_s28 + $0x10] sm:$0xf] }
  0x2d   : > { %1848 = vmatpush3.bf16.msra.mxu0 %v1999_v22  ;;  %1769 = vmatprep.subr.bf16.mxu1 %v2081_v1  ;;  %v1083_v22 = vrot.slane %v2048_v19, 1 }
  0x2e   : > { %1849 = vmatprep.subr.bf16.mxu0 %v2081_v1 }
  0x30   : > { %1770 = vmatpush3.bf16.msra.mxu1 %v2000_v23  ;;  %v2049_v23 = vld [vmem:[%s2478_s1 + $0x200] sm:$0xff]  }
  0x31   : > { %1850 = vmatpush3.bf16.msra.mxu0 %v2001_v24  ;;  %1771 = vmatprep.subr.bf16.mxu1 %v2081_v1  ;;  %v2050_v24 = vld [vmem:[%s2478_s1 + $0x208] sm:$0xff]  }
  0x32   : > { %1851 = vmatprep.subr.bf16.mxu0 %v2081_v1 }
  0x34   : > { %1772 = vmatpush3.bf16.msra.mxu1 %v2002_v25  ;;  %v2051_v25 = vld [vmem:[%s2478_s1 + $0x210] sm:$0xff]  }
  0x35   : > { %1852 = vmatpush3.bf16.msra.mxu0 %v2003_v26  ;;  %1773 = vmatprep.subr.bf16.mxu1 %v2081_v1  ;;  %v2052_v26 = vld [vmem:[%s2478_s1 + $0x218] sm:$0xff]  }
  0x36   : > { %1853 = vmatprep.subr.bf16.mxu0 %v2081_v1 }
  0x38   : > { %1774 = vmatpush3.bf16.msra.mxu1 %v2004_v27  ;;  %v1174_v27 = vld [vmem:[%s2196_s28 + $0x4] sm:$0x3] }
  0x39   : > { %1854 = vmatpush3.bf16.msra.mxu0 %v2005_v28  ;;  %1775 = vmatprep.subr.bf16.mxu1 %v2081_v1  ;;  %v2053_v28 = vld [vmem:[%s2478_s1 + $0x220] sm:$0xff]   ;;  %v1650_v29 = vcombine.low %v2340_v59, %v1174_v27 }
  0x3a   : > { %1855 = vmatprep.subr.bf16.mxu0 %v2081_v1 }
  0x3c   : > { %1776 = vmatpush3.bf16.msra.mxu1 %v2006_v30  ;;  %v2054_v30 = vld [vmem:[%s2478_s1 + $0x228] sm:$0xff]  }
  0x3d   : > { %1856 = vmatpush3.bf16.msra.mxu0 %v2007_v31  ;;  %1777 = vmatprep.subr.bf16.mxu1 %v2081_v1  ;;  %v1196_v31 = vshrl.u32 %v1650_v29, 16 }
  0x3e   : > { %1857 = vmatprep.subr.bf16.mxu0 %v2081_v1 }
  0x40   : > { %1778 = vmatpush3.bf16.msra.mxu1 %v2008_v32  ;;  %v1199_v32 = vshll.u32 %v1650_v29, 16 }
  0x41   : > { %1858 = vmatpush3.bf16.msra.mxu0 %v2009_v34  ;;  %1779 = vmatprep.subr.bf16.mxu1 %v2081_v1  ;;  %v1198_v34 = vrot.slane %v1196_v31, 1 }
  0x42   : > { %1859 = vmatprep.subr.bf16.mxu0 %v2081_v1 }
  0x44   : > { %1780 = vmatpush3.bf16.msra.mxu1 %v2010_v35  ;;  %v1201_v35 = vrot.slane %v1199_v32, 2 }
  0x45   : > { %1860 = vmatpush3.bf16.msra.mxu0 %v2011_v38  ;;  %1785 = vmatprep.subr.bf16.mxu1 %v2081_v1 }
  0x46   : > { %1865 = vmatprep.subr.bf16.mxu0 %v2081_v1  ;;  %v1202_v37 = vor.u32 %v1201_v35, %v1198_v34 }
  0x47   : > { %1782 = vmatmul.mubr.bf16.vlgmr.msra.gmra.mrb[0].mxu1 %v277_v39 }
  0x48   : > { %1786 = vmatpush3.bf16.msra.mxu1 %v2012_v40  ;;  %1862 = vmatmul.mubr.bf16.vlgmr.msra.gmra.mrb[0].mxu0 %v856_v41 }
  0x49   : > { %1866 = vmatpush3.bf16.msra.mxu0 %v2014_v42  ;;  %1787 = vmatprep.subr.bf16.mxu1 %v2081_v1 }
  0x4a   : > { %1867 = vmatprep.subr.bf16.mxu0 %v2081_v1  ;;  %1801 = vmatprep.mubr.msk.bf16.mxu1 %vm2082_vm0, %v2081_v1 }
  0x4b   : > { %1881 = vmatprep.mubr.msk.bf16.mxu0 %vm2082_vm0, %v2081_v1 }
  0x4c   : > { %1788 = vmatpush3.bf16.msra.mxu1 %v2015_v43  ;;  %v1659_v43 = vld [vmem:[%s2479_s2] ss:$0 sm:$0xff] }
  0x4d   : > { %1868 = vmatpush3.bf16.msra.mxu0 %v2016_v44  ;;  %1789 = vmatprep.subr.bf16.mxu1 %v2081_v1 }
  0x4e   : > { %1869 = vmatprep.subr.bf16.mxu0 %v2081_v1 }
  0x50   : > { %1790 = vmatpush3.bf16.msra.mxu1 %v2017_v45 }
  0x51   : > { %1870 = vmatpush3.bf16.msra.mxu0 %v2018_v46  ;;  %1791 = vmatprep.subr.bf16.mxu1 %v2081_v1  ;;  %v1660_v46 = vld [vmem:[%s2480_s3] ss:$0 sm:$0xff] }
  0x52   : > { %1871 = vmatprep.subr.bf16.mxu0 %v2081_v1 }
  0x54   : > { %1792 = vmatpush3.bf16.msra.mxu1 %v2019_v47 }
  0x55   : > { %1872 = vmatpush3.bf16.msra.mxu0 %v2020_v48  ;;  %1793 = vmatprep.subr.bf16.mxu1 %v2081_v1 }
  0x56   : > { %1873 = vmatprep.subr.bf16.mxu0 %v2081_v1 }
  0x58   : > { %1794 = vmatpush3.bf16.msra.mxu1 %v2021_v49 }
  0x59   : > { %1874 = vmatpush3.bf16.msra.mxu0 %v2022_v52  ;;  %1795 = vmatprep.subr.bf16.mxu1 %v2081_v1 }
  0x5a   : > { %1875 = vmatprep.subr.bf16.mxu0 %v2081_v1 }
  0x5c   : > { %1796 = vmatpush3.bf16.msra.mxu1 %v2023_v54 }
  0x5d   : > { %1876 = vmatpush3.bf16.msra.mxu0 %v2024_v55  ;;  %1797 = vmatprep.subr.bf16.mxu1 %v2081_v1 }
  0x5e   : > { %1877 = vmatprep.subr.bf16.mxu0 %v2081_v1 }
  0x60   : > { %1798 = vmatpush3.bf16.msra.mxu1 %v2025_v57 }
  0x61   : > { %1878 = vmatpush3.bf16.msra.mxu0 %v2026_v58  ;;  %1799 = vmatprep.subr.bf16.mxu1 %v2081_v1 }
  0x62   : > { %1879 = vmatprep.subr.bf16.mxu0 %v2081_v1 }
  0x64   : > { %1800 = vmatpush3.bf16.msra.mxu1 %v2027_v62 }
  0x65   : > { %1880 = vmatpush3.bf16.msra.mxu0 %v2028_v0  ;;  %1805 = vmatprep.subr.bf16.mxu1 %v2081_v1 }
  0x66   : > { %1885 = vmatprep.subr.bf16.mxu0 %v2081_v1 }
  0x67   : > { %1802 = vmatmul.mubr.bf16.vlgmr.msra.gmra.mrb[0].mxu1 %v519_v2 }
  0x68   : > { %1806 = vmatpush3.bf16.msra.mxu1 %v2030_v3  ;;  %1882 = vmatmul.mubr.bf16.vlgmr.msra.gmra.mrb[0].mxu0 %v968_v4 }
  0x69   : > { %1886 = vmatpush3.bf16.msra.mxu0 %v2033_v5  ;;  %1807 = vmatprep.subr.bf16.mxu1 %v2081_v1 }
  0x6a   : > { %1887 = vmatprep.subr.bf16.mxu0 %v2081_v1  ;;  %1821 = vmatprep.mubr.msk.bf16.mxu1 %vm2082_vm0, %v2081_v1 }
  0x6b   : > { %1901 = vmatprep.mubr.msk.bf16.mxu0 %vm2082_vm0, %v2081_v1 }
  0x6c   : > { %1808 = vmatpush3.bf16.msra.mxu1 %v2034_v6 }
  0x6d   : > { %1888 = vmatpush3.bf16.msra.mxu0 %v2035_v7  ;;  %1809 = vmatprep.subr.bf16.mxu1 %v2081_v1 }
  0x6e   : > { %1889 = vmatprep.subr.bf16.mxu0 %v2081_v1 }
  0x70   : > { %1810 = vmatpush3.bf16.msra.mxu1 %v2036_v8 }
  0x71   : > { %1890 = vmatpush3.bf16.msra.mxu0 %v2037_v9  ;;  %1811 = vmatprep.subr.bf16.mxu1 %v2081_v1 }
  0x72   : > { %1891 = vmatprep.subr.bf16.mxu0 %v2081_v1 }
  0x74   : > { %1812 = vmatpush3.bf16.msra.mxu1 %v2038_v10 }
  0x75   : > { %1892 = vmatpush3.bf16.msra.mxu0 %v2039_v11  ;;  %1813 = vmatprep.subr.bf16.mxu1 %v2081_v1 }
  0x76   : > { %1893 = vmatprep.subr.bf16.mxu0 %v2081_v1 }
  0x78   : > { %1814 = vmatpush3.bf16.msra.mxu1 %v2040_v12 }
  0x79   : > { %1894 = vmatpush3.bf16.msra.mxu0 %v2041_v13  ;;  %1815 = vmatprep.subr.bf16.mxu1 %v2081_v1 }
  0x7a   : > { %1895 = vmatprep.subr.bf16.mxu0 %v2081_v1 }
  0x7c   : > { %1816 = vmatpush3.bf16.msra.mxu1 %v2042_v14 }
  0x7d   : > { %1896 = vmatpush3.bf16.msra.mxu0 %v2043_v15  ;;  %1817 = vmatprep.subr.bf16.mxu1 %v2081_v1 }
  0x7e   : > { %1897 = vmatprep.subr.bf16.mxu0 %v2081_v1 }
  0x80   : > { %1818 = vmatpush3.bf16.msra.mxu1 %v2044_v16 }
  0x81   : > { %1898 = vmatpush3.bf16.msra.mxu0 %v2045_v17  ;;  %1819 = vmatprep.subr.bf16.mxu1 %v2081_v1 }
  0x82   : > { %1899 = vmatprep.subr.bf16.mxu0 %v2081_v1 }
  0x84   : > { %1820 = vmatpush3.bf16.msra.mxu1 %v2046_v18 }
  0x85   : > { %1900 = vmatpush3.bf16.msra.mxu0 %v2047_v20 }
  0x86   : > { %1905 = vmatprep.subr.bf16.mxu0 %v2081_v1 }
  0x87   : > { %1822 = vmatmul.mubr.bf16.vlgmr.msra.gmra.mrb[0].mxu1 %v1505_v21 }
  0x88   : > { %1902 = vmatmul.mubr.bf16.vlgmr.msra.gmra.mrb[0].mxu0 %v1083_v22 }
  0x89   : > { %1906 = vmatpush3.bf16.msra.mxu0 %v2049_v23  ;;  %1921 = vmatprep.mubr.msk.bf16.mxu0 %vm2082_vm0, %v2081_v1 }
  0x8a   : > { %1907 = vmatprep.subr.bf16.mxu0 %v2081_v1 }
  0x8d   : > { %1908 = vmatpush3.bf16.msra.mxu0 %v2050_v24 }
  0x8e   : > { %1909 = vmatprep.subr.bf16.mxu0 %v2081_v1 }
  0x91   : > { %1910 = vmatpush3.bf16.msra.mxu0 %v2051_v25 }
  0x92   : > { %1911 = vmatprep.subr.bf16.mxu0 %v2081_v1 }
  0x95   : > { %1912 = vmatpush3.bf16.msra.mxu0 %v2052_v26 }
  0x96   : > { %1913 = vmatprep.subr.bf16.mxu0 %v2081_v1 }
  0x99   : > { %1914 = vmatpush3.bf16.msra.mxu0 %v2053_v28 }
  0x9a   : > { %1915 = vmatprep.subr.bf16.mxu0 %v2081_v1 }
  0x9d   : > { %1916 = vmatpush3.bf16.msra.mxu0 %v2054_v30 }
  0x9e   : > { %1917 = vmatprep.subr.bf16.mxu0 %v2081_v1 }
  0xa1   : > { %1918 = vmatpush3.bf16.msra.mxu0 %v2055_v33 }
  0xa2   : > { %1919 = vmatprep.subr.bf16.mxu0 %v2081_v1 }
  0xa5   : > { %1920 = vmatpush3.bf16.msra.mxu0 %v2056_v36 }
  0xa8   : > { %1922 = vmatmul.mubr.bf16.vlgmr.msra.gmra.mrb[0].mxu0 %v1202_v37 }
 0x15a   : > { %v711_v38 = vpop.f32.mrb[0].mxu1 }
 0x15b   : > { %v1823_v39 = vpop.f32.mrb[1].mxu1 }
 0x15c   : > { %v714_v40 = vpop.f32.mrb[2].mxu1 }
 0x15d   : > { %v1824_v41 = vpop.f32.mrb[3].mxu1 }
 0x17b   : > { %v1286_v42 = vpop.f32.mrb[0].mxu0 }
 0x17c   : > { %v1925_v44 = vadd.f32 %v1286_v42, %v711_v38  ;;  %v1923_v45 = vpop.f32.mrb[1].mxu0 }
 0x17d   : > { %v1289_v1 = vpop.f32.mrb[2].mxu0 }
 0x17e   : > { %v1300_v47 = vmul.f32 %v1925_v44, %v1659_v43  ;;  %v1924_v48 = vpop.f32.mrb[3].mxu0 }
 0x180   : > { %v1308_v49 = vadd.f32 %v1660_v46, %v1300_v47 }
 0x182   : > { %v1309_v50 = vmax.f32 %v1308_v49, 0.0 }
 0x184   : > { %v1310_v51 = vpack.c.bf16 %v1309_v50, %v1309_v50 }
 0x186   : > { %1311 = vst [vmem:[%s275_s24] sm:$0xf] %v1310_v51 }
 0x187 PF: > { %s14_s17 = sadd.s32 1, %s2079_s17   ;;  %s2482_s15 = smov %s2075_s16 }
 0x188   : > { %p11_p5 = scmp.ge.s32.totalorder %s14_s17, 4   ;;  %s2483_s16 = smov %s2485_s18 }
 0x18a   :  { %13 = sbr.rel (!%p11_p5) target bundleno = 2 (0x2), region = 86 }

// kernel: resnet_encoder_forward.34
= control target key start
LH: loop header
LB: loop body
LE: loop exit
PB: predicated region body
PF: predicated region fallthrough
CT: control target
= control target key end

     0   :  { %s2206_s18 = smov 0   ;;  %s2208_s19 = smov 0   ;;  %s2588_s0 = inlined_call_operand.vmem [shape: bf16[2,1,16,128], index: 0, kind: input, shape index: {}]   ;;  %s2589_s1 = inlined_call_operand.vmem [shape: bf16[9,128,128], index: 1, kind: input, shape index: {}]   ;;  %s2590_s2 = inlined_call_operand.vmem [shape: f32[1,128], index: 2, kind: input, shape index: {}]   ;;  %s2591_s3 = inlined_call_operand.vmem [shape: f32[1,128], index: 3, kind: input, shape index: {}]   ;;  %s2592_s4 = inlined_call_operand.vmem [shape: bf16[2,8,128], index: 4, kind: input, shape index: {}]   ;;  %s2593_s5 = inlined_call_operand.vmem [shape: bf16[2,8,128], index: 5, kind: output, shape index: {}]  }
   0x1   :  { %s2210_s20 = smov 0  }
   0x2 LB: > { %s34_s21 = sadd.s32 1, %s2168_s19  ;;  %p1538_p0 = scmp.ge.s32.totalorder %s2172_s20, 1  ;;  %s2172_s20 = sphi %s2210_s20, %s15_s20   ;;  %s2168_s19 = sphi %s2208_s19, %s2595_s19   ;;  %s2164_s18 = sphi %s2206_s18, %s2594_s18  }
   0x3   : > { %p36_p1 = scmp.ge.s32.totalorder %s34_s21, 2  ;;  %p254_p2 = scmp.lt.s32.totalorder %s2172_s20, 3 }
   0x5   : > { %s2597_s21 = smov (%p36_p1, %s34_s21), 0  ;;  %p255_p3 = pnand %p1538_p0, %p254_p2 }
   0x6   : > { %v2071_v0 = vld [vmem:[%s2589_s1 + $0x40] sm:$0xff] (!%p255_p3)   ;;  %v2174_v1 = vmov (!%p255_p3), 0.0   ;;  %v2073_v3 = vld [vmem:[%s2589_s1 + $0x48] sm:$0xff] (!%p255_p3)   ;;  %vm2175_vm0 = vmmov (!%p255_p3), 0   ;;  %p307_p4 = scmp.lt.s32.totalorder (!%p255_p3), %s2164_s18, 1  ;;  %v2075_v5 = vld [vmem:[%s2589_s1 + $0x50] sm:$0xff] (!%p255_p3)  }
   0x7   : > { %258 = sbr.rel (%p255_p3) target bundleno = 393 (0x189), region = 40  ;;  %1836 = vmatprep.subr.bf16.mxu1 (!%p255_p3), %v2174_v1  ;;  %1916 = vmatprep.subr.bf16.mxu0 (!%p255_p3), %v2174_v1  ;;  %v2072_v2 = vld [vmem:[%s2589_s1 + $0x100] sm:$0xff] (!%p255_p3)   ;;  %v2074_v4 = vld [vmem:[%s2589_s1 + $0x108] sm:$0xff] (!%p255_p3)   ;;  %v2076_v6 = vld [vmem:[%s2589_s1 + $0x110] sm:$0xff] (!%p255_p3)  }
   0x8   : > { %1837 = vmatpush3.bf16.msra.mxu1 (!%p255_p3), %v2071_v0  ;;  %1852 = vmatprep.mubr.msk.bf16.mxu1 (!%p255_p3), %vm2175_vm0, %v2174_v1  ;;  %v2077_v7 = vld [vmem:[%s2589_s1 + $0x58] sm:$0xff] (!%p255_p3)   ;;  %v2079_v9 = vld [vmem:[%s2589_s1 + $0x60] sm:$0xff] (!%p255_p3)   ;;  %v2081_v15 = vld [vmem:[%s2589_s1 + $0x68] sm:$0xff] (!%p255_p3)  }
   0x9   : > { %1917 = vmatpush3.bf16.msra.mxu0 (!%p255_p3), %v2072_v2  ;;  %1838 = vmatprep.subr.bf16.mxu1 (!%p255_p3), %v2174_v1  ;;  %v2078_v8 = vld [vmem:[%s2589_s1 + $0x118] sm:$0xff] (!%p255_p3)   ;;  %v2080_v10 = vld [vmem:[%s2589_s1 + $0x120] sm:$0xff] (!%p255_p3)   ;;  %v2082_v18 = vld [vmem:[%s2589_s1 + $0x128] sm:$0xff] (!%p255_p3)  }
   0xa   : > { %1918 = vmatprep.subr.bf16.mxu0 (!%p255_p3), %v2174_v1  ;;  %1932 = vmatprep.mubr.msk.bf16.mxu0 (!%p255_p3), %vm2175_vm0, %v2174_v1  ;;  %v2083_v21 = vld [vmem:[%s2589_s1 + $0x70] sm:$0xff] (!%p255_p3)   ;;  %v2085_v26 = vld [vmem:[%s2589_s1 + $0x78] sm:$0xff] (!%p255_p3)   ;;  %v2088_v30 = vld [vmem:[%s2589_s1] sm:$0xff] (!%p255_p3)  }
   0xb   : > { %v2084_v22 = vld [vmem:[%s2589_s1 + $0x130] sm:$0xff] (!%p255_p3)   ;;  %v2086_v28 = vld [vmem:[%s2589_s1 + $0x138] sm:$0xff] (!%p255_p3)   ;;  %v2092_v32 = vld [vmem:[%s2589_s1 + $0x140] sm:$0xff] (!%p255_p3)  }
   0xc   : > { %1839 = vmatpush3.bf16.msra.mxu1 (!%p255_p3), %v2073_v3  ;;  %v2093_v33 = vld [vmem:[%s2589_s1 + $0x8] sm:$0xff] (!%p255_p3)   ;;  %v2095_v35 = vld [vmem:[%s2589_s1 + $0x10] sm:$0xff] (!%p255_p3)   ;;  %v2097_v37 = vld [vmem:[%s2589_s1 + $0x18] sm:$0xff] (!%p255_p3)  }
   0xd   : > { %1919 = vmatpush3.bf16.msra.mxu0 (!%p255_p3), %v2074_v4  ;;  %1840 = vmatprep.subr.bf16.mxu1 (!%p255_p3), %v2174_v1  ;;  %v2094_v34 = vld [vmem:[%s2589_s1 + $0x148] sm:$0xff] (!%p255_p3)   ;;  %v2096_v36 = vld [vmem:[%s2589_s1 + $0x150] sm:$0xff] (!%p255_p3)   ;;  %v2098_v38 = vld [vmem:[%s2589_s1 + $0x158] sm:$0xff] (!%p255_p3)  }
   0xe   : > { %s2599_s18 = smov (!%p307_p4, %s2164_s18), 1  ;;  %1920 = vmatprep.subr.bf16.mxu0 %v2174_v1  ;;  %v2099_v40 = vld [vmem:[%s2589_s1 + $0x20] sm:$0xff]   ;;  %v2101_v43 = vld [vmem:[%s2589_s1 + $0x28] sm:$0xff]   ;;  %v2103_v47 = vld [vmem:[%s2589_s1 + $0x30] sm:$0xff]  }
   0xf   : > { %s1754_s11 = sshll.u32 %s2599_s18, 3  ;;  %v2100_v41 = vld [vmem:[%s2589_s1 + $0x160] sm:$0xff]   ;;  %v2102_v44 = vld [vmem:[%s2589_s1 + $0x168] sm:$0xff]   ;;  %v2104_v48 = vld [vmem:[%s2589_s1 + $0x170] sm:$0xff]   ;;  %s1541_s27 = sshll.u32 %s2599_s18, 2 }
  0x10   : > { %1841 = vmatpush3.bf16.msra.mxu1 %v2075_v5  ;;  %s2266_s16 = scalar_lea.vmem %s2588_s0, %s1754_s11  ;;  %v2105_v51 = vld [vmem:[%s2589_s1 + $0x38] sm:$0xff]   ;;  %v2107_v54 = vld [vmem:[%s2589_s1 + $0x80] sm:$0xff]   ;;  %v2109_v57 = vld [vmem:[%s2589_s1 + $0x88] sm:$0xff]   ;;  %s331_s30 = scalar_lea.vmem %s2592_s4, %s1541_s27 }
  0x11   : > { %1921 = vmatpush3.bf16.msra.mxu0 %v2076_v6  ;;  %1842 = vmatprep.subr.bf16.mxu1 %v2174_v1  ;;  %v360_v11 = vld [vmem:[%s2266_s16] sm:$0xf]  ;;  %v2278_v12 = vld [vmem:[%s2266_s16 + $0x4] sm:$0x1]  ;;  %v2106_v52 = vld [vmem:[%s2589_s1 + $0x178] sm:$0xff]   ;;  %s341_s11 = scalar_lea.vmem %s2593_s5, %s1541_s27 }
  0x12   : > { %1922 = vmatprep.subr.bf16.mxu0 %v2174_v1  ;;  %v1559_v13 = vcombine.low %v360_v11, %v2278_v12  ;;  %v2282_v14 = vld [vmem:[%s2266_s16] sm:$0xe]  ;;  %v680_v16 = vld [vmem:[%s2266_s16 + $0x4] sm:$0x3]  ;;  %v2110_v58 = vld [vmem:[%s2589_s1 + $0x188] sm:$0xff]  }
  0x13   : > { %v1592_v17 = vcombine.low %v2282_v14, %v2278_v12  ;;  %v2295_v19 = vcombine.low %v2282_v14, %v680_v16  ;;  %v799_v23 = vld [vmem:[%s2266_s16] sm:$0xc]  ;;  %v2352_v39 = vld [vmem:[%s2266_s16 + $0x4] sm:$0x7]  ;;  %v2111_v59 = vld [vmem:[%s2589_s1 + $0x90] sm:$0xff]  }
  0x14   : > { %1843 = vmatpush3.bf16.msra.mxu1 %v2077_v7  ;;  %v387_v20 = vshll.u32 %v1559_v13, 16  ;;  %v385_v24 = vshrl.u32 %v1559_v13, 16  ;;  %v1642_v27 = vcombine.low %v799_v23, %v680_v16  ;;  %v1667_v42 = vcombine.low %v799_v23, %v2352_v39  ;;  %v343_v53 = vld [vmem:[%s2266_s16] sm:$0xf]  ;;  %v2112_v60 = vld [vmem:[%s2589_s1 + $0x190] sm:$0xff]   ;;  %v2113_v61 = vld [vmem:[%s2589_s1 + $0x98] sm:$0xff]  }
  0x15   : > { %1923 = vmatpush3.bf16.msra.mxu0 %v2078_v8  ;;  %1844 = vmatprep.subr.bf16.mxu1 %v2174_v1  ;;  %v2108_v56 = vld [vmem:[%s2589_s1 + $0x180] sm:$0xff]   ;;  %v2114_v62 = vld [vmem:[%s2589_s1 + $0x198] sm:$0xff]   ;;  %v2117_v2 = vld [vmem:[%s2589_s1 + $0xa8] sm:$0xff]  }
  0x16   : > { %1924 = vmatprep.subr.bf16.mxu0 %v2174_v1  ;;  %v389_v25 = vrot.slane %v387_v20, 1  ;;  %v820_v31 = vrot.slane %v1642_v27, 2  ;;  %v933_v45 = vshrl.u32 %v1667_v42, 16  ;;  %v936_v46 = vshll.u32 %v1667_v42, 16  ;;  %v2115_v63 = vld [vmem:[%s2589_s1 + $0xa0] sm:$0xff]   ;;  %v2118_v3 = vld [vmem:[%s2589_s1 + $0x1a8] sm:$0xff]  }
  0x17   : > { %v2116_v0 = vld [vmem:[%s2589_s1 + $0x1a0] sm:$0xff]   ;;  %v2119_v4 = vld [vmem:[%s2589_s1 + $0xb0] sm:$0xff]   ;;  %v2121_v7 = vld [vmem:[%s2589_s1 + $0xb8] sm:$0xff]   ;;  %v702_v27 = vshrl.u32 %v2295_v19, 16 }
  0x18   : > { %1845 = vmatpush3.bf16.msra.mxu1 %v2079_v9  ;;  %v390_v29 = vor.u32 %v389_v25, %v385_v24  ;;  %v935_v49 = vrot.slane %v933_v45, 2  ;;  %v938_v50 = vrot.slane %v936_v46, 3  ;;  %v2120_v5 = vld [vmem:[%s2589_s1 + $0x1b0] sm:$0xff]   ;;  %v1030_v6 = vld [vmem:[%s2266_s16] sm:$0x8]  ;;  %v2122_v9 = vld [vmem:[%s2589_s1 + $0x1b8] sm:$0xff]  }
  0x19   : > { %1925 = vmatpush3.bf16.msra.mxu0 %v2080_v10  ;;  %1846 = vmatprep.subr.bf16.mxu1 %v2174_v1  ;;  %v1692_v8 = vcombine.low %v1030_v6, %v2352_v39  ;;  %v589_v10 = vrot.slane %v1592_v17, 1  ;;  %v2124_v11 = vld [vmem:[%s2589_s1 + $0xc0] sm:$0xff]   ;;  %v2128_v12 = vld [vmem:[%s2589_s1 + $0xc8] sm:$0xff]   ;;  %v2130_v16 = vld [vmem:[%s2589_s1 + $0xd0] sm:$0xff]  }
  0x1a   : > { %1926 = vmatprep.subr.bf16.mxu0 %v2174_v1  ;;  %v939_v55 = vor.u32 %v938_v50, %v935_v49  ;;  %v2129_v14 = vld [vmem:[%s2589_s1 + $0x1c8] sm:$0xff]   ;;  %v2131_v17 = vld [vmem:[%s2589_s1 + $0x1d0] sm:$0xff]   ;;  %v2133_v20 = vld [vmem:[%s2589_s1 + $0x1d8] sm:$0xff]  }
  0x1b   : > { %v1051_v13 = vrot.slane %v1692_v8, 3  ;;  %v2135_v23 = vld [vmem:[%s2589_s1 + $0x1e0] sm:$0xff]   ;;  %v2136_v25 = vld [vmem:[%s2589_s1 + $0xe8] sm:$0xff]   ;;  %v2144_v42 = vld [vmem:[%s2589_s1 + $0x210] sm:$0xff]  }
  0x1c   : > { %1847 = vmatpush3.bf16.msra.mxu1 %v2081_v15  ;;  %v2127_v15 = vld [vmem:[%s2589_s1 + $0x1c0] sm:$0xff]   ;;  %v2147_v45 = vld [vmem:[%s2589_s1 + $0x228] sm:$0xff]   ;;  %v2148_v46 = vld [vmem:[%s2589_s1 + $0x230] sm:$0xff]  }
  0x1d   : > { %1927 = vmatpush3.bf16.msra.mxu0 %v2082_v18  ;;  %1848 = vmatprep.subr.bf16.mxu1 %v2174_v1  ;;  %v2132_v18 = vld [vmem:[%s2589_s1 + $0xd8] sm:$0xff]  }
  0x1e   : > { %1928 = vmatprep.subr.bf16.mxu0 %v2174_v1 }
  0x20   : > { %1849 = vmatpush3.bf16.msra.mxu1 %v2083_v21  ;;  %v2134_v21 = vld [vmem:[%s2589_s1 + $0xe0] sm:$0xff]  }
  0x21   : > { %1929 = vmatpush3.bf16.msra.mxu0 %v2084_v22  ;;  %1850 = vmatprep.subr.bf16.mxu1 %v2174_v1  ;;  %v1142_v22 = vld [vmem:[%s2266_s16 + $0x4] sm:$0xf] }
  0x22   : > { %1930 = vmatprep.subr.bf16.mxu0 %v2174_v1  ;;  %v1717_v24 = vcombine.low %v1030_v6, %v1142_v22 }
  0x24   : > { %1851 = vmatpush3.bf16.msra.mxu1 %v2085_v26  ;;  %v2137_v26 = vld [vmem:[%s2589_s1 + $0x1e8] sm:$0xff]  }
  0x25   : > { %1931 = vmatpush3.bf16.msra.mxu0 %v2086_v28  ;;  %1856 = vmatprep.subr.bf16.mxu1 %v2174_v1  ;;  %v705_v28 = vshll.u32 %v2295_v19, 16  ;;  %v2140_v19 = vld [vmem:[%s2589_s1 + $0xf8] sm:$0xff]  }
  0x26   : > { %1936 = vmatprep.subr.bf16.mxu0 %v2174_v1 }
  0x27   : > { %1853 = vmatmul.mubr.bf16.vlgmr.msra.gmra.mrb[0].mxu1 %v390_v29  ;;  %v2138_v29 = vld [vmem:[%s2589_s1 + $0xf0] sm:$0xff]  }
  0x28   : > { %1857 = vmatpush3.bf16.msra.mxu1 %v2088_v30  ;;  %1933 = vmatmul.mubr.bf16.vlgmr.msra.gmra.mrb[0].mxu0 %v820_v31  ;;  %v1164_v30 = vshrl.u32 %v1717_v24, 16  ;;  %v1167_v31 = vshll.u32 %v1717_v24, 16 }
  0x29   : > { %1937 = vmatpush3.bf16.msra.mxu0 %v2092_v32  ;;  %1858 = vmatprep.subr.bf16.mxu1 %v2174_v1  ;;  %v2139_v32 = vld [vmem:[%s2589_s1 + $0x1f0] sm:$0xff]  }
  0x2a   : > { %1938 = vmatprep.subr.bf16.mxu0 %v2174_v1  ;;  %1872 = vmatprep.mubr.msk.bf16.mxu1 %vm2175_vm0, %v2174_v1 }
  0x2b   : > { %1952 = vmatprep.mubr.msk.bf16.mxu0 %vm2175_vm0, %v2174_v1 }
  0x2c   : > { %1859 = vmatpush3.bf16.msra.mxu1 %v2093_v33  ;;  %v704_v33 = vrot.slane %v702_v27, 1 }
  0x2d   : > { %1939 = vmatpush3.bf16.msra.mxu0 %v2094_v34  ;;  %1860 = vmatprep.subr.bf16.mxu1 %v2174_v1  ;;  %v707_v34 = vrot.slane %v705_v28, 2 }
  0x2e   : > { %1940 = vmatprep.subr.bf16.mxu0 %v2174_v1 }
  0x30   : > { %1861 = vmatpush3.bf16.msra.mxu1 %v2095_v35  ;;  %v1166_v35 = vrot.slane %v1164_v30, 3 }
  0x31   : > { %1941 = vmatpush3.bf16.msra.mxu0 %v2096_v36  ;;  %1862 = vmatprep.subr.bf16.mxu1 %v2174_v1  ;;  %v1169_v36 = vrot.slane %v1167_v31, 4 }
  0x32   : > { %1942 = vmatprep.subr.bf16.mxu0 %v2174_v1 }
  0x33   : > { %v1170_v39 = vor.u32 %v1169_v36, %v1166_v35 }
  0x34   : > { %1863 = vmatpush3.bf16.msra.mxu1 %v2097_v37  ;;  %v2141_v37 = vld [vmem:[%s2589_s1 + $0x1f8] sm:$0xff]  }
  0x35   : > { %1943 = vmatpush3.bf16.msra.mxu0 %v2098_v38  ;;  %1864 = vmatprep.subr.bf16.mxu1 %v2174_v1  ;;  %v708_v38 = vor.u32 %v707_v34, %v704_v33 }
  0x36   : > { %1944 = vmatprep.subr.bf16.mxu0 %v2174_v1 }
  0x38   : > { %1865 = vmatpush3.bf16.msra.mxu1 %v2099_v40  ;;  %v2142_v40 = vld [vmem:[%s2589_s1 + $0x200] sm:$0xff]  }
  0x39   : > { %1945 = vmatpush3.bf16.msra.mxu0 %v2100_v41  ;;  %1866 = vmatprep.subr.bf16.mxu1 %v2174_v1  ;;  %v2143_v41 = vld [vmem:[%s2589_s1 + $0x208] sm:$0xff]  }
  0x3a   : > { %1946 = vmatprep.subr.bf16.mxu0 %v2174_v1 }
  0x3c   : > { %1867 = vmatpush3.bf16.msra.mxu1 %v2101_v43  ;;  %v2145_v43 = vld [vmem:[%s2589_s1 + $0x218] sm:$0xff]  }
  0x3d   : > { %1947 = vmatpush3.bf16.msra.mxu0 %v2102_v44  ;;  %1868 = vmatprep.subr.bf16.mxu1 %v2174_v1  ;;  %v2146_v44 = vld [vmem:[%s2589_s1 + $0x220] sm:$0xff]  }
  0x3e   : > { %1948 = vmatprep.subr.bf16.mxu0 %v2174_v1 }
  0x40   : > { %1869 = vmatpush3.bf16.msra.mxu1 %v2103_v47  ;;  %v2149_v47 = vld [vmem:[%s2589_s1 + $0x238] sm:$0xff]  }
  0x41   : > { %1949 = vmatpush3.bf16.msra.mxu0 %v2104_v48  ;;  %1870 = vmatprep.subr.bf16.mxu1 %v2174_v1 }
  0x42   : > { %1950 = vmatprep.subr.bf16.mxu0 %v2174_v1 }
  0x44   : > { %1871 = vmatpush3.bf16.msra.mxu1 %v2105_v51 }
  0x45   : > { %1951 = vmatpush3.bf16.msra.mxu0 %v2106_v52  ;;  %1876 = vmatprep.subr.bf16.mxu1 %v2174_v1 }
  0x46   : > { %1956 = vmatprep.subr.bf16.mxu0 %v2174_v1 }
  0x47   : > { %1873 = vmatmul.mubr.bf16.vlgmr.msra.gmra.mrb[0].mxu1 %v343_v53  ;;  %v1750_v53 = vld [vmem:[%s2590_s2] ss:$0 sm:$0xff] }
  0x48   : > { %1877 = vmatpush3.bf16.msra.mxu1 %v2107_v54  ;;  %1953 = vmatmul.mubr.bf16.vlgmr.msra.gmra.mrb[0].mxu0 %v939_v55  ;;  %v1383_v54 = vld [vmem:[%s331_s30] sm:$0xf] }
  0x49   : > { %1957 = vmatpush3.bf16.msra.mxu0 %v2108_v56  ;;  %1878 = vmatprep.subr.bf16.mxu1 %v2174_v1 }
  0x4a   : > { %1958 = vmatprep.subr.bf16.mxu0 %v2174_v1  ;;  %1892 = vmatprep.mubr.msk.bf16.mxu1 %vm2175_vm0, %v2174_v1 }
  0x4b   : > { %1972 = vmatprep.mubr.msk.bf16.mxu0 %vm2175_vm0, %v2174_v1 }
  0x4c   : > { %1879 = vmatpush3.bf16.msra.mxu1 %v2109_v57 }
  0x4d   : > { %1959 = vmatpush3.bf16.msra.mxu0 %v2110_v58  ;;  %1880 = vmatprep.subr.bf16.mxu1 %v2174_v1 }
  0x4e   : > { %1960 = vmatprep.subr.bf16.mxu0 %v2174_v1 }
  0x50   : > { %1881 = vmatpush3.bf16.msra.mxu1 %v2111_v59  ;;  %v1384_v59 = vunpack.c.l.bf16 %v1383_v54 }
  0x51   : > { %1961 = vmatpush3.bf16.msra.mxu0 %v2112_v60  ;;  %1882 = vmatprep.subr.bf16.mxu1 %v2174_v1 }
  0x52   : > { %1962 = vmatprep.subr.bf16.mxu0 %v2174_v1 }
  0x54   : > { %1883 = vmatpush3.bf16.msra.mxu1 %v2113_v61 }
  0x55   : > { %1963 = vmatpush3.bf16.msra.mxu0 %v2114_v62  ;;  %1884 = vmatprep.subr.bf16.mxu1 %v2174_v1 }
  0x56   : > { %1964 = vmatprep.subr.bf16.mxu0 %v2174_v1 }
  0x58   : > { %1885 = vmatpush3.bf16.msra.mxu1 %v2115_v63 }
  0x59   : > { %1965 = vmatpush3.bf16.msra.mxu0 %v2116_v0  ;;  %1886 = vmatprep.subr.bf16.mxu1 %v2174_v1 }
  0x5a   : > { %1966 = vmatprep.subr.bf16.mxu0 %v2174_v1 }
  0x5c   : > { %1887 = vmatpush3.bf16.msra.mxu1 %v2117_v2 }
  0x5d   : > { %1967 = vmatpush3.bf16.msra.mxu0 %v2118_v3  ;;  %1888 = vmatprep.subr.bf16.mxu1 %v2174_v1 }
  0x5e   : > { %1968 = vmatprep.subr.bf16.mxu0 %v2174_v1 }
  0x60   : > { %1889 = vmatpush3.bf16.msra.mxu1 %v2119_v4 }
  0x61   : > { %1969 = vmatpush3.bf16.msra.mxu0 %v2120_v5  ;;  %1890 = vmatprep.subr.bf16.mxu1 %v2174_v1 }
  0x62   : > { %1970 = vmatprep.subr.bf16.mxu0 %v2174_v1 }
  0x64   : > { %1891 = vmatpush3.bf16.msra.mxu1 %v2121_v7 }
  0x65   : > { %1971 = vmatpush3.bf16.msra.mxu0 %v2122_v9  ;;  %1896 = vmatprep.subr.bf16.mxu1 %v2174_v1 }
  0x66   : > { %1976 = vmatprep.subr.bf16.mxu0 %v2174_v1 }
  0x67   : > { %1893 = vmatmul.mubr.bf16.vlgmr.msra.gmra.mrb[0].mxu1 %v589_v10 }
  0x68   : > { %1897 = vmatpush3.bf16.msra.mxu1 %v2124_v11  ;;  %1973 = vmatmul.mubr.bf16.vlgmr.msra.gmra.mrb[0].mxu0 %v1051_v13 }
  0x69   : > { %1977 = vmatpush3.bf16.msra.mxu0 %v2127_v15  ;;  %1898 = vmatprep.subr.bf16.mxu1 %v2174_v1 }
  0x6a   : > { %1978 = vmatprep.subr.bf16.mxu0 %v2174_v1  ;;  %1912 = vmatprep.mubr.msk.bf16.mxu1 %vm2175_vm0, %v2174_v1 }
  0x6b   : > { %1992 = vmatprep.mubr.msk.bf16.mxu0 %vm2175_vm0, %v2174_v1 }
  0x6c   : > { %1899 = vmatpush3.bf16.msra.mxu1 %v2128_v12 }
  0x6d   : > { %1979 = vmatpush3.bf16.msra.mxu0 %v2129_v14  ;;  %1900 = vmatprep.subr.bf16.mxu1 %v2174_v1 }
  0x6e   : > { %1980 = vmatprep.subr.bf16.mxu0 %v2174_v1 }
  0x70   : > { %1901 = vmatpush3.bf16.msra.mxu1 %v2130_v16 }
  0x71   : > { %1981 = vmatpush3.bf16.msra.mxu0 %v2131_v17  ;;  %1902 = vmatprep.subr.bf16.mxu1 %v2174_v1 }
  0x72   : > { %1982 = vmatprep.subr.bf16.mxu0 %v2174_v1 }
  0x74   : > { %1903 = vmatpush3.bf16.msra.mxu1 %v2132_v18 }
  0x75   : > { %1983 = vmatpush3.bf16.msra.mxu0 %v2133_v20  ;;  %1904 = vmatprep.subr.bf16.mxu1 %v2174_v1 }
  0x76   : > { %1984 = vmatprep.subr.bf16.mxu0 %v2174_v1 }
  0x78   : > { %1905 = vmatpush3.bf16.msra.mxu1 %v2134_v21 }
  0x79   : > { %1985 = vmatpush3.bf16.msra.mxu0 %v2135_v23  ;;  %1906 = vmatprep.subr.bf16.mxu1 %v2174_v1 }
  0x7a   : > { %1986 = vmatprep.subr.bf16.mxu0 %v2174_v1 }
  0x7c   : > { %1907 = vmatpush3.bf16.msra.mxu1 %v2136_v25 }
  0x7d   : > { %1987 = vmatpush3.bf16.msra.mxu0 %v2137_v26  ;;  %1908 = vmatprep.subr.bf16.mxu1 %v2174_v1 }
  0x7e   : > { %1988 = vmatprep.subr.bf16.mxu0 %v2174_v1 }
  0x80   : > { %1909 = vmatpush3.bf16.msra.mxu1 %v2138_v29 }
  0x81   : > { %1989 = vmatpush3.bf16.msra.mxu0 %v2139_v32  ;;  %1910 = vmatprep.subr.bf16.mxu1 %v2174_v1 }
  0x82   : > { %1990 = vmatprep.subr.bf16.mxu0 %v2174_v1 }
  0x84   : > { %1911 = vmatpush3.bf16.msra.mxu1 %v2140_v19 }
  0x85   : > { %1991 = vmatpush3.bf16.msra.mxu0 %v2141_v37 }
  0x86   : > { %1996 = vmatprep.subr.bf16.mxu0 %v2174_v1 }
  0x87   : > { %1913 = vmatmul.mubr.bf16.vlgmr.msra.gmra.mrb[0].mxu1 %v708_v38 }
  0x88   : > { %1993 = vmatmul.mubr.bf16.vlgmr.msra.gmra.mrb[0].mxu0 %v1170_v39 }
  0x89   : > { %1997 = vmatpush3.bf16.msra.mxu0 %v2142_v40  ;;  %2012 = vmatprep.mubr.msk.bf16.mxu0 %vm2175_vm0, %v2174_v1 }
  0x8a   : > { %1998 = vmatprep.subr.bf16.mxu0 %v2174_v1 }
  0x8d   : > { %1999 = vmatpush3.bf16.msra.mxu0 %v2143_v41 }
  0x8e   : > { %2000 = vmatprep.subr.bf16.mxu0 %v2174_v1 }
  0x91   : > { %2001 = vmatpush3.bf16.msra.mxu0 %v2144_v42 }
  0x92   : > { %2002 = vmatprep.subr.bf16.mxu0 %v2174_v1 }
  0x95   : > { %2003 = vmatpush3.bf16.msra.mxu0 %v2145_v43 }
  0x96   : > { %2004 = vmatprep.subr.bf16.mxu0 %v2174_v1 }
  0x99   : > { %2005 = vmatpush3.bf16.msra.mxu0 %v2146_v44 }
  0x9a   : > { %2006 = vmatprep.subr.bf16.mxu0 %v2174_v1 }
  0x9d   : > { %2007 = vmatpush3.bf16.msra.mxu0 %v2147_v45 }
  0x9e   : > { %2008 = vmatprep.subr.bf16.mxu0 %v2174_v1 }
  0xa1   : > { %2009 = vmatpush3.bf16.msra.mxu0 %v2148_v46 }
  0xa2   : > { %2010 = vmatprep.subr.bf16.mxu0 %v2174_v1  ;;  %v1751_v1 = vld [vmem:[%s2591_s3] ss:$0 sm:$0xff] }
  0xa5   : > { %2011 = vmatpush3.bf16.msra.mxu0 %v2149_v47 }
  0xa8   : > { %2013 = vmatmul.mubr.bf16.vlgmr.msra.gmra.mrb[0].mxu0 %v1142_v22 }
 0x15a   : > { %v792_v48 = vpop.f32.mrb[0].mxu1 }
 0x15b   : > { %v1914_v49 = vpop.f32.mrb[1].mxu1 }
 0x15c   : > { %v795_v50 = vpop.f32.mrb[2].mxu1 }
 0x15d   : > { %v1915_v51 = vpop.f32.mrb[3].mxu1 }
 0x17b   : > { %v1360_v52 = vpop.f32.mrb[0].mxu0 }
 0x17c   : > { %v2016_v55 = vadd.f32 %v1360_v52, %v792_v48  ;;  %v2014_v56 = vpop.f32.mrb[1].mxu0 }
 0x17d   : > { %v1363_v57 = vpop.f32.mrb[2].mxu0 }
 0x17e   : > { %v1374_v58 = vmul.f32 %v2016_v55, %v1750_v53  ;;  %v2015_v60 = vpop.f32.mrb[3].mxu0 }
 0x180   : > { %v1382_v61 = vadd.f32 %v1751_v1, %v1374_v58 }
 0x182   : > { %v1385_v62 = vadd.f32 %v1384_v59, %v1382_v61 }
 0x184   : > { %v1386_v63 = vmax.f32 %v1385_v62, 0.0 }
 0x186   : > { %v1387_v0 = vpack.c.bf16 %v1386_v63, %v1386_v63 }
 0x188   : > { %1388 = vst [vmem:[%s341_s11] sm:$0xf] %v1387_v0 }
 0x189 PF: > { %s15_s20 = sadd.s32 1, %s2172_s20   ;;  %s2594_s18 = smov %s2168_s19 }
 0x18a   : > { %p12_p5 = scmp.ge.s32.totalorder %s15_s20, 4   ;;  %s2595_s19 = smov %s2597_s21 }
 0x18c   :  { %14 = sbr.rel (!%p12_p5) target bundleno = 2 (0x2), region = 90 }

// kernel: resnet_encoder_forward.35
= control target key start
LH: loop header
LB: loop body
LE: loop exit
PB: predicated region body
PF: predicated region fallthrough
CT: control target
= control target key end

     0   :  { %s2113_s15 = smov 0   ;;  %s2115_s16 = smov 0   ;;  %s2492_s0 = inlined_call_operand.vmem [shape: bf16[2,1,16,128], index: 0, kind: input, shape index: {}]   ;;  %s2493_s1 = inlined_call_operand.vmem [shape: bf16[9,128,128], index: 1, kind: input, shape index: {}]   ;;  %s2494_s2 = inlined_call_operand.vmem [shape: f32[1,128], index: 2, kind: input, shape index: {}]   ;;  %s2495_s3 = inlined_call_operand.vmem [shape: f32[1,128], index: 3, kind: input, shape index: {}]   ;;  %s2496_s4 = inlined_call_operand.vmem [shape: bf16[2,8,128], index: 4, kind: output, shape index: {}]  }
   0x1   :  { %s2117_s17 = smov 0  }
   0x2 LB: > { %s33_s18 = sadd.s32 1, %s2080_s16  ;;  %p1451_p0 = scmp.ge.s32.totalorder %s2084_s17, 1  ;;  %s2084_s17 = sphi %s2117_s17, %s14_s17   ;;  %s2080_s16 = sphi %s2115_s16, %s2498_s16   ;;  %s2076_s15 = sphi %s2113_s15, %s2497_s15  }
   0x3   : > { %p35_p1 = scmp.ge.s32.totalorder %s33_s18, 2  ;;  %p210_p2 = scmp.lt.s32.totalorder %s2084_s17, 3 }
   0x5   : > { %s2500_s18 = smov (%p35_p1, %s33_s18), 0  ;;  %p211_p3 = pnand %p1451_p0, %p210_p2 }
   0x6   : > { %v1983_v0 = vld [vmem:[%s2493_s1 + $0x40] sm:$0xff] (!%p211_p3)   ;;  %v2086_v1 = vmov (!%p211_p3), 0.0   ;;  %v1985_v3 = vld [vmem:[%s2493_s1 + $0x48] sm:$0xff] (!%p211_p3)   ;;  %vm2087_vm0 = vmmov (!%p211_p3), 0   ;;  %p251_p4 = scmp.lt.s32.totalorder (!%p211_p3), %s2076_s15, 1  ;;  %v1987_v5 = vld [vmem:[%s2493_s1 + $0x50] sm:$0xff] (!%p211_p3)  }
   0x7   : > { %214 = sbr.rel (%p211_p3) target bundleno = 391 (0x187), region = 36  ;;  %1748 = vmatprep.subr.bf16.mxu1 (!%p211_p3), %v2086_v1  ;;  %1828 = vmatprep.subr.bf16.mxu0 (!%p211_p3), %v2086_v1  ;;  %v1984_v2 = vld [vmem:[%s2493_s1 + $0x100] sm:$0xff] (!%p211_p3)   ;;  %v1986_v4 = vld [vmem:[%s2493_s1 + $0x108] sm:$0xff] (!%p211_p3)   ;;  %v1988_v6 = vld [vmem:[%s2493_s1 + $0x110] sm:$0xff] (!%p211_p3)  }
   0x8   : > { %1749 = vmatpush3.bf16.msra.mxu1 (!%p211_p3), %v1983_v0  ;;  %1764 = vmatprep.mubr.msk.bf16.mxu1 (!%p211_p3), %vm2087_vm0, %v2086_v1  ;;  %v1989_v7 = vld [vmem:[%s2493_s1 + $0x58] sm:$0xff] (!%p211_p3)   ;;  %v1991_v9 = vld [vmem:[%s2493_s1 + $0x60] sm:$0xff] (!%p211_p3)   ;;  %v1993_v15 = vld [vmem:[%s2493_s1 + $0x68] sm:$0xff] (!%p211_p3)  }
   0x9   : > { %1829 = vmatpush3.bf16.msra.mxu0 (!%p211_p3), %v1984_v2  ;;  %1750 = vmatprep.subr.bf16.mxu1 (!%p211_p3), %v2086_v1  ;;  %v1990_v8 = vld [vmem:[%s2493_s1 + $0x118] sm:$0xff] (!%p211_p3)   ;;  %v1992_v10 = vld [vmem:[%s2493_s1 + $0x120] sm:$0xff] (!%p211_p3)   ;;  %v1994_v18 = vld [vmem:[%s2493_s1 + $0x128] sm:$0xff] (!%p211_p3)  }
   0xa   : > { %1830 = vmatprep.subr.bf16.mxu0 (!%p211_p3), %v2086_v1  ;;  %1844 = vmatprep.mubr.msk.bf16.mxu0 (!%p211_p3), %vm2087_vm0, %v2086_v1  ;;  %v1995_v21 = vld [vmem:[%s2493_s1 + $0x70] sm:$0xff] (!%p211_p3)   ;;  %v1997_v26 = vld [vmem:[%s2493_s1 + $0x78] sm:$0xff] (!%p211_p3)   ;;  %v2000_v30 = vld [vmem:[%s2493_s1] sm:$0xff] (!%p211_p3)  }
   0xb   : > { %v1996_v22 = vld [vmem:[%s2493_s1 + $0x130] sm:$0xff] (!%p211_p3)   ;;  %v1998_v28 = vld [vmem:[%s2493_s1 + $0x138] sm:$0xff] (!%p211_p3)   ;;  %v2004_v32 = vld [vmem:[%s2493_s1 + $0x140] sm:$0xff] (!%p211_p3)  }
   0xc   : > { %1751 = vmatpush3.bf16.msra.mxu1 (!%p211_p3), %v1985_v3  ;;  %v2005_v33 = vld [vmem:[%s2493_s1 + $0x8] sm:$0xff] (!%p211_p3)   ;;  %v2007_v35 = vld [vmem:[%s2493_s1 + $0x10] sm:$0xff] (!%p211_p3)   ;;  %v2009_v37 = vld [vmem:[%s2493_s1 + $0x18] sm:$0xff] (!%p211_p3)  }
   0xd   : > { %1831 = vmatpush3.bf16.msra.mxu0 (!%p211_p3), %v1986_v4  ;;  %1752 = vmatprep.subr.bf16.mxu1 (!%p211_p3), %v2086_v1  ;;  %v2006_v34 = vld [vmem:[%s2493_s1 + $0x148] sm:$0xff] (!%p211_p3)   ;;  %v2008_v36 = vld [vmem:[%s2493_s1 + $0x150] sm:$0xff] (!%p211_p3)   ;;  %v2010_v38 = vld [vmem:[%s2493_s1 + $0x158] sm:$0xff] (!%p211_p3)  }
   0xe   : > { %s2502_s15 = smov (!%p251_p4, %s2076_s15), 1  ;;  %1832 = vmatprep.subr.bf16.mxu0 %v2086_v1  ;;  %v2011_v40 = vld [vmem:[%s2493_s1 + $0x20] sm:$0xff]   ;;  %v2013_v43 = vld [vmem:[%s2493_s1 + $0x28] sm:$0xff]   ;;  %v2015_v47 = vld [vmem:[%s2493_s1 + $0x30] sm:$0xff]  }
   0xf   : > { %s1666_s7 = sshll.u32 %s2502_s15, 3  ;;  %v2012_v41 = vld [vmem:[%s2493_s1 + $0x160] sm:$0xff]   ;;  %v2014_v44 = vld [vmem:[%s2493_s1 + $0x168] sm:$0xff]   ;;  %v2016_v48 = vld [vmem:[%s2493_s1 + $0x170] sm:$0xff]   ;;  %s1454_s21 = sshll.u32 %s2502_s15, 2 }
  0x10   : > { %1753 = vmatpush3.bf16.msra.mxu1 %v1987_v5  ;;  %s2173_s12 = scalar_lea.vmem %s2492_s0, %s1666_s7  ;;  %v2017_v51 = vld [vmem:[%s2493_s1 + $0x38] sm:$0xff]   ;;  %v2019_v54 = vld [vmem:[%s2493_s1 + $0x80] sm:$0xff]   ;;  %v2021_v57 = vld [vmem:[%s2493_s1 + $0x88] sm:$0xff]   ;;  %s275_s24 = scalar_lea.vmem %s2496_s4, %s1454_s21 }
  0x11   : > { %1833 = vmatpush3.bf16.msra.mxu0 %v1988_v6  ;;  %1754 = vmatprep.subr.bf16.mxu1 %v2086_v1  ;;  %v294_v11 = vld [vmem:[%s2173_s12] sm:$0xf]  ;;  %v2185_v12 = vld [vmem:[%s2173_s12 + $0x4] sm:$0x1]  ;;  %v2018_v52 = vld [vmem:[%s2493_s1 + $0x178] sm:$0xff]  }
  0x12   : > { %1834 = vmatprep.subr.bf16.mxu0 %v2086_v1  ;;  %v1471_v13 = vcombine.low %v294_v11, %v2185_v12  ;;  %v2189_v14 = vld [vmem:[%s2173_s12] sm:$0xe]  ;;  %v614_v16 = vld [vmem:[%s2173_s12 + $0x4] sm:$0x3]  ;;  %v2022_v58 = vld [vmem:[%s2493_s1 + $0x188] sm:$0xff]  }
  0x13   : > { %v1504_v17 = vcombine.low %v2189_v14, %v2185_v12  ;;  %v2202_v19 = vcombine.low %v2189_v14, %v614_v16  ;;  %v733_v23 = vld [vmem:[%s2173_s12] sm:$0xc]  ;;  %v2259_v39 = vld [vmem:[%s2173_s12 + $0x4] sm:$0x7]  ;;  %v2023_v59 = vld [vmem:[%s2493_s1 + $0x90] sm:$0xff]  }
  0x14   : > { %1755 = vmatpush3.bf16.msra.mxu1 %v1989_v7  ;;  %v321_v20 = vshll.u32 %v1471_v13, 16  ;;  %v319_v24 = vshrl.u32 %v1471_v13, 16  ;;  %v1554_v27 = vcombine.low %v733_v23, %v614_v16  ;;  %v1579_v42 = vcombine.low %v733_v23, %v2259_v39  ;;  %v277_v53 = vld [vmem:[%s2173_s12] sm:$0xf]  ;;  %v2024_v60 = vld [vmem:[%s2493_s1 + $0x190] sm:$0xff]   ;;  %v2025_v61 = vld [vmem:[%s2493_s1 + $0x98] sm:$0xff]  }
  0x15   : > { %1835 = vmatpush3.bf16.msra.mxu0 %v1990_v8  ;;  %1756 = vmatprep.subr.bf16.mxu1 %v2086_v1  ;;  %v2020_v56 = vld [vmem:[%s2493_s1 + $0x180] sm:$0xff]   ;;  %v2026_v62 = vld [vmem:[%s2493_s1 + $0x198] sm:$0xff]   ;;  %v2029_v2 = vld [vmem:[%s2493_s1 + $0xa8] sm:$0xff]  }
  0x16   : > { %1836 = vmatprep.subr.bf16.mxu0 %v2086_v1  ;;  %v323_v25 = vrot.slane %v321_v20, 1  ;;  %v754_v31 = vrot.slane %v1554_v27, 2  ;;  %v867_v45 = vshrl.u32 %v1579_v42, 16  ;;  %v870_v46 = vshll.u32 %v1579_v42, 16  ;;  %v2027_v63 = vld [vmem:[%s2493_s1 + $0xa0] sm:$0xff]   ;;  %v2030_v3 = vld [vmem:[%s2493_s1 + $0x1a8] sm:$0xff]  }
  0x17   : > { %v2028_v0 = vld [vmem:[%s2493_s1 + $0x1a0] sm:$0xff]   ;;  %v2031_v4 = vld [vmem:[%s2493_s1 + $0xb0] sm:$0xff]   ;;  %v2033_v7 = vld [vmem:[%s2493_s1 + $0xb8] sm:$0xff]   ;;  %v636_v27 = vshrl.u32 %v2202_v19, 16 }
  0x18   : > { %1757 = vmatpush3.bf16.msra.mxu1 %v1991_v9  ;;  %v324_v29 = vor.u32 %v323_v25, %v319_v24  ;;  %v869_v49 = vrot.slane %v867_v45, 2  ;;  %v872_v50 = vrot.slane %v870_v46, 3  ;;  %v2032_v5 = vld [vmem:[%s2493_s1 + $0x1b0] sm:$0xff]   ;;  %v964_v6 = vld [vmem:[%s2173_s12] sm:$0x8]  ;;  %v2034_v9 = vld [vmem:[%s2493_s1 + $0x1b8] sm:$0xff]  }
  0x19   : > { %1837 = vmatpush3.bf16.msra.mxu0 %v1992_v10  ;;  %1758 = vmatprep.subr.bf16.mxu1 %v2086_v1  ;;  %v1604_v8 = vcombine.low %v964_v6, %v2259_v39  ;;  %v523_v10 = vrot.slane %v1504_v17, 1  ;;  %v2036_v11 = vld [vmem:[%s2493_s1 + $0xc0] sm:$0xff]   ;;  %v2040_v12 = vld [vmem:[%s2493_s1 + $0xc8] sm:$0xff]   ;;  %v2042_v16 = vld [vmem:[%s2493_s1 + $0xd0] sm:$0xff]  }
  0x1a   : > { %1838 = vmatprep.subr.bf16.mxu0 %v2086_v1  ;;  %v873_v55 = vor.u32 %v872_v50, %v869_v49  ;;  %v2041_v14 = vld [vmem:[%s2493_s1 + $0x1c8] sm:$0xff]   ;;  %v2043_v17 = vld [vmem:[%s2493_s1 + $0x1d0] sm:$0xff]   ;;  %v2045_v20 = vld [vmem:[%s2493_s1 + $0x1d8] sm:$0xff]  }
  0x1b   : > { %v985_v13 = vrot.slane %v1604_v8, 3  ;;  %v2047_v23 = vld [vmem:[%s2493_s1 + $0x1e0] sm:$0xff]   ;;  %v2048_v25 = vld [vmem:[%s2493_s1 + $0xe8] sm:$0xff]   ;;  %v2056_v42 = vld [vmem:[%s2493_s1 + $0x210] sm:$0xff]  }
  0x1c   : > { %1759 = vmatpush3.bf16.msra.mxu1 %v1993_v15  ;;  %v2039_v15 = vld [vmem:[%s2493_s1 + $0x1c0] sm:$0xff]   ;;  %v2059_v45 = vld [vmem:[%s2493_s1 + $0x228] sm:$0xff]   ;;  %v2060_v46 = vld [vmem:[%s2493_s1 + $0x230] sm:$0xff]  }
  0x1d   : > { %1839 = vmatpush3.bf16.msra.mxu0 %v1994_v18  ;;  %1760 = vmatprep.subr.bf16.mxu1 %v2086_v1  ;;  %v2044_v18 = vld [vmem:[%s2493_s1 + $0xd8] sm:$0xff]  }
  0x1e   : > { %1840 = vmatprep.subr.bf16.mxu0 %v2086_v1 }
  0x20   : > { %1761 = vmatpush3.bf16.msra.mxu1 %v1995_v21  ;;  %v2046_v21 = vld [vmem:[%s2493_s1 + $0xe0] sm:$0xff]  }
  0x21   : > { %1841 = vmatpush3.bf16.msra.mxu0 %v1996_v22  ;;  %1762 = vmatprep.subr.bf16.mxu1 %v2086_v1  ;;  %v1076_v22 = vld [vmem:[%s2173_s12 + $0x4] sm:$0xf] }
  0x22   : > { %1842 = vmatprep.subr.bf16.mxu0 %v2086_v1  ;;  %v1629_v24 = vcombine.low %v964_v6, %v1076_v22 }
  0x24   : > { %1763 = vmatpush3.bf16.msra.mxu1 %v1997_v26  ;;  %v2049_v26 = vld [vmem:[%s2493_s1 + $0x1e8] sm:$0xff]  }
  0x25   : > { %1843 = vmatpush3.bf16.msra.mxu0 %v1998_v28  ;;  %1768 = vmatprep.subr.bf16.mxu1 %v2086_v1  ;;  %v639_v28 = vshll.u32 %v2202_v19, 16  ;;  %v2052_v19 = vld [vmem:[%s2493_s1 + $0xf8] sm:$0xff]  }
  0x26   : > { %1848 = vmatprep.subr.bf16.mxu0 %v2086_v1 }
  0x27   : > { %1765 = vmatmul.mubr.bf16.vlgmr.msra.gmra.mrb[0].mxu1 %v324_v29  ;;  %v2050_v29 = vld [vmem:[%s2493_s1 + $0xf0] sm:$0xff]  }
  0x28   : > { %1769 = vmatpush3.bf16.msra.mxu1 %v2000_v30  ;;  %1845 = vmatmul.mubr.bf16.vlgmr.msra.gmra.mrb[0].mxu0 %v754_v31  ;;  %v1098_v30 = vshrl.u32 %v1629_v24, 16  ;;  %v1101_v31 = vshll.u32 %v1629_v24, 16 }
  0x29   : > { %1849 = vmatpush3.bf16.msra.mxu0 %v2004_v32  ;;  %1770 = vmatprep.subr.bf16.mxu1 %v2086_v1  ;;  %v2051_v32 = vld [vmem:[%s2493_s1 + $0x1f0] sm:$0xff]  }
  0x2a   : > { %1850 = vmatprep.subr.bf16.mxu0 %v2086_v1  ;;  %1784 = vmatprep.mubr.msk.bf16.mxu1 %vm2087_vm0, %v2086_v1 }
  0x2b   : > { %1864 = vmatprep.mubr.msk.bf16.mxu0 %vm2087_vm0, %v2086_v1 }
  0x2c   : > { %1771 = vmatpush3.bf16.msra.mxu1 %v2005_v33  ;;  %v638_v33 = vrot.slane %v636_v27, 1 }
  0x2d   : > { %1851 = vmatpush3.bf16.msra.mxu0 %v2006_v34  ;;  %1772 = vmatprep.subr.bf16.mxu1 %v2086_v1  ;;  %v641_v34 = vrot.slane %v639_v28, 2 }
  0x2e   : > { %1852 = vmatprep.subr.bf16.mxu0 %v2086_v1 }
  0x30   : > { %1773 = vmatpush3.bf16.msra.mxu1 %v2007_v35  ;;  %v1100_v35 = vrot.slane %v1098_v30, 3 }
  0x31   : > { %1853 = vmatpush3.bf16.msra.mxu0 %v2008_v36  ;;  %1774 = vmatprep.subr.bf16.mxu1 %v2086_v1  ;;  %v1103_v36 = vrot.slane %v1101_v31, 4 }
  0x32   : > { %1854 = vmatprep.subr.bf16.mxu0 %v2086_v1 }
  0x33   : > { %v1104_v39 = vor.u32 %v1103_v36, %v1100_v35 }
  0x34   : > { %1775 = vmatpush3.bf16.msra.mxu1 %v2009_v37  ;;  %v2053_v37 = vld [vmem:[%s2493_s1 + $0x1f8] sm:$0xff]  }
  0x35   : > { %1855 = vmatpush3.bf16.msra.mxu0 %v2010_v38  ;;  %1776 = vmatprep.subr.bf16.mxu1 %v2086_v1  ;;  %v642_v38 = vor.u32 %v641_v34, %v638_v33 }
  0x36   : > { %1856 = vmatprep.subr.bf16.mxu0 %v2086_v1 }
  0x38   : > { %1777 = vmatpush3.bf16.msra.mxu1 %v2011_v40  ;;  %v2054_v40 = vld [vmem:[%s2493_s1 + $0x200] sm:$0xff]  }
  0x39   : > { %1857 = vmatpush3.bf16.msra.mxu0 %v2012_v41  ;;  %1778 = vmatprep.subr.bf16.mxu1 %v2086_v1  ;;  %v2055_v41 = vld [vmem:[%s2493_s1 + $0x208] sm:$0xff]  }
  0x3a   : > { %1858 = vmatprep.subr.bf16.mxu0 %v2086_v1 }
  0x3c   : > { %1779 = vmatpush3.bf16.msra.mxu1 %v2013_v43  ;;  %v2057_v43 = vld [vmem:[%s2493_s1 + $0x218] sm:$0xff]  }
  0x3d   : > { %1859 = vmatpush3.bf16.msra.mxu0 %v2014_v44  ;;  %1780 = vmatprep.subr.bf16.mxu1 %v2086_v1  ;;  %v2058_v44 = vld [vmem:[%s2493_s1 + $0x220] sm:$0xff]  }
  0x3e   : > { %1860 = vmatprep.subr.bf16.mxu0 %v2086_v1 }
  0x40   : > { %1781 = vmatpush3.bf16.msra.mxu1 %v2015_v47  ;;  %v2061_v47 = vld [vmem:[%s2493_s1 + $0x238] sm:$0xff]  }
  0x41   : > { %1861 = vmatpush3.bf16.msra.mxu0 %v2016_v48  ;;  %1782 = vmatprep.subr.bf16.mxu1 %v2086_v1 }
  0x42   : > { %1862 = vmatprep.subr.bf16.mxu0 %v2086_v1 }
  0x44   : > { %1783 = vmatpush3.bf16.msra.mxu1 %v2017_v51 }
  0x45   : > { %1863 = vmatpush3.bf16.msra.mxu0 %v2018_v52  ;;  %1788 = vmatprep.subr.bf16.mxu1 %v2086_v1 }
  0x46   : > { %1868 = vmatprep.subr.bf16.mxu0 %v2086_v1 }
  0x47   : > { %1785 = vmatmul.mubr.bf16.vlgmr.msra.gmra.mrb[0].mxu1 %v277_v53  ;;  %v1662_v53 = vld [vmem:[%s2494_s2] ss:$0 sm:$0xff] }
  0x48   : > { %1789 = vmatpush3.bf16.msra.mxu1 %v2019_v54  ;;  %1865 = vmatmul.mubr.bf16.vlgmr.msra.gmra.mrb[0].mxu0 %v873_v55 }
  0x49   : > { %1869 = vmatpush3.bf16.msra.mxu0 %v2020_v56  ;;  %1790 = vmatprep.subr.bf16.mxu1 %v2086_v1  ;;  %v1663_v56 = vld [vmem:[%s2495_s3] ss:$0 sm:$0xff] }
  0x4a   : > { %1870 = vmatprep.subr.bf16.mxu0 %v2086_v1  ;;  %1804 = vmatprep.mubr.msk.bf16.mxu1 %vm2087_vm0, %v2086_v1 }
  0x4b   : > { %1884 = vmatprep.mubr.msk.bf16.mxu0 %vm2087_vm0, %v2086_v1 }
  0x4c   : > { %1791 = vmatpush3.bf16.msra.mxu1 %v2021_v57 }
  0x4d   : > { %1871 = vmatpush3.bf16.msra.mxu0 %v2022_v58  ;;  %1792 = vmatprep.subr.bf16.mxu1 %v2086_v1 }
  0x4e   : > { %1872 = vmatprep.subr.bf16.mxu0 %v2086_v1 }
  0x50   : > { %1793 = vmatpush3.bf16.msra.mxu1 %v2023_v59 }
  0x51   : > { %1873 = vmatpush3.bf16.msra.mxu0 %v2024_v60  ;;  %1794 = vmatprep.subr.bf16.mxu1 %v2086_v1 }
  0x52   : > { %1874 = vmatprep.subr.bf16.mxu0 %v2086_v1 }
  0x54   : > { %1795 = vmatpush3.bf16.msra.mxu1 %v2025_v61 }
  0x55   : > { %1875 = vmatpush3.bf16.msra.mxu0 %v2026_v62  ;;  %1796 = vmatprep.subr.bf16.mxu1 %v2086_v1 }
  0x56   : > { %1876 = vmatprep.subr.bf16.mxu0 %v2086_v1 }
  0x58   : > { %1797 = vmatpush3.bf16.msra.mxu1 %v2027_v63 }
  0x59   : > { %1877 = vmatpush3.bf16.msra.mxu0 %v2028_v0  ;;  %1798 = vmatprep.subr.bf16.mxu1 %v2086_v1 }
  0x5a   : > { %1878 = vmatprep.subr.bf16.mxu0 %v2086_v1 }
  0x5c   : > { %1799 = vmatpush3.bf16.msra.mxu1 %v2029_v2 }
  0x5d   : > { %1879 = vmatpush3.bf16.msra.mxu0 %v2030_v3  ;;  %1800 = vmatprep.subr.bf16.mxu1 %v2086_v1 }
  0x5e   : > { %1880 = vmatprep.subr.bf16.mxu0 %v2086_v1 }
  0x60   : > { %1801 = vmatpush3.bf16.msra.mxu1 %v2031_v4 }
  0x61   : > { %1881 = vmatpush3.bf16.msra.mxu0 %v2032_v5  ;;  %1802 = vmatprep.subr.bf16.mxu1 %v2086_v1 }
  0x62   : > { %1882 = vmatprep.subr.bf16.mxu0 %v2086_v1 }
  0x64   : > { %1803 = vmatpush3.bf16.msra.mxu1 %v2033_v7 }
  0x65   : > { %1883 = vmatpush3.bf16.msra.mxu0 %v2034_v9  ;;  %1808 = vmatprep.subr.bf16.mxu1 %v2086_v1 }
  0x66   : > { %1888 = vmatprep.subr.bf16.mxu0 %v2086_v1 }
  0x67   : > { %1805 = vmatmul.mubr.bf16.vlgmr.msra.gmra.mrb[0].mxu1 %v523_v10 }
  0x68   : > { %1809 = vmatpush3.bf16.msra.mxu1 %v2036_v11  ;;  %1885 = vmatmul.mubr.bf16.vlgmr.msra.gmra.mrb[0].mxu0 %v985_v13 }
  0x69   : > { %1889 = vmatpush3.bf16.msra.mxu0 %v2039_v15  ;;  %1810 = vmatprep.subr.bf16.mxu1 %v2086_v1 }
  0x6a   : > { %1890 = vmatprep.subr.bf16.mxu0 %v2086_v1  ;;  %1824 = vmatprep.mubr.msk.bf16.mxu1 %vm2087_vm0, %v2086_v1 }
  0x6b   : > { %1904 = vmatprep.mubr.msk.bf16.mxu0 %vm2087_vm0, %v2086_v1 }
  0x6c   : > { %1811 = vmatpush3.bf16.msra.mxu1 %v2040_v12 }
  0x6d   : > { %1891 = vmatpush3.bf16.msra.mxu0 %v2041_v14  ;;  %1812 = vmatprep.subr.bf16.mxu1 %v2086_v1 }
  0x6e   : > { %1892 = vmatprep.subr.bf16.mxu0 %v2086_v1 }
  0x70   : > { %1813 = vmatpush3.bf16.msra.mxu1 %v2042_v16 }
  0x71   : > { %1893 = vmatpush3.bf16.msra.mxu0 %v2043_v17  ;;  %1814 = vmatprep.subr.bf16.mxu1 %v2086_v1 }
  0x72   : > { %1894 = vmatprep.subr.bf16.mxu0 %v2086_v1 }
  0x74   : > { %1815 = vmatpush3.bf16.msra.mxu1 %v2044_v18 }
  0x75   : > { %1895 = vmatpush3.bf16.msra.mxu0 %v2045_v20  ;;  %1816 = vmatprep.subr.bf16.mxu1 %v2086_v1 }
  0x76   : > { %1896 = vmatprep.subr.bf16.mxu0 %v2086_v1 }
  0x78   : > { %1817 = vmatpush3.bf16.msra.mxu1 %v2046_v21 }
  0x79   : > { %1897 = vmatpush3.bf16.msra.mxu0 %v2047_v23  ;;  %1818 = vmatprep.subr.bf16.mxu1 %v2086_v1 }
  0x7a   : > { %1898 = vmatprep.subr.bf16.mxu0 %v2086_v1 }
  0x7c   : > { %1819 = vmatpush3.bf16.msra.mxu1 %v2048_v25 }
  0x7d   : > { %1899 = vmatpush3.bf16.msra.mxu0 %v2049_v26  ;;  %1820 = vmatprep.subr.bf16.mxu1 %v2086_v1 }
  0x7e   : > { %1900 = vmatprep.subr.bf16.mxu0 %v2086_v1 }
  0x80   : > { %1821 = vmatpush3.bf16.msra.mxu1 %v2050_v29 }
  0x81   : > { %1901 = vmatpush3.bf16.msra.mxu0 %v2051_v32  ;;  %1822 = vmatprep.subr.bf16.mxu1 %v2086_v1 }
  0x82   : > { %1902 = vmatprep.subr.bf16.mxu0 %v2086_v1 }
  0x84   : > { %1823 = vmatpush3.bf16.msra.mxu1 %v2052_v19 }
  0x85   : > { %1903 = vmatpush3.bf16.msra.mxu0 %v2053_v37 }
  0x86   : > { %1908 = vmatprep.subr.bf16.mxu0 %v2086_v1 }
  0x87   : > { %1825 = vmatmul.mubr.bf16.vlgmr.msra.gmra.mrb[0].mxu1 %v642_v38 }
  0x88   : > { %1905 = vmatmul.mubr.bf16.vlgmr.msra.gmra.mrb[0].mxu0 %v1104_v39 }
  0x89   : > { %1909 = vmatpush3.bf16.msra.mxu0 %v2054_v40  ;;  %1924 = vmatprep.mubr.msk.bf16.mxu0 %vm2087_vm0, %v2086_v1 }
  0x8a   : > { %1910 = vmatprep.subr.bf16.mxu0 %v2086_v1 }
  0x8d   : > { %1911 = vmatpush3.bf16.msra.mxu0 %v2055_v41 }
  0x8e   : > { %1912 = vmatprep.subr.bf16.mxu0 %v2086_v1 }
  0x91   : > { %1913 = vmatpush3.bf16.msra.mxu0 %v2056_v42 }
  0x92   : > { %1914 = vmatprep.subr.bf16.mxu0 %v2086_v1 }
  0x95   : > { %1915 = vmatpush3.bf16.msra.mxu0 %v2057_v43 }
  0x96   : > { %1916 = vmatprep.subr.bf16.mxu0 %v2086_v1 }
  0x99   : > { %1917 = vmatpush3.bf16.msra.mxu0 %v2058_v44 }
  0x9a   : > { %1918 = vmatprep.subr.bf16.mxu0 %v2086_v1 }
  0x9d   : > { %1919 = vmatpush3.bf16.msra.mxu0 %v2059_v45 }
  0x9e   : > { %1920 = vmatprep.subr.bf16.mxu0 %v2086_v1 }
  0xa1   : > { %1921 = vmatpush3.bf16.msra.mxu0 %v2060_v46 }
  0xa2   : > { %1922 = vmatprep.subr.bf16.mxu0 %v2086_v1 }
  0xa5   : > { %1923 = vmatpush3.bf16.msra.mxu0 %v2061_v47 }
  0xa8   : > { %1925 = vmatmul.mubr.bf16.vlgmr.msra.gmra.mrb[0].mxu0 %v1076_v22 }
 0x15a   : > { %v726_v48 = vpop.f32.mrb[0].mxu1 }
 0x15b   : > { %v1826_v49 = vpop.f32.mrb[1].mxu1 }
 0x15c   : > { %v729_v50 = vpop.f32.mrb[2].mxu1 }
 0x15d   : > { %v1827_v51 = vpop.f32.mrb[3].mxu1 }
 0x17b   : > { %v1294_v52 = vpop.f32.mrb[0].mxu0 }
 0x17c   : > { %v1928_v54 = vadd.f32 %v1294_v52, %v726_v48  ;;  %v1926_v55 = vpop.f32.mrb[1].mxu0 }
 0x17d   : > { %v1297_v57 = vpop.f32.mrb[2].mxu0 }
 0x17e   : > { %v1308_v58 = vmul.f32 %v1928_v54, %v1662_v53  ;;  %v1927_v1 = vpop.f32.mrb[3].mxu0 }
 0x180   : > { %v1316_v59 = vadd.f32 %v1663_v56, %v1308_v58 }
 0x182   : > { %v1317_v60 = vmax.f32 %v1316_v59, 0.0 }
 0x184   : > { %v1318_v61 = vpack.c.bf16 %v1317_v60, %v1317_v60 }
 0x186   : > { %1319 = vst [vmem:[%s275_s24] sm:$0xf] %v1318_v61 }
 0x187 PF: > { %s14_s17 = sadd.s32 1, %s2084_s17   ;;  %s2497_s15 = smov %s2080_s16 }
 0x188   : > { %p11_p5 = scmp.ge.s32.totalorder %s14_s17, 4   ;;  %s2498_s16 = smov %s2500_s18 }
 0x18a   :  { %13 = sbr.rel (!%p11_p5) target bundleno = 2 (0x2), region = 83 }

</bundles_post_ra>
